<compile_context>
chip_gen: v6e
topology: v6e:2x2x1
jax: 0.10.0
libtpu: 0.0.40
codegen_flags: <defaults>
</compile_context>

<pallas_src>
import numpy as np

import jax
import jax.numpy as jnp
from jax.experimental import pallas as pl
from jax.experimental.pallas import tpu as pltpu


B_TILE = 8   # images per grid step (demo value; 32-128 for production batches)


# -----------------------------------------------------------------------------
# Fused kernel: one batch tile (B_TILE images) per grid step.
#
# Row layout inside a tile (wrapper-packed): stage-1 input rows are ordered
# (t, i, b) with t = conv1-row parity inside each 2x2 pool pair, i = pooled2
# row window (0..3), b = image within the tile.  After the t-max, every
# intermediate has rows ordered (i, b), so all row accesses are static,
# 8-aligned contiguous slices.
#
# Lane layouts:
#   stage-1 out col = par*1536 + r6*256 + c*12 + x   (par = conv1 col parity,
#       r6 = pooled1 row offset 2i+r6, c = conv1 channel, x = pooled1 col)
#   stage-2 out col = s*512 + par2*256 + co*4 + x2   (s = conv2 row parity,
#       par2 = conv2 col parity, co = conv2 channel, x2 = pooled2 col)
# so both 2x2 max-pools are elementwise maxima of 128-aligned lane blocks.
# -----------------------------------------------------------------------------
def lenet5_kernel(x_ref, t1_ref, b1_ref, w2_ref, b2_ref, w3_ref, b3_ref,
                  w4_ref, b4_ref, prob_ref, logit_ref):
    f32 = jnp.float32
    bf16 = jnp.bfloat16
    bt = prob_ref.shape[0]          # images in this tile
    r4 = 4 * bt                     # rows per conv1-row-parity half

    # ---- Stage 1: conv1 (all 25 taps in one K=420 matmul) + pool + bias+ReLU
    y = jnp.dot(x_ref[...], t1_ref[...],
                preferred_element_type=f32)              # [8*bt, 3072]
    pre1 = jnp.maximum(y[:r4], y[r4:])                   # pool over row pairs
    p1 = jnp.maximum(pre1[:, 0:1536], pre1[:, 1536:3072])  # pool over col pairs
    p1 = jnp.maximum(p1 + b1_ref[...], 0.0).astype(bf16)   # [4*bt, 1536]

    # ---- Stage 2: conv2 (all 500 taps in one K=1536 matmul) + pool + bias+ReLU
    z2 = jnp.dot(p1, w2_ref[...], preferred_element_type=f32)   # [4*bt, 1024]
    q = jnp.maximum(jnp.maximum(z2[:, 0:200], z2[:, 256:456]),
                    jnp.maximum(z2[:, 512:712], z2[:, 768:968]))
    p2 = jnp.maximum(q + b2_ref[...], 0.0).astype(bf16)         # [4*bt, 200]
    # p2[i*bt + b, co*4 + x2] == pooled2[b, co, i, x2]

    # ---- Stage 3: ip1 (sum over the 4 pooled2 rows, contiguous blocks) + ReLU
    acc = None
    for i in range(4):
        d = jnp.dot(p2[i * bt:(i + 1) * bt, :], w3_ref[i],
                    preferred_element_type=f32)                 # [bt, 512]
        acc = d if acc is None else acc + d
    h = jnp.maximum(acc + b3_ref[...], 0.0).astype(bf16)        # [bt, 512]

    # ---- Stage 4: ip2 + sigmoid (lane-dense 128-wide outputs; 10..127 = pad)
    logits = jnp.dot(h, w4_ref[...],
                     preferred_element_type=f32) + b4_ref[...]  # [bt, 128]
    logit_ref[...] = logits
    prob_ref[...] = 1.0 / (1.0 + jnp.exp(-logits))


# -----------------------------------------------------------------------------
# One-time weight packing (hoisted out of the jitted forward).
# -----------------------------------------------------------------------------
def prepare_params(params):
    w1 = np.asarray(params["conv1_w"], np.float32)   # [20, 1, 5, 5]
    b1 = np.asarray(params["conv1_b"], np.float32)   # [20]
    w2 = np.asarray(params["conv2_w"], np.float32)   # [50, 20, 5, 5]
    b2 = np.asarray(params["conv2_b"], np.float32)   # [50]
    w3 = np.asarray(params["ip1_w"], np.float32)     # [500, 800]
    b3 = np.asarray(params["ip1_b"], np.float32)     # [500]
    w4 = np.asarray(params["ip2_w"], np.float32)     # [10, 500]
    b4 = np.asarray(params["ip2_b"], np.float32)     # [10]

    # Stage-1 banded matrix:
    # T1[k15*28 + w, par*1536 + r6*256 + c*12 + x] = W1[c, 0, k15 - 2*r6, w - (2x+par)]
    T1 = np.zeros((420, 3072), np.float32)
    for par in range(2):
        for r6 in range(6):
            for x in range(12):
                colbase = par * 1536 + r6 * 256 + x
                wbase = 2 * x + par
                for ki in range(5):
                    row0 = (2 * r6 + ki) * 28 + wbase
                    T1[row0:row0 + 5, colbase:colbase + 240:12] = w1[:, 0, ki, :].T

    # Stage-2 banded matrix:
    # W2B[r6*256 + c*12 + x, s*512 + par2*256 + co*4 + x2]
    #     = W2[co, c, r6 - s, x - (2*x2 + par2)]
    W2B = np.zeros((1536, 1024), np.float32)
    for s in range(2):
        for par2 in range(2):
            for x2 in range(4):
                colbase = s * 512 + par2 * 256 + x2
                xbase = 2 * x2 + par2
                for c in range(20):
                    for ki in range(5):
                        row0 = (s + ki) * 256 + c * 12 + xbase
                        W2B[row0:row0 + 5, colbase:colbase + 200:4] = w2[:, c, ki, :].T

    # ip1 weights split by pooled2 row i (torch flatten order co*16 + i*4 + x2),
    # output padded 500 -> 512 lanes.
    W3P = np.zeros((4, 200, 512), np.float32)
    for i in range(4):
        for x2 in range(4):
            W3P[i, x2::4, :500] = w3[:, (i * 4 + x2)::16].T

    # ip2 weights, transposed and padded (rows 500..511 and cols 10..127 zero).
    W4P = np.zeros((512, 128), np.float32)
    W4P[:500, :10] = w4.T

    # Biases broadcast to the kernel's column layouts (pad lanes zero).
    b1e = np.zeros((1, 1536), np.float32)
    rep1 = np.repeat(b1, 12)
    for r6 in range(6):
        b1e[0, r6 * 256:r6 * 256 + 240] = rep1
    b2e = np.repeat(b2, 4)[None, :].astype(np.float32)        # [1, 200]
    b3e = np.zeros((1, 512), np.float32); b3e[0, :500] = b3
    b4e = np.zeros((1, 128), np.float32); b4e[0, :10] = b4

    return {
        "t1": jnp.asarray(T1).astype(jnp.bfloat16),
        "b1": jnp.asarray(b1e),
        "w2b": jnp.asarray(W2B).astype(jnp.bfloat16),
        "b2": jnp.asarray(b2e),
        "w3": jnp.asarray(W3P).astype(jnp.bfloat16),
        "b3": jnp.asarray(b3e),
        "w4": jnp.asarray(W4P).astype(jnp.bfloat16),
        "b4": jnp.asarray(b4e),
    }


# -----------------------------------------------------------------------------
# Input packing + forward pass: one pallas_call, grid over batch tiles.
# -----------------------------------------------------------------------------
def _pack_stage1(img_bf16, b_tile):
    """Pack conv1 input windows into MXU-ready rows, (t, i, b)-ordered per tile.

    Output row (t*4 + i)*b_tile + b, lane k15*28 + w  holds  img[b, 4i+t+k15, w].
    """
    B = img_bf16.shape[0]
    rows = 4 * np.arange(4)[:, None] + np.arange(15)[None, :]     # [4, 15]
    halves = []
    for t in range(2):                      # conv1-row parity in each pool pair
        g = img_bf16[:, rows + t, :]        # [B, 4, 15, 28]
        halves.append(g.reshape(B, 4, 15 * 28))
    g = jnp.stack(halves, axis=1)           # [B, 2, 4, 420]
    g = g.reshape(B // b_tile, b_tile, 2, 4, 420)
    g = g.transpose(0, 2, 3, 1, 4)          # [G, 2, 4, b_tile, 420]
    return g.reshape(B * 8, 420)


@jax.jit
def lenet5_forward(prep, x):
    B = x.shape[0]
    pad = (-B) % B_TILE
    if pad:
        x = jnp.concatenate([x, jnp.zeros((pad,) + x.shape[1:], x.dtype)], 0)
    Bp = B + pad
    img = x.reshape(Bp, 28, 28).astype(jnp.bfloat16)   # cast once, halves DMA
    xp = _pack_stage1(img, B_TILE)                     # [Bp*8, 420] bf16
    grid = Bp // B_TILE                                # even on the demo batch

    probs, logits = pl.pallas_call(
        lenet5_kernel,
        out_shape=(jax.ShapeDtypeStruct((Bp, 128), jnp.float32),
                   jax.ShapeDtypeStruct((Bp, 128), jnp.float32)),
        grid_spec=pltpu.PrefetchScalarGridSpec(
            num_scalar_prefetch=0,
            grid=(grid,),
            in_specs=[
                pl.BlockSpec((8 * B_TILE, 420), lambda g: (g, 0)),
                pl.BlockSpec((420, 3072), lambda g: (0, 0)),
                pl.BlockSpec((1, 1536), lambda g: (0, 0)),
                pl.BlockSpec((1536, 1024), lambda g: (0, 0)),
                pl.BlockSpec((1, 200), lambda g: (0, 0)),
                pl.BlockSpec((4, 200, 512), lambda g: (0, 0, 0)),
                pl.BlockSpec((1, 512), lambda g: (0, 0)),
                pl.BlockSpec((512, 128), lambda g: (0, 0)),
                pl.BlockSpec((1, 128), lambda g: (0, 0)),
            ],
            out_specs=(pl.BlockSpec((B_TILE, 128), lambda g: (g, 0)),
                       pl.BlockSpec((B_TILE, 128), lambda g: (g, 0))),
        ),
        compiler_params=pltpu.CompilerParams(
            dimension_semantics=("parallel",)),
    )(xp, prep["t1"], prep["b1"], prep["w2b"], prep["b2"],
      prep["w3"], prep["b3"], prep["w4"], prep["b4"])

    return probs[:B, :10], logits[:B, :10]


# -----------------------------------------------------------------------------
# Pure-XLA reference (PyTorch semantics).  With match_kernel_precision=True,
# every conv / matmul operand is rounded to bf16 at the same points as the
# kernel, so logits agree with the kernel to f32-accumulation-order noise.
# -----------------------------------------------------------------------------
def ref_logits(params, x, match_kernel_precision=False):
    if match_kernel_precision:
        r = lambda a: a.astype(jnp.bfloat16).astype(jnp.float32)
    else:
        r = lambda a: a

    def conv(h, w, b):
        out = jax.lax.conv_general_dilated(
            r(h), r(w), (1, 1), "VALID",
            dimension_numbers=("NCHW", "OIHW", "NCHW"),
            preferred_element_type=jnp.float32)
        return out + b[None, :, None, None]

    def pool(h):
        return jnp.max(jnp.stack([h[:, :, 0::2, 0::2], h[:, :, 0::2, 1::2],
                                  h[:, :, 1::2, 0::2], h[:, :, 1::2, 1::2]]),
                       axis=0)

    h = pool(jax.nn.relu(conv(x, params["conv1_w"], params["conv1_b"])))
    h = pool(jax.nn.relu(conv(h, params["conv2_w"], params["conv2_b"])))
    h = h.reshape(x.shape[0], 50 * 4 * 4)
    h = jax.nn.relu(jnp.dot(r(h), r(params["ip1_w"].T),
                            preferred_element_type=jnp.float32)
                    + params["ip1_b"])
    return (jnp.dot(r(h), r(params["ip2_w"].T),
                    preferred_element_type=jnp.float32) + params["ip2_b"])


def init_params(key):
    ks = jax.random.split(key, 8)
    scale = 0.1
    return {
        "conv1_w": scale * jax.random.normal(ks[0], (20, 1, 5, 5), jnp.float32),
        "conv1_b": scale * jax.random.normal(ks[1], (20,), jnp.float32),
        "conv2_w": scale * jax.random.normal(ks[2], (50, 20, 5, 5), jnp.float32),
        "conv2_b": scale * jax.random.normal(ks[3], (50,), jnp.float32),
        "ip1_w": scale * jax.random.normal(ks[4], (500, 800), jnp.float32),
        "ip1_b": scale * jax.random.normal(ks[5], (500,), jnp.float32),
        "ip2_w": scale * jax.random.normal(ks[6], (10, 500), jnp.float32),
        "ip2_b": scale * jax.random.normal(ks[7], (10,), jnp.float32),
    }


if __name__ == "__main__":
    key = jax.random.PRNGKey(0)
    pkey, xkey = jax.random.split(key)
    params = init_params(pkey)
    prep = prepare_params(params)        # one-time weight packing

    # MNIST-shaped input (28x28 required by ip1 = Linear(50*4*4, 500)).
    # Batch 16 = 2 grid tiles of B_TILE=8 (even grid -> both v7x TCs busy).
    x = jax.random.normal(xkey, (16, 1, 28, 28), jnp.float32)

    probs, logits = lenet5_forward(prep, x)
    probs, logits = jax.block_until_ready((probs, logits))

    assert probs.shape == (16, 10) and logits.shape == (16, 10)
    assert bool(jnp.all((probs >= 0.0) & (probs <= 1.0)))

    # Tight check on PRE-SIGMOID logits vs the matched-precision reference
    # (isolates layout/indexing bugs from bf16 operand rounding).
    ref_l = ref_logits(params, x, match_kernel_precision=True)
    err = float(jnp.max(jnp.abs(logits - ref_l)))
    assert err < 2e-2, f"logit mismatch vs matched-precision reference: {err}"

    # Loose sanity check of sigmoid outputs vs the pure-f32 reference
    # (covers bf16 rounding of the matmul operands).
    ref_p = jax.nn.sigmoid(ref_logits(params, x, match_kernel_precision=False))
    err_p = float(jnp.max(jnp.abs(probs - ref_p)))
    assert err_p < 0.1, f"probability mismatch vs f32 reference: {err_p}"

    print("KERNEL_OK")
</pallas_src>

<mosaic_0001>
module attributes {stable_mosaic.version = 11 : i64} {
  func.func @lenet5_kernel(%arg0: i32, %arg1: memref<64x420xbf16, #tpu.memory_space<vmem>>, %arg2: memref<420x3072xbf16, #tpu.memory_space<vmem>>, %arg3: memref<1x1536xf32, #tpu.memory_space<vmem>>, %arg4: memref<1536x1024xbf16, #tpu.memory_space<vmem>>, %arg5: memref<1x200xf32, #tpu.memory_space<vmem>>, %arg6: memref<4x200x512xbf16, #tpu.memory_space<vmem>>, %arg7: memref<1x512xf32, #tpu.memory_space<vmem>>, %arg8: memref<512x128xbf16, #tpu.memory_space<vmem>>, %arg9: memref<1x128xf32, #tpu.memory_space<vmem>>, %arg10: memref<8x128xf32, #tpu.memory_space<vmem>>, %arg11: memref<8x128xf32, #tpu.memory_space<vmem>>) attributes {dimension_semantics = [#tpu.dimension_semantics<parallel>], iteration_bounds = array<i64: 2>, scalar_prefetch = 0 : i64, scratch_operands = 0 : i64, tpu.core_type = #tpu.core_type<tc>, window_params = [{transform_indices = @transform_0, window_bounds = array<i64: 64, 420>}, {pipeline_mode = #tpu.pipeline_mode<synchronous>, transform_indices = @transform_1, window_bounds = array<i64: 420, 3072>}, {pipeline_mode = #tpu.pipeline_mode<synchronous>, transform_indices = @transform_2, window_bounds = array<i64: 1, 1536>}, {pipeline_mode = #tpu.pipeline_mode<synchronous>, transform_indices = @transform_3, window_bounds = array<i64: 1536, 1024>}, {pipeline_mode = #tpu.pipeline_mode<synchronous>, transform_indices = @transform_4, window_bounds = array<i64: 1, 200>}, {pipeline_mode = #tpu.pipeline_mode<synchronous>, transform_indices = @transform_5, window_bounds = array<i64: 4, 200, 512>}, {pipeline_mode = #tpu.pipeline_mode<synchronous>, transform_indices = @transform_6, window_bounds = array<i64: 1, 512>}, {pipeline_mode = #tpu.pipeline_mode<synchronous>, transform_indices = @transform_7, window_bounds = array<i64: 512, 128>}, {pipeline_mode = #tpu.pipeline_mode<synchronous>, transform_indices = @transform_8, window_bounds = array<i64: 1, 128>}, {transform_indices = @transform_9, window_bounds = array<i64: 8, 128>}, {transform_indices = @transform_10, window_bounds = array<i64: 8, 128>}]} {
    %c0 = arith.constant 0 : index
    %c0_0 = arith.constant 0 : index
    %0 = vector.load %arg1[%c0, %c0_0] : memref<64x420xbf16, #tpu.memory_space<vmem>>, vector<64x420xbf16>
    %c0_1 = arith.constant 0 : index
    %c0_2 = arith.constant 0 : index
    %1 = vector.load %arg2[%c0_1, %c0_2] : memref<420x3072xbf16, #tpu.memory_space<vmem>>, vector<420x3072xbf16>
    %cst = arith.constant dense<0.000000e+00> : vector<64x3072xf32>
    %2 = tpu.matmul %0, %1, %cst {dimension_numbers = #tpu.dot_dimension_numbers<[1], [0], [0], [1], [0, 0, 1, 1], [], []>} : vector<64x420xbf16>, vector<420x3072xbf16>, vector<64x3072xf32> -> vector<64x3072xf32>
    %3 = vector.extract_strided_slice %2 {offsets = [0, 0], sizes = [32, 3072], strides = [1, 1]} : vector<64x3072xf32> to vector<32x3072xf32>
    %4 = vector.extract_strided_slice %2 {offsets = [32, 0], sizes = [32, 3072], strides = [1, 1]} : vector<64x3072xf32> to vector<32x3072xf32>
    %5 = arith.maximumf %3, %4 : vector<32x3072xf32>
    %6 = vector.extract_strided_slice %5 {offsets = [0, 0], sizes = [32, 1536], strides = [1, 1]} : vector<32x3072xf32> to vector<32x1536xf32>
    %7 = vector.extract_strided_slice %5 {offsets = [0, 1536], sizes = [32, 1536], strides = [1, 1]} : vector<32x3072xf32> to vector<32x1536xf32>
    %8 = arith.maximumf %6, %7 : vector<32x1536xf32>
    %c0_3 = arith.constant 0 : index
    %c0_4 = arith.constant 0 : index
    %9 = vector.load %arg3[%c0_3, %c0_4] : memref<1x1536xf32, #tpu.memory_space<vmem>>, vector<1x1536xf32>
    %10 = vector.broadcast %9 : vector<1x1536xf32> to vector<32x1536xf32>
    %11 = arith.addf %8, %10 : vector<32x1536xf32>
    %cst_5 = arith.constant 0.000000e+00 : f32
    %12 = vector.broadcast %cst_5 : f32 to vector<32x1536xf32>
    %13 = arith.maximumf %11, %12 : vector<32x1536xf32>
    %14 = arith.truncf %13 : vector<32x1536xf32> to vector<32x1536xbf16>
    %c0_6 = arith.constant 0 : index
    %c0_7 = arith.constant 0 : index
    %15 = vector.load %arg4[%c0_6, %c0_7] : memref<1536x1024xbf16, #tpu.memory_space<vmem>>, vector<1536x1024xbf16>
    %cst_8 = arith.constant dense<0.000000e+00> : vector<32x1024xf32>
    %16 = tpu.matmul %14, %15, %cst_8 {dimension_numbers = #tpu.dot_dimension_numbers<[1], [0], [0], [1], [0, 0, 1, 1], [], []>} : vector<32x1536xbf16>, vector<1536x1024xbf16>, vector<32x1024xf32> -> vector<32x1024xf32>
    %17 = vector.extract_strided_slice %16 {offsets = [0, 0], sizes = [32, 200], strides = [1, 1]} : vector<32x1024xf32> to vector<32x200xf32>
    %18 = vector.extract_strided_slice %16 {offsets = [0, 256], sizes = [32, 200], strides = [1, 1]} : vector<32x1024xf32> to vector<32x200xf32>
    %19 = arith.maximumf %17, %18 : vector<32x200xf32>
    %20 = vector.extract_strided_slice %16 {offsets = [0, 512], sizes = [32, 200], strides = [1, 1]} : vector<32x1024xf32> to vector<32x200xf32>
    %21 = vector.extract_strided_slice %16 {offsets = [0, 768], sizes = [32, 200], strides = [1, 1]} : vector<32x1024xf32> to vector<32x200xf32>
    %22 = arith.maximumf %20, %21 : vector<32x200xf32>
    %23 = arith.maximumf %19, %22 : vector<32x200xf32>
    %c0_9 = arith.constant 0 : index
    %c0_10 = arith.constant 0 : index
    %24 = vector.load %arg5[%c0_9, %c0_10] : memref<1x200xf32, #tpu.memory_space<vmem>>, vector<1x200xf32>
    %25 = vector.broadcast %24 : vector<1x200xf32> to vector<32x200xf32>
    %26 = arith.addf %23, %25 : vector<32x200xf32>
    %cst_11 = arith.constant 0.000000e+00 : f32
    %27 = vector.broadcast %cst_11 : f32 to vector<32x200xf32>
    %28 = arith.maximumf %26, %27 : vector<32x200xf32>
    %29 = arith.truncf %28 : vector<32x200xf32> to vector<32x200xbf16>
    %30 = vector.extract_strided_slice %29 {offsets = [0, 0], sizes = [8, 200], strides = [1, 1]} : vector<32x200xbf16> to vector<8x200xbf16>
    %c0_12 = arith.constant 0 : index
    %c0_13 = arith.constant 0 : index
    %c0_14 = arith.constant 0 : index
    %31 = vector.load %arg6[%c0_12, %c0_13, %c0_14] : memref<4x200x512xbf16, #tpu.memory_space<vmem>>, vector<1x200x512xbf16>
    %32 = vector.shape_cast %31 : vector<1x200x512xbf16> to vector<200x512xbf16>
    %cst_15 = arith.constant dense<0.000000e+00> : vector<8x512xf32>
    %33 = tpu.matmul %30, %32, %cst_15 {dimension_numbers = #tpu.dot_dimension_numbers<[1], [0], [0], [1], [0, 0, 1, 1], [], []>} : vector<8x200xbf16>, vector<200x512xbf16>, vector<8x512xf32> -> vector<8x512xf32>
    %34 = vector.extract_strided_slice %29 {offsets = [8, 0], sizes = [8, 200], strides = [1, 1]} : vector<32x200xbf16> to vector<8x200xbf16>
    %c1 = arith.constant 1 : index
    %c0_16 = arith.constant 0 : index
    %c0_17 = arith.constant 0 : index
    %35 = vector.load %arg6[%c1, %c0_16, %c0_17] : memref<4x200x512xbf16, #tpu.memory_space<vmem>>, vector<1x200x512xbf16>
    %36 = vector.shape_cast %35 : vector<1x200x512xbf16> to vector<200x512xbf16>
    %cst_18 = arith.constant dense<0.000000e+00> : vector<8x512xf32>
    %37 = tpu.matmul %34, %36, %cst_18 {dimension_numbers = #tpu.dot_dimension_numbers<[1], [0], [0], [1], [0, 0, 1, 1], [], []>} : vector<8x200xbf16>, vector<200x512xbf16>, vector<8x512xf32> -> vector<8x512xf32>
    %38 = arith.addf %33, %37 : vector<8x512xf32>
    %39 = vector.extract_strided_slice %29 {offsets = [16, 0], sizes = [8, 200], strides = [1, 1]} : vector<32x200xbf16> to vector<8x200xbf16>
    %c2 = arith.constant 2 : index
    %c0_19 = arith.constant 0 : index
    %c0_20 = arith.constant 0 : index
    %40 = vector.load %arg6[%c2, %c0_19, %c0_20] : memref<4x200x512xbf16, #tpu.memory_space<vmem>>, vector<1x200x512xbf16>
    %41 = vector.shape_cast %40 : vector<1x200x512xbf16> to vector<200x512xbf16>
    %cst_21 = arith.constant dense<0.000000e+00> : vector<8x512xf32>
    %42 = tpu.matmul %39, %41, %cst_21 {dimension_numbers = #tpu.dot_dimension_numbers<[1], [0], [0], [1], [0, 0, 1, 1], [], []>} : vector<8x200xbf16>, vector<200x512xbf16>, vector<8x512xf32> -> vector<8x512xf32>
    %43 = arith.addf %38, %42 : vector<8x512xf32>
    %44 = vector.extract_strided_slice %29 {offsets = [24, 0], sizes = [8, 200], strides = [1, 1]} : vector<32x200xbf16> to vector<8x200xbf16>
    %c3 = arith.constant 3 : index
    %c0_22 = arith.constant 0 : index
    %c0_23 = arith.constant 0 : index
    %45 = vector.load %arg6[%c3, %c0_22, %c0_23] : memref<4x200x512xbf16, #tpu.memory_space<vmem>>, vector<1x200x512xbf16>
    %46 = vector.shape_cast %45 : vector<1x200x512xbf16> to vector<200x512xbf16>
    %cst_24 = arith.constant dense<0.000000e+00> : vector<8x512xf32>
    %47 = tpu.matmul %44, %46, %cst_24 {dimension_numbers = #tpu.dot_dimension_numbers<[1], [0], [0], [1], [0, 0, 1, 1], [], []>} : vector<8x200xbf16>, vector<200x512xbf16>, vector<8x512xf32> -> vector<8x512xf32>
    %48 = arith.addf %43, %47 : vector<8x512xf32>
    %c0_25 = arith.constant 0 : index
    %c0_26 = arith.constant 0 : index
    %49 = vector.load %arg7[%c0_25, %c0_26] : memref<1x512xf32, #tpu.memory_space<vmem>>, vector<1x512xf32>
    %50 = vector.broadcast %49 : vector<1x512xf32> to vector<8x512xf32>
    %51 = arith.addf %48, %50 : vector<8x512xf32>
    %cst_27 = arith.constant 0.000000e+00 : f32
    %52 = vector.broadcast %cst_27 : f32 to vector<8x512xf32>
    %53 = arith.maximumf %51, %52 : vector<8x512xf32>
    %54 = arith.truncf %53 : vector<8x512xf32> to vector<8x512xbf16>
    %c0_28 = arith.constant 0 : index
    %c0_29 = arith.constant 0 : index
    %55 = vector.load %arg8[%c0_28, %c0_29] : memref<512x128xbf16, #tpu.memory_space<vmem>>, vector<512x128xbf16>
    %cst_30 = arith.constant dense<0.000000e+00> : vector<8x128xf32>
    %56 = tpu.matmul %54, %55, %cst_30 {dimension_numbers = #tpu.dot_dimension_numbers<[1], [0], [0], [1], [0, 0, 1, 1], [], []>} : vector<8x512xbf16>, vector<512x128xbf16>, vector<8x128xf32> -> vector<8x128xf32>
    %c0_31 = arith.constant 0 : index
    %c0_32 = arith.constant 0 : index
    %57 = vector.load %arg9[%c0_31, %c0_32] : memref<1x128xf32, #tpu.memory_space<vmem>>, vector<1x128xf32>
    %58 = vector.broadcast %57 : vector<1x128xf32> to vector<8x128xf32>
    %59 = arith.addf %56, %58 : vector<8x128xf32>
    %c0_33 = arith.constant 0 : index
    %c0_34 = arith.constant 0 : index
    %60 = vector.load %arg11[%c0_33, %c0_34] : memref<8x128xf32, #tpu.memory_space<vmem>>, vector<8x128xf32>
    tpu.vector_store %arg11[%c0_33, %c0_34], %59 {strides = array<i32>} : memref<8x128xf32, #tpu.memory_space<vmem>>, vector<8x128xf32>,
    %cst_35 = arith.constant 0.000000e+00 : f32
    %61 = vector.broadcast %cst_35 : f32 to vector<8x128xf32>
    %62 = arith.subf %61, %59 : vector<8x128xf32>
    %63 = math.exp %62 : vector<8x128xf32>
    %cst_36 = arith.constant 1.000000e+00 : f32
    %64 = vector.broadcast %cst_36 : f32 to vector<8x128xf32>
    %65 = arith.addf %64, %63 : vector<8x128xf32>
    %cst_37 = arith.constant 1.000000e+00 : f32
    %66 = vector.broadcast %cst_37 : f32 to vector<8x128xf32>
    %67 = arith.divf %66, %65 : vector<8x128xf32>
    %c0_38 = arith.constant 0 : index
    %c0_39 = arith.constant 0 : index
    %68 = vector.load %arg10[%c0_38, %c0_39] : memref<8x128xf32, #tpu.memory_space<vmem>>, vector<8x128xf32>
    tpu.vector_store %arg10[%c0_38, %c0_39], %67 {strides = array<i32>} : memref<8x128xf32, #tpu.memory_space<vmem>>, vector<8x128xf32>,
    return
  }
  func.func @transform_0(%arg0: i32) -> (i32, i32) {
    %c0_i32 = arith.constant 0 : i32
    %c0_i32_0 = arith.constant 0 : i32
    return %arg0, %c0_i32 : i32, i32
  }
  func.func @transform_1(%arg0: i32) -> (i32, i32) {
    %c0_i32 = arith.constant 0 : i32
    %c0_i32_0 = arith.constant 0 : i32
    %c0_i32_1 = arith.constant 0 : i32
    return %c0_i32, %c0_i32_0 : i32, i32
  }
  func.func @transform_2(%arg0: i32) -> (i32, i32) {
    %c0_i32 = arith.constant 0 : i32
    %c0_i32_0 = arith.constant 0 : i32
    %c0_i32_1 = arith.constant 0 : i32
    return %c0_i32, %c0_i32_0 : i32, i32
  }
  func.func @transform_3(%arg0: i32) -> (i32, i32) {
    %c0_i32 = arith.constant 0 : i32
    %c0_i32_0 = arith.constant 0 : i32
    %c0_i32_1 = arith.constant 0 : i32
    return %c0_i32, %c0_i32_0 : i32, i32
  }
  func.func @transform_4(%arg0: i32) -> (i32, i32) {
    %c0_i32 = arith.constant 0 : i32
    %c0_i32_0 = arith.constant 0 : i32
    %c0_i32_1 = arith.constant 0 : i32
    return %c0_i32, %c0_i32_0 : i32, i32
  }
  func.func @transform_5(%arg0: i32) -> (i32, i32, i32) {
    %c0_i32 = arith.constant 0 : i32
    %c0_i32_0 = arith.constant 0 : i32
    %c0_i32_1 = arith.constant 0 : i32
    %c0_i32_2 = arith.constant 0 : i32
    return %c0_i32, %c0_i32_0, %c0_i32_1 : i32, i32, i32
  }
  func.func @transform_6(%arg0: i32) -> (i32, i32) {
    %c0_i32 = arith.constant 0 : i32
    %c0_i32_0 = arith.constant 0 : i32
    %c0_i32_1 = arith.constant 0 : i32
    return %c0_i32, %c0_i32_0 : i32, i32
  }
  func.func @transform_7(%arg0: i32) -> (i32, i32) {
    %c0_i32 = arith.constant 0 : i32
    %c0_i32_0 = arith.constant 0 : i32
    %c0_i32_1 = arith.constant 0 : i32
    return %c0_i32, %c0_i32_0 : i32, i32
  }
  func.func @transform_8(%arg0: i32) -> (i32, i32) {
    %c0_i32 = arith.constant 0 : i32
    %c0_i32_0 = arith.constant 0 : i32
    %c0_i32_1 = arith.constant 0 : i32
    return %c0_i32, %c0_i32_0 : i32, i32
  }
  func.func @transform_9(%arg0: i32) -> (i32, i32) {
    %c0_i32 = arith.constant 0 : i32
    %c0_i32_0 = arith.constant 0 : i32
    return %arg0, %c0_i32 : i32, i32
  }
  func.func @transform_10(%arg0: i32) -> (i32, i32) {
    %c0_i32 = arith.constant 0 : i32
    %c0_i32_0 = arith.constant 0 : i32
    return %arg0, %c0_i32 : i32, i32
  }
}

</mosaic_0001>

<bundles_post_ra>
// kernel: lenet5_forward.1
= control target key start
LH: loop header
LB: loop body
LE: loop exit
PB: predicated region body
PF: predicated region fallthrough
CT: control target
= control target key end

     0   :  { %16 = vsyncpa [#allocation3], 0  ;;  %s21979_s0 = inlined_call_operand.vmem [shape: bf16[128,420], index: 0, kind: input, shape index: {}]   ;;  %s21980_s1 = inlined_call_operand.hbm [shape: bf16[420,3072], index: 1, kind: input, shape index: {}]   ;;  %s21981_s2 = inlined_call_operand.vmem [shape: f32[1,1536], index: 2, kind: input, shape index: {}]   ;;  %s21982_s3 = inlined_call_operand.vmem [shape: bf16[1536,1024], index: 3, kind: input, shape index: {}]   ;;  %s21983_s4 = inlined_call_operand.vmem [shape: f32[1,200], index: 4, kind: input, shape index: {}]   ;;  %s21984_s5 = inlined_call_operand.hbm [shape: bf16[4,200,512], index: 5, kind: input, shape index: {}]   ;;  %s21985_s6 = inlined_call_operand.vmem [shape: f32[1,512], index: 6, kind: input, shape index: {}]   ;;  %s21986_s7 = inlined_call_operand.vmem [shape: bf16[512,128], index: 7, kind: input, shape index: {}]   ;;  %s21987_s8 = inlined_call_operand.vmem [shape: f32[1,128], index: 8, kind: input, shape index: {}]   ;;  %s21988_s9 = inlined_call_operand.hbm [shape: f32[16,128], index: 9, kind: output, shape index: {0}]   ;;  %s21989_s10 = inlined_call_operand.hbm [shape: f32[16,128], index: 10, kind: output, shape index: {1}]  }
   0x1   :  { %17 = vsyncpa [#allocation6], 0 }
   0x2   :  { %18 = vsyncpa [#allocation4], 0 }
   0x3   :  { %20 = vsyncpa [#allocation4 + $0x1], 0 }
   0x4   :  { %21 = vsyncpa [#allocation9], 0 }
   0x5   :  { %23 = vsyncpa [#allocation9 + $0x1], 0  ;;  %s17106_s13 = smov 0   ;;  %s17108_s14 = smov 0  }
   0x6   :  { %s17110_s15 = smov 0   ;;  %s17112_s16 = smov 0  }
   0x7 LB: > { %22078 = sst [smem:[#allocation14_spill]] %s17037_s15  ;;  %s17127_s17 = sadd.s32 4294967295, %s17041_s16   ;;  %s17041_s16 = sphi %s17112_s16, %s22398_s16   ;;  %s17037_s15 = sphi %s17110_s15, %s22395_s15   ;;  %s17033_s14 = sphi %s17108_s14, %s22397_s14   ;;  %s17029_s13 = sphi %s17106_s13, %s22396_s13  }
   0x8   : > { %s14556_s18 = sadd.s32 4294967294, %s17041_s16   ;;  %s17131_s19 = sadd.s32 1, %s17041_s16  }
   0x9   : > { %s230_s20 = sadd.s32 1, %s17037_s15  ;;  %s227_s21 = ssub.s32 %s17041_s16, %s17131_s19 }
   0xa   : > { %p240_p0 = scmp.ne.s32.totalorder %s17037_s15, %s17033_s14  ;;  %p228_p1 = scmp.eq.s32.totalorder %s227_s21, 0 }
   0xb   : > { %p241_p2 = scmp.eq.s32.totalorder %s17127_s17, 1  ;;  %p246_p3 = scmp.ne.s32.totalorder %s17033_s14, %s17029_s13 }
   0xc   : > { %p247_p4 = scmp.eq.s32.totalorder %s14556_s18, 1  ;;  %p14557_p7 = scmp.ge.s32.totalorder %s17041_s16, 1 }
   0xd   : > { %s17142_s22 = scalar_select %p228_p1, %s17037_s15, %s230_s20  }
   0xe   : > { %p17144_p5 = por %p241_p2, %p240_p0  ;;  %p17148_p6 = por %p247_p4, %p246_p3 }
   0xf   : > { %22079 = sst [smem:[#allocation15_spill]] %s17142_s22  ;;  %p280_p8 = scmp.lt.s32.totalorder %s17041_s16, 3 }
  0x10   : > { %s22081_s24 = scalar_select %p17148_p6, 1, 0 }
  0x11   : > { %p21990_p9 = scmp.eq.s32.totalorder %s17127_s17, 0  ;;  %p17155_p10 = pnand %p14557_p7, %p280_p8 }
  0x12   : > { %s17043_s26 = smov [#allocation2]   ;;  %s17044_s29 = smov [#allocation5]  }
  0x13   : > { %s292_s27 = sshll.u32 %s17043_s26, 4  ;;  %p16381_p11 = pneg %p17155_p10  ;;  %s293_s27 = int_to_ptr.vmem [resolvable:$true] %s292_s27 }
  0x14   : > { %s314_s30 = sshll.u32 %s17044_s29, 4  ;;  %s16902_s11 = scalar_lea.vmem %s293_s27, 81408  ;;  %s315_s30 = int_to_ptr.vmem [resolvable:$true] %s314_s30 }
  0x15   : > { %p17163_p12 = pnand %p21990_p9, %p16381_p11  ;;  %p16903_p0 = scmp.ne.s32.totalorder %s293_s27, %s16902_s11 }
  0x16   : > { %p16910_p3 = scmp.lt.s32.totalorder %s293_s27, %s293_s27  ;;  %p16911_p4 = scmp.lt.s32.totalorder %s16902_s11, %s16902_s11 }
  0x17   : > { %p16893_p13 = pneg %p17163_p12 }
  0x18   : > { %p16912_p7 = por %p16911_p4, %p16910_p3 }
  0x19   : > { %p16905_p1 = pnand %p16903_p0, %p16893_p13 }
  0x1b   : > { %p16906_p2 = pneg %p16905_p1 }
  0x1d   : > { %p16913_p8 = pnand %p16912_p7, %p16906_p2 }
  0x1f   : > { %16916 = shalt.err (!%p16913_p8)
}
  0x20   : > { %s17045_s12 = smov 1536   ;;  %s17046_s18 = smov 96  }
  0x21   : > { %16384 = dma.hbm_to_vmem [thread:$0]  (!%p17163_p12), %s21980_s1, 81408, %s293_s27, [#allocation3], %s17045_s12, %s17045_s12, %s17046_s18  }
  0x22   : > { %s16928_s26 = scalar_lea.vmem %s315_s30, 25600  ;;  %p16936_p9 = scmp.lt.s32.totalorder %s315_s30, %s315_s30 }
  0x23   : > { %p16929_p11 = scmp.ne.s32.totalorder %s315_s30, %s16928_s26  ;;  %p16937_p6 = scmp.lt.s32.totalorder %s16928_s26, %s16928_s26 }
  0x25   : > { %p16931_p0 = pnand %p16929_p11, %p16893_p13  ;;  %p16938_p3 = por %p16937_p6, %p16936_p9 }
  0x27   : > { %p16932_p1 = pneg %p16931_p0 }
  0x29   : > { %p16939_p2 = pnand %p16938_p3, %p16932_p1 }
  0x2b   : > { %16942 = shalt.err (!%p16939_p2)
}
  0x2c   : > { %s17047_s29 = smov 256   ;;  %s17048_s11 = smov 16  }
  0x2d   : > { %16387 = dma.hbm_to_vmem [thread:$0]  (!%p17163_p12), %s21984_s5, 25600, %s315_s30, [#allocation6], %s17047_s29, %s17047_s29, %s17048_s11  }
  0x2e   : > { %349 = sbr.rel (%p17155_p10) target bundleno = 2363 (0x93b), region = 56 }
  0x33   : > { %p22084_p4 = scmp.eq.s32.totalorder %s17127_s17, 0 }
  0x35   : > { %17012 = dma.done.wait (%p22084_p4), [#allocation3], 81408   ;;  %p22085_p13 = pmov %p22084_p4 }
  0x36   : > { %p22086_p6 = pmov %p22084_p4 }
  0x37   : > { %17014 = vsyncadd (%p22085_p13), [#allocation3], 4294885888 }
  0x38   : > { %17016 = dma.done.wait (%p22086_p6), [#allocation6], 25600   ;;  %p22087_p9 = pmov %p22084_p4 }
  0x39   : > { %s14566_s27 = sshll.u32 %s17127_s17, 3  ;;  %v589_v0 = vld [vmem:[#allocation2 + $0x540] sm:$0xff]  ;;  %vm4313_vm0 = vcmask 293888   ;;  %vm4326_vm1 = vcmask 1041408   ;;  %vm12775_vm2 = vcmask 1043456   ;;  %vm12771_vm3 = vcmask 588800  }
  0x3a   : > { %17018 = vsyncadd (%p22087_p9), [#allocation6], 4294941696  ;;  %v601_v1 = vld [vmem:[#allocation2 + $0x5a0] sm:$0xff]  ;;  %p17196_p10 = scmp.lt.s32.totalorder %s14566_s27, 15  ;;  %s17049_s21 = smov [#allocation8]  }
  0x3b   : > { %v973_v2 = vld [vmem:[#allocation2 + $0x1140] sm:$0xff]  ;;  %v14754_v3 = vcombine.high %v589_v0, %v601_v1  ;;  %v14753_v5 = vcombine.low %v589_v0, %v601_v1  ;;  %s16947_s29 = sshll.u32 %s17049_s21, 4  ;;  %s16948_s29 = int_to_ptr.vmem [resolvable:$false] %s16947_s29 }
  0x3c   : > { %v985_v4 = vld [vmem:[#allocation2 + $0x11a0] sm:$0xff]  ;;  %s22400_s27 = smov (!%p17196_p10, %s14566_s27), 15  ;;  %s16949_s11 = scalar_lea.vmem %s16948_s29, 256 }
  0x3d   : > { %v565_v6 = vld [vmem:[#allocation2 + $0x480] sm:$0xff]  ;;  %v15138_v8 = vcombine.high %v973_v2, %v985_v4  ;;  %v15137_v9 = vcombine.low %v973_v2, %v985_v4  ;;  %4399 = vmatprep.subr.bf16.mxu0 %v14754_v3  ;;  %s16324_s22 = sshll.u32 %s22400_s27, 4  ;;  %s22076_s27 = sshll.u32 %s17127_s17, 7 }
  0x3e   : > { %v577_v7 = vld [vmem:[#allocation2 + $0x4e0] sm:$0xff]  ;;  %4400 = vmatpush1.bf16.msra.mxu0 %v14753_v5  ;;  %s17205_s30 = scalar_lea.vmem %s21979_s0, %s16324_s22  ;;  %s21917_s12 = scalar_lea.hbm %s21989_s10, %s22076_s27 }
  0x3f   : > { %v14730_v10 = vcombine.high %v565_v6, %v577_v7  ;;  %v949_v11 = vld [vmem:[#allocation2 + $0x1080] sm:$0xff]  ;;  %4472 = vmatprep.subr.bf16.mxu1 %v15138_v8  ;;  %v14729_v18 = vcombine.low %v565_v6, %v577_v7  ;;  %v17208_v42 = vld [vmem:[%s17205_s30 + $0xc] ss:$16 sps:$4 sm:$0xff]  }
  0x40   : > { %v961_v12 = vld [vmem:[#allocation2 + $0x10e0] sm:$0xff]  ;;  %4473 = vmatpush1.bf16.msra.mxu1 %v15137_v9  ;;  %15234 = vmatprep.mubr.msk.bf16.mxu1 %vm4313_vm0, %v17208_v42 }
  0x41   : > { %v541_v13 = vld [vmem:[#allocation2 + $0x3c0] sm:$0xff]  ;;  %v15114_v14 = vcombine.high %v949_v11, %v961_v12  ;;  %4401 = vmatprep.subr.bf16.mxu0 %v14730_v10  ;;  %v15113_v19 = vcombine.low %v949_v11, %v961_v12 }
  0x42   : > { %v553_v15 = vld [vmem:[#allocation2 + $0x420] sm:$0xff]  ;;  %4402 = vmatpush1.bf16.msra.mxu0 %v14729_v18 }
  0x43   : > { %v925_v16 = vld [vmem:[#allocation2 + $0xfc0] sm:$0xff]  ;;  %v14706_v20 = vcombine.high %v541_v13, %v553_v15  ;;  %4474 = vmatprep.subr.bf16.mxu1 %v15114_v14  ;;  %v14705_v26 = vcombine.low %v541_v13, %v553_v15 }
  0x44   : > { %v937_v17 = vld [vmem:[#allocation2 + $0x1020] sm:$0xff]  ;;  %4475 = vmatpush1.bf16.msra.mxu1 %v15113_v19 }
  0x45   : > { %v15090_v21 = vcombine.high %v925_v16, %v937_v17  ;;  %v517_v22 = vld [vmem:[#allocation2 + $0x300] sm:$0xff]  ;;  %4403 = vmatprep.subr.bf16.mxu0 %v14706_v20  ;;  %v15089_v27 = vcombine.low %v925_v16, %v937_v17 }
  0x46   : > { %v529_v23 = vld [vmem:[#allocation2 + $0x360] sm:$0xff]  ;;  %4404 = vmatpush1.bf16.msra.mxu0 %v14705_v26  ;;  %v590_v26 = vld [vmem:[#allocation2 + $0x548] sm:$0xff] }
  0x47   : > { %v901_v24 = vld [vmem:[#allocation2 + $0xf00] sm:$0xff]  ;;  %v14682_v28 = vcombine.high %v517_v22, %v529_v23  ;;  %4476 = vmatprep.subr.bf16.mxu1 %v15090_v21  ;;  %v14681_v34 = vcombine.low %v517_v22, %v529_v23 }
  0x48   : > { %v913_v25 = vld [vmem:[#allocation2 + $0xf60] sm:$0xff]  ;;  %4477 = vmatpush1.bf16.msra.mxu1 %v15089_v27  ;;  %v602_v27 = vld [vmem:[#allocation2 + $0x5a8] sm:$0xff] }
  0x49   : > { %v15066_v29 = vcombine.high %v901_v24, %v913_v25  ;;  %v493_v30 = vld [vmem:[#allocation2 + $0x240] sm:$0xff]  ;;  %4405 = vmatprep.subr.bf16.mxu0 %v14682_v28  ;;  %v15065_v35 = vcombine.low %v901_v24, %v913_v25 }
  0x4a   : > { %v505_v31 = vld [vmem:[#allocation2 + $0x2a0] sm:$0xff]  ;;  %4406 = vmatpush1.bf16.msra.mxu0 %v14681_v34  ;;  %v566_v34 = vld [vmem:[#allocation2 + $0x488] sm:$0xff] }
  0x4b   : > { %v877_v32 = vld [vmem:[#allocation2 + $0xe40] sm:$0xff]  ;;  %v14658_v36 = vcombine.high %v493_v30, %v505_v31  ;;  %4478 = vmatprep.subr.bf16.mxu1 %v15066_v29  ;;  %v14657_v43 = vcombine.low %v493_v30, %v505_v31  ;;  %v14756_v31 = vcombine.high %v590_v26, %v602_v27 }
  0x4c   : > { %v889_v33 = vld [vmem:[#allocation2 + $0xea0] sm:$0xff]  ;;  %4479 = vmatpush1.bf16.msra.mxu1 %v15065_v35  ;;  %v578_v35 = vld [vmem:[#allocation2 + $0x4e8] sm:$0xff] }
  0x4d   : > { %v469_v37 = vld [vmem:[#allocation2 + $0x180] sm:$0xff]  ;;  %v15042_v38 = vcombine.high %v877_v32, %v889_v33  ;;  %4407 = vmatprep.subr.bf16.mxu0 %v14658_v36  ;;  %v15041_v44 = vcombine.low %v877_v32, %v889_v33  ;;  %v17219_v36 = vld [vmem:[%s17205_s30 + $0x8] ss:$16 sps:$4 sm:$0xff]  }
  0x4e   : > { %v481_v39 = vld [vmem:[#allocation2 + $0x1e0] sm:$0xff]  ;;  %4408 = vmatpush1.bf16.msra.mxu0 %v14657_v43 }
  0x4f   : > { %v853_v40 = vld [vmem:[#allocation2 + $0xd80] sm:$0xff]  ;;  %v14634_v45 = vcombine.high %v469_v37, %v481_v39  ;;  %4480 = vmatprep.subr.bf16.mxu1 %v15042_v38  ;;  %v14633_v51 = vcombine.low %v469_v37, %v481_v39  ;;  %v14755_v38 = vcombine.low %v590_v26, %v602_v27  ;;  %v926_v26 = vld [vmem:[#allocation2 + $0xfc8] sm:$0xff] }
  0x50   : > { %v865_v41 = vld [vmem:[#allocation2 + $0xde0] sm:$0xff]  ;;  %4481 = vmatpush1.bf16.msra.mxu1 %v15041_v44  ;;  %v17222_v44 = vld [vmem:[%s17205_s30 + $0x2c] ss:$16 sps:$4 sm:$0xff]  }
  0x51   : > { %v15018_v46 = vcombine.high %v853_v40, %v865_v41  ;;  %v445_v47 = vld [vmem:[#allocation2 + $0xc0] sm:$0xff]  ;;  %4409 = vmatprep.subr.bf16.mxu0 %v14634_v45  ;;  %v15017_v52 = vcombine.low %v853_v40, %v865_v41  ;;  %v14732_v40 = vcombine.high %v566_v34, %v578_v35  ;;  %v542_v45 = vld [vmem:[#allocation2 + $0x3c8] sm:$0xff] }
  0x52   : > { %v457_v48 = vld [vmem:[#allocation2 + $0x120] sm:$0xff]  ;;  %4410 = vmatpush1.bf16.msra.mxu0 %v14633_v51  ;;  %v938_v27 = vld [vmem:[#allocation2 + $0x1028] sm:$0xff] }
  0x53   : > { %v829_v49 = vld [vmem:[#allocation2 + $0xcc0] sm:$0xff]  ;;  %v14610_v53 = vcombine.high %v445_v47, %v457_v48  ;;  %4482 = vmatprep.subr.bf16.mxu1 %v15018_v46  ;;  %v14609_v60 = vcombine.low %v445_v47, %v457_v48  ;;  %v554_v46 = vld [vmem:[#allocation2 + $0x428] sm:$0xff]  ;;  %v14731_v48 = vcombine.low %v566_v34, %v578_v35 }
  0x54   : > { %v841_v50 = vld [vmem:[#allocation2 + $0xd20] sm:$0xff]  ;;  %4483 = vmatpush1.bf16.msra.mxu1 %v15017_v52  ;;  %v902_v35 = vld [vmem:[#allocation2 + $0xf08] sm:$0xff] }
  0x55   : > { %v421_v54 = vld [vmem:[#allocation2] sm:$0xff]  ;;  %v14994_v55 = vcombine.high %v829_v49, %v841_v50  ;;  %4411 = vmatprep.subr.bf16.mxu0 %v14610_v53  ;;  %v14993_v61 = vcombine.low %v829_v49, %v841_v50  ;;  %v14708_v50 = vcombine.high %v542_v45, %v554_v46  ;;  %v518_v53 = vld [vmem:[#allocation2 + $0x308] sm:$0xff] }
  0x56   : > { %v433_v56 = vld [vmem:[#allocation2 + $0x60] sm:$0xff]  ;;  %4412 = vmatpush1.bf16.msra.mxu0 %v14609_v60 }
  0x57   : > { %v805_v57 = vld [vmem:[#allocation2 + $0xc00] sm:$0xff]  ;;  %v14586_v62 = vcombine.high %v421_v54, %v433_v56  ;;  %4484 = vmatprep.subr.bf16.mxu1 %v14994_v55  ;;  %v14585_v3 = vcombine.low %v421_v54, %v433_v56  ;;  %v530_v54 = vld [vmem:[#allocation2 + $0x368] sm:$0xff] }
  0x58   : > { %v817_v58 = vld [vmem:[#allocation2 + $0xc60] sm:$0xff]  ;;  %4485 = vmatpush1.bf16.msra.mxu1 %v14993_v61  ;;  %v17228_v56 = vld [vmem:[%s17205_s30 + $0x28] ss:$16 sps:$4 sm:$0xff]   ;;  %v14684_v60 = vcombine.high %v518_v53, %v530_v54 }
  0x59   : > { %v17213_v59 = vld [vmem:[%s17205_s30 + $0x4] ss:$16 sps:$4 sm:$0xff]   ;;  %v14970_v0 = vcombine.high %v805_v57, %v817_v58  ;;  %4413 = vmatprep.subr.bf16.mxu0 %v14586_v62  ;;  %v14969_v4 = vcombine.low %v805_v57, %v817_v58  ;;  %v14707_v57 = vcombine.low %v542_v45, %v554_v46 }
  0x5a   : > { %v781_v63 = vld [vmem:[#allocation2 + $0xb40] sm:$0xff]  ;;  %4431 = vmatprep.mubr.bf16.mxu0 %v17213_v59  ;;  %4414 = vmatpush1.bf16.msra.mxu0 %v14585_v3  ;;  %v14683_v3 = vcombine.low %v518_v53, %v530_v54 }
  0x5b   : > { %v793_v1 = vld [vmem:[#allocation2 + $0xba0] sm:$0xff]  ;;  %4486 = vmatprep.subr.bf16.mxu1 %v14970_v0  ;;  %v494_v0 = vld [vmem:[#allocation2 + $0x248] sm:$0xff] }
  0x5c   : > { %v1045_v2 = vld [vmem:[#allocation2 + $0x1380] sm:$0x33]  ;;  %v14946_v5 = vcombine.high %v781_v63, %v793_v1  ;;  %v14945_v12 = vcombine.low %v781_v63, %v793_v1  ;;  %4487 = vmatpush1.bf16.msra.mxu1 %v14969_v4  ;;  %v17231_v63 = vld [vmem:[%s17205_s30 + $0x4c] ss:$16 sps:$4 sm:$0xff]  }
  0x5d   : > { %v15210_v6 = vcombine.high %v1045_v2, %v1045_v2  ;;  %v15209_v7 = vcombine.low %v1045_v2, %v1045_v2  ;;  %v757_v8 = vld [vmem:[#allocation2 + $0xa80] sm:$0xff]  ;;  %v506_v1 = vld [vmem:[#allocation2 + $0x2a8] sm:$0xff] }
  0x5e   : > { %v769_v9 = vld [vmem:[#allocation2 + $0xae0] sm:$0xff]  ;;  %4415 = vmatprep.subr.bf16.mxu0 %v14946_v5  ;;  %v14660_v5 = vcombine.high %v494_v0, %v506_v1 }
  0x5f   : > { %v1021_v10 = vld [vmem:[#allocation2 + $0x12c0] sm:$0xff]  ;;  %v14922_v13 = vcombine.high %v757_v8, %v769_v9  ;;  %15233 = vmatprep.subr.msk.bf16.mxu1 %vm4326_vm1, %v15210_v6  ;;  %v4328_v14 = vsel %vm4326_vm1, %v15209_v7, 0  ;;  %4416 = vmatpush2.bf16.msra.mxu0 %v14945_v12  ;;  %v14921_v20 = vcombine.low %v757_v8, %v769_v9  ;;  %v974_v6 = vld [vmem:[#allocation2 + $0x1148] sm:$0xff]  ;;  %v14659_v12 = vcombine.low %v494_v0, %v506_v1 }
  0x60   : > { %v1033_v11 = vld [vmem:[#allocation2 + $0x1320] sm:$0xff]  ;;  %4499 = vmatpush2.bf16.msra.mxu1 %v4328_v14  ;;  %v986_v7 = vld [vmem:[#allocation2 + $0x11a8] sm:$0xff] }
  0x61   : > { %v15186_v15 = vcombine.high %v1021_v10, %v1033_v11  ;;  %v733_v16 = vld [vmem:[#allocation2 + $0x9c0] sm:$0xff]  ;;  %4417 = vmatprep.subr.bf16.mxu0 %v14922_v13  ;;  %v15185_v21 = vcombine.low %v1021_v10, %v1033_v11  ;;  %v470_v8 = vld [vmem:[#allocation2 + $0x188] sm:$0xff]  ;;  %v15140_v13 = vcombine.high %v974_v6, %v986_v7 }
  0x62   : > { %v745_v17 = vld [vmem:[#allocation2 + $0xa20] sm:$0xff]  ;;  %v482_v9 = vld [vmem:[#allocation2 + $0x1e8] sm:$0xff] }
  0x63   : > { %v997_v18 = vld [vmem:[#allocation2 + $0x1200] sm:$0xff]  ;;  %v14898_v22 = vcombine.high %v733_v16, %v745_v17  ;;  %4500 = vmatprep.subr.bf16.mxu1 %v15186_v15  ;;  %4418 = vmatpush2.bf16.msra.mxu0 %v14921_v20  ;;  %v14897_v28 = vcombine.low %v733_v16, %v745_v17  ;;  %v17237_v11 = vld [vmem:[%s17205_s30 + $0x48] ss:$16 sps:$4 sm:$0xff]   ;;  %v14636_v14 = vcombine.high %v470_v8, %v482_v9  ;;  %v17240_v17 = vld [vmem:[%s17205_s30 + $0x6c] ss:$16 sps:$4 sm:$0xff]  }
  0x64   : > { %v1009_v19 = vld [vmem:[#allocation2 + $0x1260] sm:$0xff]  ;;  %4501 = vmatpush2.bf16.msra.mxu1 %v15185_v21  ;;  %v950_v15 = vld [vmem:[#allocation2 + $0x1088] sm:$0xff]  ;;  %v15139_v21 = vcombine.low %v974_v6, %v986_v7 }
  0x65   : > { %v709_v23 = vld [vmem:[#allocation2 + $0x900] sm:$0xff]  ;;  %v15162_v24 = vcombine.high %v997_v18, %v1009_v19  ;;  %4419 = vmatprep.subr.bf16.mxu0 %v14898_v22  ;;  %v15161_v29 = vcombine.low %v997_v18, %v1009_v19  ;;  %v962_v16 = vld [vmem:[#allocation2 + $0x10e8] sm:$0xff] }
  0x66   : > { %v721_v25 = vld [vmem:[#allocation2 + $0x960] sm:$0xff]  ;;  %v446_v19 = vld [vmem:[#allocation2 + $0xc8] sm:$0xff] }
  0x67   : > { %v14874_v30 = vcombine.high %v709_v23, %v721_v25  ;;  %4502 = vmatprep.subr.bf16.mxu1 %v15162_v24  ;;  %v685_v32 = vld [vmem:[#allocation2 + $0x840] sm:$0xff]  ;;  %4420 = vmatpush2.bf16.msra.mxu0 %v14897_v28  ;;  %v14873_v37 = vcombine.low %v709_v23, %v721_v25  ;;  %v458_v20 = vld [vmem:[#allocation2 + $0x128] sm:$0xff]  ;;  %v14635_v23 = vcombine.low %v470_v8, %v482_v9 }
  0x68   : > { %v697_v33 = vld [vmem:[#allocation2 + $0x8a0] sm:$0xff]  ;;  %4503 = vmatpush2.bf16.msra.mxu1 %v15161_v29  ;;  %v15116_v24 = vcombine.high %v950_v15, %v962_v16  ;;  %v14612_v25 = vcombine.high %v446_v19, %v458_v20  ;;  %v422_v28 = vld [vmem:[#allocation2 + $0x8] sm:$0xff] }
  0x69   : > { %4421 = vmatprep.subr.bf16.mxu0 %v14874_v30  ;;  %v14850_v39 = vcombine.high %v685_v32, %v697_v33  ;;  %4545 = vmatprep.subr.bf16.mxu1 %v14756_v31  ;;  %v661_v41 = vld [vmem:[#allocation2 + $0x780] sm:$0xff]  ;;  %v14849_v47 = vcombine.low %v685_v32, %v697_v33  ;;  %v434_v29 = vld [vmem:[#allocation2 + $0x68] sm:$0xff]  ;;  %v15115_v30 = vcombine.low %v950_v15, %v962_v16 }
  0x6a   : > { %v673_v43 = vld [vmem:[#allocation2 + $0x7e0] sm:$0xff]  ;;  %v17254_v31 = vld [vmem:[%s17205_s30 + $0x68] ss:$16 sps:$4 sm:$0xff]   ;;  %v14611_v32 = vcombine.low %v446_v19, %v458_v20  ;;  %v15092_v33 = vcombine.high %v926_v26, %v938_v27  ;;  %v14588_v34 = vcombine.high %v422_v28, %v434_v29  ;;  %v14587_v45 = vcombine.low %v422_v28, %v434_v29 }
  0x6b   : > { %4505 = vmatmul.mubr.bf16.vlgmr.msra.gmra.mxu1 %v17219_v36  ;;  %4422 = vmatpush2.bf16.msra.mxu0 %v14873_v37  ;;  %v14826_v49 = vcombine.high %v661_v41, %v673_v43  ;;  %v637_v51 = vld [vmem:[#allocation2 + $0x6c0] sm:$0xff]  ;;  %v14825_v55 = vcombine.low %v661_v41, %v673_v43  ;;  %v914_v37 = vld [vmem:[#allocation2 + $0xf68] sm:$0xff]  ;;  %v15091_v41 = vcombine.low %v926_v26, %v938_v27 }
  0x6c   : > { %4546 = vmatpush1.bf16.msra.mxu1 %v14755_v38  ;;  %4423 = vmatprep.subr.bf16.mxu0 %v14850_v39  ;;  %v649_v52 = vld [vmem:[#allocation2 + $0x720] sm:$0xff]  ;;  %v782_v39 = vld [vmem:[#allocation2 + $0xb48] sm:$0xff]  ;;  %v15068_v46 = vcombine.high %v902_v35, %v914_v37 }
  0x6d   : > { %4547 = vmatprep.subr.bf16.mxu1 %v14732_v40  ;;  %15235 = vmatprep.mubr.msk.bf16.mxu1 %vm4313_vm0, %v17222_v44  ;;  %v14802_v58 = vcombine.high %v637_v51, %v649_v52  ;;  %v613_v61 = vld [vmem:[#allocation2 + $0x600] sm:$0xff]  ;;  %v14801_v2 = vcombine.low %v637_v51, %v649_v52  ;;  %v794_v40 = vld [vmem:[#allocation2 + $0xba8] sm:$0xff]  ;;  %v15067_v52 = vcombine.low %v902_v35, %v914_v37 }
  0x6e   : > { %v625_v62 = vld [vmem:[#allocation2 + $0x660] sm:$0xff]  ;;  %v770_v51 = vld [vmem:[#allocation2 + $0xae8] sm:$0xff]  ;;  %v14947_v53 = vcombine.low %v782_v39, %v794_v40 }
  0x6f   : > { %4424 = vmatpush2.bf16.msra.mxu0 %v14849_v47  ;;  %v14778_v4 = vcombine.high %v613_v61, %v625_v62  ;;  %v14777_v10 = vcombine.low %v613_v61, %v625_v62  ;;  %v17243_v18 = vld [vmem:[%s17205_s30] ss:$16 sps:$4 sm:$0xff]   ;;  %v17246_v22 = vld [vmem:[%s17205_s30 + $0x24] ss:$16 sps:$4 sm:$0xff]   ;;  %v14948_v47 = vcombine.high %v782_v39, %v794_v40  ;;  %v866_v61 = vld [vmem:[#allocation2 + $0xde8] sm:$0xff] }
  0x70   : > { %4548 = vmatpush1.bf16.msra.mxu1 %v14731_v48  ;;  %4425 = vmatprep.subr.bf16.mxu0 %v14826_v49  ;;  %v17257_v38 = vld [vmem:[%s17205_s30 + $0x20] ss:$16 sps:$4 sm:$0xff]   ;;  %v17260_v43 = vld [vmem:[%s17205_s30 + $0x44] ss:$16 sps:$4 sm:$0xff]   ;;  %v878_v48 = vld [vmem:[#allocation2 + $0xe48] sm:$0xff] }
  0x71   : > { %4549 = vmatprep.subr.bf16.mxu1 %v14708_v50  ;;  %v890_v49 = vld [vmem:[#allocation2 + $0xea8] sm:$0xff]  ;;  %v17267_v54 = vld [vmem:[%s17205_s30 + $0x40] ss:$16 sps:$4 sm:$0xff]   ;;  %v17270_v62 = vld [vmem:[%s17205_s30 + $0x64] ss:$16 sps:$4 sm:$0xff]  }
  0x72   : > { %v758_v50 = vld [vmem:[#allocation2 + $0xa88] sm:$0xff]  ;;  %v15043_v0 = vcombine.low %v878_v48, %v890_v49 }
  0x73   : > { %4426 = vmatpush2.bf16.msra.mxu0 %v14825_v55  ;;  %4515 = vmatmul.mubr.bf16.gmra.mxu1 %v17228_v56  ;;  %v15044_v55 = vcombine.high %v878_v48, %v890_v49  ;;  %v14923_v1 = vcombine.low %v758_v50, %v770_v51  ;;  %v842_v7 = vld [vmem:[#allocation2 + $0xd28] sm:$0xff] }
  0x74   : > { %4550 = vmatpush1.bf16.msra.mxu1 %v14707_v57  ;;  %4427 = vmatprep.subr.bf16.mxu0 %v14802_v58  ;;  %v734_v57 = vld [vmem:[#allocation2 + $0x9c8] sm:$0xff] }
  0x75   : > { %4551 = vmatprep.subr.bf16.mxu1 %v14684_v60  ;;  %15236 = vmatprep.mubr.msk.bf16.mxu1 %vm4313_vm0, %v17231_v63  ;;  %v746_v58 = vld [vmem:[#allocation2 + $0xa28] sm:$0xff] }
  0x76   : > { %v854_v60 = vld [vmem:[#allocation2 + $0xd88] sm:$0xff]  ;;  %v14900_v6 = vcombine.high %v734_v57, %v746_v58  ;;  %v14899_v9 = vcombine.low %v734_v57, %v746_v58  ;;  %v975_v57 = vld [vmem:[#allocation2 + $0x1150] sm:$0xff] }
  0x77   : > { %4428 = vmatpush2.bf16.msra.mxu0 %v14801_v2  ;;  %v15020_v2 = vcombine.high %v854_v60, %v866_v61  ;;  %v15019_v8 = vcombine.low %v854_v60, %v866_v61  ;;  %v806_v15 = vld [vmem:[#allocation2 + $0xc08] sm:$0xff]  ;;  %v987_v60 = vld [vmem:[#allocation2 + $0x11b0] sm:$0xff] }
  0x78   : > { %4552 = vmatpush1.bf16.msra.mxu1 %v14683_v3  ;;  %4429 = vmatprep.subr.bf16.mxu0 %v14778_v4  ;;  %v710_v3 = vld [vmem:[#allocation2 + $0x908] sm:$0xff] }
  0x79   : > { %4553 = vmatprep.subr.bf16.mxu1 %v14660_v5  ;;  %v722_v4 = vld [vmem:[#allocation2 + $0x968] sm:$0xff] }
  0x7a   : > { %v830_v5 = vld [vmem:[#allocation2 + $0xcc8] sm:$0xff]  ;;  %v14876_v16 = vcombine.high %v710_v3, %v722_v4 }
  0x7b   : > { %4430 = vmatpush2.bf16.msra.mxu0 %v14777_v10  ;;  %4525 = vmatmul.mubr.bf16.gmra.mxu1 %v17237_v11  ;;  %v17275_v10 = vld [vmem:[%s17205_s30 + $0x60] ss:$16 sps:$4 sm:$0xff]   ;;  %v818_v19 = vld [vmem:[#allocation2 + $0xc68] sm:$0xff]  ;;  %v14995_v20 = vcombine.low %v830_v5, %v842_v7 }
  0x7c   : > { %4554 = vmatpush1.bf16.msra.mxu1 %v14659_v12  ;;  %4618 = vmatprep.subr.bf16.mxu0 %v15140_v13  ;;  %v14996_v12 = vcombine.high %v830_v5, %v842_v7  ;;  %v686_v13 = vld [vmem:[#allocation2 + $0x848] sm:$0xff]  ;;  %v14971_v28 = vcombine.low %v806_v15, %v818_v19  ;;  %v963_v5 = vld [vmem:[#allocation2 + $0x10f0] sm:$0xff]  ;;  %v15141_v7 = vcombine.low %v975_v57, %v987_v60 }
  0x7d   : > { %4555 = vmatprep.subr.bf16.mxu1 %v14636_v14  ;;  %15237 = vmatprep.mubr.msk.bf16.mxu1 %vm4313_vm0, %v17240_v17  ;;  %v698_v14 = vld [vmem:[#allocation2 + $0x8a8] sm:$0xff] }
  0x7e   : > { %4432 = vmatmul.mubr.bf16.vlgmr.msra.gmra.mxu0 %v17243_v18  ;;  %v14852_v26 = vcombine.high %v686_v13, %v698_v14  ;;  %v1046_v27 = vld [vmem:[#allocation2 + $0x1388] sm:$0x33]  ;;  %v14851_v29 = vcombine.low %v686_v13, %v698_v14  ;;  %v927_v13 = vld [vmem:[#allocation2 + $0xfd0] sm:$0xff] }
  0x7f   : > { %4619 = vmatpush1.bf16.msra.mxu0 %v15139_v21  ;;  %4441 = vmatprep.mubr.bf16.mxu0 %v17246_v22  ;;  %v14875_v21 = vcombine.low %v710_v3, %v722_v4  ;;  %v1022_v35 = vld [vmem:[#allocation2 + $0x12c8] sm:$0xff]  ;;  %v951_v3 = vld [vmem:[#allocation2 + $0x1090] sm:$0xff]  ;;  %v15142_v4 = vcombine.high %v975_v57, %v987_v60 }
  0x80   : > { %4556 = vmatpush1.bf16.msra.mxu1 %v14635_v23  ;;  %4620 = vmatprep.subr.bf16.mxu0 %v15116_v24  ;;  %v14972_v23 = vcombine.high %v806_v15, %v818_v19  ;;  %v662_v24 = vld [vmem:[#allocation2 + $0x788] sm:$0xff]  ;;  %v15118_v14 = vcombine.high %v951_v3, %v963_v5  ;;  %v939_v15 = vld [vmem:[#allocation2 + $0x1030] sm:$0xff]  ;;  %v15117_v19 = vcombine.low %v951_v3, %v963_v5 }
  0x81   : > { %4557 = vmatprep.subr.bf16.mxu1 %v14612_v25  ;;  %v674_v25 = vld [vmem:[#allocation2 + $0x7e8] sm:$0xff]  ;;  %v819_v57 = vld [vmem:[#allocation2 + $0xc70] sm:$0xff] }
  0x82   : > { %v14828_v37 = vcombine.high %v662_v24, %v674_v25  ;;  %v1034_v39 = vld [vmem:[#allocation2 + $0x1328] sm:$0xff]  ;;  %v14827_v40 = vcombine.low %v662_v24, %v674_v25  ;;  %v903_v24 = vld [vmem:[#allocation2 + $0xf10] sm:$0xff]  ;;  %v15094_v25 = vcombine.high %v927_v13, %v939_v15 }
  0x83   : > { %4621 = vmatpush1.bf16.msra.mxu0 %v15115_v30  ;;  %4535 = vmatmul.mubr.bf16.gmra.mxu1 %v17254_v31  ;;  %v15212_v30 = vcombine.high %v1046_v27, %v1046_v27  ;;  %v1010_v49 = vld [vmem:[#allocation2 + $0x1268] sm:$0xff]  ;;  %v783_v60 = vld [vmem:[#allocation2 + $0xb50] sm:$0xff] }
  0x84   : > { %4558 = vmatpush1.bf16.msra.mxu1 %v14611_v32  ;;  %4622 = vmatprep.subr.bf16.mxu0 %v15092_v33  ;;  %v15211_v32 = vcombine.low %v1046_v27, %v1046_v27  ;;  %v638_v33 = vld [vmem:[#allocation2 + $0x6c8] sm:$0xff]  ;;  %v771_v3 = vld [vmem:[#allocation2 + $0xaf0] sm:$0xff] }
  0x85   : > { %4559 = vmatprep.subr.bf16.mxu1 %v14588_v34  ;;  %4577 = vmatprep.mubr.bf16.mxu1 %v17213_v59  ;;  %v14924_v59 = vcombine.high %v758_v50, %v770_v51  ;;  %v650_v34 = vld [vmem:[#allocation2 + $0x728] sm:$0xff]  ;;  %v15187_v50 = vcombine.low %v1022_v35, %v1034_v39 }
  0x86   : > { %4442 = vmatmul.mubr.bf16.gmra.mxu0 %v17257_v38  ;;  %v14804_v48 = vcombine.high %v638_v33, %v650_v34  ;;  %v14803_v51 = vcombine.low %v638_v33, %v650_v34  ;;  %v891_v33 = vld [vmem:[#allocation2 + $0xeb0] sm:$0xff] }
  0x87   : > { %4623 = vmatpush1.bf16.msra.mxu0 %v15091_v41  ;;  %4451 = vmatprep.mubr.bf16.mxu0 %v17260_v43  ;;  %v4334_v41 = vsel %vm4326_vm1, %v15211_v32, 0  ;;  %v471_v34 = vld [vmem:[#allocation2 + $0x190] sm:$0xff] }
  0x88   : > { %4560 = vmatpush1.bf16.msra.mxu1 %v14587_v45  ;;  %4624 = vmatprep.subr.bf16.mxu0 %v15068_v46  ;;  %v15188_v45 = vcombine.high %v1022_v35, %v1034_v39  ;;  %v626_v46 = vld [vmem:[#allocation2 + $0x668] sm:$0xff]  ;;  %v855_v39 = vld [vmem:[#allocation2 + $0xd90] sm:$0xff] }
  0x89   : > { %4561 = vmatprep.subr.bf16.mxu1 %v14948_v47  ;;  %v998_v47 = vld [vmem:[#allocation2 + $0x1208] sm:$0xff] }
  0x8b   : > { %4625 = vmatpush1.bf16.msra.mxu0 %v15067_v52  ;;  %v15164_v52 = vcombine.high %v998_v47, %v1010_v49 }
  0x8c   : > { %4562 = vmatpush2.bf16.msra.mxu1 %v14947_v53  ;;  %4626 = vmatprep.subr.bf16.mxu0 %v15044_v55  ;;  %v591_v53 = vld [vmem:[#allocation2 + $0x550] sm:$0xff] }
  0x8d   : > { %4563 = vmatprep.subr.bf16.mxu1 %v14924_v59  ;;  %v603_v55 = vld [vmem:[#allocation2 + $0x5b0] sm:$0xff]  ;;  %v15163_v59 = vcombine.low %v998_v47, %v1010_v49 }
  0x8e   : > { %4452 = vmatmul.mubr.bf16.gmra.mxu0 %v17267_v54  ;;  %v831_v47 = vld [vmem:[#allocation2 + $0xcd0] sm:$0xff] }
  0x8f   : > { %4627 = vmatpush1.bf16.msra.mxu0 %v15043_v0  ;;  %4461 = vmatprep.mubr.bf16.mxu0 %v17270_v62  ;;  %v14758_v0 = vcombine.high %v591_v53, %v603_v55  ;;  %v843_v49 = vld [vmem:[#allocation2 + $0xd30] sm:$0xff] }
  0x90   : > { %4564 = vmatpush2.bf16.msra.mxu1 %v14923_v1  ;;  %4628 = vmatprep.subr.bf16.mxu0 %v15020_v2  ;;  %v567_v1 = vld [vmem:[#allocation2 + $0x490] sm:$0xff] }
  0x91   : > { %4565 = vmatprep.subr.bf16.mxu1 %v14900_v6  ;;  %v579_v2 = vld [vmem:[#allocation2 + $0x4f0] sm:$0xff]  ;;  %v14757_v6 = vcombine.low %v591_v53, %v603_v55  ;;  %v14998_v55 = vcombine.high %v831_v47, %v843_v49 }
  0x92   : > { %v807_v53 = vld [vmem:[#allocation2 + $0xc10] sm:$0xff] }
  0x93   : > { %4629 = vmatpush1.bf16.msra.mxu0 %v15019_v8  ;;  %v14734_v8 = vcombine.high %v567_v1, %v579_v2 }
  0x94   : > { %4566 = vmatpush2.bf16.msra.mxu1 %v14899_v9  ;;  %4630 = vmatprep.subr.bf16.mxu0 %v14996_v12  ;;  %v543_v9 = vld [vmem:[#allocation2 + $0x3d0] sm:$0xff] }
  0x95   : > { %4567 = vmatprep.subr.bf16.mxu1 %v14876_v16  ;;  %v555_v12 = vld [vmem:[#allocation2 + $0x430] sm:$0xff]  ;;  %v14733_v16 = vcombine.low %v567_v1, %v579_v2 }
  0x96   : > { %4462 = vmatmul.mubr.bf16.gmra.mxu0 %v17275_v10  ;;  %v759_v2 = vld [vmem:[#allocation2 + $0xa90] sm:$0xff] }
  0x97   : > { %4631 = vmatpush1.bf16.msra.mxu0 %v14995_v20  ;;  %15239 = vmatprep.mubr.msk.bf16.mxu0 %vm4313_vm0, %v17208_v42  ;;  %v614_v42 = vld [vmem:[#allocation2 + $0x608] sm:$0xff]  ;;  %v14710_v20 = vcombine.high %v543_v9, %v555_v12 }
  0x98   : > { %4568 = vmatpush2.bf16.msra.mxu1 %v14875_v21  ;;  %4632 = vmatprep.subr.bf16.mxu0 %v14972_v23  ;;  %v14780_v58 = vcombine.high %v614_v42, %v626_v46  ;;  %v14779_v61 = vcombine.low %v614_v42, %v626_v46  ;;  %v519_v21 = vld [vmem:[#allocation2 + $0x310] sm:$0xff] }
  0x99   : > { %4569 = vmatprep.subr.bf16.mxu1 %v14852_v26  ;;  %v531_v23 = vld [vmem:[#allocation2 + $0x370] sm:$0xff] }
  0x9a   : > { %v915_v26 = vld [vmem:[#allocation2 + $0xf70] sm:$0xff]  ;;  %v14686_v27 = vcombine.high %v519_v21, %v531_v23 }
  0x9b   : > { %4633 = vmatpush1.bf16.msra.mxu0 %v14971_v28  ;;  %v495_v28 = vld [vmem:[#allocation2 + $0x250] sm:$0xff]  ;;  %v15070_v32 = vcombine.high %v903_v24, %v915_v26 }
  0x9c   : > { %4570 = vmatpush2.bf16.msra.mxu1 %v14851_v29  ;;  %15238 = vmatprep.subr.msk.bf16.mxu0 %vm4326_vm1, %v15212_v30  ;;  %v507_v29 = vld [vmem:[#allocation2 + $0x2b0] sm:$0xff] }
  0x9d   : > { %4571 = vmatprep.subr.bf16.mxu1 %v14828_v37  ;;  %v879_v30 = vld [vmem:[#allocation2 + $0xe50] sm:$0xff]  ;;  %v14662_v35 = vcombine.high %v495_v28, %v507_v29 }
  0x9e   : > { %v483_v37 = vld [vmem:[#allocation2 + $0x1f0] sm:$0xff] }
  0x9f   : > { %4645 = vmatpush2.bf16.msra.mxu0 %v4334_v41  ;;  %v15046_v41 = vcombine.high %v879_v30, %v891_v33  ;;  %v447_v42 = vld [vmem:[#allocation2 + $0xd0] sm:$0xff] }
  0xa0   : > { %4572 = vmatpush2.bf16.msra.mxu1 %v14827_v40  ;;  %4646 = vmatprep.subr.bf16.mxu0 %v15188_v45  ;;  %v867_v40 = vld [vmem:[#allocation2 + $0xdf0] sm:$0xff]  ;;  %v14638_v45 = vcombine.high %v471_v34, %v483_v37 }
  0xa1   : > { %4573 = vmatprep.subr.bf16.mxu1 %v14804_v48  ;;  %v459_v46 = vld [vmem:[#allocation2 + $0x130] sm:$0xff]  ;;  %v15022_v48 = vcombine.high %v855_v39, %v867_v40 }
  0xa3   : > { %4647 = vmatpush2.bf16.msra.mxu0 %v15187_v50  ;;  %v14614_v50 = vcombine.high %v447_v42, %v459_v46 }
  0xa4   : > { %4574 = vmatpush2.bf16.msra.mxu1 %v14803_v51  ;;  %4648 = vmatprep.subr.bf16.mxu0 %v15164_v52  ;;  %v423_v51 = vld [vmem:[#allocation2 + $0x10] sm:$0xff] }
  0xa5   : > { %4575 = vmatprep.subr.bf16.mxu1 %v14780_v58  ;;  %v435_v52 = vld [vmem:[#allocation2 + $0x70] sm:$0xff] }
  0xa6   : > { %v14590_v58 = vcombine.high %v423_v51, %v435_v52 }
  0xa7   : > { %4649 = vmatpush2.bf16.msra.mxu0 %v15163_v59  ;;  %v795_v59 = vld [vmem:[#allocation2 + $0xbb0] sm:$0xff] }
  0xa8   : > { %4576 = vmatpush2.bf16.msra.mxu1 %v14779_v61  ;;  %4691 = vmatprep.subr.bf16.mxu0 %v14758_v0  ;;  %v14974_v61 = vcombine.high %v807_v53, %v819_v57  ;;  %v1047_v0 = vld [vmem:[#allocation2 + $0x1390] sm:$0x33]  ;;  %v14950_v1 = vcombine.high %v783_v60, %v795_v59 }
  0xa9   : > { %4764 = vmatprep.subr.bf16.mxu1 %v15142_v4  ;;  %v1023_v4 = vld [vmem:[#allocation2 + $0x12d0] sm:$0xff]  ;;  %v15214_v5 = vcombine.high %v1047_v0, %v1047_v0 }
  0xaa   : > { %4651 = vmatmul.mubr.bf16.vlgmr.msra.gmra.mxu0 %v17219_v36  ;;  %v14709_v36 = vcombine.low %v543_v9, %v555_v12  ;;  %v14926_v9 = vcombine.high %v759_v2, %v771_v3  ;;  %v735_v12 = vld [vmem:[#allocation2 + $0x9d0] sm:$0xff] }
  0xab   : > { %4578 = vmatmul.mubr.bf16.vlgmr.msra.gmra.mxu1 %v17243_v18  ;;  %4692 = vmatpush1.bf16.msra.mxu0 %v14757_v6  ;;  %v15093_v18 = vcombine.low %v927_v13, %v939_v15  ;;  %v15213_v6 = vcombine.low %v1047_v0, %v1047_v0  ;;  %v747_v13 = vld [vmem:[#allocation2 + $0xa30] sm:$0xff] }
  0xac   : > { %4765 = vmatpush1.bf16.msra.mxu1 %v15141_v7  ;;  %4693 = vmatprep.subr.bf16.mxu0 %v14734_v8  ;;  %v1035_v7 = vld [vmem:[#allocation2 + $0x1330] sm:$0xff]  ;;  %v17300_v8 = vld [vmem:[%s17205_s30 + $0xc] ss:$16 sps:$4 sm:$0xff]  }
  0xad   : > { %4766 = vmatprep.subr.bf16.mxu1 %v15118_v14  ;;  %4587 = vmatprep.mubr.bf16.mxu1 %v17246_v22  ;;  %v14685_v22 = vcombine.low %v519_v21, %v531_v23  ;;  %v999_v14 = vld [vmem:[#allocation2 + $0x1210] sm:$0xff]  ;;  %v4340_v15 = vsel %vm4326_vm1, %v15213_v6, 0  ;;  %v15189_v21 = vcombine.low %v1023_v4, %v1035_v7  ;;  %v14902_v23 = vcombine.high %v735_v12, %v747_v13 }
  0xae   : > { %15240 = vmatprep.mubr.msk.bf16.mxu0 %vm4313_vm0, %v17222_v44  ;;  %v15069_v44 = vcombine.low %v903_v24, %v915_v26  ;;  %v711_v24 = vld [vmem:[#allocation2 + $0x910] sm:$0xff]  ;;  %v592_v26 = vld [vmem:[#allocation2 + $0x558] sm:$0xff] }
  0xaf   : > { %4694 = vmatpush1.bf16.msra.mxu0 %v14733_v16  ;;  %v15190_v16 = vcombine.high %v1023_v4, %v1035_v7  ;;  %v988_v4 = vld [vmem:[#allocation2 + $0x11b8] sm:$0xff] }
  0xb0   : > { %4767 = vmatpush1.bf16.msra.mxu1 %v15117_v19  ;;  %4695 = vmatprep.subr.bf16.mxu0 %v14710_v20  ;;  %v1011_v19 = vld [vmem:[#allocation2 + $0x1270] sm:$0xff]  ;;  %v14925_v20 = vcombine.low %v759_v2, %v771_v3  ;;  %v976_v2 = vld [vmem:[#allocation2 + $0x1158] sm:$0xff] }
  0xb1   : > { %4768 = vmatprep.subr.bf16.mxu1 %v15094_v25  ;;  %v723_v25 = vld [vmem:[#allocation2 + $0x970] sm:$0xff] }
  0xb2   : > { %4661 = vmatmul.mubr.bf16.gmra.mxu0 %v17228_v56  ;;  %v14661_v56 = vcombine.low %v495_v28, %v507_v29  ;;  %v15165_v28 = vcombine.low %v999_v14, %v1011_v19  ;;  %v14878_v29 = vcombine.high %v711_v24, %v723_v25 }
  0xb3   : > { %4588 = vmatmul.mubr.bf16.gmra.mxu1 %v17257_v38  ;;  %4696 = vmatpush1.bf16.msra.mxu0 %v14709_v36  ;;  %v15045_v38 = vcombine.low %v879_v30, %v891_v33  ;;  %v15166_v36 = vcombine.high %v999_v14, %v1011_v19  ;;  %v687_v30 = vld [vmem:[#allocation2 + $0x850] sm:$0xff]  ;;  %v568_v33 = vld [vmem:[#allocation2 + $0x498] sm:$0xff] }
  0xb4   : > { %4769 = vmatpush1.bf16.msra.mxu1 %v15093_v18  ;;  %4697 = vmatprep.subr.bf16.mxu0 %v14686_v27  ;;  %v604_v18 = vld [vmem:[#allocation2 + $0x5b8] sm:$0xff]  ;;  %v14901_v27 = vcombine.low %v735_v12, %v747_v13 }
  0xb5   : > { %4770 = vmatprep.subr.bf16.mxu1 %v15070_v32  ;;  %4597 = vmatprep.mubr.bf16.mxu1 %v17260_v43  ;;  %v14637_v43 = vcombine.low %v471_v34, %v483_v37  ;;  %v699_v32 = vld [vmem:[#allocation2 + $0x8b0] sm:$0xff]  ;;  %v580_v34 = vld [vmem:[#allocation2 + $0x4f8] sm:$0xff] }
  0xb6   : > { %15241 = vmatprep.mubr.msk.bf16.mxu0 %vm4313_vm0, %v17231_v63  ;;  %v15021_v63 = vcombine.low %v855_v39, %v867_v40  ;;  %v14854_v37 = vcombine.high %v687_v30, %v699_v32  ;;  %v663_v39 = vld [vmem:[#allocation2 + $0x790] sm:$0xff]  ;;  %v460_v12 = vld [vmem:[#allocation2 + $0x138] sm:$0xff] }
  0xb7   : > { %4698 = vmatpush1.bf16.msra.mxu0 %v14685_v22  ;;  %v14760_v22 = vcombine.high %v592_v26, %v604_v18  ;;  %v675_v40 = vld [vmem:[#allocation2 + $0x7f0] sm:$0xff]  ;;  %v952_v13 = vld [vmem:[#allocation2 + $0x1098] sm:$0xff] }
  0xb8   : > { %4771 = vmatpush1.bf16.msra.mxu1 %v15069_v44  ;;  %4699 = vmatprep.subr.bf16.mxu0 %v14662_v35  ;;  %v14877_v44 = vcombine.low %v711_v24, %v723_v25  ;;  %v14759_v35 = vcombine.low %v592_v26, %v604_v18  ;;  %v17329_v19 = vld [vmem:[%s17205_s30 + $0x48] ss:$16 sps:$4 sm:$0xff]   ;;  %v17333_v18 = vld [vmem:[%s17205_s30 + $0x6c] ss:$16 sps:$4 sm:$0xff]  }
  0xb9   : > { %4772 = vmatprep.subr.bf16.mxu1 %v15046_v41  ;;  %v544_v41 = vld [vmem:[#allocation2 + $0x3d8] sm:$0xff] }
  0xba   : > { %4671 = vmatmul.mubr.bf16.gmra.mxu0 %v17237_v11  ;;  %v14613_v11 = vcombine.low %v447_v42, %v459_v46  ;;  %v14853_v42 = vcombine.low %v687_v30, %v699_v32  ;;  %v14735_v46 = vcombine.low %v568_v33, %v580_v34  ;;  %v436_v24 = vld [vmem:[#allocation2 + $0x78] sm:$0xff] }
  0xbb   : > { %4598 = vmatmul.mubr.bf16.gmra.mxu1 %v17267_v54  ;;  %4700 = vmatpush1.bf16.msra.mxu0 %v14661_v56  ;;  %v14997_v54 = vcombine.low %v831_v47, %v843_v49  ;;  %v14736_v56 = vcombine.high %v568_v33, %v580_v34  ;;  %v14830_v47 = vcombine.high %v663_v39, %v675_v40  ;;  %v651_v49 = vld [vmem:[#allocation2 + $0x730] sm:$0xff]  ;;  %v928_v25 = vld [vmem:[#allocation2 + $0xfd8] sm:$0xff] }
  0xbc   : > { %4773 = vmatpush1.bf16.msra.mxu1 %v15045_v38  ;;  %4701 = vmatprep.subr.bf16.mxu0 %v14638_v45  ;;  %v556_v38 = vld [vmem:[#allocation2 + $0x438] sm:$0xff] }
  0xbd   : > { %4774 = vmatprep.subr.bf16.mxu1 %v15022_v48  ;;  %4607 = vmatprep.mubr.bf16.mxu1 %v17270_v62  ;;  %v14589_v62 = vcombine.low %v423_v51, %v435_v52  ;;  %v17311_v45 = vld [vmem:[%s17205_s30 + $0x8] ss:$16 sps:$4 sm:$0xff]   ;;  %v639_v48 = vld [vmem:[#allocation2 + $0x6d0] sm:$0xff]  ;;  %v17315_v51 = vld [vmem:[%s17205_s30 + $0x2c] ss:$16 sps:$4 sm:$0xff]   ;;  %v14829_v52 = vcombine.low %v663_v39, %v675_v40 }
  0xbe   : > { %15242 = vmatprep.mubr.msk.bf16.mxu0 %vm4313_vm0, %v17240_v17  ;;  %v14973_v17 = vcombine.low %v807_v53, %v819_v57  ;;  %v14711_v53 = vcombine.low %v544_v41, %v556_v38  ;;  %v615_v57 = vld [vmem:[#allocation2 + $0x610] sm:$0xff]  ;;  %v784_v33 = vld [vmem:[#allocation2 + $0xb58] sm:$0xff] }
  0xbf   : > { %4702 = vmatpush1.bf16.msra.mxu0 %v14637_v43  ;;  %v520_v43 = vld [vmem:[#allocation2 + $0x318] sm:$0xff] }
  0xc0   : > { %4775 = vmatpush1.bf16.msra.mxu1 %v15021_v63  ;;  %4703 = vmatprep.subr.bf16.mxu0 %v14614_v50  ;;  %v14712_v63 = vcombine.high %v544_v41, %v556_v38  ;;  %v532_v50 = vld [vmem:[#allocation2 + $0x378] sm:$0xff] }
  0xc1   : > { %4776 = vmatprep.subr.bf16.mxu1 %v14998_v55  ;;  %v14806_v55 = vcombine.high %v639_v48, %v651_v49  ;;  %v14687_v0 = vcombine.low %v520_v43, %v532_v50  ;;  %v904_v34 = vld [vmem:[#allocation2 + $0xf18] sm:$0xff] }
  0xc2   : > { %4681 = vmatmul.mubr.bf16.gmra.mxu0 %v17254_v31  ;;  %v17305_v31 = vld [vmem:[%s17205_s30 + $0x4] ss:$16 sps:$4 sm:$0xff]   ;;  %v17346_v39 = vld [vmem:[%s17205_s30 + $0x68] ss:$16 sps:$4 sm:$0xff]  }
  0xc3   : > { %4608 = vmatmul.mubr.bf16.gmra.mxu1 %v17275_v10  ;;  %4704 = vmatpush1.bf16.msra.mxu0 %v14613_v11  ;;  %v14949_v10 = vcombine.low %v783_v60, %v795_v59  ;;  %v627_v11 = vld [vmem:[#allocation2 + $0x670] sm:$0xff]  ;;  %v508_v60 = vld [vmem:[#allocation2 + $0x2b8] sm:$0xff]  ;;  %v14805_v59 = vcombine.low %v639_v48, %v651_v49 }
  0xc4   : > { %4777 = vmatpush1.bf16.msra.mxu1 %v14997_v54  ;;  %4705 = vmatprep.subr.bf16.mxu0 %v14590_v58  ;;  %v496_v54 = vld [vmem:[#allocation2 + $0x258] sm:$0xff]  ;;  %v14688_v58 = vcombine.high %v520_v43, %v532_v50  ;;  %v14781_v6 = vcombine.low %v615_v57, %v627_v11  ;;  %v17351_v48 = vld [vmem:[%s17205_s30 + $0x20] ss:$16 sps:$4 sm:$0xff]   ;;  %v17355_v43 = vld [vmem:[%s17205_s30 + $0x44] ss:$16 sps:$4 sm:$0xff]  }
  0xc5   : > { %4778 = vmatprep.subr.bf16.mxu1 %v14974_v61  ;;  %15244 = vmatprep.mubr.msk.bf16.mxu1 %vm4313_vm0, %v17300_v8  ;;  %v17320_v61 = vld [vmem:[%s17205_s30 + $0x28] ss:$16 sps:$4 sm:$0xff]   ;;  %v14664_v3 = vcombine.high %v496_v54, %v508_v60  ;;  %v14663_v7 = vcombine.low %v496_v54, %v508_v60 }
  0xc6   : > { %4723 = vmatprep.mubr.bf16.mxu0 %v17305_v31  ;;  %v772_v38 = vld [vmem:[#allocation2 + $0xaf8] sm:$0xff] }
  0xc7   : > { %4706 = vmatpush1.bf16.msra.mxu0 %v14589_v62  ;;  %v14782_v62 = vcombine.high %v615_v57, %v627_v11  ;;  %v868_v57 = vld [vmem:[#allocation2 + $0xdf8] sm:$0xff] }
  0xc8   : > { %4779 = vmatpush1.bf16.msra.mxu1 %v14973_v17  ;;  %4707 = vmatprep.subr.bf16.mxu0 %v14950_v1  ;;  %v472_v17 = vld [vmem:[#allocation2 + $0x198] sm:$0xff] }
  0xc9   : > { %15243 = vmatprep.subr.msk.bf16.mxu1 %vm4326_vm1, %v15214_v5  ;;  %v484_v1 = vld [vmem:[#allocation2 + $0x1f8] sm:$0xff] }
  0xca   : > { %v17324_v5 = vld [vmem:[%s17205_s30 + $0x4c] ss:$16 sps:$4 sm:$0xff]   ;;  %v14640_v14 = vcombine.high %v472_v17, %v484_v1 }
  0xcb   : > { %4708 = vmatpush2.bf16.msra.mxu0 %v14949_v10  ;;  %v15144_v10 = vcombine.high %v976_v2, %v988_v4 }
  0xcc   : > { %4791 = vmatpush2.bf16.msra.mxu1 %v4340_v15  ;;  %4709 = vmatprep.subr.bf16.mxu0 %v14926_v9  ;;  %v448_v9 = vld [vmem:[#allocation2 + $0xd8] sm:$0xff] }
  0xcd   : > { %4792 = vmatprep.subr.bf16.mxu1 %v15190_v16  ;;  %v964_v15 = vld [vmem:[#allocation2 + $0x10f8] sm:$0xff]  ;;  %v15143_v16 = vcombine.low %v976_v2, %v988_v4  ;;  %v14616_v26 = vcombine.high %v448_v9, %v460_v12  ;;  %v14615_v30 = vcombine.low %v448_v9, %v460_v12  ;;  %v17359_v2 = vld [vmem:[%s17205_s30 + $0x40] ss:$16 sps:$4 sm:$0xff]   ;;  %v17363_v4 = vld [vmem:[%s17205_s30 + $0x64] ss:$16 sps:$4 sm:$0xff]  }
  0xce   : > { %v700_v9 = vld [vmem:[#allocation2 + $0x8b8] sm:$0xff] }
  0xcf   : > { %4710 = vmatpush2.bf16.msra.mxu0 %v14925_v20  ;;  %v14639_v20 = vcombine.low %v472_v17, %v484_v1  ;;  %v844_v1 = vld [vmem:[#allocation2 + $0xd38] sm:$0xff] }
  0xd0   : > { %4793 = vmatpush2.bf16.msra.mxu1 %v15189_v21  ;;  %4711 = vmatprep.subr.bf16.mxu0 %v14902_v23  ;;  %v15120_v21 = vcombine.high %v952_v13, %v964_v15  ;;  %v424_v23 = vld [vmem:[#allocation2 + $0x18] sm:$0xff] }
  0xd1   : > { %4794 = vmatprep.subr.bf16.mxu1 %v15166_v36  ;;  %v940_v36 = vld [vmem:[#allocation2 + $0x1038] sm:$0xff]  ;;  %v14591_v40 = vcombine.low %v424_v23, %v436_v24 }
  0xd2   : > { %v15096_v32 = vcombine.high %v928_v25, %v940_v36  ;;  %v808_v12 = vld [vmem:[#allocation2 + $0xc18] sm:$0xff] }
  0xd3   : > { %4712 = vmatpush2.bf16.msra.mxu0 %v14901_v27  ;;  %v17338_v27 = vld [vmem:[%s17205_s30] ss:$16 sps:$4 sm:$0xff]  }
  0xd4   : > { %4795 = vmatpush2.bf16.msra.mxu1 %v15165_v28  ;;  %4713 = vmatprep.subr.bf16.mxu0 %v14878_v29  ;;  %v15119_v28 = vcombine.low %v952_v13, %v964_v15  ;;  %v17342_v29 = vld [vmem:[%s17205_s30 + $0x24] ss:$16 sps:$4 sm:$0xff]  }
  0xd5   : > { %4837 = vmatprep.subr.bf16.mxu1 %v14760_v22  ;;  %v796_v22 = vld [vmem:[#allocation2 + $0xbb8] sm:$0xff] }
  0xd7   : > { %4797 = vmatmul.mubr.bf16.vlgmr.msra.gmra.mxu1 %v17311_v45  ;;  %4714 = vmatpush2.bf16.msra.mxu0 %v14877_v44  ;;  %v14592_v44 = vcombine.high %v424_v23, %v436_v24  ;;  %v676_v23 = vld [vmem:[#allocation2 + $0x7f8] sm:$0xff] }
  0xd8   : > { %4838 = vmatpush1.bf16.msra.mxu1 %v14759_v35  ;;  %4715 = vmatprep.subr.bf16.mxu0 %v14854_v37  ;;  %v916_v35 = vld [vmem:[#allocation2 + $0xf78] sm:$0xff]  ;;  %v15095_v37 = vcombine.low %v928_v25, %v940_v36 }
  0xd9   : > { %4839 = vmatprep.subr.bf16.mxu1 %v14736_v56  ;;  %15245 = vmatprep.mubr.msk.bf16.mxu1 %vm4313_vm0, %v17315_v51  ;;  %v15072_v41 = vcombine.high %v904_v34, %v916_v35  ;;  %v760_v56 = vld [vmem:[#allocation2 + $0xa98] sm:$0xff]  ;;  %v15071_v49 = vcombine.low %v904_v34, %v916_v35 }
  0xda   : > { %v14928_v11 = vcombine.high %v760_v56, %v772_v38  ;;  %v1048_v25 = vld [vmem:[#allocation2 + $0x1398] sm:$0x33] }
  0xdb   : > { %4716 = vmatpush2.bf16.msra.mxu0 %v14853_v42  ;;  %v880_v42 = vld [vmem:[#allocation2 + $0xe58] sm:$0xff] }
  0xdc   : > { %4840 = vmatpush1.bf16.msra.mxu1 %v14735_v46  ;;  %4717 = vmatprep.subr.bf16.mxu0 %v14830_v47  ;;  %v14952_v46 = vcombine.high %v784_v33, %v796_v22  ;;  %v892_v47 = vld [vmem:[#allocation2 + $0xeb8] sm:$0xff] }
  0xdd   : > { %4841 = vmatprep.subr.bf16.mxu1 %v14712_v63  ;;  %v14951_v63 = vcombine.low %v784_v33, %v796_v22  ;;  %v15048_v50 = vcombine.high %v880_v42, %v892_v47  ;;  %v15047_v54 = vcombine.low %v880_v42, %v892_v47  ;;  %v640_v33 = vld [vmem:[#allocation2 + $0x6d8] sm:$0xff] }
  0xde   : > { %v652_v22 = vld [vmem:[#allocation2 + $0x738] sm:$0xff] }
  0xdf   : > { %4718 = vmatpush2.bf16.msra.mxu0 %v14829_v52  ;;  %4807 = vmatmul.mubr.bf16.gmra.mxu1 %v17320_v61  ;;  %v736_v52 = vld [vmem:[#allocation2 + $0x9d8] sm:$0xff] }
  0xe0   : > { %4842 = vmatpush1.bf16.msra.mxu1 %v14711_v53  ;;  %4719 = vmatprep.subr.bf16.mxu0 %v14806_v55  ;;  %v748_v53 = vld [vmem:[#allocation2 + $0xa38] sm:$0xff] }
  0xe1   : > { %4843 = vmatprep.subr.bf16.mxu1 %v14688_v58  ;;  %15246 = vmatprep.mubr.msk.bf16.mxu1 %vm4313_vm0, %v17324_v5  ;;  %v856_v55 = vld [vmem:[#allocation2 + $0xd98] sm:$0xff]  ;;  %v14927_v58 = vcombine.low %v760_v56, %v772_v38  ;;  %v14904_v17 = vcombine.high %v736_v52, %v748_v53  ;;  %v14808_v56 = vcombine.high %v640_v33, %v652_v22 }
  0xe2   : > { %v15024_v60 = vcombine.high %v856_v55, %v868_v57  ;;  %v1024_v34 = vld [vmem:[#allocation2 + $0x12d8] sm:$0xff] }
  0xe3   : > { %4720 = vmatpush2.bf16.msra.mxu0 %v14805_v59  ;;  %v712_v59 = vld [vmem:[#allocation2 + $0x918] sm:$0xff] }
  0xe4   : > { %4844 = vmatpush1.bf16.msra.mxu1 %v14687_v0  ;;  %4721 = vmatprep.subr.bf16.mxu0 %v14782_v62  ;;  %v724_v0 = vld [vmem:[#allocation2 + $0x978] sm:$0xff] }
  0xe5   : > { %4845 = vmatprep.subr.bf16.mxu1 %v14664_v3  ;;  %v832_v62 = vld [vmem:[#allocation2 + $0xcd8] sm:$0xff]  ;;  %v15023_v3 = vcombine.low %v856_v55, %v868_v57  ;;  %v14880_v13 = vcombine.high %v712_v59, %v724_v0  ;;  %v605_v55 = vld [vmem:[#allocation2 + $0x5c0] sm:$0xff] }
  0xe6   : > { %v14999_v15 = vcombine.low %v832_v62, %v844_v1  ;;  %v1036_v35 = vld [vmem:[#allocation2 + $0x1338] sm:$0xff]  ;;  %v977_v57 = vld [vmem:[#allocation2 + $0x1160] sm:$0xff] }
  0xe7   : > { %4722 = vmatpush2.bf16.msra.mxu0 %v14781_v6  ;;  %4817 = vmatmul.mubr.bf16.gmra.mxu1 %v17329_v19  ;;  %v14903_v6 = vcombine.low %v736_v52, %v748_v53  ;;  %v1000_v38 = vld [vmem:[#allocation2 + $0x1218] sm:$0xff]  ;;  %v593_v53 = vld [vmem:[#allocation2 + $0x560] sm:$0xff] }
  0xe8   : > { %4846 = vmatpush1.bf16.msra.mxu1 %v14663_v7  ;;  %4910 = vmatprep.subr.bf16.mxu0 %v15144_v10  ;;  %v15000_v7 = vcombine.high %v832_v62, %v844_v1  ;;  %v688_v10 = vld [vmem:[#allocation2 + $0x858] sm:$0xff]  ;;  %v581_v62 = vld [vmem:[#allocation2 + $0x500] sm:$0xff] }
  0xe9   : > { %4847 = vmatprep.subr.bf16.mxu1 %v14640_v14  ;;  %15247 = vmatprep.mubr.msk.bf16.mxu1 %vm4313_vm0, %v17333_v18  ;;  %v820_v14 = vld [vmem:[#allocation2 + $0xc78] sm:$0xff]  ;;  %v14856_v24 = vcombine.high %v688_v10, %v700_v9  ;;  %v965_v1 = vld [vmem:[#allocation2 + $0x1100] sm:$0xff] }
  0xea   : > { %4724 = vmatmul.mubr.bf16.vlgmr.msra.gmra.mxu0 %v17338_v27  ;;  %v14975_v36 = vcombine.low %v808_v12, %v820_v14  ;;  %v1012_v42 = vld [vmem:[#allocation2 + $0x1278] sm:$0xff] }
  0xeb   : > { %4911 = vmatpush1.bf16.msra.mxu0 %v15143_v16  ;;  %4733 = vmatprep.mubr.bf16.mxu0 %v17342_v29  ;;  %v14879_v16 = vcombine.low %v712_v59, %v724_v0  ;;  %v628_v47 = vld [vmem:[#allocation2 + $0x678] sm:$0xff]  ;;  %v569_v0 = vld [vmem:[#allocation2 + $0x4a0] sm:$0xff] }
  0xec   : > { %4848 = vmatpush1.bf16.msra.mxu1 %v14639_v20  ;;  %4912 = vmatprep.subr.bf16.mxu0 %v15120_v21  ;;  %v14976_v20 = vcombine.high %v808_v12, %v820_v14  ;;  %v664_v21 = vld [vmem:[#allocation2 + $0x798] sm:$0xff]  ;;  %v557_v12 = vld [vmem:[#allocation2 + $0x440] sm:$0xff] }
  0xed   : > { %4849 = vmatprep.subr.bf16.mxu1 %v14616_v26  ;;  %v17367_v26 = vld [vmem:[%s17205_s30 + $0x60] ss:$16 sps:$4 sm:$0xff]  }
  0xee   : > { %v941_v14 = vld [vmem:[#allocation2 + $0x1040] sm:$0xff] }
  0xef   : > { %4913 = vmatpush1.bf16.msra.mxu0 %v15119_v28  ;;  %4827 = vmatmul.mubr.bf16.gmra.mxu1 %v17346_v39  ;;  %v14855_v28 = vcombine.low %v688_v10, %v700_v9  ;;  %v545_v9 = vld [vmem:[#allocation2 + $0x3e0] sm:$0xff] }
  0xf0   : > { %4850 = vmatpush1.bf16.msra.mxu1 %v14615_v30  ;;  %4914 = vmatprep.subr.bf16.mxu0 %v15096_v32  ;;  %v15216_v30 = vcombine.high %v1048_v25, %v1048_v25  ;;  %v15215_v32 = vcombine.low %v1048_v25, %v1048_v25  ;;  %v905_v25 = vld [vmem:[#allocation2 + $0xf20] sm:$0xff] }
  0xf1   : > { %4851 = vmatprep.subr.bf16.mxu1 %v14592_v44  ;;  %4869 = vmatprep.mubr.bf16.mxu1 %v17305_v31  ;;  %v14832_v44 = vcombine.high %v664_v21, %v676_v23 }
  0xf2   : > { %4734 = vmatmul.mubr.bf16.gmra.mxu0 %v17351_v48 }
  0xf3   : > { %4915 = vmatpush1.bf16.msra.mxu0 %v15095_v37  ;;  %4743 = vmatprep.mubr.bf16.mxu0 %v17355_v43  ;;  %v14831_v37 = vcombine.low %v664_v21, %v676_v23  ;;  %v521_v23 = vld [vmem:[#allocation2 + $0x320] sm:$0xff] }
  0xf4   : > { %4852 = vmatpush1.bf16.msra.mxu1 %v14591_v40  ;;  %4916 = vmatprep.subr.bf16.mxu0 %v15072_v41  ;;  %v4346_v40 = vsel %vm4326_vm1, %v15215_v32, 0  ;;  %v15192_v41 = vcombine.high %v1024_v34, %v1036_v35 }
  0xf5   : > { %4853 = vmatprep.subr.bf16.mxu1 %v14952_v46  ;;  %v616_v46 = vld [vmem:[#allocation2 + $0x618] sm:$0xff] }
  0xf6   : > { %v14784_v52 = vcombine.high %v616_v46, %v628_v47 }
  0xf7   : > { %4917 = vmatpush1.bf16.msra.mxu0 %v15071_v49  ;;  %v15191_v49 = vcombine.low %v1024_v34, %v1036_v35  ;;  %v509_v34 = vld [vmem:[#allocation2 + $0x2c0] sm:$0xff] }
  0xf8   : > { %4854 = vmatpush2.bf16.msra.mxu1 %v14951_v63  ;;  %4918 = vmatprep.subr.bf16.mxu0 %v15048_v50  ;;  %v14807_v63 = vcombine.low %v640_v33, %v652_v22  ;;  %v15168_v50 = vcombine.high %v1000_v38, %v1012_v42  ;;  %v497_v22 = vld [vmem:[#allocation2 + $0x260] sm:$0xff] }
  0xf9   : > { %4855 = vmatprep.subr.bf16.mxu1 %v14928_v11  ;;  %v989_v11 = vld [vmem:[#allocation2 + $0x11c0] sm:$0xff] }
  0xfa   : > { %4744 = vmatmul.mubr.bf16.gmra.mxu0 %v17359_v2  ;;  %v15146_v59 = vcombine.high %v977_v57, %v989_v11  ;;  %v893_v35 = vld [vmem:[#allocation2 + $0xec0] sm:$0xff] }
  0xfb   : > { %4919 = vmatpush1.bf16.msra.mxu0 %v15047_v54  ;;  %4753 = vmatprep.mubr.bf16.mxu0 %v17363_v4  ;;  %v15167_v54 = vcombine.low %v1000_v38, %v1012_v42  ;;  %v473_v38 = vld [vmem:[#allocation2 + $0x1a0] sm:$0xff] }
  0xfc   : > { %4856 = vmatpush2.bf16.msra.mxu1 %v14927_v58  ;;  %4920 = vmatprep.subr.bf16.mxu0 %v15024_v60  ;;  %v14783_v58 = vcombine.low %v616_v46, %v628_v47  ;;  %v14762_v60 = vcombine.high %v593_v53, %v605_v55  ;;  %v485_v42 = vld [vmem:[#allocation2 + $0x200] sm:$0xff] }
  0xfd   : > { %4857 = vmatprep.subr.bf16.mxu1 %v14904_v17  ;;  %v953_v17 = vld [vmem:[#allocation2 + $0x10a0] sm:$0xff] }
  0xfe   : > { %v15122_v10 = vcombine.high %v953_v17, %v965_v1  ;;  %v857_v46 = vld [vmem:[#allocation2 + $0xda0] sm:$0xff] }
  0xff   : > { %4921 = vmatpush1.bf16.msra.mxu0 %v15023_v3  ;;  %v14761_v3 = vcombine.low %v593_v53, %v605_v55  ;;  %v869_v47 = vld [vmem:[#allocation2 + $0xe00] sm:$0xff] }
 0x100   : > { %4858 = vmatpush2.bf16.msra.mxu1 %v14903_v6  ;;  %4922 = vmatprep.subr.bf16.mxu0 %v15000_v7  ;;  %v15145_v6 = vcombine.low %v977_v57, %v989_v11  ;;  %v14738_v7 = vcombine.high %v569_v0, %v581_v62  ;;  %v449_v53 = vld [vmem:[#allocation2 + $0xe0] sm:$0xff] }
 0x101   : > { %4859 = vmatprep.subr.bf16.mxu1 %v14880_v13  ;;  %v929_v13 = vld [vmem:[#allocation2 + $0xfe0] sm:$0xff] }
 0x102   : > { %4754 = vmatmul.mubr.bf16.gmra.mxu0 %v17367_v26  ;;  %v15098_v21 = vcombine.high %v929_v13, %v941_v14  ;;  %v461_v55 = vld [vmem:[#allocation2 + $0x140] sm:$0xff] }
 0x103   : > { %4923 = vmatpush1.bf16.msra.mxu0 %v14999_v15  ;;  %15249 = vmatprep.mubr.msk.bf16.mxu0 %vm4313_vm0, %v17300_v8  ;;  %v14737_v15 = vcombine.low %v569_v0, %v581_v62  ;;  %v833_v57 = vld [vmem:[#allocation2 + $0xce0] sm:$0xff] }
 0x104   : > { %4860 = vmatpush2.bf16.msra.mxu1 %v14879_v16  ;;  %4924 = vmatprep.subr.bf16.mxu0 %v14976_v20  ;;  %v15121_v16 = vcombine.low %v953_v17, %v965_v1  ;;  %v14714_v20 = vcombine.high %v545_v9, %v557_v12  ;;  %v845_v11 = vld [vmem:[#allocation2 + $0xd40] sm:$0xff] }
 0x105   : > { %4861 = vmatprep.subr.bf16.mxu1 %v14856_v24  ;;  %v533_v24 = vld [vmem:[#allocation2 + $0x380] sm:$0xff] }
 0x106   : > { %v14690_v32 = vcombine.high %v521_v23, %v533_v24  ;;  %v425_v0 = vld [vmem:[#allocation2 + $0x20] sm:$0xff] }
 0x107   : > { %4925 = vmatpush1.bf16.msra.mxu0 %v14975_v36  ;;  %v917_v36 = vld [vmem:[#allocation2 + $0xf80] sm:$0xff] }
 0x108   : > { %4862 = vmatpush2.bf16.msra.mxu1 %v14855_v28  ;;  %15248 = vmatprep.subr.msk.bf16.mxu0 %vm4326_vm1, %v15216_v30  ;;  %v14713_v28 = vcombine.low %v545_v9, %v557_v12  ;;  %v15097_v30 = vcombine.low %v929_v13, %v941_v14  ;;  %v15074_v33 = vcombine.high %v905_v25, %v917_v36  ;;  %v437_v62 = vld [vmem:[#allocation2 + $0x80] sm:$0xff] }
 0x109   : > { %4863 = vmatprep.subr.bf16.mxu1 %v14832_v44  ;;  %v881_v44 = vld [vmem:[#allocation2 + $0xe60] sm:$0xff] }
 0x10a   : > { %v809_v17 = vld [vmem:[#allocation2 + $0xc20] sm:$0xff] }
 0x10b   : > { %4937 = vmatpush2.bf16.msra.mxu0 %v4346_v40  ;;  %v15073_v40 = vcombine.low %v905_v25, %v917_v36  ;;  %v821_v1 = vld [vmem:[#allocation2 + $0xc80] sm:$0xff] }
 0x10c   : > { %4864 = vmatpush2.bf16.msra.mxu1 %v14831_v37  ;;  %4938 = vmatprep.subr.bf16.mxu0 %v15192_v41  ;;  %v14689_v37 = vcombine.low %v521_v23, %v533_v24  ;;  %v14666_v41 = vcombine.high %v497_v22, %v509_v34  ;;  %v14978_v12 = vcombine.high %v809_v17, %v821_v1  ;;  %v785_v13 = vld [vmem:[#allocation2 + $0xb60] sm:$0xff] }
 0x10d   : > { %4865 = vmatprep.subr.bf16.mxu1 %v14808_v56  ;;  %v15050_v56 = vcombine.high %v881_v44, %v893_v35  ;;  %v797_v14 = vld [vmem:[#allocation2 + $0xbc0] sm:$0xff] }
 0x10e   : > { %v14954_v23 = vcombine.high %v785_v13, %v797_v14 }
 0x10f   : > { %4939 = vmatpush2.bf16.msra.mxu0 %v15191_v49  ;;  %v14665_v49 = vcombine.low %v497_v22, %v509_v34  ;;  %v14953_v22 = vcombine.low %v785_v13, %v797_v14 }
 0x110   : > { %4866 = vmatpush2.bf16.msra.mxu1 %v14807_v63  ;;  %4940 = vmatprep.subr.bf16.mxu0 %v15168_v50  ;;  %v15049_v63 = vcombine.low %v881_v44, %v893_v35  ;;  %v14642_v50 = vcombine.high %v473_v38, %v485_v42 }
 0x111   : > { %4867 = vmatprep.subr.bf16.mxu1 %v14784_v52  ;;  %v15026_v52 = vcombine.high %v857_v46, %v869_v47 }
 0x113   : > { %4941 = vmatpush2.bf16.msra.mxu0 %v15167_v54  ;;  %v14641_v54 = vcombine.low %v473_v38, %v485_v42  ;;  %v1013_v38 = vld [vmem:[#allocation2 + $0x1280] sm:$0xff] }
 0x114   : > { %4868 = vmatpush2.bf16.msra.mxu1 %v14783_v58  ;;  %4983 = vmatprep.subr.bf16.mxu0 %v14762_v60  ;;  %v15025_v58 = vcombine.low %v857_v46, %v869_v47  ;;  %v14618_v60 = vcombine.high %v449_v53, %v461_v55 }
 0x115   : > { %5056 = vmatprep.subr.bf16.mxu1 %v15146_v59  ;;  %v15002_v59 = vcombine.high %v833_v57, %v845_v11 }
 0x116   : > { %4943 = vmatmul.mubr.bf16.vlgmr.msra.gmra.mxu0 %v17311_v45 }
 0x117   : > { %4870 = vmatmul.mubr.bf16.vlgmr.msra.gmra.mxu1 %v17338_v27  ;;  %4984 = vmatpush1.bf16.msra.mxu0 %v14761_v3 }
 0x118   : > { %5057 = vmatpush1.bf16.msra.mxu1 %v15145_v6  ;;  %4985 = vmatprep.subr.bf16.mxu0 %v14738_v7  ;;  %v14617_v6 = vcombine.low %v449_v53, %v461_v55  ;;  %v15001_v7 = vcombine.low %v833_v57, %v845_v11  ;;  %v606_v53 = vld [vmem:[#allocation2 + $0x5c8] sm:$0xff] }
 0x119   : > { %5058 = vmatprep.subr.bf16.mxu1 %v15122_v10  ;;  %4879 = vmatprep.mubr.bf16.mxu1 %v17342_v29  ;;  %v14594_v10 = vcombine.high %v425_v0, %v437_v62 }
 0x11a   : > { %15250 = vmatprep.mubr.msk.bf16.mxu0 %vm4313_vm0, %v17315_v51 }
 0x11b   : > { %4986 = vmatpush1.bf16.msra.mxu0 %v14737_v15  ;;  %v1049_v15 = vld [vmem:[#allocation2 + $0x13a0] sm:$0x33] }
 0x11c   : > { %5059 = vmatpush1.bf16.msra.mxu1 %v15121_v16  ;;  %4987 = vmatprep.subr.bf16.mxu0 %v14714_v20  ;;  %v14593_v20 = vcombine.low %v425_v0, %v437_v62  ;;  %v15218_v25 = vcombine.high %v1049_v15, %v1049_v15  ;;  %v15217_v36 = vcombine.low %v1049_v15, %v1049_v15  ;;  %v570_v62 = vld [vmem:[#allocation2 + $0x4a8] sm:$0xff] }
 0x11d   : > { %5060 = vmatprep.subr.bf16.mxu1 %v15098_v21  ;;  %v14977_v21 = vcombine.low %v809_v17, %v821_v1  ;;  %v582_v17 = vld [vmem:[#allocation2 + $0x508] sm:$0xff] }
 0x11e   : > { %4953 = vmatmul.mubr.bf16.gmra.mxu0 %v17320_v61  ;;  %v4352_v35 = vsel %vm4326_vm1, %v15217_v36, 0  ;;  %v14740_v15 = vcombine.high %v570_v62, %v582_v17  ;;  %v558_v36 = vld [vmem:[#allocation2 + $0x448] sm:$0xff] }
 0x11f   : > { %4880 = vmatmul.mubr.bf16.gmra.mxu1 %v17351_v48  ;;  %4988 = vmatpush1.bf16.msra.mxu0 %v14713_v28  ;;  %v761_v28 = vld [vmem:[#allocation2 + $0xaa0] sm:$0xff] }
 0x120   : > { %5061 = vmatpush1.bf16.msra.mxu1 %v15097_v30  ;;  %4989 = vmatprep.subr.bf16.mxu0 %v14690_v32  ;;  %v773_v30 = vld [vmem:[#allocation2 + $0xb00] sm:$0xff] }
 0x121   : > { %5062 = vmatprep.subr.bf16.mxu1 %v15074_v33  ;;  %4889 = vmatprep.mubr.bf16.mxu1 %v17355_v43  ;;  %v1025_v32 = vld [vmem:[#allocation2 + $0x12e0] sm:$0xff]  ;;  %v14930_v44 = vcombine.high %v761_v28, %v773_v30 }
 0x122   : > { %15251 = vmatprep.mubr.msk.bf16.mxu0 %vm4313_vm0, %v17324_v5  ;;  %v1037_v33 = vld [vmem:[#allocation2 + $0x1340] sm:$0xff] }
 0x123   : > { %4990 = vmatpush1.bf16.msra.mxu0 %v14689_v37  ;;  %v15194_v37 = vcombine.high %v1025_v32, %v1037_v33  ;;  %v15193_v42 = vcombine.low %v1025_v32, %v1037_v33 }
 0x124   : > { %5063 = vmatpush1.bf16.msra.mxu1 %v15073_v40  ;;  %4991 = vmatprep.subr.bf16.mxu0 %v14666_v41  ;;  %v737_v40 = vld [vmem:[#allocation2 + $0x9e0] sm:$0xff] }
 0x125   : > { %5064 = vmatprep.subr.bf16.mxu1 %v15050_v56  ;;  %v749_v41 = vld [vmem:[#allocation2 + $0xa40] sm:$0xff] }
 0x126   : > { %4963 = vmatmul.mubr.bf16.gmra.mxu0 %v17329_v19  ;;  %v14906_v46 = vcombine.high %v737_v40, %v749_v41  ;;  %v14905_v55 = vcombine.low %v737_v40, %v749_v41  ;;  %v534_v40 = vld [vmem:[#allocation2 + $0x388] sm:$0xff] }
 0x127   : > { %4890 = vmatmul.mubr.bf16.gmra.mxu1 %v17359_v2  ;;  %4992 = vmatpush1.bf16.msra.mxu0 %v14665_v49 }
 0x128   : > { %5065 = vmatpush1.bf16.msra.mxu1 %v15049_v63  ;;  %4993 = vmatprep.subr.bf16.mxu0 %v14642_v50  ;;  %v713_v63 = vld [vmem:[#allocation2 + $0x920] sm:$0xff] }
 0x129   : > { %5066 = vmatprep.subr.bf16.mxu1 %v15026_v52  ;;  %4899 = vmatprep.mubr.bf16.mxu1 %v17363_v4  ;;  %v725_v50 = vld [vmem:[#allocation2 + $0x980] sm:$0xff]  ;;  %v594_v52 = vld [vmem:[#allocation2 + $0x568] sm:$0xff] }
 0x12a   : > { %15252 = vmatprep.mubr.msk.bf16.mxu0 %vm4313_vm0, %v17333_v18  ;;  %v14882_v11 = vcombine.high %v713_v63, %v725_v50 }
 0x12b   : > { %v17389_v3 = vpop.f32.mrf.mxu1  ;;  %4994 = vmatpush1.bf16.msra.mxu0 %v14641_v54 }
 0x12c   : > { %5067 = vmatpush1.bf16.msra.mxu1 %v15025_v58  ;;  %4995 = vmatprep.subr.bf16.mxu0 %v14618_v60  ;;  %v14764_v58 = vcombine.high %v594_v52, %v606_v53  ;;  %v689_v60 = vld [vmem:[#allocation2 + $0x860] sm:$0xff] }
 0x12d   : > { %v17391_v9 = vpop.f32.mrf.mxu1  ;;  %5068 = vmatprep.subr.bf16.mxu1 %v15002_v59  ;;  %v701_v59 = vld [vmem:[#allocation2 + $0x8c0] sm:$0xff] }
 0x12e   : > { %4973 = vmatmul.mubr.bf16.gmra.mxu0 %v17346_v39 }
 0x12f   : > { %v17394_v16 = vpop.f32.mrf.mxu1  ;;  %4900 = vmatmul.mubr.bf16.gmra.mxu1 %v17367_v26  ;;  %4996 = vmatpush1.bf16.msra.mxu0 %v14617_v6  ;;  %v14881_v6 = vcombine.low %v713_v63, %v725_v50  ;;  %v629_v63 = vld [vmem:[#allocation2 + $0x680] sm:$0xff] }
 0x130   : > { %5069 = vmatpush1.bf16.msra.mxu1 %v15001_v7  ;;  %4997 = vmatprep.subr.bf16.mxu0 %v14594_v10  ;;  %v14763_v10 = vcombine.low %v594_v52, %v606_v53  ;;  %v498_v52 = vld [vmem:[#allocation2 + $0x268] sm:$0xff] }
 0x131   : > { %v17397_v24 = vpop.f32.mrf.mxu1  ;;  %5070 = vmatprep.subr.bf16.mxu1 %v14978_v12  ;;  %15254 = vmatprep.mubr.msk.bf16.mxu1 %vm4313_vm0, %v17300_v8  ;;  %v1001_v8 = vld [vmem:[#allocation2 + $0x1220] sm:$0xff]  ;;  %v14858_v12 = vcombine.high %v689_v60, %v701_v59  ;;  %v510_v53 = vld [vmem:[#allocation2 + $0x2c8] sm:$0xff] }
 0x132   : > { %5015 = vmatprep.mubr.bf16.mxu0 %v17305_v31  ;;  %v14929_v31 = vcombine.low %v761_v28, %v773_v30  ;;  %v15170_v49 = vcombine.high %v1001_v8, %v1013_v38  ;;  %v15169_v57 = vcombine.low %v1001_v8, %v1013_v38  ;;  %v14857_v28 = vcombine.low %v689_v60, %v701_v59  ;;  %v978_v59 = vld [vmem:[#allocation2 + $0x1168] sm:$0xff] }
 0x133   : > { %4998 = vmatpush1.bf16.msra.mxu0 %v14593_v20  ;;  %v17402_v34 = vpop.f32.mrf.mxu1  ;;  %v665_v20 = vld [vmem:[#allocation2 + $0x7a0] sm:$0xff]  ;;  %v14668_v60 = vcombine.high %v498_v52, %v510_v53 }
 0x134   : > { %5071 = vmatpush1.bf16.msra.mxu1 %v14977_v21  ;;  %4999 = vmatprep.subr.bf16.mxu0 %v14954_v23  ;;  %v677_v21 = vld [vmem:[#allocation2 + $0x800] sm:$0xff] }
 0x135   : > { %15253 = vmatprep.subr.msk.bf16.mxu1 %vm4326_vm1, %v15218_v25  ;;  %v17406_v56 = vpop.f32.mrf.mxu1  ;;  %v546_v25 = vld [vmem:[#allocation2 + $0x3e8] sm:$0xff]  ;;  %v14834_v32 = vcombine.high %v665_v20, %v677_v21  ;;  %v14833_v41 = vcombine.low %v665_v20, %v677_v21  ;;  %v499_v20 = vld [vmem:[#allocation2 + $0x270] sm:$0xff] }
 0x136   : > { %v14715_v38 = vcombine.low %v546_v25, %v558_v36 }
 0x137   : > { %5000 = vmatpush2.bf16.msra.mxu0 %v14953_v22  ;;  %v17408_v47 = vpop.f32.mrf.mxu1  ;;  %v14716_v22 = vcombine.high %v546_v25, %v558_v36  ;;  %v966_v25 = vld [vmem:[#allocation2 + $0x1108] sm:$0xff] }
 0x138   : > { %5083 = vmatpush2.bf16.msra.mxu1 %v4352_v35  ;;  %5001 = vmatprep.subr.bf16.mxu0 %v14930_v44  ;;  %v641_v44 = vld [vmem:[#allocation2 + $0x6e0] sm:$0xff] }
 0x139   : > { %5084 = vmatprep.subr.bf16.mxu1 %v15194_v37  ;;  %v17410_v54 = vpop.f32.mrf.mxu1  ;;  %v653_v35 = vld [vmem:[#allocation2 + $0x740] sm:$0xff]  ;;  %v522_v37 = vld [vmem:[#allocation2 + $0x328] sm:$0xff] }
 0x13a   : > { %22089 = vst [vmem:[#allocation16_spill] sm:$0xff] %v17410_v54  ;;  %v17591_v54 = vld [vmem:[%s17205_s30 + $0x6c] ss:$16 sps:$4 sm:$0xff]  }
 0x13b   : > { %5002 = vmatpush2.bf16.msra.mxu0 %v14929_v31  ;;  %v4526_v13 = vpop.f32.mrf.mxu1  ;;  %v14810_v31 = vcombine.high %v641_v44, %v653_v35 }
 0x13c   : > { %5085 = vmatpush2.bf16.msra.mxu1 %v15193_v42  ;;  %5003 = vmatprep.subr.bf16.mxu0 %v14906_v46 }
 0x13d   : > { %5086 = vmatprep.subr.bf16.mxu1 %v15170_v49  ;;  %v4528_v33 = vpop.f32.mrf.mxu1  ;;  %v14692_v49 = vcombine.high %v522_v37, %v534_v40 }
 0x13e   : > { %v4433_v0 = vpop.f32.mrf.mxu0 }
 0x13f   : > { %v17413_v1 = vadd.f32 %v17389_v3, %v4433_v0  ;;  %5004 = vmatpush2.bf16.msra.mxu0 %v14905_v55  ;;  %v4530_v42 = vpop.f32.mrf.mxu1  ;;  %v14809_v55 = vcombine.low %v641_v44, %v653_v35  ;;  %v990_v0 = vld [vmem:[#allocation2 + $0x11c8] sm:$0xff] }
 0x140   : > { %5087 = vmatpush2.bf16.msra.mxu1 %v15169_v57  ;;  %v4435_v7 = vpop.f32.mrf.mxu0  ;;  %5005 = vmatprep.subr.bf16.mxu0 %v14882_v11 }
 0x141   : > { %v17416_v14 = vadd.f32 %v17391_v9, %v4435_v7  ;;  %5129 = vmatprep.subr.bf16.mxu1 %v14764_v58  ;;  %v14739_v9 = vcombine.low %v570_v62, %v582_v17  ;;  %v17438_v58 = vpop.f32.mrf.mxu1  ;;  %v474_v62 = vld [vmem:[#allocation2 + $0x1a8] sm:$0xff] }
 0x142   : > { %v4437_v23 = vpop.f32.mrf.mxu0  ;;  %v486_v17 = vld [vmem:[#allocation2 + $0x208] sm:$0xff] }
 0x143   : > { %22090 = vst [vmem:[#allocation17_spill] sm:$0xff] %v17416_v14  ;;  %v17419_v3 = vadd.f32 %v17394_v16, %v4437_v23  ;;  %5089 = vmatmul.mubr.bf16.vlgmr.msra.gmra.mxu1 %v17311_v45  ;;  %5006 = vmatpush2.bf16.msra.mxu0 %v14881_v6  ;;  %v954_v23 = vld [vmem:[#allocation2 + $0x10a8] sm:$0xff]  ;;  %v17606_v14 = vld [vmem:[%s17205_s30 + $0x60] ss:$16 sps:$4 sm:$0xff]  }
 0x144   : > { %5130 = vmatpush1.bf16.msra.mxu1 %v14763_v10  ;;  %v17422_v30 = vpop.f32.mrf.mxu0  ;;  %5007 = vmatprep.subr.bf16.mxu0 %v14858_v12  ;;  %v14667_v10 = vcombine.low %v498_v52, %v510_v53  ;;  %v4536_v12 = vpop.f32.mrf.mxu1 }
 0x145   : > { %5131 = vmatprep.subr.bf16.mxu1 %v14740_v15  ;;  %15255 = vmatprep.mubr.msk.bf16.mxu1 %vm4313_vm0, %v17315_v51  ;;  %v617_v51 = vld [vmem:[#allocation2 + $0x620] sm:$0xff]  ;;  %v15148_v15 = vcombine.high %v978_v59, %v990_v0 }
 0x146   : > { %v4443_v16 = vpop.f32.mrf.mxu0  ;;  %v14786_v11 = vcombine.high %v617_v51, %v629_v63  ;;  %v4538_v35 = vpop.f32.mrf.mxu1 }
 0x147   : > { %v17427_v45 = vadd.f32 %v17402_v34, %v4443_v16  ;;  %5008 = vmatpush2.bf16.msra.mxu0 %v14857_v28  ;;  %v462_v28 = vld [vmem:[#allocation2 + $0x148] sm:$0xff]  ;;  %v15124_v16 = vcombine.high %v954_v23, %v966_v25 }
 0x148   : > { %5132 = vmatpush1.bf16.msra.mxu1 %v14739_v9  ;;  %v4445_v8 = vpop.f32.mrf.mxu0  ;;  %5009 = vmatprep.subr.bf16.mxu0 %v14834_v32 }
 0x149   : > { %v17430_v46 = vadd.f32 %v17406_v56, %v4445_v8  ;;  %5133 = vmatprep.subr.bf16.mxu1 %v14716_v22  ;;  %v14691_v56 = vcombine.low %v522_v37, %v534_v40  ;;  %v15147_v22 = vcombine.low %v978_v59, %v990_v0  ;;  %v942_v8 = vld [vmem:[#allocation2 + $0x1048] sm:$0xff]  ;;  %v535_v37 = vld [vmem:[#allocation2 + $0x390] sm:$0xff] }
 0x14a   : > { %v4447_v50 = vpop.f32.mrf.mxu0  ;;  %v798_v59 = vld [vmem:[#allocation2 + $0xbc8] sm:$0xff] }
 0x14b   : > { %v17433_v34 = vadd.f32 %v17408_v47, %v4447_v50  ;;  %5010 = vmatpush2.bf16.msra.mxu0 %v14833_v41  ;;  %5099 = vmatmul.mubr.bf16.gmra.mxu1 %v17320_v61  ;;  %v14785_v61 = vcombine.low %v617_v51, %v629_v63  ;;  %v930_v41 = vld [vmem:[#allocation2 + $0xfe8] sm:$0xff]  ;;  %v4540_v63 = vpop.f32.mrf.mxu1 }
 0x14c   : > { %5134 = vmatpush1.bf16.msra.mxu1 %v14715_v38  ;;  %v17436_v57 = vpop.f32.mrf.mxu0  ;;  %5011 = vmatprep.subr.bf16.mxu0 %v14810_v31  ;;  %v438_v31 = vld [vmem:[#allocation2 + $0x88] sm:$0xff]  ;;  %v15100_v52 = vcombine.high %v930_v41, %v942_v8 }
 0x14d   : > { %22091 = vst [vmem:[#allocation18_spill] sm:$0xff] %v17436_v57  ;;  %5135 = vmatprep.subr.bf16.mxu1 %v14692_v49  ;;  %15256 = vmatprep.mubr.msk.bf16.mxu1 %vm4313_vm0, %v17324_v5  ;;  %v14644_v5 = vcombine.high %v474_v62, %v486_v17  ;;  %v15123_v49 = vcombine.low %v954_v23, %v966_v25  ;;  %v774_v23 = vld [vmem:[#allocation2 + $0xb08] sm:$0xff]  ;;  %v799_v57 = vld [vmem:[#allocation2 + $0xbd0] sm:$0xff] }
 0x14e   : > { %v4453_v47 = vpop.f32.mrf.mxu0 }
 0x14f   : > { %v17442_v6 = vadd.f32 %v4526_v13, %v4453_v47  ;;  %5012 = vmatpush2.bf16.msra.mxu0 %v14809_v55  ;;  %v450_v13 = vld [vmem:[#allocation2 + $0xe8] sm:$0xff]  ;;  %v15099_v47 = vcombine.low %v930_v41, %v942_v8 }
 0x150   : > { %5136 = vmatpush1.bf16.msra.mxu1 %v14691_v56  ;;  %v4455_v7 = vpop.f32.mrf.mxu0  ;;  %5013 = vmatprep.subr.bf16.mxu0 %v14786_v11  ;;  %v14620_v40 = vcombine.high %v450_v13, %v462_v28  ;;  %v14619_v50 = vcombine.low %v450_v13, %v462_v28  ;;  %v906_v55 = vld [vmem:[#allocation2 + $0xf28] sm:$0xff] }
 0x151   : > { %v17446_v21 = vadd.f32 %v4528_v33, %v4455_v7  ;;  %5137 = vmatprep.subr.bf16.mxu1 %v14668_v60  ;;  %v14643_v33 = vcombine.low %v474_v62, %v486_v17  ;;  %v918_v56 = vld [vmem:[#allocation2 + $0xf88] sm:$0xff] }
 0x152   : > { %v4457_v36 = vpop.f32.mrf.mxu0  ;;  %v786_v60 = vld [vmem:[#allocation2 + $0xb68] sm:$0xff]  ;;  %v15076_v17 = vcombine.high %v906_v55, %v918_v56 }
 0x153   : > { %22092 = vst [vmem:[#allocation19_spill] sm:$0xff] %v17446_v21  ;;  %v17450_v32 = vadd.f32 %v4530_v42, %v4457_v36  ;;  %5014 = vmatpush2.bf16.msra.mxu0 %v14785_v61  ;;  %5109 = vmatmul.mubr.bf16.gmra.mxu1 %v17329_v19  ;;  %v426_v19 = vld [vmem:[#allocation2 + $0x28] sm:$0xff]  ;;  %v14956_v7 = vcombine.high %v786_v60, %v798_v59  ;;  %v17541_v61 = vld [vmem:[%s17205_s30 + $0x24] ss:$16 sps:$4 sm:$0xff]  }
 0x154   : > { %5138 = vmatpush1.bf16.msra.mxu1 %v14667_v10  ;;  %v17453_v44 = vpop.f32.mrf.mxu0  ;;  %5202 = vmatprep.subr.bf16.mxu0 %v15148_v15  ;;  %v14595_v62 = vcombine.low %v426_v19, %v438_v31  ;;  %v882_v10 = vld [vmem:[#allocation2 + $0xe68] sm:$0xff]  ;;  %v17475_v15 = vld [vmem:[%s17205_s30 + $0x4] ss:$16 sps:$4 sm:$0xff]   ;;  %v14955_v25 = vcombine.low %v786_v60, %v798_v59 }
 0x155   : > { %5139 = vmatprep.subr.bf16.mxu1 %v14644_v5  ;;  %15257 = vmatprep.mubr.msk.bf16.mxu1 %vm4313_vm0, %v17333_v18  ;;  %v762_v5 = vld [vmem:[#allocation2 + $0xaa8] sm:$0xff]  ;;  %v523_v18 = vld [vmem:[#allocation2 + $0x330] sm:$0xff] }
 0x156   : > { %v4463_v38 = vpop.f32.mrf.mxu0  ;;  %5016 = vmatmul.mubr.bf16.vlgmr.msra.gmra.mxu0 %v17338_v27  ;;  %v14596_v27 = vcombine.high %v426_v19, %v438_v31  ;;  %v14932_v13 = vcombine.high %v762_v5, %v774_v23  ;;  %v858_v28 = vld [vmem:[#allocation2 + $0xda8] sm:$0xff] }
 0x157   : > { %v17460_v42 = vadd.f32 %v4536_v12, %v4463_v38  ;;  %5203 = vmatpush1.bf16.msra.mxu0 %v15147_v22  ;;  %5025 = vmatprep.mubr.bf16.mxu0 %v17342_v29  ;;  %v894_v12 = vld [vmem:[#allocation2 + $0xec8] sm:$0xff] }
 0x158   : > { %5140 = vmatpush1.bf16.msra.mxu1 %v14643_v33  ;;  %v4465_v51 = vpop.f32.mrf.mxu0  ;;  %5204 = vmatprep.subr.bf16.mxu0 %v15124_v16  ;;  %v15052_v36 = vcombine.high %v882_v10, %v894_v12  ;;  %v870_v22 = vld [vmem:[#allocation2 + $0xe08] sm:$0xff]  ;;  %v15051_v16 = vcombine.low %v882_v10, %v894_v12 }
 0x159   : > { %v17465_v53 = vadd.f32 %v4538_v35, %v4465_v51  ;;  %5141 = vmatprep.subr.bf16.mxu1 %v14620_v40  ;;  %v738_v33 = vld [vmem:[#allocation2 + $0x9e8] sm:$0xff]  ;;  %v15028_v40 = vcombine.high %v858_v28, %v870_v22  ;;  %v15027_v31 = vcombine.low %v858_v28, %v870_v22 }
 0x15a   : > { %v4467_v11 = vpop.f32.mrf.mxu0  ;;  %v750_v35 = vld [vmem:[#allocation2 + $0xa48] sm:$0xff] }
 0x15b   : > { %v17469_v0 = vadd.f32 %v4540_v63, %v4467_v11  ;;  %5205 = vmatpush1.bf16.msra.mxu0 %v15123_v49  ;;  %5119 = vmatmul.mubr.bf16.gmra.mxu1 %v17346_v39  ;;  %v15075_v39 = vcombine.low %v906_v55, %v918_v56  ;;  %v14908_v41 = vcombine.high %v738_v33, %v750_v35  ;;  %v834_v8 = vld [vmem:[#allocation2 + $0xce8] sm:$0xff] }
 0x15c   : > { %5142 = vmatpush1.bf16.msra.mxu1 %v14619_v50  ;;  %5206 = vmatprep.subr.bf16.mxu0 %v15100_v52  ;;  %v714_v38 = vld [vmem:[#allocation2 + $0x928] sm:$0xff]  ;;  %v17482_v49 = vpop.f32.mrf.mxu0  ;;  %v14907_v51 = vcombine.low %v738_v33, %v750_v35  ;;  %v17484_v50 = vpop.f32.mrf.mxu1 }
 0x15d   : > { %5143 = vmatprep.subr.bf16.mxu1 %v14596_v27  ;;  %5161 = vmatprep.mubr.bf16.mxu1 %v17475_v15  ;;  %v726_v19 = vld [vmem:[#allocation2 + $0x988] sm:$0xff]  ;;  %22093 = vst [vmem:[#allocation20_spill] sm:$0xff] %v17482_v49  ;;  %22094 = vst [vmem:[#allocation21_spill] sm:$0xff] %v17484_v50  ;;  %v847_v50 = vld [vmem:[#allocation2 + $0xd50] sm:$0xff] }
 0x15e   : > { %5026 = vmatmul.mubr.bf16.gmra.mxu0 %v17351_v48  ;;  %v14931_v48 = vcombine.low %v762_v5, %v774_v23  ;;  %v14884_v52 = vcombine.high %v714_v38, %v726_v19  ;;  %v810_v27 = vld [vmem:[#allocation2 + $0xc28] sm:$0xff]  ;;  %v17581_v49 = vld [vmem:[%s17205_s30 + $0x40] ss:$16 sps:$4 sm:$0xff]  }
 0x15f   : > { %5207 = vmatpush1.bf16.msra.mxu0 %v15099_v47  ;;  %5035 = vmatprep.mubr.bf16.mxu0 %v17355_v43  ;;  %v846_v43 = vld [vmem:[#allocation2 + $0xd48] sm:$0xff] }
 0x160   : > { %5144 = vmatpush1.bf16.msra.mxu1 %v14595_v62  ;;  %5208 = vmatprep.subr.bf16.mxu0 %v15076_v17  ;;  %v15004_v63 = vcombine.high %v834_v8, %v846_v43  ;;  %v822_v55 = vld [vmem:[#allocation2 + $0xc88] sm:$0xff]  ;;  %v15003_v59 = vcombine.low %v834_v8, %v846_v43  ;;  %v14883_v62 = vcombine.low %v714_v38, %v726_v19 }
 0x161   : > { %5145 = vmatprep.subr.bf16.mxu1 %v14956_v7  ;;  %v702_v11 = vld [vmem:[#allocation2 + $0x8c8] sm:$0xff]  ;;  %v14980_v17 = vcombine.high %v810_v27, %v822_v55  ;;  %v14979_v28 = vcombine.low %v810_v27, %v822_v55 }
 0x162   : > { %v1050_v12 = vld [vmem:[#allocation2 + $0x13a8] sm:$0x33] }
 0x163   : > { %5209 = vmatpush1.bf16.msra.mxu0 %v15075_v39  ;;  %v666_v39 = vld [vmem:[#allocation2 + $0x7a8] sm:$0xff] }
 0x164   : > { %5146 = vmatpush2.bf16.msra.mxu1 %v14955_v25  ;;  %5210 = vmatprep.subr.bf16.mxu0 %v15052_v36  ;;  %v678_v25 = vld [vmem:[#allocation2 + $0x808] sm:$0xff] }
 0x165   : > { %5147 = vmatprep.subr.bf16.mxu1 %v14932_v13  ;;  %v17492_v22 = vld [vmem:[%s17205_s30 + $0xc] ss:$16 sps:$4 sm:$0xff]  }
 0x166   : > { %5036 = vmatmul.mubr.bf16.gmra.mxu0 %v17359_v2  ;;  %v690_v2 = vld [vmem:[#allocation2 + $0x868] sm:$0xff] }
 0x167   : > { %5211 = vmatpush1.bf16.msra.mxu0 %v15051_v16  ;;  %5045 = vmatprep.mubr.bf16.mxu0 %v17363_v4  ;;  %v14860_v10 = vcombine.high %v690_v2, %v702_v11  ;;  %v14859_v13 = vcombine.low %v690_v2, %v702_v11  ;;  %v15220_v16 = vcombine.high %v1050_v12, %v1050_v12  ;;  %v1038_v8 = vld [vmem:[#allocation2 + $0x1348] sm:$0xff] }
 0x168   : > { %5148 = vmatpush2.bf16.msra.mxu1 %v14931_v48  ;;  %5212 = vmatprep.subr.bf16.mxu0 %v15028_v40  ;;  %v15219_v48 = vcombine.low %v1050_v12, %v1050_v12  ;;  %v14836_v40 = vcombine.high %v666_v39, %v678_v25  ;;  %v642_v38 = vld [vmem:[#allocation2 + $0x6e8] sm:$0xff] }
 0x169   : > { %5149 = vmatprep.subr.bf16.mxu1 %v14908_v41  ;;  %v1026_v41 = vld [vmem:[#allocation2 + $0x12e8] sm:$0xff] }
 0x16a   : > { %v4652_v56 = vpop.f32.mrf.mxu0  ;;  %v654_v19 = vld [vmem:[#allocation2 + $0x748] sm:$0xff]  ;;  %v4358_v27 = vsel %vm4326_vm1, %v15219_v48, 0  ;;  %v15196_v55 = vcombine.high %v1026_v41, %v1038_v8 }
 0x16b   : > { %v4579_v60 = vpop.f32.mrf.mxu1  ;;  %5213 = vmatpush1.bf16.msra.mxu0 %v15027_v31  ;;  %v14812_v2 = vcombine.high %v642_v38, %v654_v19  ;;  %v1002_v11 = vld [vmem:[#allocation2 + $0x1228] sm:$0xff] }
 0x16c   : > { %v17486_v47 = vadd.f32 %v4652_v56, %v4579_v60  ;;  %5150 = vmatpush2.bf16.msra.mxu1 %v14907_v51  ;;  %v4654_v4 = vpop.f32.mrf.mxu0  ;;  %5214 = vmatprep.subr.bf16.mxu0 %v15004_v63  ;;  %v1014_v60 = vld [vmem:[#allocation2 + $0x1288] sm:$0xff] }
 0x16d   : > { %v4581_v7 = vpop.f32.mrf.mxu1  ;;  %5151 = vmatprep.subr.bf16.mxu1 %v14884_v52  ;;  %v14835_v52 = vcombine.low %v666_v39, %v678_v25  ;;  %v14811_v39 = vcombine.low %v642_v38, %v654_v19  ;;  %v15172_v25 = vcombine.high %v1002_v11, %v1014_v60 }
 0x16e   : > { %22095 = vst [vmem:[#allocation22_spill] sm:$0xff] %v17486_v47  ;;  %v17488_v5 = vadd.f32 %v4654_v4, %v4581_v7  ;;  %v4656_v23 = vpop.f32.mrf.mxu0  ;;  %5046 = vmatmul.mubr.bf16.gmra.mxu0 %v17367_v26  ;;  %v512_v47 = vld [vmem:[#allocation2 + $0x2d8] sm:$0xff] }
 0x16f   : > { %v4583_v36 = vpop.f32.mrf.mxu1  ;;  %5215 = vmatpush1.bf16.msra.mxu0 %v15003_v59  ;;  %15259 = vmatprep.mubr.msk.bf16.mxu0 %vm4313_vm0, %v17492_v22 }
 0x170   : > { %22096 = vst [vmem:[#allocation23_spill] sm:$0xff] %v17488_v5  ;;  %v17496_v33 = vadd.f32 %v4656_v23, %v4583_v36  ;;  %5152 = vmatpush2.bf16.msra.mxu1 %v14883_v62  ;;  %v17498_v35 = vpop.f32.mrf.mxu0  ;;  %5216 = vmatprep.subr.bf16.mxu0 %v14980_v17  ;;  %v618_v62 = vld [vmem:[#allocation2 + $0x628] sm:$0xff]  ;;  %v1051_v5 = vld [vmem:[#allocation2 + $0x13b0] sm:$0x33] }
 0x171   : > { %22098 = vst [vmem:[#allocation25_spill] sm:$0xff] %v17498_v35  ;;  %v17500_v26 = vpop.f32.mrf.mxu1  ;;  %5153 = vmatprep.subr.bf16.mxu1 %v14860_v10  ;;  %v630_v17 = vld [vmem:[#allocation2 + $0x688] sm:$0xff]  ;;  %v15195_v10 = vcombine.low %v1026_v41, %v1038_v8  ;;  %v15171_v41 = vcombine.low %v1002_v11, %v1014_v60  ;;  %v967_v11 = vld [vmem:[#allocation2 + $0x1110] sm:$0xff]  ;;  %v548_v35 = vld [vmem:[#allocation2 + $0x3f8] sm:$0xff] }
 0x172   : > { %22097 = vst [vmem:[#allocation24_spill] sm:$0xff] %v17496_v33  ;;  %22099 = vst [vmem:[#allocation26_spill] sm:$0xff] %v17500_v26  ;;  %v4662_v43 = vpop.f32.mrf.mxu0  ;;  %v560_v26 = vld [vmem:[#allocation2 + $0x458] sm:$0xff] }
 0x173   : > { %v4589_v31 = vpop.f32.mrf.mxu1  ;;  %5217 = vmatpush1.bf16.msra.mxu0 %v14979_v28  ;;  %v595_v28 = vld [vmem:[#allocation2 + $0x570] sm:$0xff] }
 0x174   : > { %v17502_v51 = vadd.f32 %v4662_v43, %v4589_v31  ;;  %5154 = vmatpush2.bf16.msra.mxu1 %v14859_v13  ;;  %v4664_v63 = vpop.f32.mrf.mxu0  ;;  %15258 = vmatprep.subr.msk.bf16.mxu0 %vm4326_vm1, %v15220_v16  ;;  %v14788_v13 = vcombine.high %v618_v62, %v630_v17  ;;  %v607_v16 = vld [vmem:[#allocation2 + $0x5d0] sm:$0xff] }
 0x175   : > { %v4591_v56 = vpop.f32.mrf.mxu1  ;;  %5155 = vmatprep.subr.bf16.mxu1 %v14836_v40  ;;  %v979_v40 = vld [vmem:[#allocation2 + $0x1170] sm:$0xff]  ;;  %v14766_v38 = vcombine.high %v595_v28, %v607_v16 }
 0x176   : > { %22100 = vst [vmem:[#allocation27_spill] sm:$0xff] %v17502_v51  ;;  %v17506_v59 = vadd.f32 %v4664_v63, %v4591_v56  ;;  %v4666_v4 = vpop.f32.mrf.mxu0  ;;  %v991_v43 = vld [vmem:[#allocation2 + $0x11d0] sm:$0xff]  ;;  %v608_v51 = vld [vmem:[#allocation2 + $0x5d8] sm:$0xff] }
 0x177   : > { %v4593_v7 = vpop.f32.mrf.mxu1  ;;  %5229 = vmatpush2.bf16.msra.mxu0 %v4358_v27  ;;  %v15150_v27 = vcombine.high %v979_v40, %v991_v43  ;;  %v583_v56 = vld [vmem:[#allocation2 + $0x510] sm:$0xff] }
 0x178   : > { %22101 = vst [vmem:[#allocation28_spill] sm:$0xff] %v17506_v59  ;;  %v17508_v12 = vadd.f32 %v4666_v4, %v4593_v7  ;;  %5156 = vmatpush2.bf16.msra.mxu1 %v14835_v52  ;;  %v17510_v23 = vpop.f32.mrf.mxu0  ;;  %5230 = vmatprep.subr.bf16.mxu0 %v15196_v55  ;;  %v14787_v52 = vcombine.low %v618_v62, %v630_v17  ;;  %v571_v55 = vld [vmem:[#allocation2 + $0x4b0] sm:$0xff] }
 0x179   : > { %22103 = vst [vmem:[#allocation30_spill] sm:$0xff] %v17510_v23  ;;  %v17512_v36 = vpop.f32.mrf.mxu1  ;;  %5157 = vmatprep.subr.bf16.mxu1 %v14812_v2  ;;  %v15149_v62 = vcombine.low %v979_v40, %v991_v43  ;;  %v17531_v40 = vld [vmem:[%s17205_s30 + $0x8] ss:$16 sps:$4 sm:$0xff]   ;;  %v931_v43 = vld [vmem:[#allocation2 + $0xff0] sm:$0xff] }
 0x17a   : > { %22102 = vst [vmem:[#allocation29_spill] sm:$0xff] %v17508_v12  ;;  %22104 = vst [vmem:[#allocation31_spill] sm:$0xff] %v17512_v36  ;;  %v4672_v48 = vpop.f32.mrf.mxu0  ;;  %v511_v23 = vld [vmem:[#allocation2 + $0x2d0] sm:$0xff]  ;;  %v17572_v36 = vld [vmem:[%s17205_s30 + $0x4c] ss:$16 sps:$4 sm:$0xff]  }
 0x17b   : > { %v4599_v31 = vpop.f32.mrf.mxu1  ;;  %5231 = vmatpush2.bf16.msra.mxu0 %v15195_v10  ;;  %v955_v10 = vld [vmem:[#allocation2 + $0x10b0] sm:$0xff] }
 0x17c   : > { %v17514_v8 = vadd.f32 %v4672_v48, %v4599_v31  ;;  %5158 = vmatpush2.bf16.msra.mxu1 %v14811_v39  ;;  %v4674_v63 = vpop.f32.mrf.mxu0  ;;  %5232 = vmatprep.subr.bf16.mxu0 %v15172_v25  ;;  %v14765_v39 = vcombine.low %v595_v28, %v607_v16  ;;  %v14742_v48 = vcombine.high %v571_v55, %v583_v56  ;;  %v835_v59 = vld [vmem:[#allocation2 + $0xcf0] sm:$0xff] }
 0x17d   : > { %v4601_v19 = vpop.f32.mrf.mxu1  ;;  %5159 = vmatprep.subr.bf16.mxu1 %v14788_v13  ;;  %v15125_v9 = vcombine.low %v955_v10, %v967_v11  ;;  %v1039_v12 = vld [vmem:[#allocation2 + $0x1350] sm:$0xff] }
 0x17e   : > { %22105 = vst [vmem:[#allocation32_spill] sm:$0xff] %v17514_v8  ;;  %v17518_v4 = vadd.f32 %v4674_v63, %v4601_v19  ;;  %v4676_v7 = vpop.f32.mrf.mxu0  ;;  %v15126_v63 = vcombine.high %v955_v10, %v967_v11  ;;  %v547_v19 = vld [vmem:[#allocation2 + $0x3f0] sm:$0xff]  ;;  %v500_v8 = vld [vmem:[#allocation2 + $0x278] sm:$0xff] }
 0x17f   : > { %v4603_v60 = vpop.f32.mrf.mxu1  ;;  %5233 = vmatpush2.bf16.msra.mxu0 %v15171_v41  ;;  %v559_v41 = vld [vmem:[#allocation2 + $0x450] sm:$0xff] }
 0x180   : > { %22106 = vst [vmem:[#allocation33_spill] sm:$0xff] %v17518_v4  ;;  %v17522_v25 = vadd.f32 %v4676_v7, %v4603_v60  ;;  %5160 = vmatpush2.bf16.msra.mxu1 %v14787_v52  ;;  %v17524_v13 = vpop.f32.mrf.mxu0  ;;  %5275 = vmatprep.subr.bf16.mxu0 %v14766_v38  ;;  %v943_v52 = vld [vmem:[#allocation2 + $0x1050] sm:$0xff]  ;;  %v14718_v28 = vcombine.high %v547_v19, %v559_v41  ;;  %v17600_v4 = vld [vmem:[%s17205_s30 + $0x68] ss:$16 sps:$4 sm:$0xff]  }
 0x181   : > { %22108 = vst [vmem:[#allocation35_spill] sm:$0xff] %v17524_v13  ;;  %v17526_v31 = vpop.f32.mrf.mxu1  ;;  %5348 = vmatprep.subr.bf16.mxu1 %v15150_v27  ;;  %v17535_v38 = vld [vmem:[%s17205_s30] ss:$16 sps:$4 sm:$0xff]   ;;  %v14741_v27 = vcombine.low %v571_v55, %v583_v56  ;;  %v15102_v29 = vcombine.high %v931_v43, %v943_v52  ;;  %v584_v13 = vld [vmem:[#allocation2 + $0x518] sm:$0xff] }
 0x182   : > { %22107 = vst [vmem:[#allocation34_spill] sm:$0xff] %v17522_v25  ;;  %22109 = vst [vmem:[#allocation36_spill] sm:$0xff] %v17526_v31  ;;  %v4682_v16 = vpop.f32.mrf.mxu0  ;;  %5235 = vmatmul.mubr.bf16.vlgmr.msra.gmra.mxu0 %v17531_v40  ;;  %v907_v10 = vld [vmem:[#allocation2 + $0xf30] sm:$0xff] }
 0x183   : > { %v4609_v7 = vpop.f32.mrf.mxu1  ;;  %5162 = vmatmul.mubr.bf16.vlgmr.msra.gmra.mxu1 %v17535_v38  ;;  %5276 = vmatpush1.bf16.msra.mxu0 %v14765_v39  ;;  %v919_v11 = vld [vmem:[#allocation2 + $0xf90] sm:$0xff] }
 0x184   : > { %v17538_v60 = vadd.f32 %v4682_v16, %v4609_v7  ;;  %5349 = vmatpush1.bf16.msra.mxu1 %v15149_v62  ;;  %v4684_v17 = vpop.f32.mrf.mxu0  ;;  %5277 = vmatprep.subr.bf16.mxu0 %v14742_v48  ;;  %v17549_v62 = vld [vmem:[%s17205_s30 + $0x2c] ss:$16 sps:$4 sm:$0xff]   ;;  %v15101_v16 = vcombine.low %v931_v43, %v943_v52  ;;  %v17564_v43 = vld [vmem:[%s17205_s30 + $0x20] ss:$16 sps:$4 sm:$0xff]   ;;  %v17568_v52 = vld [vmem:[%s17205_s30 + $0x44] ss:$16 sps:$4 sm:$0xff]  }
 0x185   : > { %v4611_v2 = vpop.f32.mrf.mxu1  ;;  %5350 = vmatprep.subr.bf16.mxu1 %v15126_v63  ;;  %5171 = vmatprep.mubr.bf16.mxu1 %v17541_v61  ;;  %v14717_v63 = vcombine.low %v547_v19, %v559_v41  ;;  %v883_v19 = vld [vmem:[#allocation2 + $0xe70] sm:$0xff] }
 0x186   : > { %22110 = vst [vmem:[#allocation37_spill] sm:$0xff] %v17538_v60  ;;  %v17546_v56 = vadd.f32 %v4684_v17, %v4611_v2  ;;  %v4686_v39 = vpop.f32.mrf.mxu0  ;;  %15260 = vmatprep.mubr.msk.bf16.mxu0 %vm4313_vm0, %v17549_v62  ;;  %v14694_v2 = vcombine.high %v523_v18, %v535_v37  ;;  %v15078_v17 = vcombine.high %v907_v10, %v919_v11  ;;  %v895_v41 = vld [vmem:[#allocation2 + $0xed0] sm:$0xff] }
 0x187   : > { %v4613_v48 = vpop.f32.mrf.mxu1  ;;  %5278 = vmatpush1.bf16.msra.mxu0 %v14741_v27  ;;  %v17560_v27 = vld [vmem:[%s17205_s30 + $0x28] ss:$16 sps:$4 sm:$0xff]   ;;  %v487_v7 = vld [vmem:[#allocation2 + $0x210] sm:$0xff] }
 0x188   : > { %22111 = vst [vmem:[#allocation38_spill] sm:$0xff] %v17546_v56  ;;  %v17555_v55 = vadd.f32 %v4686_v39, %v4613_v48  ;;  %5351 = vmatpush1.bf16.msra.mxu1 %v15125_v9  ;;  %5279 = vmatprep.subr.bf16.mxu0 %v14718_v28  ;;  %v14693_v9 = vcombine.low %v523_v18, %v535_v37  ;;  %v475_v48 = vld [vmem:[#allocation2 + $0x1b0] sm:$0xff]  ;;  %v17577_v56 = vld [vmem:[%s17205_s30 + $0x48] ss:$16 sps:$4 sm:$0xff]   ;;  %v17622_v33 = vpop.f32.mrf.mxu0 }
 0x189   : > { %5352 = vmatprep.subr.bf16.mxu1 %v15102_v29  ;;  %v15077_v29 = vcombine.low %v907_v10, %v919_v11  ;;  %v14670_v28 = vcombine.high %v499_v20, %v511_v23  ;;  %v15054_v39 = vcombine.high %v883_v19, %v895_v41  ;;  %v871_v37 = vld [vmem:[#allocation2 + $0xe10] sm:$0xff]  ;;  %v14669_v18 = vcombine.low %v499_v20, %v511_v23 }
 0x18a   : > { %22112 = vst [vmem:[#allocation39_spill] sm:$0xff] %v17555_v55  ;;  %5245 = vmatmul.mubr.bf16.gmra.mxu0 %v17560_v27  ;;  %v15053_v10 = vcombine.low %v883_v19, %v895_v41  ;;  %v14646_v11 = vcombine.high %v475_v48, %v487_v7  ;;  %v14645_v20 = vcombine.low %v475_v48, %v487_v7  ;;  %v17584_v41 = vpop.f32.mrf.mxu1  ;;  %v811_v7 = vld [vmem:[#allocation2 + $0xc30] sm:$0xff]  ;;  %22115 = vst [vmem:[#allocation42_spill] sm:$0xff] %v17622_v33 }
 0x18b   : > { %5172 = vmatmul.mubr.bf16.gmra.mxu1 %v17564_v43  ;;  %5280 = vmatpush1.bf16.msra.mxu0 %v14717_v63  ;;  %v859_v63 = vld [vmem:[#allocation2 + $0xdb0] sm:$0xff]  ;;  %22113 = vst [vmem:[#allocation40_spill] sm:$0xff] %v17584_v41 }
 0x18c   : > { %5353 = vmatpush1.bf16.msra.mxu1 %v15101_v16  ;;  %5281 = vmatprep.subr.bf16.mxu0 %v14694_v2  ;;  %v15030_v16 = vcombine.high %v859_v63, %v871_v37  ;;  %v451_v2 = vld [vmem:[#allocation2 + $0xf0] sm:$0xff]  ;;  %v15029_v23 = vcombine.low %v859_v63, %v871_v37 }
 0x18d   : > { %5354 = vmatprep.subr.bf16.mxu1 %v15078_v17  ;;  %5181 = vmatprep.mubr.bf16.mxu1 %v17568_v52  ;;  %v463_v17 = vld [vmem:[#allocation2 + $0x150] sm:$0xff] }
 0x18e   : > { %15261 = vmatprep.mubr.msk.bf16.mxu0 %vm4313_vm0, %v17572_v36  ;;  %v14622_v19 = vcombine.high %v451_v2, %v463_v17  ;;  %v823_v48 = vld [vmem:[#allocation2 + $0xc90] sm:$0xff]  ;;  %v14621_v37 = vcombine.low %v451_v2, %v463_v17 }
 0x18f   : > { %5282 = vmatpush1.bf16.msra.mxu0 %v14693_v9  ;;  %v17587_v9 = vld [vmem:[%s17205_s30 + $0x64] ss:$16 sps:$4 sm:$0xff]  }
 0x190   : > { %5355 = vmatpush1.bf16.msra.mxu1 %v15077_v29  ;;  %5283 = vmatprep.subr.bf16.mxu0 %v14670_v28  ;;  %v15006_v29 = vcombine.high %v835_v59, %v847_v50  ;;  %v427_v28 = vld [vmem:[#allocation2 + $0x30] sm:$0xff] }
 0x191   : > { %5356 = vmatprep.subr.bf16.mxu1 %v15054_v39  ;;  %v439_v39 = vld [vmem:[#allocation2 + $0x90] sm:$0xff] }
 0x192   : > { %5255 = vmatmul.mubr.bf16.gmra.mxu0 %v17577_v56  ;;  %v787_v41 = vld [vmem:[#allocation2 + $0xb70] sm:$0xff] }
 0x193   : > { %5182 = vmatmul.mubr.bf16.gmra.mxu1 %v17581_v49  ;;  %5284 = vmatpush1.bf16.msra.mxu0 %v14669_v18  ;;  %v15005_v18 = vcombine.low %v835_v59, %v847_v50  ;;  %v14597_v50 = vcombine.low %v427_v28, %v439_v39  ;;  %v14981_v59 = vcombine.low %v811_v7, %v823_v48  ;;  %v1027_v55 = vld [vmem:[#allocation2 + $0x12f0] sm:$0xff] }
 0x194   : > { %5357 = vmatpush1.bf16.msra.mxu1 %v15053_v10  ;;  %5285 = vmatprep.subr.bf16.mxu0 %v14646_v11  ;;  %v14598_v10 = vcombine.high %v427_v28, %v439_v39  ;;  %v14958_v2 = vcombine.high %v787_v41, %v799_v57  ;;  %v14957_v28 = vcombine.low %v787_v41, %v799_v57 }
 0x195   : > { %5358 = vmatprep.subr.bf16.mxu1 %v15030_v16  ;;  %5191 = vmatprep.mubr.bf16.mxu1 %v17587_v9  ;;  %v14982_v16 = vcombine.high %v811_v7, %v823_v48  ;;  %v15198_v48 = vcombine.high %v1027_v55, %v1039_v12  ;;  %v15197_v57 = vcombine.low %v1027_v55, %v1039_v12  ;;  %v691_v55 = vld [vmem:[#allocation2 + $0x870] sm:$0xff] }
 0x196   : > { %15262 = vmatprep.mubr.msk.bf16.mxu0 %vm4313_vm0, %v17591_v54 }
 0x197   : > { %v17595_v63 = vpop.f32.mrf.mxu1  ;;  %5286 = vmatpush1.bf16.msra.mxu0 %v14645_v20  ;;  %v15222_v20 = vcombine.high %v1051_v5, %v1051_v5 }
 0x198   : > { %5359 = vmatpush1.bf16.msra.mxu1 %v15029_v23  ;;  %5287 = vmatprep.subr.bf16.mxu0 %v14622_v19  ;;  %v15221_v23 = vcombine.low %v1051_v5, %v1051_v5  ;;  %v763_v19 = vld [vmem:[#allocation2 + $0xab0] sm:$0xff] }
 0x199   : > { %v17597_v11 = vpop.f32.mrf.mxu1  ;;  %5360 = vmatprep.subr.bf16.mxu1 %v15006_v29  ;;  %v775_v29 = vld [vmem:[#allocation2 + $0xb10] sm:$0xff] }
 0x19a   : > { %5265 = vmatmul.mubr.bf16.gmra.mxu0 %v17600_v4  ;;  %v14934_v7 = vcombine.high %v763_v19, %v775_v29  ;;  %v4364_v5 = vsel %vm4326_vm1, %v15221_v23, 0  ;;  %v14933_v60 = vcombine.low %v763_v19, %v775_v29  ;;  %v596_v23 = vld [vmem:[#allocation2 + $0x578] sm:$0xff] }
 0x19b   : > { %v17603_v21 = vpop.f32.mrf.mxu1  ;;  %5192 = vmatmul.mubr.bf16.gmra.mxu1 %v17606_v14  ;;  %5288 = vmatpush1.bf16.msra.mxu0 %v14621_v37  ;;  %v739_v37 = vld [vmem:[#allocation2 + $0x9f0] sm:$0xff]  ;;  %v14768_v12 = vcombine.high %v596_v23, %v608_v51 }
 0x19c   : > { %5361 = vmatpush1.bf16.msra.mxu1 %v15005_v18  ;;  %5289 = vmatprep.subr.bf16.mxu0 %v14598_v10  ;;  %v751_v18 = vld [vmem:[#allocation2 + $0xa50] sm:$0xff] }
 0x19d   : > { %v17609_v17 = vpop.f32.mrf.mxu1  ;;  %5362 = vmatprep.subr.bf16.mxu1 %v14982_v16  ;;  %15264 = vmatprep.mubr.msk.bf16.mxu1 %vm4313_vm0, %v17492_v22  ;;  %v1003_v16 = vld [vmem:[#allocation2 + $0x1230] sm:$0xff]  ;;  %v14910_v41 = vcombine.high %v739_v37, %v751_v18  ;;  %v14909_v25 = vcombine.low %v739_v37, %v751_v18  ;;  %v14767_v18 = vcombine.low %v596_v23, %v608_v51 }
 0x19e   : > { %22114 = vst [vmem:[#allocation41_spill] sm:$0xff] %v17609_v17  ;;  %5307 = vmatprep.mubr.bf16.mxu0 %v17475_v15  ;;  %v1015_v17 = vld [vmem:[#allocation2 + $0x1290] sm:$0xff]  ;;  %v14720_v23 = vcombine.high %v548_v35, %v560_v26 }
 0x19f   : > { %5290 = vmatpush1.bf16.msra.mxu0 %v14597_v50  ;;  %v17614_v39 = vpop.f32.mrf.mxu1 }
 0x1a0   : > { %5363 = vmatpush1.bf16.msra.mxu1 %v14981_v59  ;;  %5291 = vmatprep.subr.bf16.mxu0 %v14958_v2  ;;  %v15174_v59 = vcombine.high %v1003_v16, %v1015_v17  ;;  %v715_v2 = vld [vmem:[#allocation2 + $0x930] sm:$0xff] }
 0x1a1   : > { %15263 = vmatprep.subr.msk.bf16.mxu1 %vm4326_vm1, %v15222_v20  ;;  %v17618_v10 = vpop.f32.mrf.mxu1  ;;  %v727_v20 = vld [vmem:[#allocation2 + $0x990] sm:$0xff] }
 0x1a2   : > { %v14886_v19 = vcombine.high %v715_v2, %v727_v20 }
 0x1a3   : > { %5292 = vmatpush2.bf16.msra.mxu0 %v14957_v28  ;;  %v17620_v50 = vpop.f32.mrf.mxu1  ;;  %v15173_v28 = vcombine.low %v1003_v16, %v1015_v17 }
 0x1a4   : > { %5375 = vmatpush2.bf16.msra.mxu1 %v4364_v5  ;;  %5293 = vmatprep.subr.bf16.mxu0 %v14934_v7  ;;  %v703_v7 = vld [vmem:[#allocation2 + $0x8d0] sm:$0xff] }
 0x1a5   : > { %5376 = vmatprep.subr.bf16.mxu1 %v15198_v48  ;;  %v17624_v29 = vpop.f32.mrf.mxu1  ;;  %v572_v48 = vld [vmem:[#allocation2 + $0x4b8] sm:$0xff]  ;;  %v14862_v17 = vcombine.high %v691_v55, %v703_v7 }
 0x1a6   : > { %22116 = vst [vmem:[#allocation43_spill] sm:$0xff] %v17624_v29  ;;  %v679_v29 = vld [vmem:[#allocation2 + $0x810] sm:$0xff] }
 0x1a7   : > { %5294 = vmatpush2.bf16.msra.mxu0 %v14933_v60  ;;  %v14885_v60 = vcombine.low %v715_v2, %v727_v20  ;;  %v4818_v16 = vpop.f32.mrf.mxu1 }
 0x1a8   : > { %5377 = vmatpush2.bf16.msra.mxu1 %v15197_v57  ;;  %5295 = vmatprep.subr.bf16.mxu0 %v14910_v41  ;;  %v14744_v41 = vcombine.high %v572_v48, %v584_v13 }
 0x1a9   : > { %5378 = vmatprep.subr.bf16.mxu1 %v15174_v59  ;;  %v667_v59 = vld [vmem:[#allocation2 + $0x7b0] sm:$0xff]  ;;  %v4820_v20 = vpop.f32.mrf.mxu1 }
 0x1aa   : > { %v4725_v5 = vpop.f32.mrf.mxu0  ;;  %v14838_v2 = vcombine.high %v667_v59, %v679_v29 }
 0x1ab   : > { %v17627_v31 = vadd.f32 %v17595_v63, %v4725_v5  ;;  %5296 = vmatpush2.bf16.msra.mxu0 %v14909_v25  ;;  %v14861_v25 = vcombine.low %v691_v55, %v703_v7  ;;  %v14837_v55 = vcombine.low %v667_v59, %v679_v29 }
 0x1ac   : > { %5379 = vmatpush2.bf16.msra.mxu1 %v15173_v28  ;;  %v4727_v37 = vpop.f32.mrf.mxu0  ;;  %5297 = vmatprep.subr.bf16.mxu0 %v14886_v19  ;;  %v643_v28 = vld [vmem:[#allocation2 + $0x6f0] sm:$0xff] }
 0x1ad   : > { %22117 = vst [vmem:[#allocation44_spill] sm:$0xff] %v17627_v31  ;;  %v17630_v57 = vadd.f32 %v17597_v11, %v4727_v37  ;;  %5421 = vmatprep.subr.bf16.mxu1 %v14768_v12  ;;  %v14743_v11 = vcombine.low %v572_v48, %v584_v13  ;;  %v655_v19 = vld [vmem:[#allocation2 + $0x750] sm:$0xff]  ;;  %v536_v12 = vld [vmem:[#allocation2 + $0x398] sm:$0xff]  ;;  %v14719_v13 = vcombine.low %v548_v35, %v560_v26 }
 0x1ae   : > { %v4729_v33 = vpop.f32.mrf.mxu0  ;;  %v14814_v48 = vcombine.high %v643_v28, %v655_v19  ;;  %v14813_v29 = vcombine.low %v643_v28, %v655_v19 }
 0x1af   : > { %22118 = vst [vmem:[#allocation45_spill] sm:$0xff] %v17630_v57  ;;  %v17633_v63 = vadd.f32 %v17603_v21, %v4729_v33  ;;  %5381 = vmatmul.mubr.bf16.vlgmr.msra.gmra.mxu1 %v17531_v40  ;;  %5298 = vmatpush2.bf16.msra.mxu0 %v14885_v60  ;;  %v524_v33 = vld [vmem:[#allocation2 + $0x338] sm:$0xff]  ;;  %v4822_v60 = vpop.f32.mrf.mxu1  ;;  %v995_v57 = vld [vmem:[#allocation2 + $0x11f0] sm:$0xff] }
 0x1b0   : > { %5422 = vmatpush1.bf16.msra.mxu1 %v14767_v18  ;;  %v17636_v51 = vpop.f32.mrf.mxu0  ;;  %5299 = vmatprep.subr.bf16.mxu0 %v14862_v17  ;;  %v14696_v18 = vcombine.high %v524_v33, %v536_v12  ;;  %v619_v17 = vld [vmem:[#allocation2 + $0x630] sm:$0xff]  ;;  %v14695_v26 = vcombine.low %v524_v33, %v536_v12  ;;  %v14671_v33 = vcombine.low %v500_v8, %v512_v47 }
 0x1b1   : > { %22119 = vst [vmem:[#allocation46_spill] sm:$0xff] %v17633_v63  ;;  %22120 = vst [vmem:[#allocation47_spill] sm:$0xff] %v17636_v51  ;;  %5423 = vmatprep.subr.bf16.mxu1 %v14744_v41  ;;  %15265 = vmatprep.mubr.msk.bf16.mxu1 %vm4313_vm0, %v17549_v62  ;;  %v631_v41 = vld [vmem:[#allocation2 + $0x690] sm:$0xff]  ;;  %v17652_v59 = vpop.f32.mrf.mxu1  ;;  %v993_v63 = vld [vmem:[#allocation2 + $0x11e0] sm:$0xff] }
 0x1b2   : > { %v4735_v21 = vpop.f32.mrf.mxu0  ;;  %22125 = vst [vmem:[#allocation52_spill] sm:$0xff] %v17652_v59  ;;  %v14789_v19 = vcombine.low %v619_v17, %v631_v41 }
 0x1b3   : > { %v17641_v5 = vadd.f32 %v17614_v39, %v4735_v21  ;;  %5300 = vmatpush2.bf16.msra.mxu0 %v14861_v25  ;;  %v14672_v25 = vcombine.high %v500_v8, %v512_v47  ;;  %v4828_v12 = vpop.f32.mrf.mxu1 }
 0x1b4   : > { %5424 = vmatpush1.bf16.msra.mxu1 %v14743_v11  ;;  %v4737_v7 = vpop.f32.mrf.mxu0  ;;  %5301 = vmatprep.subr.bf16.mxu0 %v14838_v2  ;;  %v980_v11 = vld [vmem:[#allocation2 + $0x1178] sm:$0xff] }
 0x1b5   : > { %22121 = vst [vmem:[#allocation48_spill] sm:$0xff] %v17641_v5  ;;  %v17644_v37 = vadd.f32 %v17618_v10, %v4737_v7  ;;  %5425 = vmatprep.subr.bf16.mxu1 %v14720_v23  ;;  %v14790_v10 = vcombine.high %v619_v17, %v631_v41  ;;  %v992_v2 = vld [vmem:[#allocation2 + $0x11d8] sm:$0xff]  ;;  %v981_v5 = vld [vmem:[#allocation2 + $0x1180] sm:$0xff] }
 0x1b6   : > { %v4739_v51 = vpop.f32.mrf.mxu0  ;;  %v488_v23 = vld [vmem:[#allocation2 + $0x218] sm:$0xff]  ;;  %v15151_v47 = vcombine.low %v980_v11, %v992_v2 }
 0x1b7   : > { %22122 = vst [vmem:[#allocation49_spill] sm:$0xff] %v17644_v37  ;;  %v17647_v39 = vadd.f32 %v17620_v50, %v4739_v51  ;;  %5302 = vmatpush2.bf16.msra.mxu0 %v14837_v55  ;;  %5391 = vmatmul.mubr.bf16.gmra.mxu1 %v17560_v27  ;;  %v476_v51 = vld [vmem:[#allocation2 + $0x1b8] sm:$0xff]  ;;  %v15152_v55 = vcombine.high %v980_v11, %v992_v2 }
 0x1b8   : > { %5426 = vmatpush1.bf16.msra.mxu1 %v14719_v13  ;;  %v17650_v35 = vpop.f32.mrf.mxu0  ;;  %5303 = vmatprep.subr.bf16.mxu0 %v14814_v48  ;;  %v14648_v48 = vcombine.high %v476_v51, %v488_v23  ;;  %v944_v17 = vld [vmem:[#allocation2 + $0x1058] sm:$0xff] }
 0x1b9   : > { %22123 = vst [vmem:[#allocation50_spill] sm:$0xff] %v17647_v39  ;;  %22124 = vst [vmem:[#allocation51_spill] sm:$0xff] %v17650_v35  ;;  %5427 = vmatprep.subr.bf16.mxu1 %v14696_v18  ;;  %15266 = vmatprep.mubr.msk.bf16.mxu1 %vm4313_vm0, %v17572_v36  ;;  %v956_v18 = vld [vmem:[#allocation2 + $0x10b8] sm:$0xff] }
 0x1ba   : > { %v4745_v50 = vpop.f32.mrf.mxu0  ;;  %v968_v35 = vld [vmem:[#allocation2 + $0x1118] sm:$0xff] }
 0x1bb   : > { %v17656_v28 = vadd.f32 %v4818_v16, %v4745_v50  ;;  %5304 = vmatpush2.bf16.msra.mxu0 %v14813_v29  ;;  %v452_v16 = vld [vmem:[#allocation2 + $0xf8] sm:$0xff]  ;;  %v4830_v29 = vpop.f32.mrf.mxu1 }
 0x1bc   : > { %5428 = vmatpush1.bf16.msra.mxu1 %v14695_v26  ;;  %v4747_v21 = vpop.f32.mrf.mxu0  ;;  %5305 = vmatprep.subr.bf16.mxu0 %v14790_v10  ;;  %v464_v50 = vld [vmem:[#allocation2 + $0x158] sm:$0xff]  ;;  %v15128_v26 = vcombine.high %v956_v18, %v968_v35 }
 0x1bd   : > { %22126 = vst [vmem:[#allocation53_spill] sm:$0xff] %v17656_v28  ;;  %v17660_v13 = vadd.f32 %v4820_v20, %v4747_v21  ;;  %5429 = vmatprep.subr.bf16.mxu1 %v14672_v25  ;;  %v14647_v20 = vcombine.low %v476_v51, %v488_v23  ;;  %v14624_v25 = vcombine.high %v452_v16, %v464_v50  ;;  %v932_v21 = vld [vmem:[#allocation2 + $0xff8] sm:$0xff] }
 0x1be   : > { %v4749_v59 = vpop.f32.mrf.mxu0  ;;  %v440_v11 = vld [vmem:[#allocation2 + $0x98] sm:$0xff]  ;;  %v15127_v51 = vcombine.low %v956_v18, %v968_v35 }
 0x1bf   : > { %22127 = vst [vmem:[#allocation54_spill] sm:$0xff] %v17660_v13  ;;  %v17664_v41 = vadd.f32 %v4822_v60, %v4749_v59  ;;  %5306 = vmatpush2.bf16.msra.mxu0 %v14789_v19  ;;  %5401 = vmatmul.mubr.bf16.gmra.mxu1 %v17577_v56  ;;  %v428_v59 = vld [vmem:[#allocation2 + $0x38] sm:$0xff]  ;;  %v4832_v19 = vpop.f32.mrf.mxu1 }
 0x1c0   : > { %5430 = vmatpush1.bf16.msra.mxu1 %v14671_v33  ;;  %v17667_v8 = vpop.f32.mrf.mxu0  ;;  %5494 = vmatprep.subr.bf16.mxu0 %v15152_v55  ;;  %v14623_v33 = vcombine.low %v452_v16, %v464_v50  ;;  %v15104_v55 = vcombine.high %v932_v21, %v944_v17  ;;  %v14600_v7 = vcombine.high %v428_v59, %v440_v11  ;;  %v800_v35 = vld [vmem:[#allocation2 + $0xbd8] sm:$0xff] }
 0x1c1   : > { %22128 = vst [vmem:[#allocation55_spill] sm:$0xff] %v17664_v41  ;;  %22129 = vst [vmem:[#allocation56_spill] sm:$0xff] %v17667_v8  ;;  %5431 = vmatprep.subr.bf16.mxu1 %v14648_v48  ;;  %15267 = vmatprep.mubr.msk.bf16.mxu1 %vm4313_vm0, %v17591_v54  ;;  %v908_v41 = vld [vmem:[#allocation2 + $0xf38] sm:$0xff]  ;;  %v15103_v16 = vcombine.low %v932_v21, %v944_v17  ;;  %v14599_v50 = vcombine.low %v428_v59, %v440_v11 }
 0x1c2   : > { %v4755_v60 = vpop.f32.mrf.mxu0  ;;  %5308 = vmatmul.mubr.bf16.vlgmr.msra.gmra.mxu0 %v17535_v38  ;;  %v896_v48 = vld [vmem:[#allocation2 + $0xed8] sm:$0xff] }
 0x1c3   : > { %v17674_v2 = vadd.f32 %v4828_v12, %v4755_v60  ;;  %5495 = vmatpush1.bf16.msra.mxu0 %v15151_v47  ;;  %5317 = vmatprep.mubr.bf16.mxu0 %v17541_v61  ;;  %v920_v12 = vld [vmem:[#allocation2 + $0xf98] sm:$0xff] }
 0x1c4   : > { %5432 = vmatpush1.bf16.msra.mxu1 %v14647_v20  ;;  %v4757_v23 = vpop.f32.mrf.mxu0  ;;  %5496 = vmatprep.subr.bf16.mxu0 %v15128_v26  ;;  %v788_v47 = vld [vmem:[#allocation2 + $0xb78] sm:$0xff]  ;;  %v15079_v17 = vcombine.low %v908_v41, %v920_v12 }
 0x1c5   : > { %22130 = vst [vmem:[#allocation57_spill] sm:$0xff] %v17674_v2  ;;  %v17679_v10 = vadd.f32 %v4830_v29, %v4757_v23  ;;  %5433 = vmatprep.subr.bf16.mxu1 %v14624_v25  ;;  %v15080_v29 = vcombine.high %v908_v41, %v920_v12  ;;  %v14960_v25 = vcombine.high %v788_v47, %v800_v35  ;;  %v884_v23 = vld [vmem:[#allocation2 + $0xe78] sm:$0xff] }
 0x1c6   : > { %v4759_v60 = vpop.f32.mrf.mxu0  ;;  %v14959_v21 = vcombine.low %v788_v47, %v800_v35  ;;  %v15056_v59 = vcombine.high %v884_v23, %v896_v48  ;;  %v836_v12 = vld [vmem:[#allocation2 + $0xcf8] sm:$0xff] }
 0x1c7   : > { %22131 = vst [vmem:[#allocation58_spill] sm:$0xff] %v17679_v10  ;;  %v17683_v20 = vadd.f32 %v4832_v19, %v4759_v60  ;;  %5497 = vmatpush1.bf16.msra.mxu0 %v15127_v51  ;;  %5411 = vmatmul.mubr.bf16.gmra.mxu1 %v17600_v4  ;;  %v764_v19 = vld [vmem:[#allocation2 + $0xab8] sm:$0xff] }
 0x1c8   : > { %5434 = vmatpush1.bf16.msra.mxu1 %v14623_v33  ;;  %5498 = vmatprep.subr.bf16.mxu0 %v15104_v55  ;;  %v776_v51 = vld [vmem:[#allocation2 + $0xb18] sm:$0xff] }
 0x1c9   : > { %22132 = vst [vmem:[#allocation59_spill] sm:$0xff] %v17683_v20  ;;  %5435 = vmatprep.subr.bf16.mxu1 %v14600_v7  ;;  %5453 = vmatprep.mubr.bf16.mxu1 %v17475_v15  ;;  %v14936_v11 = vcombine.high %v764_v19, %v776_v51  ;;  %v860_v7 = vld [vmem:[#allocation2 + $0xdb8] sm:$0xff]  ;;  %v15055_v15 = vcombine.low %v884_v23, %v896_v48  ;;  %v17695_v23 = vpop.f32.mrf.mxu1 }
 0x1ca   : > { %5318 = vmatmul.mubr.bf16.gmra.mxu0 %v17564_v43  ;;  %v872_v33 = vld [vmem:[#allocation2 + $0xe18] sm:$0xff]  ;;  %v14935_v26 = vcombine.low %v764_v19, %v776_v51  ;;  %22134 = vst [vmem:[#allocation61_spill] sm:$0xff] %v17695_v23 }
 0x1cb   : > { %5499 = vmatpush1.bf16.msra.mxu0 %v15103_v16  ;;  %5327 = vmatprep.mubr.bf16.mxu0 %v17568_v52  ;;  %v740_v55 = vld [vmem:[#allocation2 + $0x9f8] sm:$0xff]  ;;  %v15032_v18 = vcombine.high %v860_v7, %v872_v33 }
 0x1cc   : > { %5436 = vmatpush1.bf16.msra.mxu1 %v14599_v50  ;;  %5500 = vmatprep.subr.bf16.mxu0 %v15080_v29  ;;  %v752_v60 = vld [vmem:[#allocation2 + $0xa58] sm:$0xff]  ;;  %v15031_v50 = vcombine.low %v860_v7, %v872_v33  ;;  %v17693_v29 = vpop.f32.mrf.mxu0 }
 0x1cd   : > { %5437 = vmatprep.subr.bf16.mxu1 %v14960_v25  ;;  %v14912_v41 = vcombine.high %v740_v55, %v752_v60  ;;  %v848_v16 = vld [vmem:[#allocation2 + $0xd58] sm:$0xff]  ;;  %22133 = vst [vmem:[#allocation60_spill] sm:$0xff] %v17693_v29  ;;  %v14911_v48 = vcombine.low %v740_v55, %v752_v60 }
 0x1ce   : > { %v716_v47 = vld [vmem:[#allocation2 + $0x938] sm:$0xff]  ;;  %v15008_v25 = vcombine.high %v836_v12, %v848_v16  ;;  %v15007_v7 = vcombine.low %v836_v12, %v848_v16 }
 0x1cf   : > { %5501 = vmatpush1.bf16.msra.mxu0 %v15079_v17  ;;  %v728_v35 = vld [vmem:[#allocation2 + $0x998] sm:$0xff] }
 0x1d0   : > { %5438 = vmatpush2.bf16.msra.mxu1 %v14959_v21  ;;  %5502 = vmatprep.subr.bf16.mxu0 %v15056_v59  ;;  %v14888_v19 = vcombine.high %v716_v47, %v728_v35  ;;  %v812_v51 = vld [vmem:[#allocation2 + $0xc38] sm:$0xff] }
 0x1d1   : > { %5439 = vmatprep.subr.bf16.mxu1 %v14936_v11  ;;  %v824_v17 = vld [vmem:[#allocation2 + $0xc98] sm:$0xff] }
 0x1d2   : > { %5328 = vmatmul.mubr.bf16.gmra.mxu0 %v17581_v49  ;;  %v692_v59 = vld [vmem:[#allocation2 + $0x878] sm:$0xff]  ;;  %v14983_v12 = vcombine.low %v812_v51, %v824_v17 }
 0x1d3   : > { %5503 = vmatpush1.bf16.msra.mxu0 %v15055_v15  ;;  %5337 = vmatprep.mubr.bf16.mxu0 %v17587_v9  ;;  %v704_v11 = vld [vmem:[#allocation2 + $0x8d8] sm:$0xff] }
 0x1d4   : > { %5440 = vmatpush2.bf16.msra.mxu1 %v14935_v26  ;;  %5504 = vmatprep.subr.bf16.mxu0 %v15032_v18  ;;  %v14887_v26 = vcombine.low %v716_v47, %v728_v35  ;;  %v14984_v18 = vcombine.high %v812_v51, %v824_v17  ;;  %v14864_v60 = vcombine.high %v692_v59, %v704_v11  ;;  %v668_v39 = vld [vmem:[#allocation2 + $0x7b8] sm:$0xff] }
 0x1d5   : > { %5441 = vmatprep.subr.bf16.mxu1 %v14912_v41  ;;  %v1052_v41 = vld [vmem:[#allocation2 + $0x13b8] sm:$0x33] }
 0x1d6   : > { %v4944_v21 = vpop.f32.mrf.mxu0  ;;  %v680_v10 = vld [vmem:[#allocation2 + $0x818] sm:$0xff]  ;;  %v15224_v35 = vcombine.high %v1052_v41, %v1052_v41 }
 0x1d7   : > { %v4871_v20 = vpop.f32.mrf.mxu1  ;;  %5505 = vmatpush1.bf16.msra.mxu0 %v15031_v50  ;;  %v656_v51 = vld [vmem:[#allocation2 + $0x758] sm:$0xff] }
 0x1d8   : > { %v17697_v33 = vadd.f32 %v4944_v21, %v4871_v20  ;;  %5442 = vmatpush2.bf16.msra.mxu1 %v14911_v48  ;;  %v4946_v15 = vpop.f32.mrf.mxu0  ;;  %5506 = vmatprep.subr.bf16.mxu0 %v15008_v25  ;;  %v14863_v20 = vcombine.low %v692_v59, %v704_v11  ;;  %v15223_v48 = vcombine.low %v1052_v41, %v1052_v41  ;;  %v1028_v21 = vld [vmem:[#allocation2 + $0x12f8] sm:$0xff] }
 0x1d9   : > { %v4873_v55 = vpop.f32.mrf.mxu1  ;;  %5443 = vmatprep.subr.bf16.mxu1 %v14888_v19  ;;  %v14840_v19 = vcombine.high %v668_v39, %v680_v10  ;;  %v644_v59 = vld [vmem:[#allocation2 + $0x6f8] sm:$0xff]  ;;  %v14839_v11 = vcombine.low %v668_v39, %v680_v10 }
 0x1da   : > { %22135 = vst [vmem:[#allocation62_spill] sm:$0xff] %v17697_v33  ;;  %v17699_v23 = vadd.f32 %v4946_v15, %v4873_v55  ;;  %v4948_v29 = vpop.f32.mrf.mxu0  ;;  %5338 = vmatmul.mubr.bf16.gmra.mxu0 %v17606_v14  ;;  %v1040_v15 = vld [vmem:[#allocation2 + $0x1358] sm:$0xff]  ;;  %v14815_v10 = vcombine.low %v644_v59, %v656_v51 }
 0x1db   : > { %v4875_v50 = vpop.f32.mrf.mxu1  ;;  %5507 = vmatpush1.bf16.msra.mxu0 %v15007_v7  ;;  %15269 = vmatprep.mubr.msk.bf16.mxu0 %vm4313_vm0, %v17492_v22  ;;  %v1004_v41 = vld [vmem:[#allocation2 + $0x1238] sm:$0xff] }
 0x1dc   : > { %22136 = vst [vmem:[#allocation63_spill] sm:$0xff] %v17699_v23  ;;  %v17704_v16 = vadd.f32 %v4948_v29, %v4875_v50  ;;  %5444 = vmatpush2.bf16.msra.mxu1 %v14887_v26  ;;  %v17706_v47 = vpop.f32.mrf.mxu0  ;;  %5508 = vmatprep.subr.bf16.mxu0 %v14984_v18  ;;  %v4370_v26 = vsel %vm4326_vm1, %v15223_v48, 0  ;;  %v15200_v18 = vcombine.high %v1028_v21, %v1040_v15  ;;  %v1016_v50 = vld [vmem:[#allocation2 + $0x1298] sm:$0xff]  ;;  %v17916_v23 = vld [vmem:[%s17205_s30 + $0x60] ss:$16 sps:$4 sm:$0xff]  }
 0x1dd   : > { %22138 = vst [vmem:[#allocation65_spill] sm:$0xff] %v17706_v47  ;;  %v17708_v25 = vpop.f32.mrf.mxu1  ;;  %5445 = vmatprep.subr.bf16.mxu1 %v14864_v60  ;;  %v14816_v60 = vcombine.high %v644_v59, %v656_v51  ;;  %v620_v37 = vld [vmem:[#allocation2 + $0x638] sm:$0xff] }
 0x1de   : > { %22137 = vst [vmem:[#allocation64_spill] sm:$0xff] %v17704_v16  ;;  %22139 = vst [vmem:[#allocation66_spill] sm:$0xff] %v17708_v25  ;;  %v4954_v7 = vpop.f32.mrf.mxu0 }
 0x1df   : > { %v4881_v17 = vpop.f32.mrf.mxu1  ;;  %5509 = vmatpush1.bf16.msra.mxu0 %v14983_v12  ;;  %v632_v12 = vld [vmem:[#allocation2 + $0x698] sm:$0xff] }
 0x1e0   : > { %v17710_v22 = vadd.f32 %v4954_v7, %v4881_v17  ;;  %5446 = vmatpush2.bf16.msra.mxu1 %v14863_v20  ;;  %v4956_v29 = vpop.f32.mrf.mxu0  ;;  %15268 = vmatprep.subr.msk.bf16.mxu0 %vm4326_vm1, %v15224_v35  ;;  %v15199_v20 = vcombine.low %v1028_v21, %v1040_v15  ;;  %v15176_v35 = vcombine.high %v1004_v41, %v1016_v50 }
 0x1e1   : > { %v4883_v55 = vpop.f32.mrf.mxu1  ;;  %5447 = vmatprep.subr.bf16.mxu1 %v14840_v19  ;;  %v14792_v19 = vcombine.high %v620_v37, %v632_v12  ;;  %v15175_v21 = vcombine.low %v1004_v41, %v1016_v50  ;;  %v969_v41 = vld [vmem:[#allocation2 + $0x1120] sm:$0xff]  ;;  %v15153_v50 = vcombine.low %v981_v5, %v993_v63 }
 0x1e2   : > { %22140 = vst [vmem:[#allocation67_spill] sm:$0xff] %v17710_v22  ;;  %v17714_v47 = vadd.f32 %v4956_v29, %v4883_v55  ;;  %v4958_v25 = vpop.f32.mrf.mxu0  ;;  %v597_v29 = vld [vmem:[#allocation2 + $0x580] sm:$0xff]  ;;  %v958_v22 = vld [vmem:[#allocation2 + $0x10c8] sm:$0xff] }
 0x1e3   : > { %v4885_v7 = vpop.f32.mrf.mxu1  ;;  %5521 = vmatpush2.bf16.msra.mxu0 %v4370_v26  ;;  %v609_v55 = vld [vmem:[#allocation2 + $0x5e0] sm:$0xff]  ;;  %v15154_v26 = vcombine.high %v981_v5, %v993_v63 }
 0x1e4   : > { %22141 = vst [vmem:[#allocation68_spill] sm:$0xff] %v17714_v47  ;;  %v17716_v17 = vadd.f32 %v4958_v25, %v4885_v7  ;;  %5448 = vmatpush2.bf16.msra.mxu1 %v14839_v11  ;;  %v17718_v39 = vpop.f32.mrf.mxu0  ;;  %5522 = vmatprep.subr.bf16.mxu0 %v15200_v18  ;;  %v14791_v11 = vcombine.low %v620_v37, %v632_v12  ;;  %v573_v18 = vld [vmem:[#allocation2 + $0x4c0] sm:$0xff] }
 0x1e5   : > { %22143 = vst [vmem:[#allocation70_spill] sm:$0xff] %v17718_v39  ;;  %v17720_v48 = vpop.f32.mrf.mxu1  ;;  %5449 = vmatprep.subr.bf16.mxu1 %v14816_v60  ;;  %v14770_v59 = vcombine.high %v597_v29, %v609_v55  ;;  %v585_v60 = vld [vmem:[#allocation2 + $0x520] sm:$0xff] }
 0x1e6   : > { %22142 = vst [vmem:[#allocation69_spill] sm:$0xff] %v17716_v17  ;;  %22144 = vst [vmem:[#allocation71_spill] sm:$0xff] %v17720_v48  ;;  %v4964_v2 = vpop.f32.mrf.mxu0  ;;  %v561_v7 = vld [vmem:[#allocation2 + $0x460] sm:$0xff] }
 0x1e7   : > { %v4891_v13 = vpop.f32.mrf.mxu1  ;;  %5523 = vmatpush2.bf16.msra.mxu0 %v15199_v20  ;;  %v957_v20 = vld [vmem:[#allocation2 + $0x10c0] sm:$0xff] }
 0x1e8   : > { %v17722_v25 = vadd.f32 %v4964_v2, %v4891_v13  ;;  %5450 = vmatpush2.bf16.msra.mxu1 %v14815_v10  ;;  %v4966_v15 = vpop.f32.mrf.mxu0  ;;  %5524 = vmatprep.subr.bf16.mxu0 %v15176_v35  ;;  %v14769_v2 = vcombine.low %v597_v29, %v609_v55  ;;  %v14746_v35 = vcombine.high %v573_v18, %v585_v60  ;;  %v933_v5 = vld [vmem:[#allocation2 + $0x1000] sm:$0xff] }
 0x1e9   : > { %v4893_v51 = vpop.f32.mrf.mxu1  ;;  %5451 = vmatprep.subr.bf16.mxu1 %v14792_v19  ;;  %v621_v47 = vld [vmem:[#allocation2 + $0x640] sm:$0xff] }
 0x1ea   : > { %22145 = vst [vmem:[#allocation72_spill] sm:$0xff] %v17722_v25  ;;  %v17726_v39 = vadd.f32 %v4966_v15, %v4893_v51  ;;  %v4968_v48 = vpop.f32.mrf.mxu0  ;;  %v15130_v15 = vcombine.high %v957_v20, %v969_v41  ;;  %v549_v51 = vld [vmem:[#allocation2 + $0x400] sm:$0xff]  ;;  %v1042_v25 = vld [vmem:[#allocation2 + $0x1368] sm:$0xff] }
 0x1eb   : > { %v4895_v13 = vpop.f32.mrf.mxu1  ;;  %5525 = vmatpush2.bf16.msra.mxu0 %v15175_v21  ;;  %v14745_v21 = vcombine.low %v573_v18, %v585_v60  ;;  %v909_v60 = vld [vmem:[#allocation2 + $0xf40] sm:$0xff] }
 0x1ec   : > { %22146 = vst [vmem:[#allocation73_spill] sm:$0xff] %v17726_v39  ;;  %v17730_v12 = vadd.f32 %v4968_v48, %v4895_v13  ;;  %5452 = vmatpush2.bf16.msra.mxu1 %v14791_v11  ;;  %v17732_v10 = vpop.f32.mrf.mxu0  ;;  %5567 = vmatprep.subr.bf16.mxu0 %v14770_v59  ;;  %v945_v48 = vld [vmem:[#allocation2 + $0x1060] sm:$0xff]  ;;  %v14722_v13 = vcombine.high %v549_v51, %v561_v7  ;;  %v970_v39 = vld [vmem:[#allocation2 + $0x1128] sm:$0xff] }
 0x1ed   : > { %22148 = vst [vmem:[#allocation75_spill] sm:$0xff] %v17732_v10  ;;  %v17734_v19 = vpop.f32.mrf.mxu1  ;;  %5640 = vmatprep.subr.bf16.mxu1 %v15154_v26  ;;  %v15129_v26 = vcombine.low %v957_v20, %v969_v41  ;;  %v15106_v29 = vcombine.high %v933_v5, %v945_v48  ;;  %v14721_v41 = vcombine.low %v549_v51, %v561_v7  ;;  %v897_v7 = vld [vmem:[#allocation2 + $0xee0] sm:$0xff] }
 0x1ee   : > { %22147 = vst [vmem:[#allocation74_spill] sm:$0xff] %v17730_v12  ;;  %22149 = vst [vmem:[#allocation76_spill] sm:$0xff] %v17734_v19  ;;  %v4974_v63 = vpop.f32.mrf.mxu0  ;;  %5527 = vmatmul.mubr.bf16.vlgmr.msra.gmra.mxu0 %v17531_v40  ;;  %v525_v40 = vld [vmem:[#allocation2 + $0x340] sm:$0xff]  ;;  %v983_v19 = vld [vmem:[#allocation2 + $0x1190] sm:$0xff] }
 0x1ef   : > { %v4901_v55 = vpop.f32.mrf.mxu1  ;;  %5454 = vmatmul.mubr.bf16.vlgmr.msra.gmra.mxu1 %v17535_v38  ;;  %5568 = vmatpush1.bf16.msra.mxu0 %v14769_v2  ;;  %v537_v12 = vld [vmem:[#allocation2 + $0x3a0] sm:$0xff] }
 0x1f0   : > { %v17740_v11 = vadd.f32 %v4974_v63, %v4901_v55  ;;  %5641 = vmatpush1.bf16.msra.mxu1 %v15153_v50  ;;  %v4976_v59 = vpop.f32.mrf.mxu0  ;;  %5569 = vmatprep.subr.bf16.mxu0 %v14746_v35  ;;  %v921_v2 = vld [vmem:[#allocation2 + $0xfa0] sm:$0xff]  ;;  %v15105_v50 = vcombine.low %v933_v5, %v945_v48  ;;  %v14697_v51 = vcombine.low %v525_v40, %v537_v12 }
 0x1f1   : > { %v4903_v37 = vpop.f32.mrf.mxu1  ;;  %5642 = vmatprep.subr.bf16.mxu1 %v15130_v15  ;;  %5463 = vmatprep.mubr.bf16.mxu1 %v17541_v61  ;;  %v14698_v15 = vcombine.high %v525_v40, %v537_v12  ;;  %v501_v63 = vld [vmem:[#allocation2 + $0x280] sm:$0xff]  ;;  %v15081_v5 = vcombine.low %v909_v60, %v921_v2 }
 0x1f2   : > { %22150 = vst [vmem:[#allocation77_spill] sm:$0xff] %v17740_v11  ;;  %v17745_v38 = vadd.f32 %v4976_v59, %v4903_v37  ;;  %v4978_v18 = vpop.f32.mrf.mxu0  ;;  %15270 = vmatprep.mubr.msk.bf16.mxu0 %vm4313_vm0, %v17549_v62  ;;  %v15082_v37 = vcombine.high %v909_v60, %v921_v2  ;;  %v513_v55 = vld [vmem:[#allocation2 + $0x2e0] sm:$0xff]  ;;  %v586_v62 = vld [vmem:[#allocation2 + $0x528] sm:$0xff] }
 0x1f3   : > { %v4905_v20 = vpop.f32.mrf.mxu1  ;;  %5570 = vmatpush1.bf16.msra.mxu0 %v14745_v21  ;;  %v885_v21 = vld [vmem:[#allocation2 + $0xe80] sm:$0xff]  ;;  %v14674_v48 = vcombine.high %v501_v63, %v513_v55  ;;  %v502_v11 = vld [vmem:[#allocation2 + $0x288] sm:$0xff] }
 0x1f4   : > { %22151 = vst [vmem:[#allocation78_spill] sm:$0xff] %v17745_v38  ;;  %v17751_v35 = vadd.f32 %v4978_v18, %v4905_v20  ;;  %5643 = vmatpush1.bf16.msra.mxu1 %v15129_v26  ;;  %5571 = vmatprep.subr.bf16.mxu0 %v14722_v13  ;;  %v477_v59 = vld [vmem:[#allocation2 + $0x1c0] sm:$0xff]  ;;  %v14673_v18 = vcombine.low %v501_v63, %v513_v55  ;;  %v17794_v61 = vpop.f32.mrf.mxu0  ;;  %v17816_v38 = vld [vmem:[%s17205_s30 + $0x2c] ss:$16 sps:$4 sm:$0xff]  }
 0x1f5   : > { %5644 = vmatprep.subr.bf16.mxu1 %v15106_v29  ;;  %v15058_v29 = vcombine.high %v885_v21, %v897_v7  ;;  %v489_v26 = vld [vmem:[#allocation2 + $0x220] sm:$0xff]  ;;  %22155 = vst [vmem:[#allocation82_spill] sm:$0xff] %v17794_v61 }
 0x1f6   : > { %22152 = vst [vmem:[#allocation79_spill] sm:$0xff] %v17751_v35  ;;  %5537 = vmatmul.mubr.bf16.gmra.mxu0 %v17560_v27  ;;  %v861_v27 = vld [vmem:[#allocation2 + $0xdc0] sm:$0xff]  ;;  %v14650_v12 = vcombine.high %v477_v59, %v489_v26 }
 0x1f7   : > { %5464 = vmatmul.mubr.bf16.gmra.mxu1 %v17564_v43  ;;  %5572 = vmatpush1.bf16.msra.mxu0 %v14721_v41  ;;  %v873_v13 = vld [vmem:[#allocation2 + $0xe20] sm:$0xff]  ;;  %v15057_v43 = vcombine.low %v885_v21, %v897_v7 }
 0x1f8   : > { %5645 = vmatpush1.bf16.msra.mxu1 %v15105_v50  ;;  %5573 = vmatprep.subr.bf16.mxu0 %v14698_v15  ;;  %v15034_v40 = vcombine.high %v861_v27, %v873_v13  ;;  %v453_v60 = vld [vmem:[#allocation2 + $0x100] sm:$0xff]  ;;  %v15033_v41 = vcombine.low %v861_v27, %v873_v13  ;;  %v17762_v15 = vpop.f32.mrf.mxu1 }
 0x1f9   : > { %5646 = vmatprep.subr.bf16.mxu1 %v15082_v37  ;;  %5473 = vmatprep.mubr.bf16.mxu1 %v17568_v52  ;;  %v465_v2 = vld [vmem:[#allocation2 + $0x160] sm:$0xff]  ;;  %22153 = vst [vmem:[#allocation80_spill] sm:$0xff] %v17762_v15  ;;  %v622_v15 = vld [vmem:[#allocation2 + $0x648] sm:$0xff] }
 0x1fa   : > { %15271 = vmatprep.mubr.msk.bf16.mxu0 %vm4313_vm0, %v17572_v36  ;;  %v837_v52 = vld [vmem:[#allocation2 + $0xd00] sm:$0xff]  ;;  %v14649_v36 = vcombine.low %v477_v59, %v489_v26  ;;  %v14626_v50 = vcombine.high %v453_v60, %v465_v2  ;;  %v14625_v7 = vcombine.low %v453_v60, %v465_v2  ;;  %v17778_v2 = vld [vmem:[%s17205_s30 + $0xc] ss:$16 sps:$4 sm:$0xff]  }
 0x1fb   : > { %5574 = vmatpush1.bf16.msra.mxu0 %v14697_v51  ;;  %v849_v20 = vld [vmem:[#allocation2 + $0xd60] sm:$0xff] }
 0x1fc   : > { %5647 = vmatpush1.bf16.msra.mxu1 %v15081_v5  ;;  %5575 = vmatprep.subr.bf16.mxu0 %v14674_v48  ;;  %v15010_v37 = vcombine.high %v837_v52, %v849_v20  ;;  %v429_v63 = vld [vmem:[#allocation2 + $0x40] sm:$0xff]  ;;  %v15009_v51 = vcombine.low %v837_v52, %v849_v20 }
 0x1fd   : > { %5648 = vmatprep.subr.bf16.mxu1 %v15058_v29  ;;  %v441_v55 = vld [vmem:[#allocation2 + $0xa0] sm:$0xff] }
 0x1fe   : > { %5547 = vmatmul.mubr.bf16.gmra.mxu0 %v17577_v56  ;;  %v813_v56 = vld [vmem:[#allocation2 + $0xc40] sm:$0xff]  ;;  %v14602_v5 = vcombine.high %v429_v63, %v441_v55  ;;  %v14601_v27 = vcombine.low %v429_v63, %v441_v55 }
 0x1ff   : > { %5474 = vmatmul.mubr.bf16.gmra.mxu1 %v17581_v49  ;;  %5576 = vmatpush1.bf16.msra.mxu0 %v14673_v18  ;;  %v825_v21 = vld [vmem:[#allocation2 + $0xca0] sm:$0xff] }
 0x200   : > { %5649 = vmatpush1.bf16.msra.mxu1 %v15057_v43  ;;  %5577 = vmatprep.subr.bf16.mxu0 %v14650_v12  ;;  %v789_v29 = vld [vmem:[#allocation2 + $0xb80] sm:$0xff]  ;;  %v14985_v13 = vcombine.low %v813_v56, %v825_v21 }
 0x201   : > { %5650 = vmatprep.subr.bf16.mxu1 %v15034_v40  ;;  %5483 = vmatprep.mubr.bf16.mxu1 %v17587_v9  ;;  %v14986_v9 = vcombine.high %v813_v56, %v825_v21  ;;  %v801_v59 = vld [vmem:[#allocation2 + $0xbe0] sm:$0xff] }
 0x202   : > { %15272 = vmatprep.mubr.msk.bf16.mxu0 %vm4313_vm0, %v17591_v54  ;;  %v1053_v54 = vld [vmem:[#allocation2 + $0x13c0] sm:$0x33]  ;;  %v14962_v18 = vcombine.high %v789_v29, %v801_v59 }
 0x203   : > { %v17767_v49 = vpop.f32.mrf.mxu1  ;;  %5578 = vmatpush1.bf16.msra.mxu0 %v14649_v36  ;;  %v15226_v12 = vcombine.high %v1053_v54, %v1053_v54  ;;  %v15225_v40 = vcombine.low %v1053_v54, %v1053_v54  ;;  %v765_v60 = vld [vmem:[#allocation2 + $0xac0] sm:$0xff]  ;;  %v14961_v36 = vcombine.low %v789_v29, %v801_v59 }
 0x204   : > { %5651 = vmatpush1.bf16.msra.mxu1 %v15033_v41  ;;  %5579 = vmatprep.subr.bf16.mxu0 %v14626_v50  ;;  %v1041_v52 = vld [vmem:[#allocation2 + $0x1360] sm:$0xff] }
 0x205   : > { %v17769_v48 = vpop.f32.mrf.mxu1  ;;  %5652 = vmatprep.subr.bf16.mxu1 %v15010_v37  ;;  %v17783_v20 = vld [vmem:[%s17205_s30 + $0x4] ss:$16 sps:$4 sm:$0xff]   ;;  %v4376_v37 = vsel %vm4326_vm1, %v15225_v40, 0 }
 0x206   : > { %5557 = vmatmul.mubr.bf16.gmra.mxu0 %v17600_v4  ;;  %v777_v4 = vld [vmem:[#allocation2 + $0xb20] sm:$0xff] }
 0x207   : > { %v17772_v26 = vpop.f32.mrf.mxu1  ;;  %5484 = vmatmul.mubr.bf16.gmra.mxu1 %v17606_v14  ;;  %5580 = vmatpush1.bf16.msra.mxu0 %v14625_v7  ;;  %v1029_v14 = vld [vmem:[#allocation2 + $0x1300] sm:$0xff]  ;;  %v14938_v50 = vcombine.high %v765_v60, %v777_v4 }
 0x208   : > { %5653 = vmatpush1.bf16.msra.mxu1 %v15009_v51  ;;  %5581 = vmatprep.subr.bf16.mxu0 %v14602_v5  ;;  %v15202_v63 = vcombine.high %v1029_v14, %v1041_v52  ;;  %v741_v55 = vld [vmem:[#allocation2 + $0xa00] sm:$0xff]  ;;  %v14937_v5 = vcombine.low %v765_v60, %v777_v4 }
 0x209   : > { %v17775_v43 = vpop.f32.mrf.mxu1  ;;  %5654 = vmatprep.subr.bf16.mxu1 %v14986_v9  ;;  %15274 = vmatprep.mubr.msk.bf16.mxu1 %vm4313_vm0, %v17778_v2  ;;  %v753_v56 = vld [vmem:[#allocation2 + $0xa60] sm:$0xff]  ;;  %v15201_v9 = vcombine.low %v1029_v14, %v1041_v52 }
 0x20a   : > { %22154 = vst [vmem:[#allocation81_spill] sm:$0xff] %v17775_v43  ;;  %5599 = vmatprep.mubr.bf16.mxu0 %v17783_v20  ;;  %v1005_v7 = vld [vmem:[#allocation2 + $0x1240] sm:$0xff]  ;;  %v14914_v29 = vcombine.high %v741_v55, %v753_v56  ;;  %v14913_v40 = vcombine.low %v741_v55, %v753_v56 }
 0x20b   : > { %5582 = vmatpush1.bf16.msra.mxu0 %v14601_v27  ;;  %v17786_v41 = vpop.f32.mrf.mxu1  ;;  %v1017_v51 = vld [vmem:[#allocation2 + $0x12a0] sm:$0xff] }
 0x20c   : > { %5655 = vmatpush1.bf16.msra.mxu1 %v14985_v13  ;;  %5583 = vmatprep.subr.bf16.mxu0 %v14962_v18  ;;  %v15178_v54 = vcombine.high %v1005_v7, %v1017_v51  ;;  %v717_v27 = vld [vmem:[#allocation2 + $0x940] sm:$0xff]  ;;  %v598_v18 = vld [vmem:[#allocation2 + $0x588] sm:$0xff] }
 0x20d   : > { %15273 = vmatprep.subr.msk.bf16.mxu1 %vm4326_vm1, %v15226_v12  ;;  %v17790_v21 = vpop.f32.mrf.mxu1  ;;  %v729_v13 = vld [vmem:[#allocation2 + $0x9a0] sm:$0xff]  ;;  %v610_v12 = vld [vmem:[#allocation2 + $0x5e8] sm:$0xff] }
 0x20e   : > { %v14890_v60 = vcombine.high %v717_v27, %v729_v13  ;;  %v14772_v14 = vcombine.high %v598_v18, %v610_v12  ;;  %v693_v52 = vld [vmem:[#allocation2 + $0x880] sm:$0xff]  ;;  %v14889_v55 = vcombine.low %v717_v27, %v729_v13  ;;  %v17810_v13 = vld [vmem:[%s17205_s30 + $0x8] ss:$16 sps:$4 sm:$0xff]  }
 0x20f   : > { %5584 = vmatpush2.bf16.msra.mxu0 %v14961_v36  ;;  %v17792_v59 = vpop.f32.mrf.mxu1  ;;  %v15177_v36 = vcombine.low %v1005_v7, %v1017_v51  ;;  %v14771_v7 = vcombine.low %v598_v18, %v610_v12  ;;  %v633_v35 = vld [vmem:[#allocation2 + $0x6a0] sm:$0xff] }
 0x210   : > { %5667 = vmatpush2.bf16.msra.mxu1 %v4376_v37  ;;  %5585 = vmatprep.subr.bf16.mxu0 %v14938_v50  ;;  %v705_v50 = vld [vmem:[#allocation2 + $0x8e0] sm:$0xff] }
 0x211   : > { %5668 = vmatprep.subr.bf16.mxu1 %v15202_v63  ;;  %v17796_v4 = vpop.f32.mrf.mxu1  ;;  %v574_v63 = vld [vmem:[#allocation2 + $0x4c8] sm:$0xff]  ;;  %v14866_v51 = vcombine.high %v693_v52, %v705_v50  ;;  %v14865_v18 = vcombine.low %v693_v52, %v705_v50 }
 0x212   : > { %22156 = vst [vmem:[#allocation83_spill] sm:$0xff] %v17796_v4  ;;  %v681_v4 = vld [vmem:[#allocation2 + $0x820] sm:$0xff]  ;;  %v14747_v12 = vcombine.low %v574_v63, %v586_v62 }
 0x213   : > { %5586 = vmatpush2.bf16.msra.mxu0 %v14937_v5  ;;  %v17801_v5 = vpop.f32.mrf.mxu1 }
 0x214   : > { %5669 = vmatpush2.bf16.msra.mxu1 %v15201_v9  ;;  %5587 = vmatprep.subr.bf16.mxu0 %v14914_v29  ;;  %v14748_v29 = vcombine.high %v574_v63, %v586_v62 }
 0x215   : > { %5670 = vmatprep.subr.bf16.mxu1 %v15178_v54  ;;  %v669_v54 = vld [vmem:[#allocation2 + $0x7c0] sm:$0xff] }
 0x216   : > { %v5017_v37 = vpop.f32.mrf.mxu0  ;;  %v14841_v50 = vcombine.low %v669_v54, %v681_v4 }
 0x217   : > { %v17799_v16 = vadd.f32 %v17767_v49, %v5017_v37  ;;  %5588 = vmatpush2.bf16.msra.mxu0 %v14913_v40  ;;  %v550_v49 = vld [vmem:[#allocation2 + $0x408] sm:$0xff]  ;;  %v14842_v40 = vcombine.high %v669_v54, %v681_v4 }
 0x218   : > { %5671 = vmatpush2.bf16.msra.mxu1 %v15177_v36  ;;  %v5019_v56 = vpop.f32.mrf.mxu0  ;;  %5589 = vmatprep.subr.bf16.mxu0 %v14890_v60  ;;  %v562_v37 = vld [vmem:[#allocation2 + $0x468] sm:$0xff]  ;;  %v5112_v36 = vpop.f32.mrf.mxu1 }
 0x219   : > { %22157 = vst [vmem:[#allocation84_spill] sm:$0xff] %v17799_v16  ;;  %v17804_v9 = vadd.f32 %v17769_v48, %v5019_v56  ;;  %5713 = vmatprep.subr.bf16.mxu1 %v14772_v14  ;;  %v14724_v60 = vcombine.high %v550_v49, %v562_v37  ;;  %v645_v14 = vld [vmem:[#allocation2 + $0x700] sm:$0xff]  ;;  %v14723_v63 = vcombine.low %v550_v49, %v562_v37 }
 0x21a   : > { %v5021_v43 = vpop.f32.mrf.mxu0  ;;  %v657_v56 = vld [vmem:[#allocation2 + $0x760] sm:$0xff]  ;;  %v14794_v37 = vcombine.high %v621_v47, %v633_v35 }
 0x21b   : > { %22158 = vst [vmem:[#allocation85_spill] sm:$0xff] %v17804_v9  ;;  %v17807_v27 = vadd.f32 %v17772_v26, %v5021_v43  ;;  %5673 = vmatmul.mubr.bf16.vlgmr.msra.gmra.mxu1 %v17810_v13  ;;  %5590 = vmatpush2.bf16.msra.mxu0 %v14889_v55  ;;  %v526_v43 = vld [vmem:[#allocation2 + $0x348] sm:$0xff]  ;;  %v14817_v54 = vcombine.low %v645_v14, %v657_v56 }
 0x21c   : > { %5714 = vmatpush1.bf16.msra.mxu1 %v14771_v7  ;;  %v17813_v48 = vpop.f32.mrf.mxu0  ;;  %5591 = vmatprep.subr.bf16.mxu0 %v14866_v51  ;;  %v538_v55 = vld [vmem:[#allocation2 + $0x3a8] sm:$0xff]  ;;  %v14818_v7 = vcombine.high %v645_v14, %v657_v56  ;;  %v5114_v51 = vpop.f32.mrf.mxu1 }
 0x21d   : > { %22159 = vst [vmem:[#allocation86_spill] sm:$0xff] %v17807_v27  ;;  %22160 = vst [vmem:[#allocation87_spill] sm:$0xff] %v17813_v48  ;;  %5715 = vmatprep.subr.bf16.mxu1 %v14748_v29  ;;  %15275 = vmatprep.mubr.msk.bf16.mxu1 %vm4313_vm0, %v17816_v38  ;;  %v14700_v48 = vcombine.high %v526_v43, %v538_v55  ;;  %v14699_v49 = vcombine.low %v526_v43, %v538_v55  ;;  %v478_v14 = vld [vmem:[#allocation2 + $0x1c8] sm:$0xff] }
 0x21e   : > { %v5027_v26 = vpop.f32.mrf.mxu0  ;;  %v490_v56 = vld [vmem:[#allocation2 + $0x228] sm:$0xff]  ;;  %v14793_v43 = vcombine.low %v621_v47, %v633_v35 }
 0x21f   : > { %v17821_v52 = vadd.f32 %v17786_v41, %v5027_v26  ;;  %5592 = vmatpush2.bf16.msra.mxu0 %v14865_v18  ;;  %v514_v41 = vld [vmem:[#allocation2 + $0x2e8] sm:$0xff] }
 0x220   : > { %5716 = vmatpush1.bf16.msra.mxu1 %v14747_v12  ;;  %v5029_v62 = vpop.f32.mrf.mxu0  ;;  %5593 = vmatprep.subr.bf16.mxu0 %v14842_v40  ;;  %v17830_v18 = vld [vmem:[%s17205_s30 + $0x28] ss:$16 sps:$4 sm:$0xff]   ;;  %v17835_v12 = vpop.f32.mrf.mxu1  ;;  %v14676_v40 = vcombine.high %v502_v11, %v514_v41 }
 0x221   : > { %22161 = vst [vmem:[#allocation88_spill] sm:$0xff] %v17821_v52  ;;  %v17824_v29 = vadd.f32 %v17790_v21, %v5029_v62  ;;  %5717 = vmatprep.subr.bf16.mxu1 %v14724_v60  ;;  %22165 = vst [vmem:[#allocation92_spill] sm:$0xff] %v17835_v12  ;;  %v982_v60 = vld [vmem:[#allocation2 + $0x1188] sm:$0xff]  ;;  %v14652_v12 = vcombine.high %v478_v14, %v490_v56 }
 0x222   : > { %v5031_v17 = vpop.f32.mrf.mxu0  ;;  %v994_v26 = vld [vmem:[#allocation2 + $0x11e8] sm:$0xff]  ;;  %v5120_v62 = vpop.f32.mrf.mxu1 }
 0x223   : > { %22162 = vst [vmem:[#allocation89_spill] sm:$0xff] %v17824_v29  ;;  %v17827_v4 = vadd.f32 %v17792_v59, %v5031_v17  ;;  %5594 = vmatpush2.bf16.msra.mxu0 %v14841_v50  ;;  %5683 = vmatmul.mubr.bf16.gmra.mxu1 %v17830_v18  ;;  %v17838_v17 = vld [vmem:[%s17205_s30 + $0x4c] ss:$16 sps:$4 sm:$0xff]  }
 0x224   : > { %5718 = vmatpush1.bf16.msra.mxu1 %v14723_v63  ;;  %v17833_v21 = vpop.f32.mrf.mxu0  ;;  %5595 = vmatprep.subr.bf16.mxu0 %v14818_v7  ;;  %v15156_v63 = vcombine.high %v982_v60, %v994_v26  ;;  %v754_v29 = vld [vmem:[#allocation2 + $0xa68] sm:$0xff] }
 0x225   : > { %22163 = vst [vmem:[#allocation90_spill] sm:$0xff] %v17827_v4  ;;  %22164 = vst [vmem:[#allocation91_spill] sm:$0xff] %v17833_v21  ;;  %5719 = vmatprep.subr.bf16.mxu1 %v14700_v48  ;;  %15276 = vmatprep.mubr.msk.bf16.mxu1 %vm4313_vm0, %v17838_v17  ;;  %v14675_v48 = vcombine.low %v502_v11, %v514_v41  ;;  %v15155_v11 = vcombine.low %v982_v60, %v994_v26  ;;  %v17854_v41 = vld [vmem:[%s17205_s30 + $0x48] ss:$16 sps:$4 sm:$0xff]   ;;  %v17862_v26 = vld [vmem:[%s17205_s30 + $0x6c] ss:$16 sps:$4 sm:$0xff]  }
 0x226   : > { %v5037_v59 = vpop.f32.mrf.mxu0  ;;  %v946_v60 = vld [vmem:[#allocation2 + $0x1068] sm:$0xff] }
 0x227   : > { %v17843_v50 = vadd.f32 %v17801_v5, %v5037_v59  ;;  %5596 = vmatpush2.bf16.msra.mxu0 %v14817_v54  ;;  %v454_v59 = vld [vmem:[#allocation2 + $0x108] sm:$0xff] }
 0x228   : > { %5720 = vmatpush1.bf16.msra.mxu1 %v14699_v49  ;;  %v5039_v55 = vpop.f32.mrf.mxu0  ;;  %5597 = vmatprep.subr.bf16.mxu0 %v14794_v37  ;;  %v466_v54 = vld [vmem:[#allocation2 + $0x168] sm:$0xff]  ;;  %v14651_v49 = vcombine.low %v478_v14, %v490_v56  ;;  %v5122_v37 = vpop.f32.mrf.mxu1 }
 0x229   : > { %22166 = vst [vmem:[#allocation93_spill] sm:$0xff] %v17843_v50  ;;  %v17847_v21 = vadd.f32 %v5112_v36, %v5039_v55  ;;  %5721 = vmatprep.subr.bf16.mxu1 %v14676_v40  ;;  %v15132_v40 = vcombine.high %v958_v22, %v970_v39  ;;  %v14628_v55 = vcombine.high %v454_v59, %v466_v54  ;;  %v430_v14 = vld [vmem:[#allocation2 + $0x48] sm:$0xff] }
 0x22a   : > { %v5041_v5 = vpop.f32.mrf.mxu0  ;;  %v442_v56 = vld [vmem:[#allocation2 + $0xa8] sm:$0xff]  ;;  %v5124_v7 = vpop.f32.mrf.mxu1 }
 0x22b   : > { %22167 = vst [vmem:[#allocation94_spill] sm:$0xff] %v17847_v21  ;;  %v17851_v35 = vadd.f32 %v5114_v51, %v5041_v5  ;;  %5598 = vmatpush2.bf16.msra.mxu0 %v14793_v43  ;;  %5693 = vmatmul.mubr.bf16.gmra.mxu1 %v17854_v41  ;;  %v934_v43 = vld [vmem:[#allocation2 + $0x1008] sm:$0xff]  ;;  %v17867_v5 = vld [vmem:[%s17205_s30] ss:$16 sps:$4 sm:$0xff]   ;;  %v15131_v51 = vcombine.low %v958_v22, %v970_v39 }
 0x22c   : > { %5722 = vmatpush1.bf16.msra.mxu1 %v14675_v48  ;;  %v17857_v36 = vpop.f32.mrf.mxu0  ;;  %5786 = vmatprep.subr.bf16.mxu0 %v15156_v63  ;;  %v15108_v27 = vcombine.high %v934_v43, %v946_v60  ;;  %v922_v22 = vld [vmem:[#allocation2 + $0xfa8] sm:$0xff] }
 0x22d   : > { %22168 = vst [vmem:[#allocation95_spill] sm:$0xff] %v17851_v35  ;;  %22169 = vst [vmem:[#allocation96_spill] sm:$0xff] %v17857_v36  ;;  %5723 = vmatprep.subr.bf16.mxu1 %v14652_v12  ;;  %15277 = vmatprep.mubr.msk.bf16.mxu1 %vm4313_vm0, %v17862_v26  ;;  %v17873_v12 = vld [vmem:[%s17205_s30 + $0x24] ss:$16 sps:$4 sm:$0xff]   ;;  %v14627_v35 = vcombine.low %v454_v59, %v466_v54  ;;  %v802_v50 = vld [vmem:[#allocation2 + $0xbe8] sm:$0xff]  ;;  %v15107_v54 = vcombine.low %v934_v43, %v946_v60 }
 0x22e   : > { %v5047_v48 = vpop.f32.mrf.mxu0  ;;  %5600 = vmatmul.mubr.bf16.vlgmr.msra.gmra.mxu0 %v17867_v5  ;;  %v778_v43 = vld [vmem:[#allocation2 + $0xb28] sm:$0xff]  ;;  %v17896_v60 = vld [vmem:[%s17205_s30 + $0x44] ss:$16 sps:$4 sm:$0xff]  }
 0x22f   : > { %v17870_v63 = vadd.f32 %v5120_v62, %v5047_v48  ;;  %5787 = vmatpush1.bf16.msra.mxu0 %v15155_v11  ;;  %5609 = vmatprep.mubr.bf16.mxu0 %v17873_v12  ;;  %v14604_v62 = vcombine.high %v430_v14, %v442_v56  ;;  %v910_v11 = vld [vmem:[#allocation2 + $0xf48] sm:$0xff] }
 0x230   : > { %5724 = vmatpush1.bf16.msra.mxu1 %v14651_v49  ;;  %v5049_v47 = vpop.f32.mrf.mxu0  ;;  %5788 = vmatprep.subr.bf16.mxu0 %v15132_v40  ;;  %v790_v48 = vld [vmem:[#allocation2 + $0xb88] sm:$0xff] }
 0x231   : > { %22170 = vst [vmem:[#allocation97_spill] sm:$0xff] %v17870_v63  ;;  %v17878_v9 = vadd.f32 %v5122_v37, %v5049_v47  ;;  %5725 = vmatprep.subr.bf16.mxu1 %v14628_v55  ;;  %v17885_v40 = vld [vmem:[%s17205_s30 + $0x68] ss:$16 sps:$4 sm:$0xff]   ;;  %v14603_v47 = vcombine.low %v430_v14, %v442_v56  ;;  %v15084_v37 = vcombine.high %v910_v11, %v922_v22  ;;  %v17904_v63 = vld [vmem:[%s17205_s30 + $0x64] ss:$16 sps:$4 sm:$0xff]  }
 0x232   : > { %v5051_v39 = vpop.f32.mrf.mxu0  ;;  %v14964_v21 = vcombine.high %v790_v48, %v802_v50  ;;  %v886_v49 = vld [vmem:[#allocation2 + $0xe88] sm:$0xff] }
 0x233   : > { %22171 = vst [vmem:[#allocation98_spill] sm:$0xff] %v17878_v9  ;;  %v17882_v59 = vadd.f32 %v5124_v7, %v5051_v39  ;;  %5789 = vmatpush1.bf16.msra.mxu0 %v15131_v51  ;;  %5703 = vmatmul.mubr.bf16.gmra.mxu1 %v17885_v40  ;;  %v898_v9 = vld [vmem:[#allocation2 + $0xee8] sm:$0xff]  ;;  %v17892_v7 = vld [vmem:[%s17205_s30 + $0x20] ss:$16 sps:$4 sm:$0xff]  }
 0x234   : > { %5726 = vmatpush1.bf16.msra.mxu1 %v14627_v35  ;;  %5790 = vmatprep.subr.bf16.mxu0 %v15108_v27  ;;  %v766_v51 = vld [vmem:[#allocation2 + $0xac8] sm:$0xff]  ;;  %v15083_v35 = vcombine.low %v910_v11, %v922_v22  ;;  %v14963_v27 = vcombine.low %v790_v48, %v802_v50  ;;  %v15060_v14 = vcombine.high %v886_v49, %v898_v9  ;;  %v17900_v48 = vld [vmem:[%s17205_s30 + $0x40] ss:$16 sps:$4 sm:$0xff]  }
 0x235   : > { %22172 = vst [vmem:[#allocation99_spill] sm:$0xff] %v17882_v59  ;;  %5727 = vmatprep.subr.bf16.mxu1 %v14604_v62  ;;  %5745 = vmatprep.mubr.bf16.mxu1 %v17783_v20  ;;  %v14940_v56 = vcombine.high %v766_v51, %v778_v43  ;;  %v862_v62 = vld [vmem:[#allocation2 + $0xdc8] sm:$0xff]  ;;  %v15059_v59 = vcombine.low %v886_v49, %v898_v9  ;;  %v17907_v9 = vpop.f32.mrf.mxu0 }
 0x236   : > { %5610 = vmatmul.mubr.bf16.gmra.mxu0 %v17892_v7  ;;  %v874_v39 = vld [vmem:[#allocation2 + $0xe28] sm:$0xff]  ;;  %v14939_v11 = vcombine.low %v766_v51, %v778_v43  ;;  %22173 = vst [vmem:[#allocation100_spill] sm:$0xff] %v17907_v9  ;;  %v17909_v43 = vpop.f32.mrf.mxu1 }
 0x237   : > { %5791 = vmatpush1.bf16.msra.mxu0 %v15107_v54  ;;  %5619 = vmatprep.mubr.bf16.mxu0 %v17896_v60  ;;  %v742_v55 = vld [vmem:[#allocation2 + $0xa08] sm:$0xff]  ;;  %v15036_v22 = vcombine.high %v862_v62, %v874_v39  ;;  %v15035_v4 = vcombine.low %v862_v62, %v874_v39  ;;  %22174 = vst [vmem:[#allocation101_spill] sm:$0xff] %v17909_v43 }
 0x238   : > { %5728 = vmatpush1.bf16.msra.mxu1 %v14603_v47  ;;  %5792 = vmatprep.subr.bf16.mxu0 %v15084_v37  ;;  %v14916_v54 = vcombine.high %v742_v55, %v754_v29  ;;  %v838_v47 = vld [vmem:[#allocation2 + $0xd08] sm:$0xff]  ;;  %v14915_v49 = vcombine.low %v742_v55, %v754_v29 }
 0x239   : > { %5729 = vmatprep.subr.bf16.mxu1 %v14964_v21  ;;  %v850_v50 = vld [vmem:[#allocation2 + $0xd68] sm:$0xff] }
 0x23a   : > { %v718_v21 = vld [vmem:[#allocation2 + $0x948] sm:$0xff]  ;;  %v15012_v51 = vcombine.high %v838_v47, %v850_v50  ;;  %v15011_v39 = vcombine.low %v838_v47, %v850_v50 }
 0x23b   : > { %5793 = vmatpush1.bf16.msra.mxu0 %v15083_v35  ;;  %v730_v37 = vld [vmem:[#allocation2 + $0x9a8] sm:$0xff] }
 0x23c   : > { %5730 = vmatpush2.bf16.msra.mxu1 %v14963_v27  ;;  %5794 = vmatprep.subr.bf16.mxu0 %v15060_v14  ;;  %v14892_v35 = vcombine.high %v718_v21, %v730_v37  ;;  %v814_v27 = vld [vmem:[#allocation2 + $0xc48] sm:$0xff]  ;;  %v14891_v29 = vcombine.low %v718_v21, %v730_v37 }
 0x23d   : > { %5731 = vmatprep.subr.bf16.mxu1 %v14940_v56  ;;  %v826_v14 = vld [vmem:[#allocation2 + $0xca8] sm:$0xff] }
 0x23e   : > { %5620 = vmatmul.mubr.bf16.gmra.mxu0 %v17900_v48  ;;  %v694_v52 = vld [vmem:[#allocation2 + $0x888] sm:$0xff]  ;;  %v14988_v55 = vcombine.high %v814_v27, %v826_v14 }
 0x23f   : > { %5795 = vmatpush1.bf16.msra.mxu0 %v15059_v59  ;;  %5629 = vmatprep.mubr.bf16.mxu0 %v17904_v63  ;;  %v706_v59 = vld [vmem:[#allocation2 + $0x8e8] sm:$0xff] }
 0x240   : > { %5732 = vmatpush2.bf16.msra.mxu1 %v14939_v11  ;;  %5796 = vmatprep.subr.bf16.mxu0 %v15036_v22  ;;  %v1054_v43 = vld [vmem:[#allocation2 + $0x13c8] sm:$0x33] }
 0x241   : > { %5733 = vmatprep.subr.bf16.mxu1 %v14916_v54  ;;  %v14868_v54 = vcombine.high %v694_v52, %v706_v59  ;;  %v682_v47 = vld [vmem:[#allocation2 + $0x828] sm:$0xff] }
 0x242   : > { %v5236_v56 = vpop.f32.mrf.mxu0 }
 0x243   : > { %v5163_v62 = vpop.f32.mrf.mxu1  ;;  %5797 = vmatpush1.bf16.msra.mxu0 %v15035_v4  ;;  %v670_v4 = vld [vmem:[#allocation2 + $0x7c8] sm:$0xff] }
 0x244   : > { %v17911_v16 = vadd.f32 %v5236_v56, %v5163_v62  ;;  %5734 = vmatpush2.bf16.msra.mxu1 %v14915_v49  ;;  %v5238_v11 = vpop.f32.mrf.mxu0  ;;  %5798 = vmatprep.subr.bf16.mxu0 %v15012_v51  ;;  %v14867_v49 = vcombine.low %v694_v52, %v706_v59  ;;  %v14987_v56 = vcombine.low %v814_v27, %v826_v14  ;;  %v646_v52 = vld [vmem:[#allocation2 + $0x708] sm:$0xff] }
 0x245   : > { %v5165_v22 = vpop.f32.mrf.mxu1  ;;  %5735 = vmatprep.subr.bf16.mxu1 %v14892_v35  ;;  %v15228_v51 = vcombine.high %v1054_v43, %v1054_v43  ;;  %v15227_v35 = vcombine.low %v1054_v43, %v1054_v43  ;;  %v658_v27 = vld [vmem:[#allocation2 + $0x768] sm:$0xff] }
 0x246   : > { %22175 = vst [vmem:[#allocation102_spill] sm:$0xff] %v17911_v16  ;;  %v17913_v9 = vadd.f32 %v5238_v11, %v5165_v22  ;;  %v5240_v36 = vpop.f32.mrf.mxu0  ;;  %5630 = vmatmul.mubr.bf16.gmra.mxu0 %v17916_v23  ;;  %v14844_v11 = vcombine.high %v670_v4, %v682_v47  ;;  %v1030_v22 = vld [vmem:[#allocation2 + $0x1308] sm:$0xff]  ;;  %v552_v16 = vld [vmem:[#allocation2 + $0x418] sm:$0xff] }
 0x247   : > { %v5167_v50 = vpop.f32.mrf.mxu1  ;;  %5799 = vmatpush1.bf16.msra.mxu0 %v15011_v39  ;;  %15279 = vmatprep.mubr.msk.bf16.mxu0 %vm4313_vm0, %v17778_v2  ;;  %v4382_v43 = vsel %vm4326_vm1, %v15227_v35, 0 }
 0x248   : > { %22176 = vst [vmem:[#allocation103_spill] sm:$0xff] %v17913_v9  ;;  %v17921_v21 = vadd.f32 %v5240_v36, %v5167_v50  ;;  %5736 = vmatpush2.bf16.msra.mxu1 %v14891_v29  ;;  %v17923_v37 = vpop.f32.mrf.mxu0  ;;  %5800 = vmatprep.subr.bf16.mxu0 %v14988_v55  ;;  %v14843_v29 = vcombine.low %v670_v4, %v682_v47 }
 0x249   : > { %22178 = vst [vmem:[#allocation105_spill] sm:$0xff] %v17923_v37  ;;  %v17925_v62 = vpop.f32.mrf.mxu1  ;;  %5737 = vmatprep.subr.bf16.mxu1 %v14868_v54  ;;  %v15204_v55 = vcombine.high %v1030_v22, %v1042_v25  ;;  %v14820_v54 = vcombine.high %v646_v52, %v658_v27  ;;  %v1006_v37 = vld [vmem:[#allocation2 + $0x1248] sm:$0xff]  ;;  %v14819_v47 = vcombine.low %v646_v52, %v658_v27 }
 0x24a   : > { %22177 = vst [vmem:[#allocation104_spill] sm:$0xff] %v17921_v21  ;;  %22179 = vst [vmem:[#allocation106_spill] sm:$0xff] %v17925_v62  ;;  %v5246_v39 = vpop.f32.mrf.mxu0  ;;  %v1018_v62 = vld [vmem:[#allocation2 + $0x12a8] sm:$0xff]  ;;  %v539_v21 = vld [vmem:[#allocation2 + $0x3b0] sm:$0xff] }
 0x24b   : > { %v5173_v14 = vpop.f32.mrf.mxu1  ;;  %5801 = vmatpush1.bf16.msra.mxu0 %v14987_v56  ;;  %v634_v56 = vld [vmem:[#allocation2 + $0x6a8] sm:$0xff] }
 0x24c   : > { %v17927_v59 = vadd.f32 %v5246_v39, %v5173_v14  ;;  %5738 = vmatpush2.bf16.msra.mxu1 %v14867_v49  ;;  %v5248_v36 = vpop.f32.mrf.mxu0  ;;  %15278 = vmatprep.subr.msk.bf16.mxu0 %vm4326_vm1, %v15228_v51  ;;  %v15203_v49 = vcombine.low %v1030_v22, %v1042_v25  ;;  %v15180_v51 = vcombine.high %v1006_v37, %v1018_v62 }
 0x24d   : > { %v5175_v50 = vpop.f32.mrf.mxu1  ;;  %5739 = vmatprep.subr.bf16.mxu1 %v14844_v11  ;;  %v14796_v11 = vcombine.high %v622_v15, %v634_v56  ;;  %v15179_v25 = vcombine.low %v1006_v37, %v1018_v62  ;;  %v971_v37 = vld [vmem:[#allocation2 + $0x1130] sm:$0xff]  ;;  %v15157_v62 = vcombine.low %v983_v19, %v995_v57 }
 0x24e   : > { %22180 = vst [vmem:[#allocation107_spill] sm:$0xff] %v17927_v59  ;;  %v17931_v33 = vadd.f32 %v5248_v36, %v5175_v50  ;;  %v5250_v61 = vpop.f32.mrf.mxu0  ;;  %v599_v36 = vld [vmem:[#allocation2 + $0x590] sm:$0xff] }
 0x24f   : > { %v5177_v39 = vpop.f32.mrf.mxu1  ;;  %5813 = vmatpush2.bf16.msra.mxu0 %v4382_v43  ;;  %v611_v50 = vld [vmem:[#allocation2 + $0x5f0] sm:$0xff]  ;;  %v15158_v43 = vcombine.high %v983_v19, %v995_v57 }
 0x250   : > { %22181 = vst [vmem:[#allocation108_spill] sm:$0xff] %v17931_v33  ;;  %v17933_v14 = vadd.f32 %v5250_v61, %v5177_v39  ;;  %5740 = vmatpush2.bf16.msra.mxu1 %v14843_v29  ;;  %v17935_v4 = vpop.f32.mrf.mxu0  ;;  %5814 = vmatprep.subr.bf16.mxu0 %v15204_v55  ;;  %v14795_v29 = vcombine.low %v622_v15, %v634_v56  ;;  %v575_v55 = vld [vmem:[#allocation2 + $0x4d0] sm:$0xff]  ;;  %v612_v33 = vld [vmem:[#allocation2 + $0x5f8] sm:$0xff] }
 0x251   : > { %22183 = vst [vmem:[#allocation110_spill] sm:$0xff] %v17935_v4  ;;  %v17937_v35 = vpop.f32.mrf.mxu1  ;;  %5741 = vmatprep.subr.bf16.mxu1 %v14820_v54  ;;  %v14774_v52 = vcombine.high %v599_v36, %v611_v50  ;;  %v587_v54 = vld [vmem:[#allocation2 + $0x530] sm:$0xff] }
 0x252   : > { %22182 = vst [vmem:[#allocation109_spill] sm:$0xff] %v17933_v14  ;;  %22184 = vst [vmem:[#allocation111_spill] sm:$0xff] %v17937_v35  ;;  %v5256_v10 = vpop.f32.mrf.mxu0  ;;  %v563_v39 = vld [vmem:[#allocation2 + $0x470] sm:$0xff] }
 0x253   : > { %v5183_v28 = vpop.f32.mrf.mxu1  ;;  %5815 = vmatpush2.bf16.msra.mxu0 %v15203_v49  ;;  %v959_v49 = vld [vmem:[#allocation2 + $0x10d0] sm:$0xff] }
 0x254   : > { %v17939_v61 = vadd.f32 %v5256_v10, %v5183_v28  ;;  %5742 = vmatpush2.bf16.msra.mxu1 %v14819_v47  ;;  %v5258_v22 = vpop.f32.mrf.mxu0  ;;  %5816 = vmatprep.subr.bf16.mxu0 %v15180_v51  ;;  %v14773_v10 = vcombine.low %v599_v36, %v611_v50  ;;  %v14750_v51 = vcombine.high %v575_v55, %v587_v54  ;;  %v935_v19 = vld [vmem:[#allocation2 + $0x1010] sm:$0xff] }
 0x255   : > { %v5185_v27 = vpop.f32.mrf.mxu1  ;;  %5743 = vmatprep.subr.bf16.mxu1 %v14796_v11  ;;  %v1031_v14 = vld [vmem:[#allocation2 + $0x1310] sm:$0xff] }
 0x256   : > { %22185 = vst [vmem:[#allocation112_spill] sm:$0xff] %v17939_v61  ;;  %v17943_v4 = vadd.f32 %v5258_v22, %v5185_v27  ;;  %v5260_v35 = vpop.f32.mrf.mxu0  ;;  %v15134_v22 = vcombine.high %v959_v49, %v971_v37  ;;  %v551_v27 = vld [vmem:[#allocation2 + $0x410] sm:$0xff] }
 0x257   : > { %v5187_v28 = vpop.f32.mrf.mxu1  ;;  %5817 = vmatpush2.bf16.msra.mxu0 %v15179_v25  ;;  %v14749_v25 = vcombine.low %v575_v55, %v587_v54  ;;  %v911_v54 = vld [vmem:[#allocation2 + $0xf50] sm:$0xff] }
 0x258   : > { %22186 = vst [vmem:[#allocation113_spill] sm:$0xff] %v17943_v4  ;;  %v17947_v56 = vadd.f32 %v5260_v35, %v5187_v28  ;;  %5744 = vmatpush2.bf16.msra.mxu1 %v14795_v29  ;;  %v17949_v47 = vpop.f32.mrf.mxu0  ;;  %5859 = vmatprep.subr.bf16.mxu0 %v14774_v52  ;;  %v947_v35 = vld [vmem:[#allocation2 + $0x1070] sm:$0xff]  ;;  %v14726_v28 = vcombine.high %v551_v27, %v563_v39 }
 0x259   : > { %22188 = vst [vmem:[#allocation115_spill] sm:$0xff] %v17949_v47  ;;  %v17951_v11 = vpop.f32.mrf.mxu1  ;;  %5932 = vmatprep.subr.bf16.mxu1 %v15158_v43  ;;  %v15133_v43 = vcombine.low %v959_v49, %v971_v37  ;;  %v15110_v36 = vcombine.high %v935_v19, %v947_v35  ;;  %v14725_v37 = vcombine.low %v551_v27, %v563_v39  ;;  %v899_v39 = vld [vmem:[#allocation2 + $0xef0] sm:$0xff]  ;;  %v564_v47 = vld [vmem:[#allocation2 + $0x478] sm:$0xff] }
 0x25a   : > { %22187 = vst [vmem:[#allocation114_spill] sm:$0xff] %v17947_v56  ;;  %22189 = vst [vmem:[#allocation116_spill] sm:$0xff] %v17951_v11  ;;  %v5266_v57 = vpop.f32.mrf.mxu0  ;;  %5819 = vmatmul.mubr.bf16.vlgmr.msra.gmra.mxu0 %v17810_v13  ;;  %v527_v56 = vld [vmem:[#allocation2 + $0x350] sm:$0xff] }
 0x25b   : > { %v5193_v50 = vpop.f32.mrf.mxu1  ;;  %5746 = vmatmul.mubr.bf16.vlgmr.msra.gmra.mxu1 %v17867_v5  ;;  %5860 = vmatpush1.bf16.msra.mxu0 %v14773_v10  ;;  %v923_v10 = vld [vmem:[#allocation2 + $0xfb0] sm:$0xff]  ;;  %v14701_v27 = vcombine.low %v527_v56, %v539_v21 }
 0x25c   : > { %v17957_v29 = vadd.f32 %v5266_v57, %v5193_v50  ;;  %5933 = vmatpush1.bf16.msra.mxu1 %v15157_v62  ;;  %v5268_v52 = vpop.f32.mrf.mxu0  ;;  %5861 = vmatprep.subr.bf16.mxu0 %v14750_v51  ;;  %v15109_v62 = vcombine.low %v935_v19, %v947_v35  ;;  %v14702_v57 = vcombine.high %v527_v56, %v539_v21  ;;  %v503_v50 = vld [vmem:[#allocation2 + $0x290] sm:$0xff] }
 0x25d   : > { %v5195_v15 = vpop.f32.mrf.mxu1  ;;  %5934 = vmatprep.subr.bf16.mxu1 %v15134_v22  ;;  %5755 = vmatprep.mubr.bf16.mxu1 %v17873_v12  ;;  %v15085_v19 = vcombine.low %v911_v54, %v923_v10  ;;  %v635_v11 = vld [vmem:[#allocation2 + $0x6b0] sm:$0xff] }
 0x25e   : > { %22190 = vst [vmem:[#allocation117_spill] sm:$0xff] %v17957_v29  ;;  %v17962_v9 = vadd.f32 %v5268_v52, %v5195_v15  ;;  %v5270_v55 = vpop.f32.mrf.mxu0  ;;  %15280 = vmatprep.mubr.msk.bf16.mxu0 %vm4313_vm0, %v17816_v38  ;;  %v15086_v15 = vcombine.high %v911_v54, %v923_v10  ;;  %v515_v52 = vld [vmem:[#allocation2 + $0x2f0] sm:$0xff] }
 0x25f   : > { %v5197_v49 = vpop.f32.mrf.mxu1  ;;  %5862 = vmatpush1.bf16.msra.mxu0 %v14749_v25  ;;  %v887_v25 = vld [vmem:[#allocation2 + $0xe90] sm:$0xff]  ;;  %v14678_v35 = vcombine.high %v503_v50, %v515_v52  ;;  %v14677_v4 = vcombine.low %v503_v50, %v515_v52 }
 0x260   : > { %22191 = vst [vmem:[#allocation118_spill] sm:$0xff] %v17962_v9  ;;  %v17968_v22 = vadd.f32 %v5270_v55, %v5197_v49  ;;  %5935 = vmatpush1.bf16.msra.mxu1 %v15133_v43  ;;  %5863 = vmatprep.subr.bf16.mxu0 %v14726_v28  ;;  %v479_v43 = vld [vmem:[#allocation2 + $0x1d0] sm:$0xff]  ;;  %v15061_v21 = vcombine.low %v887_v25, %v899_v39  ;;  %v18005_v59 = vpop.f32.mrf.mxu0 }
 0x261   : > { %5936 = vmatprep.subr.bf16.mxu1 %v15110_v36  ;;  %v15062_v36 = vcombine.high %v887_v25, %v899_v39  ;;  %v491_v28 = vld [vmem:[#allocation2 + $0x230] sm:$0xff]  ;;  %v17979_v52 = vpop.f32.mrf.mxu1  ;;  %22195 = vst [vmem:[#allocation122_spill] sm:$0xff] %v18005_v59 }
 0x262   : > { %22192 = vst [vmem:[#allocation119_spill] sm:$0xff] %v17968_v22  ;;  %5829 = vmatmul.mubr.bf16.gmra.mxu0 %v17830_v18  ;;  %v863_v55 = vld [vmem:[#allocation2 + $0xdd0] sm:$0xff]  ;;  %v14654_v56 = vcombine.high %v479_v43, %v491_v28  ;;  %22193 = vst [vmem:[#allocation120_spill] sm:$0xff] %v17979_v52  ;;  %v588_v52 = vld [vmem:[#allocation2 + $0x538] sm:$0xff] }
 0x263   : > { %5756 = vmatmul.mubr.bf16.gmra.mxu1 %v17892_v7  ;;  %5864 = vmatpush1.bf16.msra.mxu0 %v14725_v37  ;;  %v875_v49 = vld [vmem:[#allocation2 + $0xe30] sm:$0xff] }
 0x264   : > { %5937 = vmatpush1.bf16.msra.mxu1 %v15109_v62  ;;  %5865 = vmatprep.subr.bf16.mxu0 %v14702_v57  ;;  %v15038_v54 = vcombine.high %v863_v55, %v875_v49  ;;  %v455_v10 = vld [vmem:[#allocation2 + $0x110] sm:$0xff] }
 0x265   : > { %5938 = vmatprep.subr.bf16.mxu1 %v15086_v15  ;;  %5765 = vmatprep.mubr.bf16.mxu1 %v17896_v60  ;;  %v467_v37 = vld [vmem:[#allocation2 + $0x170] sm:$0xff]  ;;  %v14653_v15 = vcombine.low %v479_v43, %v491_v28 }
 0x266   : > { %15281 = vmatprep.mubr.msk.bf16.mxu0 %vm4313_vm0, %v17838_v17  ;;  %v839_v62 = vld [vmem:[#allocation2 + $0xd10] sm:$0xff]  ;;  %v14630_v50 = vcombine.high %v455_v10, %v467_v37 }
 0x267   : > { %5866 = vmatpush1.bf16.msra.mxu0 %v14701_v27  ;;  %v851_v57 = vld [vmem:[#allocation2 + $0xd70] sm:$0xff]  ;;  %v15037_v27 = vcombine.low %v863_v55, %v875_v49 }
 0x268   : > { %5939 = vmatpush1.bf16.msra.mxu1 %v15085_v19  ;;  %5867 = vmatprep.subr.bf16.mxu0 %v14678_v35  ;;  %v15014_v25 = vcombine.high %v839_v62, %v851_v57  ;;  %v431_v39 = vld [vmem:[#allocation2 + $0x50] sm:$0xff]  ;;  %v15013_v43 = vcombine.low %v839_v62, %v851_v57 }
 0x269   : > { %5940 = vmatprep.subr.bf16.mxu1 %v15062_v36  ;;  %v443_v19 = vld [vmem:[#allocation2 + $0xb0] sm:$0xff] }
 0x26a   : > { %5839 = vmatmul.mubr.bf16.gmra.mxu0 %v17854_v41  ;;  %v815_v35 = vld [vmem:[#allocation2 + $0xc50] sm:$0xff]  ;;  %v14606_v28 = vcombine.high %v431_v39, %v443_v19 }
 0x26b   : > { %5766 = vmatmul.mubr.bf16.gmra.mxu1 %v17900_v48  ;;  %5868 = vmatpush1.bf16.msra.mxu0 %v14677_v4  ;;  %v827_v36 = vld [vmem:[#allocation2 + $0xcb0] sm:$0xff]  ;;  %v14629_v4 = vcombine.low %v455_v10, %v467_v37 }
 0x26c   : > { %5941 = vmatpush1.bf16.msra.mxu1 %v15061_v21  ;;  %5869 = vmatprep.subr.bf16.mxu0 %v14654_v56  ;;  %v14990_v49 = vcombine.high %v815_v35, %v827_v36  ;;  %v791_v21 = vld [vmem:[#allocation2 + $0xb90] sm:$0xff]  ;;  %v14989_v10 = vcombine.low %v815_v35, %v827_v36 }
 0x26d   : > { %5942 = vmatprep.subr.bf16.mxu1 %v15038_v54  ;;  %5775 = vmatprep.mubr.bf16.mxu1 %v17904_v63  ;;  %v803_v56 = vld [vmem:[#allocation2 + $0xbf0] sm:$0xff] }
 0x26e   : > { %15282 = vmatprep.mubr.msk.bf16.mxu0 %vm4313_vm0, %v17862_v26  ;;  %v1055_v54 = vld [vmem:[#allocation2 + $0x13d0] sm:$0x33]  ;;  %v14966_v37 = vcombine.high %v791_v21, %v803_v56 }
 0x26f   : > { %v17984_v51 = vpop.f32.mrf.mxu1  ;;  %5870 = vmatpush1.bf16.msra.mxu0 %v14653_v15  ;;  %v14605_v15 = vcombine.low %v431_v39, %v443_v19  ;;  %v15230_v57 = vcombine.high %v1055_v54, %v1055_v54  ;;  %v1043_v9 = vld [vmem:[#allocation2 + $0x1370] sm:$0xff]  ;;  %v14965_v39 = vcombine.low %v791_v21, %v803_v56 }
 0x270   : > { %5943 = vmatpush1.bf16.msra.mxu1 %v15037_v27  ;;  %5871 = vmatprep.subr.bf16.mxu0 %v14630_v50  ;;  %v15229_v27 = vcombine.low %v1055_v54, %v1055_v54  ;;  %v767_v50 = vld [vmem:[#allocation2 + $0xad0] sm:$0xff]  ;;  %v15205_v21 = vcombine.low %v1031_v14, %v1043_v9 }
 0x271   : > { %v17986_v55 = vpop.f32.mrf.mxu1  ;;  %5944 = vmatprep.subr.bf16.mxu1 %v15014_v25  ;;  %v779_v25 = vld [vmem:[#allocation2 + $0xb30] sm:$0xff] }
 0x272   : > { %22194 = vst [vmem:[#allocation121_spill] sm:$0xff] %v17986_v55  ;;  %5849 = vmatmul.mubr.bf16.gmra.mxu0 %v17885_v40  ;;  %v14942_v35 = vcombine.high %v767_v50, %v779_v25  ;;  %v4388_v36 = vsel %vm4326_vm1, %v15229_v27, 0  ;;  %v1019_v54 = vld [vmem:[#allocation2 + $0x12b0] sm:$0xff]  ;;  %v600_v27 = vld [vmem:[#allocation2 + $0x598] sm:$0xff] }
 0x273   : > { %v17989_v22 = vpop.f32.mrf.mxu1  ;;  %5776 = vmatmul.mubr.bf16.gmra.mxu1 %v17916_v23  ;;  %5872 = vmatpush1.bf16.msra.mxu0 %v14629_v4  ;;  %v15206_v4 = vcombine.high %v1031_v14, %v1043_v9  ;;  %v14776_v9 = vcombine.high %v600_v27, %v612_v33  ;;  %v695_v14 = vld [vmem:[#allocation2 + $0x890] sm:$0xff]  ;;  %v936_v55 = vld [vmem:[#allocation2 + $0x1018] sm:$0xff] }
 0x274   : > { %5945 = vmatpush1.bf16.msra.mxu1 %v15013_v43  ;;  %5873 = vmatprep.subr.bf16.mxu0 %v14606_v28  ;;  %v743_v43 = vld [vmem:[#allocation2 + $0xa10] sm:$0xff] }
 0x275   : > { %v17992_v62 = vpop.f32.mrf.mxu1  ;;  %5946 = vmatprep.subr.bf16.mxu1 %v14990_v49  ;;  %15284 = vmatprep.mubr.msk.bf16.mxu1 %vm4313_vm0, %v17778_v2  ;;  %v755_v28 = vld [vmem:[#allocation2 + $0xa70] sm:$0xff] }
 0x276   : > { %5891 = vmatprep.mubr.bf16.mxu0 %v17783_v20  ;;  %v1007_v2 = vld [vmem:[#allocation2 + $0x1250] sm:$0xff]  ;;  %v14941_v20 = vcombine.low %v767_v50, %v779_v25  ;;  %v14918_v56 = vcombine.high %v743_v43, %v755_v28  ;;  %v14917_v29 = vcombine.low %v743_v43, %v755_v28 }
 0x277   : > { %5874 = vmatpush1.bf16.msra.mxu0 %v14605_v15  ;;  %v17997_v19 = vpop.f32.mrf.mxu1 }
 0x278   : > { %5947 = vmatpush1.bf16.msra.mxu1 %v14989_v10  ;;  %5875 = vmatprep.subr.bf16.mxu0 %v14966_v37  ;;  %v15182_v10 = vcombine.high %v1007_v2, %v1019_v54  ;;  %v719_v37 = vld [vmem:[#allocation2 + $0x950] sm:$0xff] }
 0x279   : > { %15283 = vmatprep.subr.msk.bf16.mxu1 %vm4326_vm1, %v15230_v57  ;;  %v18001_v49 = vpop.f32.mrf.mxu1  ;;  %v731_v57 = vld [vmem:[#allocation2 + $0x9b0] sm:$0xff] }
 0x27a   : > { %v14894_v50 = vcombine.high %v719_v37, %v731_v57  ;;  %v14893_v43 = vcombine.low %v719_v37, %v731_v57 }
 0x27b   : > { %5876 = vmatpush2.bf16.msra.mxu0 %v14965_v39  ;;  %v18003_v15 = vpop.f32.mrf.mxu1  ;;  %v15181_v39 = vcombine.low %v1007_v2, %v1019_v54  ;;  %v14775_v2 = vcombine.low %v600_v27, %v612_v33 }
 0x27c   : > { %5959 = vmatpush2.bf16.msra.mxu1 %v4388_v36  ;;  %5877 = vmatprep.subr.bf16.mxu0 %v14942_v35  ;;  %v707_v35 = vld [vmem:[#allocation2 + $0x8f0] sm:$0xff] }
 0x27d   : > { %5960 = vmatprep.subr.bf16.mxu1 %v15206_v4  ;;  %v18007_v25 = vpop.f32.mrf.mxu1  ;;  %v576_v4 = vld [vmem:[#allocation2 + $0x4d8] sm:$0xff]  ;;  %v14870_v54 = vcombine.high %v695_v14, %v707_v35 }
 0x27e   : > { %22196 = vst [vmem:[#allocation123_spill] sm:$0xff] %v18007_v25  ;;  %v14751_v33 = vcombine.low %v576_v4, %v588_v52 }
 0x27f   : > { %5878 = vmatpush2.bf16.msra.mxu0 %v14941_v20  ;;  %v18014_v20 = vpop.f32.mrf.mxu1 }
 0x280   : > { %5961 = vmatpush2.bf16.msra.mxu1 %v15205_v21  ;;  %5879 = vmatprep.subr.bf16.mxu0 %v14918_v56  ;;  %v14752_v21 = vcombine.high %v576_v4, %v588_v52  ;;  %v671_v56 = vld [vmem:[#allocation2 + $0x7d0] sm:$0xff]  ;;  %v14727_v4 = vcombine.low %v552_v16, %v564_v47 }
 0x281   : > { %5962 = vmatprep.subr.bf16.mxu1 %v15182_v10  ;;  %v683_v10 = vld [vmem:[#allocation2 + $0x830] sm:$0xff]  ;;  %v18022_v27 = vpop.f32.mrf.mxu1 }
 0x282   : > { %v5309_v36 = vpop.f32.mrf.mxu0  ;;  %v14846_v57 = vcombine.high %v671_v56, %v683_v10 }
 0x283   : > { %v18010_v61 = vadd.f32 %v17984_v51, %v5309_v36  ;;  %5880 = vmatpush2.bf16.msra.mxu0 %v14917_v29  ;;  %v14869_v29 = vcombine.low %v695_v14, %v707_v35  ;;  %v540_v36 = vld [vmem:[#allocation2 + $0x3b8] sm:$0xff]  ;;  %v14845_v35 = vcombine.low %v671_v56, %v683_v10 }
 0x284   : > { %5963 = vmatpush2.bf16.msra.mxu1 %v15181_v39  ;;  %v18012_v28 = vpop.f32.mrf.mxu0  ;;  %5881 = vmatprep.subr.bf16.mxu0 %v14894_v50  ;;  %v14728_v39 = vcombine.high %v552_v16, %v564_v47  ;;  %v647_v50 = vld [vmem:[#allocation2 + $0x710] sm:$0xff] }
 0x285   : > { %22197 = vst [vmem:[#allocation124_spill] sm:$0xff] %v18012_v28  ;;  %6005 = vmatprep.subr.bf16.mxu1 %v14776_v9  ;;  %v659_v9 = vld [vmem:[#allocation2 + $0x770] sm:$0xff]  ;;  %v948_v28 = vld [vmem:[#allocation2 + $0x1078] sm:$0xff] }
 0x286   : > { %v5313_v59 = vpop.f32.mrf.mxu0  ;;  %v14821_v10 = vcombine.low %v647_v50, %v659_v9 }
 0x287   : > { %v18017_v51 = vadd.f32 %v17989_v22, %v5313_v59  ;;  %5965 = vmatmul.mubr.bf16.vlgmr.msra.gmra.mxu1 %v17810_v13  ;;  %5882 = vmatpush2.bf16.msra.mxu0 %v14893_v43  ;;  %v6299_v22 = vlaneseq  ;;  %v528_v13 = vld [vmem:[#allocation2 + $0x358] sm:$0xff]  ;;  %v14822_v43 = vcombine.high %v647_v50, %v659_v9 }
 0x288   : > { %6006 = vmatpush1.bf16.msra.mxu1 %v14775_v2  ;;  %v18020_v37 = vpop.f32.mrf.mxu0  ;;  %5883 = vmatprep.subr.bf16.mxu0 %v14870_v54  ;;  %v5406_v2 = vpop.f32.mrf.mxu1  ;;  %v14703_v47 = vcombine.low %v528_v13, %v540_v36  ;;  %v492_v50 = vld [vmem:[#allocation2 + $0x238] sm:$0xff] }
 0x289   : > { %6007 = vmatprep.subr.bf16.mxu1 %v14752_v21  ;;  %15285 = vmatprep.mubr.msk.bf16.mxu1 %vm4313_vm0, %v17816_v38  ;;  %v14704_v38 = vcombine.high %v528_v13, %v540_v36  ;;  %v623_v21 = vld [vmem:[#allocation2 + $0x650] sm:$0xff]  ;;  %v18032_v8 = vshrl.u32 %v6299_v22, 7  ;;  %v18051_v22 = vld [vmem:[%s21981_s2] sm:$0xff] }
 0x28a   : > { %v5319_v59 = vpop.f32.mrf.mxu0  ;;  %v14797_v13 = vcombine.low %v623_v21, %v635_v11 }
 0x28b   : > { %v18027_v14 = vadd.f32 %v17997_v19, %v5319_v59  ;;  %5884 = vmatpush2.bf16.msra.mxu0 %v14869_v29  ;;  %v504_v19 = vld [vmem:[#allocation2 + $0x298] sm:$0xff]  ;;  %v18040_v29 = vpop.f32.mrf.mxu1 }
 0x28c   : > { %6008 = vmatpush1.bf16.msra.mxu1 %v14751_v33  ;;  %v5321_v52 = vpop.f32.mrf.mxu0  ;;  %5885 = vmatprep.subr.bf16.mxu0 %v14846_v57  ;;  %v516_v59 = vld [vmem:[#allocation2 + $0x2f8] sm:$0xff] }
 0x28d   : > { %v18030_v54 = vadd.f32 %v18001_v49, %v5321_v52  ;;  %6009 = vmatprep.subr.bf16.mxu1 %v14728_v39  ;;  %v14798_v49 = vcombine.high %v623_v21, %v635_v11  ;;  %v14680_v33 = vcombine.high %v504_v19, %v516_v59  ;;  %v984_v57 = vld [vmem:[#allocation2 + $0x1198] sm:$0xff]  ;;  %v22200_v21 = vmax.f32 %v17413_v1, %v17442_v6 }
 0x28e   : > { %v5323_v31 = vpop.f32.mrf.mxu0  ;;  %v996_v39 = vld [vmem:[#allocation2 + $0x11f8] sm:$0xff] }
 0x28f   : > { %v18035_v56 = vadd.f32 %v18003_v15, %v5323_v31  ;;  %5886 = vmatpush2.bf16.msra.mxu0 %v14845_v35  ;;  %5975 = vmatmul.mubr.bf16.gmra.mxu1 %v17830_v18  ;;  %v18045_v15 = vsub.s32 0, %v18032_v8  ;;  %v480_v18 = vld [vmem:[#allocation2 + $0x1d8] sm:$0xff]  ;;  %v5412_v35 = vpop.f32.mrf.mxu1  ;;  %v15160_v52 = vcombine.high %v984_v57, %v996_v39 }
 0x290   : > { %6010 = vmatpush1.bf16.msra.mxu1 %v14727_v4  ;;  %v18038_v16 = vpop.f32.mrf.mxu0  ;;  %5887 = vmatprep.subr.bf16.mxu0 %v14822_v43  ;;  %v14656_v43 = vcombine.high %v480_v18, %v492_v50  ;;  %v468_v11 = vld [vmem:[#allocation2 + $0x178] sm:$0xff] }
 0x291   : > { %22198 = vst [vmem:[#allocation125_spill] sm:$0xff] %v18038_v16  ;;  %6011 = vmatprep.subr.bf16.mxu1 %v14704_v38  ;;  %15286 = vmatprep.mubr.msk.bf16.mxu1 %vm4313_vm0, %v17838_v17  ;;  %22199 = vst [vmem:[#allocation126_spill] sm:$0xff] %v18045_v15  ;;  %v14679_v17 = vcombine.low %v504_v19, %v516_v59  ;;  %v960_v38 = vld [vmem:[#allocation2 + $0x10d8] sm:$0xff]  ;;  %v15159_v59 = vcombine.low %v984_v57, %v996_v39 }
 0x292   : > { %v5329_v31 = vpop.f32.mrf.mxu0  ;;  %v432_v6 = vld [vmem:[#allocation2 + $0x58] sm:$0xff] }
 0x293   : > { %v5403_v9 = vadd.f32 %v18014_v20, %v5329_v31  ;;  %5888 = vmatpush2.bf16.msra.mxu0 %v14821_v10  ;;  %v972_v20 = vld [vmem:[#allocation2 + $0x1138] sm:$0xff]  ;;  %v18058_v31 = vrot.slane %v18051_v22, %v18045_v15 }
 0x294   : > { %6012 = vmatpush1.bf16.msra.mxu1 %v14703_v47  ;;  %v18053_v36 = vpop.f32.mrf.mxu0  ;;  %5889 = vmatprep.subr.bf16.mxu0 %v14798_v49  ;;  %v456_v10 = vld [vmem:[#allocation2 + $0x118] sm:$0xff]  ;;  %v14655_v49 = vcombine.low %v480_v18, %v492_v50 }
 0x295   : > { %v6163_v4 = vmax.f32 %v18010_v61, %v5403_v9  ;;  %6013 = vmatprep.subr.bf16.mxu1 %v14680_v33  ;;  %v5414_v33 = vpop.f32.mrf.mxu1  ;;  %v15136_v9 = vcombine.high %v960_v38, %v972_v20  ;;  %v14632_v16 = vcombine.high %v456_v10, %v468_v11 }
 0x296   : > { %v5333_v25 = vpop.f32.mrf.mxu0 }
 0x297   : > { %v6247_v47 = vmax.f32 %v22200_v21, %v6163_v4  ;;  %v5407_v19 = vadd.f32 %v5406_v2, %v5333_v25  ;;  %5890 = vmatpush2.bf16.msra.mxu0 %v14797_v13  ;;  %5985 = vmatmul.mubr.bf16.gmra.mxu1 %v17854_v41  ;;  %v444_v25 = vld [vmem:[#allocation2 + $0xb8] sm:$0xff]  ;;  %v22201_v2 = vmax.f32 %v17419_v3, %v17450_v32  ;;  %v5416_v50 = vpop.f32.mrf.mxu1 }
 0x298   : > { %6014 = vmatpush1.bf16.msra.mxu1 %v14679_v17  ;;  %v18064_v61 = vpop.f32.mrf.mxu0  ;;  %6078 = vmatprep.subr.bf16.mxu0 %v15160_v52  ;;  %v15112_v13 = vcombine.high %v936_v55, %v948_v28  ;;  %v792_v17 = vld [vmem:[#allocation2 + $0xb98] sm:$0xff]  ;;  %v14608_v4 = vcombine.high %v432_v6, %v444_v25 }
 0x299   : > { %v6187_v15 = vmax.f32 %v18017_v51, %v5407_v19  ;;  %6015 = vmatprep.subr.bf16.mxu1 %v14656_v43  ;;  %15287 = vmatprep.mubr.msk.bf16.mxu1 %vm4313_vm0, %v17862_v26  ;;  %v6359_v41 = vadd.f32 %v18058_v31, %v6247_v47  ;;  %v15135_v51 = vcombine.low %v960_v38, %v972_v20  ;;  %v804_v43 = vld [vmem:[#allocation2 + $0xbf8] sm:$0xff] }
 0x29a   : > { %v5339_v1 = vpop.f32.mrf.mxu0  ;;  %5892 = vmatmul.mubr.bf16.vlgmr.msra.gmra.mxu0 %v17867_v5  ;;  %v14631_v5 = vcombine.low %v456_v10, %v468_v11  ;;  %v912_v3 = vld [vmem:[#allocation2 + $0xf58] sm:$0xff]  ;;  %v14968_v19 = vcombine.high %v792_v17, %v804_v43 }
 0x29b   : > { %v6259_v57 = vmax.f32 %v22201_v2, %v6187_v15  ;;  %6079 = vmatpush1.bf16.msra.mxu0 %v15159_v59  ;;  %5901 = vmatprep.mubr.bf16.mxu0 %v17873_v12  ;;  %v5413_v39 = vadd.f32 %v5412_v35, %v5339_v1  ;;  %v924_v32 = vld [vmem:[#allocation2 + $0xfb8] sm:$0xff]  ;;  %v14607_v12 = vcombine.low %v432_v6, %v444_v25  ;;  %v6407_v20 = vmax.f32 %v6359_v41, 0.0 }
 0x29c   : > { %6016 = vmatpush1.bf16.msra.mxu1 %v14655_v49  ;;  %v5341_v18 = vpop.f32.mrf.mxu0  ;;  %6080 = vmatprep.subr.bf16.mxu0 %v15136_v9  ;;  %v15111_v35 = vcombine.low %v936_v55, %v948_v28  ;;  %v22203_v55 = vmax.f32 %v17430_v46, %v17465_v53  ;;  %v888_v49 = vld [vmem:[#allocation2 + $0xe98] sm:$0xff]  ;;  %v22204_v1 = vmax.f32 %v17433_v34, %v17469_v0 }
 0x29d   : > { %v6371_v26 = vadd.f32 %v18058_v31, %v6259_v57  ;;  %v5415_v52 = vadd.f32 %v5414_v33, %v5341_v18  ;;  %6017 = vmatprep.subr.bf16.mxu1 %v14632_v16  ;;  %v6211_v15 = vmax.f32 %v18027_v14, %v5413_v39  ;;  %v22202_v16 = vmax.f32 %v17427_v45, %v17460_v42  ;;  %v16874_v33 = vld [vmem:[%s17205_s30 + $0x4] ss:$16 sps:$4 sm:$0xff]   ;;  %v768_v45 = vld [vmem:[#allocation2 + $0xad8] sm:$0xff] }
 0x29e   : > { %v5343_v38 = vpop.f32.mrf.mxu0  ;;  %v15088_v14 = vcombine.high %v912_v3, %v924_v32  ;;  %v780_v42 = vld [vmem:[#allocation2 + $0xb38] sm:$0xff]  ;;  %v15087_v46 = vcombine.low %v912_v3, %v924_v32  ;;  %v14967_v53 = vcombine.low %v792_v17, %v804_v43  ;;  %v18104_v32 = vpop.f32.mrf.mxu1 }
 0x29f   : > { %v6419_v21 = vmax.f32 %v6371_v26, 0.0  ;;  %v6212_v10 = vmax.f32 %v18030_v54, %v5415_v52  ;;  %v5417_v11 = vadd.f32 %v5416_v50, %v5343_v38  ;;  %6081 = vmatpush1.bf16.msra.mxu0 %v15135_v51  ;;  %5995 = vmatmul.mubr.bf16.gmra.mxu1 %v17885_v40  ;;  %v6271_v47 = vmax.f32 %v22202_v16, %v6211_v15  ;;  %v900_v40 = vld [vmem:[#allocation2 + $0xef8] sm:$0xff] }
 0x2a0   : > { %6018 = vmatpush1.bf16.msra.mxu1 %v14631_v5  ;;  %6082 = vmatprep.subr.bf16.mxu0 %v15112_v13  ;;  %v864_v41 = vld [vmem:[#allocation2 + $0xdd8] sm:$0xff]  ;;  %v15063_v34 = vcombine.low %v888_v49, %v900_v40  ;;  %v14943_v0 = vcombine.low %v768_v45, %v780_v42 }
 0x2a1   : > { %v18082_v59 = vpack.c.bf16 %v6419_v21, %v6407_v20  ;;  %v18087_v28 = vmax.f32 %v22203_v55, %v6212_v10  ;;  %v6235_v54 = vmax.f32 %v18035_v56, %v5417_v11  ;;  %6019 = vmatprep.subr.bf16.mxu1 %v14608_v4  ;;  %6037 = vmatprep.mubr.bf16.mxu1 %v16874_v33  ;;  %v876_v2 = vld [vmem:[#allocation2 + $0xe38] sm:$0xff]  ;;  %v18102_v4 = vpop.f32.mrf.mxu0 }
 0x2a2   : > { %5902 = vmatmul.mubr.bf16.gmra.mxu0 %v17892_v7  ;;  %v6383_v9 = vadd.f32 %v18058_v31, %v6271_v47  ;;  %v15064_v56 = vcombine.high %v888_v49, %v900_v40  ;;  %v14944_v7 = vcombine.high %v768_v45, %v780_v42  ;;  %v744_v57 = vld [vmem:[#allocation2 + $0xa18] sm:$0xff]  ;;  %v15039_v52 = vcombine.low %v864_v41, %v876_v2 }
 0x2a3   : > { %v6283_v6 = vmax.f32 %v22204_v1, %v6235_v54  ;;  %6083 = vmatpush1.bf16.msra.mxu0 %v15111_v35  ;;  %5911 = vmatprep.mubr.bf16.mxu0 %v17896_v60  ;;  %v756_v51 = vld [vmem:[#allocation2 + $0xa78] sm:$0xff]  ;;  %v15040_v60 = vcombine.high %v864_v41, %v876_v2 }
 0x2a4   : > { %6020 = vmatpush1.bf16.msra.mxu1 %v14607_v12  ;;  %6084 = vmatprep.subr.bf16.mxu0 %v15088_v14  ;;  %v6431_v39 = vmax.f32 %v6383_v9, 0.0  ;;  %v14920_v50 = vcombine.high %v744_v57, %v756_v51  ;;  %v840_v5 = vld [vmem:[#allocation2 + $0xd18] sm:$0xff]  ;;  %v14919_v43 = vcombine.low %v744_v57, %v756_v51 }
 0x2a5   : > { %v6395_v25 = vadd.f32 %v18058_v31, %v6283_v6  ;;  %6021 = vmatprep.subr.bf16.mxu1 %v14968_v19  ;;  %v852_v13 = vld [vmem:[#allocation2 + $0xd78] sm:$0xff] }
 0x2a6   : > { %v720_v31 = vld [vmem:[#allocation2 + $0x958] sm:$0xff]  ;;  %v15016_v3 = vcombine.high %v840_v5, %v852_v13 }
 0x2a7   : > { %v6443_v18 = vmax.f32 %v6395_v25, 0.0  ;;  %6085 = vmatpush1.bf16.msra.mxu0 %v15087_v46  ;;  %v732_v26 = vld [vmem:[#allocation2 + $0x9b8] sm:$0xff] }
 0x2a8   : > { %6022 = vmatpush2.bf16.msra.mxu1 %v14967_v53  ;;  %6086 = vmatprep.subr.bf16.mxu0 %v15064_v56  ;;  %v14896_v15 = vcombine.high %v720_v31, %v732_v26  ;;  %v816_v38 = vld [vmem:[#allocation2 + $0xc58] sm:$0xff]  ;;  %v14895_v11 = vcombine.low %v720_v31, %v732_v26 }
 0x2a9   : > { %6023 = vmatprep.subr.bf16.mxu1 %v14944_v7  ;;  %v18098_v17 = vpack.c.bf16 %v6443_v18, %v6431_v39  ;;  %v828_v12 = vld [vmem:[#allocation2 + $0xcb8] sm:$0xff] }
 0x2aa   : > { %5912 = vmatmul.mubr.bf16.gmra.mxu0 %v17900_v48  ;;  %v696_v48 = vld [vmem:[#allocation2 + $0x898] sm:$0xff]  ;;  %v14992_v16 = vcombine.high %v816_v38, %v828_v12  ;;  %v14991_v33 = vcombine.low %v816_v38, %v828_v12 }
 0x2ab   : > { %22205 = vst [vmem:[#allocation127_spill] sm:$0xff] %v18098_v17  ;;  %6087 = vmatpush1.bf16.msra.mxu0 %v15063_v34  ;;  %5921 = vmatprep.mubr.bf16.mxu0 %v17904_v63  ;;  %v708_v20 = vld [vmem:[#allocation2 + $0x8f8] sm:$0xff]  ;;  %v15015_v63 = vcombine.low %v840_v5, %v852_v13 }
 0x2ac   : > { %6024 = vmatpush2.bf16.msra.mxu1 %v14943_v0  ;;  %6088 = vmatprep.subr.bf16.mxu0 %v15040_v60  ;;  %v14872_v19 = vcombine.high %v696_v48, %v708_v20  ;;  %v1056_v14 = vld [vmem:[#allocation2 + $0x13d8] sm:$0x33]  ;;  %v14871_v9 = vcombine.low %v696_v48, %v708_v20  ;;  %v6535_v48 = vld [vmem:[%s21982_s3 + $0x1c0] sm:$0xff] }
 0x2ad   : > { %6025 = vmatprep.subr.bf16.mxu1 %v14920_v50  ;;  %v672_v54 = vld [vmem:[#allocation2 + $0x7d8] sm:$0xff]  ;;  %v15232_v1 = vcombine.high %v1056_v14, %v1056_v14  ;;  %v15231_v6 = vcombine.low %v1056_v14, %v1056_v14  ;;  %v6539_v20 = vld [vmem:[%s21982_s3 + $0x1e0] sm:$0xff]  ;;  %v18160_v14 = vsub.s32 2, %v18032_v8 }
 0x2ae   : > { %v18106_v35 = vpop.f32.mrf.mxu0  ;;  %v684_v49 = vld [vmem:[#allocation2 + $0x838] sm:$0xff] }
 0x2af   : > { %v18108_v21 = vpop.f32.mrf.mxu1  ;;  %6089 = vmatpush1.bf16.msra.mxu0 %v15039_v52  ;;  %v16875_v45 = vld [vmem:[%s17205_s30 + $0xc] ss:$16 sps:$4 sm:$0xff]   ;;  %v14847_v51 = vcombine.low %v672_v54, %v684_v49  ;;  %v4394_v39 = vsel %vm4326_vm1, %v15231_v6, 0  ;;  %22206 = vst [vmem:[#allocation128_spill] sm:$0xff] %v18160_v14  ;;  %v18169_v6 = vld [vmem:[%s21982_s3 + $0x180] sm:$0xff] }
 0x2b0   : > { %6026 = vmatpush2.bf16.msra.mxu1 %v14919_v43  ;;  %v18110_v10 = vpop.f32.mrf.mxu0  ;;  %6090 = vmatprep.subr.bf16.mxu0 %v15016_v3  ;;  %v1032_v53 = vld [vmem:[#allocation2 + $0x1318] sm:$0xff] }
 0x2b1   : > { %v18112_v47 = vpop.f32.mrf.mxu1  ;;  %6027 = vmatprep.subr.bf16.mxu1 %v14896_v15  ;;  %v1044_v56 = vld [vmem:[#allocation2 + $0x1378] sm:$0xff] }
 0x2b2   : > { %v18114_v55 = vpop.f32.mrf.mxu0  ;;  %5922 = vmatmul.mubr.bf16.gmra.mxu0 %v17916_v23  ;;  %v14848_v23 = vcombine.high %v672_v54, %v684_v49  ;;  %v648_v7 = vld [vmem:[#allocation2 + $0x718] sm:$0xff]  ;;  %v15208_v18 = vcombine.high %v1032_v53, %v1044_v56  ;;  %v15207_v52 = vcombine.low %v1032_v53, %v1044_v56  ;;  %v18178_v53 = vadd.f32 %v17438_v58, %v17453_v44  ;;  %v18196_v58 = vld [vmem:[%s21982_s3 + $0x5a0] sm:$0xff] }
 0x2b3   : > { %v18117_v40 = vpop.f32.mrf.mxu1  ;;  %6091 = vmatpush1.bf16.msra.mxu0 %v15015_v63  ;;  %15289 = vmatprep.mubr.msk.bf16.mxu0 %vm4313_vm0, %v16875_v45  ;;  %v660_v41 = vld [vmem:[#allocation2 + $0x778] sm:$0xff]  ;;  %v18186_v56 = vadd.f32 %v17397_v24, %v17422_v30  ;;  %v18200_v44 = vrot.slane %v18051_v22, %v18160_v14  ;;  %v15349_v24 = vcombine.low %v6535_v48, %v6539_v20 }
 0x2b4   : > { %6028 = vmatpush2.bf16.msra.mxu1 %v14895_v11  ;;  %v18121_v42 = vpop.f32.mrf.mxu0  ;;  %6092 = vmatprep.subr.bf16.mxu0 %v14992_v16  ;;  %v14824_v0 = vcombine.high %v648_v7, %v660_v41  ;;  %v1008_v60 = vld [vmem:[#allocation2 + $0x1258] sm:$0xff]  ;;  %v14823_v3 = vcombine.low %v648_v7, %v660_v41  ;;  %v18152_v11 = vld [vmem:[%s21982_s3 + $0x5c0] sm:$0xff] }
 0x2b5   : > { %v18123_v46 = vpop.f32.mrf.mxu1  ;;  %6029 = vmatprep.subr.bf16.mxu1 %v14872_v19  ;;  %v1020_v50 = vld [vmem:[#allocation2 + $0x12b8] sm:$0xff]  ;;  %v18157_v16 = vld [vmem:[%s21982_s3 + $0x5e0] sm:$0xff] }
 0x2b6   : > { %v18125_v25 = vpop.f32.mrf.mxu0  ;;  %v624_v13 = vld [vmem:[#allocation2 + $0x658] sm:$0xff]  ;;  %v15184_v15 = vcombine.high %v1008_v60, %v1020_v50  ;;  %v15183_v49 = vcombine.low %v1008_v60, %v1020_v50  ;;  %v15477_v30 = vcombine.low %v18152_v11, %v18157_v16  ;;  %v5533_v60 = vadd.f32 %v18114_v55, %v18117_v40  ;;  %v22207_v50 = vld [vmem:[#allocation22_spill] sm:$0xff]  ;;  %v18229_v55 = vld [vmem:[%s21982_s3 + $0x560] sm:$0xff] }
 0x2b7   : > { %v18127_v2 = vpop.f32.mrf.mxu1  ;;  %6093 = vmatpush1.bf16.msra.mxu0 %v14991_v33  ;;  %v636_v31 = vld [vmem:[#allocation2 + $0x6b8] sm:$0xff]  ;;  %v5529_v33 = vadd.f32 %v18106_v35, %v18108_v21  ;;  %v15478_v21 = vcombine.high %v18152_v11, %v18157_v16  ;;  %v6176_v40 = vmax.f32 %v18186_v56, %v18178_v53 }
 0x2b8   : > { %6030 = vmatpush2.bf16.msra.mxu1 %v14871_v9  ;;  %v18129_v57 = vpop.f32.mrf.mxu0  ;;  %15288 = vmatprep.subr.msk.bf16.mxu0 %vm4326_vm1, %v15232_v1  ;;  %v14800_v12 = vcombine.high %v624_v13, %v636_v31  ;;  %v14799_v54 = vcombine.low %v624_v13, %v636_v31  ;;  %v15350_v1 = vcombine.high %v6535_v48, %v6539_v20  ;;  %v22208_v13 = vld [vmem:[#allocation32_spill] sm:$0xff]  ;;  %v22210_v20 = vld [vmem:[#allocation26_spill] sm:$0xff] }
 0x2b9   : > { %v18133_v34 = vpop.f32.mrf.mxu1  ;;  %6031 = vmatprep.subr.bf16.mxu1 %v14848_v23  ;;  %v18174_v23 = vld [vmem:[%s21982_s3 + $0x1a0] sm:$0xff]  ;;  %v22209_v31 = vmax.f32 %v22207_v50, %v22208_v13 }
 0x2ba   : > { %v18135_v5 = vpop.f32.mrf.mxu0  ;;  %v18224_v48 = vld [vmem:[%s21982_s3 + $0x540] sm:$0xff] }
 0x2bb   : > { %v18137_v26 = vpop.f32.mrf.mxu1  ;;  %6105 = vmatpush2.bf16.msra.mxu0 %v4394_v39  ;;  %v18256_v50 = vld [vmem:[%s21982_s3 + $0x120] sm:$0xff] }
 0x2bc   : > { %6032 = vmatpush2.bf16.msra.mxu1 %v14847_v51  ;;  %v18139_v43 = vpop.f32.mrf.mxu0  ;;  %6106 = vmatprep.subr.bf16.mxu0 %v15208_v18  ;;  %v18191_v51 = vld [vmem:[%s21982_s3 + $0x580] sm:$0xff]  ;;  %v15342_v18 = vcombine.high %v18169_v6, %v18174_v23 }
 0x2bd   : > { %v18141_v38 = vpop.f32.mrf.mxu1  ;;  %6033 = vmatprep.subr.bf16.mxu1 %v14824_v0  ;;  %v18209_v0 = vld [vmem:[%s21982_s3 + $0x140] sm:$0xff] }
 0x2be   : > { %v5548_v63 = vpop.f32.mrf.mxu0  ;;  %v16877_v13 = vld [vmem:[%s17205_s30] ss:$16 sps:$4 sm:$0xff]  }
 0x2bf   : > { %v5475_v19 = vpop.f32.mrf.mxu1  ;;  %6107 = vmatpush2.bf16.msra.mxu0 %v15207_v52 }
 0x2c0   : > { %v5549_v45 = vadd.f32 %v5548_v63, %v5475_v19  ;;  %6034 = vmatpush2.bf16.msra.mxu1 %v14823_v3  ;;  %v18164_v9 = vpop.f32.mrf.mxu0  ;;  %6108 = vmatprep.subr.bf16.mxu0 %v15184_v15  ;;  %v22211_v63 = vld [vmem:[#allocation25_spill] sm:$0xff]  ;;  %v15470_v19 = vcombine.high %v18191_v51, %v18196_v58 }
 0x2c1   : > { %v18180_v35 = vpop.f32.mrf.mxu1  ;;  %6035 = vmatprep.subr.bf16.mxu1 %v14800_v12  ;;  %v18219_v12 = vld [vmem:[%s21982_s3 + $0x160] sm:$0xff]  ;;  %v18235_v11 = vadd.f32 %v22211_v63, %v22210_v20  ;;  %v22215_v20 = vld [vmem:[#allocation34_spill] sm:$0xff] }
 0x2c2   : > { %v6165_v7 = vmax.f32 %v5529_v33, %v5549_v45  ;;  %v5552_v41 = vpop.f32.mrf.mxu0 }
 0x2c3   : > { %v5479_v39 = vpop.f32.mrf.mxu1  ;;  %6109 = vmatpush2.bf16.msra.mxu0 %v15183_v49  ;;  %v22213_v49 = vld [vmem:[#allocation35_spill] sm:$0xff] }
 0x2c4   : > { %v6249_v52 = vmax.f32 %v22209_v31, %v6165_v7  ;;  %v5553_v3 = vadd.f32 %v5552_v41, %v5479_v39  ;;  %6036 = vmatpush2.bf16.msra.mxu1 %v14799_v54  ;;  %v5554_v15 = vpop.f32.mrf.mxu0  ;;  %11087 = vmatprep.subr.bf16.mxu0 %v15350_v1  ;;  %v22212_v54 = vld [vmem:[#allocation36_spill] sm:$0xff]  ;;  %v16876_v7 = vld [vmem:[%s17205_s30 + $0x8] ss:$16 sps:$4 sm:$0xff]   ;;  %v15341_v41 = vcombine.low %v18169_v6, %v18174_v23 }
 0x2c5   : > { %v5481_v16 = vpop.f32.mrf.mxu1  ;;  %11140 = vmatprep.subr.bf16.mxu1 %v15478_v21  ;;  %v18241_v33 = vadd.f32 %v22213_v49, %v22212_v54  ;;  %v15469_v39 = vcombine.low %v18191_v51, %v18196_v58  ;;  %v18251_v21 = vld [vmem:[%s21982_s3 + $0x100] sm:$0xff]  ;;  %v15333_v6 = vcombine.low %v18209_v0, %v18219_v12  ;;  %v15334_v23 = vcombine.high %v18209_v0, %v18219_v12 }
 0x2c6   : > { %v6189_v45 = vmax.f32 %v5533_v60, %v5553_v3  ;;  %v5558_v1 = vpop.f32.mrf.mxu0  ;;  %6111 = vmatmul.mubr.bf16.vlgmr.msra.gmra.mxu0 %v16876_v7  ;;  %v15461_v51 = vcombine.low %v18224_v48, %v18229_v55  ;;  %v18268_v58 = vld [vmem:[%s21982_s3 + $0x500] sm:$0xff]  ;;  %v15462_v54 = vcombine.high %v18224_v48, %v18229_v55  ;;  %v5539_v49 = vadd.f32 %v18125_v25, %v18127_v2 }
 0x2c7   : > { %v5485_v60 = vpop.f32.mrf.mxu1  ;;  %6038 = vmatmul.mubr.bf16.vlgmr.msra.gmra.mxu1 %v16877_v13  ;;  %11088 = vmatpush1.bf16.msra.mxu0 %v15349_v24  ;;  %v18273_v31 = vld [vmem:[%s21982_s3 + $0x520] sm:$0xff]  ;;  %v6361_v24 = vadd.f32 %v18200_v44, %v6249_v52  ;;  %v15325_v25 = vcombine.low %v18251_v21, %v18256_v50  ;;  %v5389_v48 = vadd.f32 %v17992_v62, %v18020_v37 }
 0x2c8   : > { %v22214_v3 = vld [vmem:[#allocation24_spill] sm:$0xff]  ;;  %11141 = vmatpush1.bf16.msra.mxu1 %v15477_v30  ;;  %v18279_v12 = vpop.f32.mrf.mxu0  ;;  %11089 = vmatprep.subr.bf16.mxu0 %v15342_v18  ;;  %v5559_v7 = vadd.f32 %v5558_v1, %v5485_v60  ;;  %v5409_v30 = vadd.f32 %v18040_v29, %v18064_v61  ;;  %v15453_v2 = vcombine.low %v18268_v58, %v18273_v31 }
 0x2c9   : > { %v22216_v63 = vmax.f32 %v22214_v3, %v22215_v20  ;;  %v18285_v13 = vpop.f32.mrf.mxu1  ;;  %11142 = vmatprep.subr.bf16.mxu1 %v15470_v19  ;;  %v16878_v52 = vld [vmem:[%s17205_s30 + $0x24] ss:$16 sps:$4 sm:$0xff]   ;;  %v15326_v3 = vcombine.high %v18251_v21, %v18256_v50  ;;  %v16879_v20 = vld [vmem:[%s17205_s30 + $0x2c] ss:$16 sps:$4 sm:$0xff]   ;;  %v5405_v55 = vadd.f32 %v18022_v27, %v18053_v36  ;;  %v5555_v19 = vadd.f32 %v5554_v15, %v5481_v16 }
 0x2ca   : > { %6047 = vmatprep.mubr.bf16.mxu1 %v16878_v52  ;;  %15290 = vmatprep.mubr.msk.bf16.mxu0 %vm4313_vm0, %v16879_v20  ;;  %v6213_v29 = vmax.f32 %v5539_v49, %v5559_v7  ;;  %v5543_v1 = vadd.f32 %v18135_v5, %v18137_v26  ;;  %v6409_v60 = vmax.f32 %v6361_v24, 0.0  ;;  %v18308_v62 = vld [vmem:[%s21982_s3 + $0xc0] sm:$0xff]  ;;  %v5535_v27 = vadd.f32 %v18121_v42, %v18123_v46  ;;  %v22217_v5 = vld [vmem:[#allocation27_spill] sm:$0xff]  ;;  %v22218_v26 = vld [vmem:[#allocation37_spill] sm:$0xff] }
 0x2cb   : > { %v6261_v0 = vmax.f32 %v22216_v63, %v6189_v45  ;;  %v5562_v45 = vpop.f32.mrf.mxu0  ;;  %v5489_v61 = vpop.f32.mrf.mxu1  ;;  %11090 = vmatpush1.bf16.msra.mxu0 %v15341_v41  ;;  %v18313_v37 = vld [vmem:[%s21982_s3 + $0xe0] sm:$0xff]  ;;  %v5551_v36 = vadd.f32 %v18164_v9, %v18180_v35  ;;  %v22219_v15 = vmax.f32 %v22217_v5, %v22218_v26  ;;  %v15454_v41 = vcombine.high %v18268_v58, %v18273_v31  ;;  %v22221_v50 = vld [vmem:[#allocation121_spill] sm:$0xff] }
 0x2cc   : > { %v5563_v21 = vadd.f32 %v5562_v45, %v5489_v61  ;;  %11143 = vmatpush1.bf16.msra.mxu1 %v15469_v39  ;;  %11091 = vmatprep.subr.bf16.mxu0 %v15334_v23  ;;  %v22220_v39 = vld [vmem:[#allocation124_spill] sm:$0xff]  ;;  %v6188_v24 = vmax.f32 %v5389_v48, %v5409_v30  ;;  %v16880_v42 = vld [vmem:[%s17205_s30 + $0x28] ss:$16 sps:$4 sm:$0xff]   ;;  %v18336_v35 = vsub.s32 1, %v18032_v8  ;;  %v5531_v58 = vadd.f32 %v18110_v10, %v18112_v47 }
 0x2cd   : > { %v6373_v18 = vadd.f32 %v18200_v44, %v6261_v0  ;;  %v6273_v16 = vmax.f32 %v22219_v15, %v6213_v29  ;;  %11144 = vmatprep.subr.bf16.mxu1 %v15462_v54  ;;  %v5385_v23 = vadd.f32 %v22221_v50, %v22220_v39  ;;  %v6631_v46 = vld [vmem:[%s21982_s3 + $0x4c0] sm:$0xff]  ;;  %v6190_v31 = vmax.f32 %v5535_v27, %v5555_v19  ;;  %v22224_v45 = vld [vmem:[#allocation39_spill] sm:$0xff] }
 0x2ce   : > { %v6237_v49 = vmax.f32 %v5543_v1, %v5563_v21  ;;  %6121 = vmatmul.mubr.bf16.gmra.mxu0 %v16880_v42  ;;  %v6635_v9 = vld [vmem:[%s21982_s3 + $0x4e0] sm:$0xff]  ;;  %v15318_v7 = vcombine.high %v18308_v62, %v18313_v37  ;;  %v6178_v10 = vmax.f32 %v18235_v11, %v18241_v33  ;;  %v6166_v47 = vmax.f32 %v5531_v58, %v5551_v36  ;;  %v22230_v15 = vld [vmem:[#allocation23_spill] sm:$0xff] }
 0x2cf   : > { %v6421_v63 = vmax.f32 %v6373_v18, 0.0  ;;  %v16881_v54 = vld [vmem:[%s17205_s30 + $0x20] ss:$16 sps:$4 sm:$0xff]   ;;  %11092 = vmatpush1.bf16.msra.mxu0 %v15333_v6  ;;  %v6164_v52 = vmax.f32 %v5385_v23, %v5405_v55  ;;  %v6385_v30 = vadd.f32 %v18200_v44, %v6273_v16  ;;  %v22223_v18 = vld [vmem:[#allocation29_spill] sm:$0xff]  ;;  %v18350_v19 = vsub.s32 3, %v18032_v8 }
 0x2d0   : > { %6048 = vmatmul.mubr.bf16.gmra.mxu1 %v16881_v54  ;;  %v22225_v20 = vmax.f32 %v22223_v18, %v22224_v45  ;;  %11093 = vmatprep.subr.bf16.mxu0 %v15326_v3  ;;  %v16882_v6 = vld [vmem:[%s17205_s30 + $0x44] ss:$16 sps:$4 sm:$0xff]   ;;  %v15446_v55 = vcombine.high %v6631_v46, %v6635_v9  ;;  %v6260_v11 = vmax.f32 %v6176_v40, %v6188_v24  ;;  %v16883_v3 = vld [vmem:[%s17205_s30 + $0x4c] ss:$16 sps:$4 sm:$0xff]   ;;  %v16884_v23 = vld [vmem:[%s17205_s30 + $0x48] ss:$16 sps:$4 sm:$0xff]  }
 0x2d1   : > { %v18326_v0 = vpack.c.bf16 %v6421_v63, %v6409_v60  ;;  %11145 = vmatpush1.bf16.msra.mxu1 %v15461_v51  ;;  %22226 = vst [vmem:[#allocation32_spill] sm:$0xff] %v18350_v19  ;;  %6057 = vmatprep.mubr.bf16.mxu1 %v16882_v6  ;;  %v6495_v29 = vld [vmem:[%s21982_s3 + $0x80] sm:$0xff]  ;;  %v18373_v60 = vrot.slane %v18051_v22, %v18336_v35  ;;  %v22228_v40 = vld [vmem:[#allocation19_spill] sm:$0xff]  ;;  %v6433_v36 = vmax.f32 %v6385_v30, 0.0  ;;  %v22231_v16 = vld [vmem:[#allocation33_spill] sm:$0xff] }
 0x2d2   : > { %v6285_v48 = vmax.f32 %v22225_v20, %v6237_v49  ;;  %11146 = vmatprep.subr.bf16.mxu1 %v15454_v41  ;;  %v6499_v51 = vld [vmem:[%s21982_s3 + $0xa0] sm:$0xff]  ;;  %15291 = vmatprep.mubr.msk.bf16.mxu0 %vm4313_vm0, %v16883_v3  ;;  %v6262_v63 = vmax.f32 %v6178_v10, %v6190_v31  ;;  %v15317_v53 = vcombine.low %v18308_v62, %v18313_v37  ;;  %v16887_v20 = vld [vmem:[%s17205_s30 + $0x6c] ss:$16 sps:$4 sm:$0xff]  }
 0x2d3   : > { %22222 = vst [vmem:[#allocation22_spill] sm:$0xff] %v18326_v0  ;;  %v6623_v61 = vld [vmem:[%s21982_s3 + $0x480] sm:$0xff]  ;;  %11094 = vmatpush1.bf16.msra.mxu0 %v15325_v25  ;;  %v15445_v56 = vcombine.low %v6631_v46, %v6635_v9  ;;  %v15310_v26 = vcombine.high %v6495_v29, %v6499_v51  ;;  %v22232_v41 = vmax.f32 %v22230_v15, %v22231_v16 }
 0x2d4   : > { %v6397_v33 = vadd.f32 %v18200_v44, %v6285_v48  ;;  %v6627_v1 = vld [vmem:[%s21982_s3 + $0x4a0] sm:$0xff]  ;;  %v22227_v44 = vld [vmem:[#allocation17_spill] sm:$0xff]  ;;  %11095 = vmatprep.subr.bf16.mxu0 %v15318_v7  ;;  %v18385_v25 = vrot.slane %v18051_v22, %v18350_v19  ;;  %v6372_v50 = vadd.f32 %v18373_v60, %v6260_v11  ;;  %v15309_v9 = vcombine.low %v6495_v29, %v6499_v51 }
 0x2d5   : > { %v22229_v21 = vmax.f32 %v22227_v44, %v22228_v40  ;;  %11147 = vmatpush1.bf16.msra.mxu1 %v15453_v2  ;;  %v6250_v39 = vmax.f32 %v22232_v41, %v6166_v47  ;;  %v15438_v62 = vcombine.high %v6623_v61, %v6627_v1  ;;  %v6487_v37 = vld [vmem:[%s21982_s3 + $0x40] sm:$0xff]  ;;  %v15437_v31 = vcombine.low %v6623_v61, %v6627_v1 }
 0x2d6   : > { %v6445_v5 = vmax.f32 %v6397_v33, 0.0  ;;  %11148 = vmatprep.subr.bf16.mxu1 %v15446_v55  ;;  %v6491_v2 = vld [vmem:[%s21982_s3 + $0x60] sm:$0xff]  ;;  %6131 = vmatmul.mubr.bf16.gmra.mxu0 %v16884_v23  ;;  %v6374_v42 = vadd.f32 %v18385_v25, %v6262_v63  ;;  %v6420_v45 = vmax.f32 %v6372_v50, 0.0 }
 0x2d7   : > { %v6248_v27 = vmax.f32 %v22229_v21, %v6164_v52  ;;  %v6615_v24 = vld [vmem:[%s21982_s3 + $0x440] sm:$0xff]  ;;  %11096 = vmatpush1.bf16.msra.mxu0 %v15317_v53  ;;  %v15302_v54 = vcombine.high %v6487_v37, %v6491_v2  ;;  %v6362_v7 = vadd.f32 %v18385_v25, %v6250_v39  ;;  %v18407_v52 = vpop.f32.mrf.mxu1  ;;  %15292 = vmatprep.mubr.msk.bf16.mxu0 %vm4313_vm0, %v16887_v20 }
 0x2d8   : > { %v6619_v22 = vld [vmem:[%s21982_s3 + $0x460] sm:$0xff]  ;;  %v18401_v49 = vpack.c.bf16 %v6445_v5, %v6433_v36  ;;  %11097 = vmatprep.subr.bf16.mxu0 %v15310_v26  ;;  %v6422_v47 = vmax.f32 %v6374_v42, 0.0  ;;  %v15301_v55 = vcombine.low %v6487_v37, %v6491_v2 }
 0x2d9   : > { %v16885_v46 = vld [vmem:[%s17205_s30 + $0x40] ss:$16 sps:$4 sm:$0xff]   ;;  %v6360_v58 = vadd.f32 %v18373_v60, %v6248_v27  ;;  %11149 = vmatpush1.bf16.msra.mxu1 %v15445_v56  ;;  %v16886_v30 = vld [vmem:[%s17205_s30 + $0x64] ss:$16 sps:$4 sm:$0xff]   ;;  %v15430_v18 = vcombine.high %v6615_v24, %v6619_v22  ;;  %v15429_v33 = vcombine.low %v6615_v24, %v6619_v22  ;;  %v6410_v3 = vmax.f32 %v6362_v7, 0.0 }
 0x2da   : > { %22233 = vst [vmem:[#allocation26_spill] sm:$0xff] %v18401_v49  ;;  %6058 = vmatmul.mubr.bf16.gmra.mxu1 %v16885_v46  ;;  %11150 = vmatprep.subr.bf16.mxu1 %v15438_v62  ;;  %v6479_v48 = vld [vmem:[%s21982_s3] sm:$0xff]  ;;  %v16888_v56 = vld [vmem:[%s17205_s30 + $0x68] ss:$16 sps:$4 sm:$0xff]  }
 0x2db   : > { %6067 = vmatprep.mubr.bf16.mxu1 %v16886_v30  ;;  %v6483_v10 = vld [vmem:[%s21982_s3 + $0x20] sm:$0xff]  ;;  %v18418_v6 = vpop.f32.mrf.mxu1  ;;  %11098 = vmatpush1.bf16.msra.mxu0 %v15309_v9  ;;  %v6408_v11 = vmax.f32 %v6360_v58, 0.0  ;;  %v18446_v26 = vpack.c.bf16 %v6422_v47, %v6410_v3 }
 0x2dc   : > { %v6607_v29 = vld [vmem:[%s21982_s3 + $0x400] sm:$0xff]  ;;  %11099 = vmatprep.subr.bf16.mxu0 %v15302_v54  ;;  %v15294_v1 = vcombine.high %v6479_v48, %v6483_v10  ;;  %v15293_v15 = vcombine.low %v6479_v48, %v6483_v10 }
 0x2dd   : > { %v6611_v51 = vld [vmem:[%s21982_s3 + $0x420] sm:$0xff]  ;;  %11151 = vmatpush1.bf16.msra.mxu1 %v15437_v31  ;;  %v18426_v61 = vpop.f32.mrf.mxu1  ;;  %v18435_v44 = vpack.c.bf16 %v6420_v45, %v6408_v11 }
 0x2de   : > { %11152 = vmatprep.subr.bf16.mxu1 %v15430_v18  ;;  %v6599_v63 = vld [vmem:[%s21982_s3 + $0x3c0] sm:$0xff]  ;;  %6141 = vmatmul.mubr.bf16.gmra.mxu0 %v16888_v56  ;;  %v15422_v40 = vcombine.high %v6607_v29, %v6611_v51  ;;  %v15421_v16 = vcombine.low %v6607_v29, %v6611_v51 }
 0x2df   : > { %v6603_v53 = vld [vmem:[%s21982_s3 + $0x3e0] sm:$0xff]  ;;  %v18443_v36 = vpop.f32.mrf.mxu1  ;;  %11100 = vmatpush1.bf16.msra.mxu0 %v15301_v55  ;;  %11119 = vmatprep.mubr.bf16.mxu0 %v18435_v44 }
 0x2e0   : > { %v6727_v21 = vld [vmem:[%s21982_s3 + $0x7c0] sm:$0xff]  ;;  %v15414_v41 = vcombine.high %v6599_v63, %v6603_v53  ;;  %11101 = vmatprep.subr.bf16.mxu0 %v15294_v1  ;;  %v15413_v24 = vcombine.low %v6599_v63, %v6603_v53 }
 0x2e1   : > { %v6731_v27 = vld [vmem:[%s21982_s3 + $0x7e0] sm:$0xff]  ;;  %11153 = vmatpush1.bf16.msra.mxu1 %v15429_v33  ;;  %v18450_v39 = vpop.f32.mrf.mxu1  ;;  %v5564_v33 = vpop.f32.mrf.mxu0 }
 0x2e2   : > { %v16889_v5 = vld [vmem:[%s17205_s30 + $0x60] ss:$16 sps:$4 sm:$0xff]   ;;  %v15542_v62 = vcombine.high %v6727_v21, %v6731_v27  ;;  %11154 = vmatprep.subr.bf16.mxu1 %v15422_v40  ;;  %v15541_v42 = vcombine.low %v6727_v21, %v6731_v27  ;;  %s21903_s30 = sand.u32 1, %s17033_s14  }
 0x2e3   : > { %6068 = vmatmul.mubr.bf16.gmra.mxu1 %v16889_v5  ;;  %v6591_v37 = vld [vmem:[%s21982_s3 + $0x380] sm:$0xff]  ;;  %11102 = vmatpush1.bf16.msra.mxu0 %v15293_v15  ;;  %v18464_v22 = vpop.f32.mrf.mxu1  ;;  %s22077_s26 = sshll.u32 %s21903_s30, 3  ;;  %s14417_s18 = scalar_lea.sflag [#allocation9], %s21903_s30 }
 0x2e4   : > { %11172 = vmatprep.mubr.bf16.mxu1 %v18446_v26  ;;  %v6595_v2 = vld [vmem:[%s21982_s3 + $0x3a0] sm:$0xff]  ;;  %11103 = vmatprep.subr.bf16.mxu0 %v15414_v41  ;;  %v5419_v41 = vadd.f32 %v18104_v32, %v18102_v4  ;;  %s396_s15 = scalar_lea.vmem [#allocation8], %s22077_s26 }
 0x2e5   : > { %v6719_v50 = vld [vmem:[%s21982_s3 + $0x780] sm:$0xff]  ;;  %11155 = vmatpush1.bf16.msra.mxu1 %v15421_v16  ;;  %v15406_v46 = vcombine.high %v6591_v37, %v6595_v2  ;;  %v18472_v54 = vpop.f32.mrf.mxu1  ;;  %v15405_v18 = vcombine.low %v6591_v37, %v6595_v2  ;;  %s14443_s22 = sshll.u32 %s396_s15, 4  ;;  %s14444_s22 = int_to_ptr.vmem [resolvable:$true] %s14443_s22 }
 0x2e6   : > { %v6723_v23 = vld [vmem:[%s21982_s3 + $0x7a0] sm:$0xff]  ;;  %11156 = vmatprep.subr.bf16.mxu1 %v15542_v62  ;;  %s16943_s20 = scalar_lea.vmem %s14444_s22, 128  ;;  %p16950_p11 = scmp.lt.s32.totalorder %s14444_s22, %s16948_s29 }
 0x2e7   : > { %v15534_v9 = vcombine.high %v6719_v50, %v6723_v23  ;;  %v6583_v58 = vld [vmem:[%s21982_s3 + $0x340] sm:$0xff]  ;;  %11104 = vmatpush2.bf16.msra.mxu0 %v15413_v24  ;;  %v15533_v45 = vcombine.low %v6719_v50, %v6723_v23  ;;  %v18480_v48 = vpop.f32.mrf.mxu1  ;;  %v22234_v24 = vld [vmem:[#allocation18_spill] sm:$0xff]  ;;  %p16944_p12 = scmp.ne.s32.totalorder %s14444_s22, %s16943_s20  ;;  %p16951_p0 = scmp.lt.s32.totalorder %s16949_s11, %s16943_s20 }
 0x2e8   : > { %v6587_v31 = vld [vmem:[%s21982_s3 + $0x360] sm:$0xff]  ;;  %11105 = vmatprep.subr.bf16.mxu0 %v15406_v46 }
 0x2e9   : > { %v6711_v7 = vld [vmem:[%s21982_s3 + $0x740] sm:$0xff]  ;;  %11157 = vmatpush2.bf16.msra.mxu1 %v15541_v42  ;;  %v15398_v20 = vcombine.high %v6583_v58, %v6587_v31  ;;  %v15397_v11 = vcombine.low %v6583_v58, %v6587_v31  ;;  %v18494_v63 = vpop.f32.mrf.mxu1  ;;  %p16945_p7 = pnand %p16944_p12, %p17144_p5  ;;  %p16952_p1 = por %p16951_p0, %p16950_p11 }
 0x2ea   : > { %v6715_v30 = vld [vmem:[%s21982_s3 + $0x760] sm:$0xff]  ;;  %11158 = vmatprep.subr.bf16.mxu1 %v15534_v9  ;;  %v22237_v9 = vld [vmem:[#allocation21_spill] sm:$0xff] }
 0x2eb   : > { %v15526_v10 = vcombine.high %v6711_v7, %v6715_v30  ;;  %v6575_v47 = vld [vmem:[%s21982_s3 + $0x300] sm:$0xff]  ;;  %11106 = vmatpush2.bf16.msra.mxu0 %v15405_v18  ;;  %v15525_v3 = vcombine.low %v6711_v7, %v6715_v30  ;;  %v18521_v23 = vpop.f32.mrf.mxu1  ;;  %v22239_v7 = vld [vmem:[#allocation42_spill] sm:$0xff]  ;;  %v22240_v18 = vld [vmem:[#allocation125_spill] sm:$0xff]  ;;  %p16946_p8 = pneg %p16945_p7 }
 0x2ec   : > { %v6579_v55 = vld [vmem:[%s21982_s3 + $0x320] sm:$0xff]  ;;  %11107 = vmatprep.subr.bf16.mxu0 %v15398_v20 }
 0x2ed   : > { %v6703_v29 = vld [vmem:[%s21982_s3 + $0x700] sm:$0xff]  ;;  %11159 = vmatpush2.bf16.msra.mxu1 %v15533_v45  ;;  %v15390_v1 = vcombine.high %v6575_v47, %v6579_v55  ;;  %v15389_v16 = vcombine.low %v6575_v47, %v6579_v55  ;;  %v22241_v45 = vld [vmem:[#allocation123_spill] sm:$0xff]  ;;  %p16953_p3 = pnand %p16952_p1, %p16946_p8 }
 0x2ee   : > { %v6707_v51 = vld [vmem:[%s21982_s3 + $0x720] sm:$0xff]  ;;  %11160 = vmatprep.subr.bf16.mxu1 %v15526_v10  ;;  %v5601_v21 = vpop.f32.mrf.mxu0  ;;  %v5399_v20 = vadd.f32 %v22241_v45, %v22240_v18  ;;  %v5565_v10 = vadd.f32 %v5564_v33, %v18407_v52  ;;  %v5545_v52 = vadd.f32 %v18139_v43, %v18141_v38  ;;  %v5561_v33 = vadd.f32 %v18279_v12, %v18285_v13 }
 0x2ef   : > { %v15518_v53 = vcombine.high %v6703_v29, %v6707_v51  ;;  %v6567_v56 = vld [vmem:[%s21982_s3 + $0x2c0] sm:$0xff]  ;;  %v18509_v15 = vadd.f32 %v18418_v6, %v5601_v21  ;;  %11108 = vmatpush2.bf16.msra.mxu0 %v15397_v11  ;;  %v15517_v37 = vcombine.low %v6703_v29, %v6707_v51  ;;  %v5541_v12 = vadd.f32 %v18129_v57, %v18133_v34 }
 0x2f0   : > { %v6571_v40 = vld [vmem:[%s21982_s3 + $0x2e0] sm:$0xff]  ;;  %v18513_v62 = vpop.f32.mrf.mxu0  ;;  %11109 = vmatprep.subr.bf16.mxu0 %v15390_v1  ;;  %v6238_v13 = vmax.f32 %v5545_v52, %v5565_v10 }
 0x2f1   : > { %v6695_v27 = vld [vmem:[%s21982_s3 + $0x6c0] sm:$0xff]  ;;  %11161 = vmatpush2.bf16.msra.mxu1 %v15525_v3  ;;  %v15382_v2 = vcombine.high %v6567_v56, %v6571_v40  ;;  %v15381_v11 = vcombine.low %v6567_v56, %v6571_v40 }
 0x2f2   : > { %v6699_v5 = vld [vmem:[%s21982_s3 + $0x6e0] sm:$0xff]  ;;  %11162 = vmatprep.subr.bf16.mxu1 %v15518_v53  ;;  %v5605_v47 = vpop.f32.mrf.mxu0  ;;  %v6236_v53 = vmax.f32 %v5399_v20, %v5419_v41 }
 0x2f3   : > { %v6559_v50 = vld [vmem:[%s21982_s3 + $0x280] sm:$0xff]  ;;  %v15510_v4 = vcombine.high %v6695_v27, %v6699_v5  ;;  %v18539_v51 = vadd.f32 %v18443_v36, %v5605_v47  ;;  %11110 = vmatpush2.bf16.msra.mxu0 %v15389_v16  ;;  %v15509_v3 = vcombine.low %v6695_v27, %v6699_v5  ;;  %v22243_v36 = vld [vmem:[#allocation30_spill] sm:$0xff] }
 0x2f4   : > { %v6563_v6 = vld [vmem:[%s21982_s3 + $0x2a0] sm:$0xff]  ;;  %v18545_v21 = vpop.f32.mrf.mxu0  ;;  %11111 = vmatprep.subr.bf16.mxu0 %v15382_v2 }
 0x2f5   : > { %v22235_v42 = vld [vmem:[#allocation16_spill] sm:$0xff]  ;;  %v15374_v1 = vcombine.high %v6559_v50, %v6563_v6  ;;  %11163 = vmatpush2.bf16.msra.mxu1 %v15517_v37  ;;  %v15373_v2 = vcombine.low %v6559_v50, %v6563_v6 }
 0x2f6   : > { %v4523_v46 = vadd.f32 %v22235_v42, %v22234_v24  ;;  %v22236_v32 = vld [vmem:[#allocation20_spill] sm:$0xff]  ;;  %v18547_v24 = vpop.f32.mrf.mxu1  ;;  %v22242_v42 = vld [vmem:[#allocation31_spill] sm:$0xff]  ;;  %11164 = vmatprep.subr.bf16.mxu1 %v15510_v4  ;;  %v5611_v27 = vpop.f32.mrf.mxu0 }
 0x2f7   : > { %v4543_v58 = vadd.f32 %v22237_v9, %v22236_v32  ;;  %v22238_v31 = vld [vmem:[#allocation40_spill] sm:$0xff]  ;;  %v4669_v32 = vadd.f32 %v22243_v36, %v22242_v42  ;;  %v18566_v37 = vadd.f32 %v18464_v22, %v5611_v27  ;;  %11112 = vmatpush2.bf16.msra.mxu0 %v15381_v11  ;;  %v6214_v9 = vmax.f32 %v5541_v12, %v5561_v33 }
 0x2f8   : > { %v4689_v30 = vadd.f32 %v22239_v7, %v22238_v31  ;;  %v6687_v55 = vld [vmem:[%s21982_s3 + $0x680] sm:$0xff]  ;;  %v5613_v57 = vpop.f32.mrf.mxu0  ;;  %11113 = vmatprep.subr.bf16.mxu0 %v15374_v1  ;;  %v22247_v1 = vld [vmem:[#allocation38_spill] sm:$0xff]  ;;  %v6384_v12 = vadd.f32 %v18373_v60, %v18087_v28 }
 0x2f9   : > { %v6691_v29 = vld [vmem:[%s21982_s3 + $0x6a0] sm:$0xff]  ;;  %v6224_v38 = vmax.f32 %v4523_v46, %v4543_v58  ;;  %11165 = vmatpush2.bf16.msra.mxu1 %v15509_v3  ;;  %v5698_v58 = vpop.f32.mrf.mxu1  ;;  %v18569_v31 = vadd.f32 %v18472_v54, %v5613_v57 }
 0x2fa   : > { %v15502_v56 = vcombine.high %v6687_v55, %v6691_v29  ;;  %v6551_v40 = vld [vmem:[%s21982_s3 + $0x240] sm:$0xff]  ;;  %v6226_v41 = vmax.f32 %v4669_v32, %v4689_v30  ;;  %v15501_v46 = vcombine.low %v6687_v55, %v6691_v29  ;;  %v5615_v30 = vpop.f32.mrf.mxu0  ;;  %v22249_v32 = vld [vmem:[#allocation47_spill] sm:$0xff] }
 0x2fb   : > { %v6555_v43 = vld [vmem:[%s21982_s3 + $0x260] sm:$0xff]  ;;  %v6284_v4 = vmax.f32 %v6224_v38, %v6236_v53  ;;  %v18588_v47 = vadd.f32 %v18480_v48, %v5615_v30  ;;  %11114 = vmatpush2.bf16.msra.mxu0 %v15373_v2  ;;  %v5700_v36 = vpop.f32.mrf.mxu1  ;;  %v5677_v30 = vadd.f32 %v18426_v61, %v18513_v62 }
 0x2fc   : > { %v6679_v5 = vld [vmem:[%s21982_s3 + $0x640] sm:$0xff]  ;;  %v15366_v34 = vcombine.high %v6551_v40, %v6555_v43  ;;  %11166 = vmatprep.subr.bf16.mxu1 %v15502_v56  ;;  %v6286_v6 = vmax.f32 %v6226_v41, %v6238_v13  ;;  %v15365_v55 = vcombine.low %v6551_v40, %v6555_v43  ;;  %v18594_v33 = vpop.f32.mrf.mxu0  ;;  %v22250_v56 = vld [vmem:[#allocation41_spill] sm:$0xff] }
 0x2fd   : > { %v6683_v16 = vld [vmem:[%s21982_s3 + $0x660] sm:$0xff]  ;;  %v6396_v11 = vadd.f32 %v18373_v60, %v6284_v4  ;;  %11167 = vmatpush2.bf16.msra.mxu1 %v15501_v46  ;;  %v18598_v38 = vadd.f32 %v22250_v56, %v22249_v32 }
 0x2fe   : > { %v15494_v7 = vcombine.high %v6679_v5, %v6683_v16  ;;  %v6543_v22 = vld [vmem:[%s21982_s3 + $0x200] sm:$0xff]  ;;  %v15493_v29 = vcombine.low %v6679_v5, %v6683_v16  ;;  %11115 = vmatprep.subr.bf16.mxu0 %v15366_v34  ;;  %v6398_v13 = vadd.f32 %v18385_v25, %v6286_v6  ;;  %v5621_v27 = vpop.f32.mrf.mxu0  ;;  %v6317_v5 = vsub.s32 4, %v18032_v8 }
 0x2ff   : > { %v6547_v50 = vld [vmem:[%s21982_s3 + $0x220] sm:$0xff]  ;;  %v6321_v16 = vsub.s32 5, %v18032_v8  ;;  %v5695_v60 = vadd.f32 %v18521_v23, %v5621_v27  ;;  %11116 = vmatpush2.bf16.msra.mxu0 %v15365_v55  ;;  %v6444_v4 = vmax.f32 %v6396_v11, 0.0  ;;  %v22252_v55 = vld [vmem:[#allocation53_spill] sm:$0xff]  ;;  %v22255_v27 = vld [vmem:[#allocation54_spill] sm:$0xff] }
 0x300   : > { %v6671_v18 = vld [vmem:[%s21982_s3 + $0x600] sm:$0xff]  ;;  %v15358_v42 = vcombine.high %v6543_v22, %v6547_v50  ;;  %11168 = vmatprep.subr.bf16.mxu1 %v15494_v7  ;;  %v15357_v46 = vcombine.low %v6543_v22, %v6547_v50  ;;  %v5623_v57 = vpop.f32.mrf.mxu0  ;;  %v5704_v7 = vpop.f32.mrf.mxu1  ;;  %v6446_v61 = vmax.f32 %v6398_v13, 0.0  ;;  %v22254_v13 = vld [vmem:[#allocation45_spill] sm:$0xff] }
 0x301   : > { %v6675_v54 = vld [vmem:[%s21982_s3 + $0x620] sm:$0xff]  ;;  %11169 = vmatpush2.bf16.msra.mxu1 %v15493_v29  ;;  %v5697_v23 = vadd.f32 %v18547_v24, %v5623_v57  ;;  %v22259_v57 = vld [vmem:[#allocation55_spill] sm:$0xff] }
 0x302   : > { %v22244_v45 = vld [vmem:[#allocation56_spill] sm:$0xff]  ;;  %v15486_v48 = vcombine.high %v6671_v18, %v6675_v54  ;;  %11117 = vmatprep.subr.bf16.mxu0 %v15358_v42  ;;  %v15485_v34 = vcombine.low %v6671_v18, %v6675_v54  ;;  %v6432_v18 = vmax.f32 %v6384_v12, 0.0  ;;  %v5625_v54 = vpop.f32.mrf.mxu0  ;;  %v5681_v12 = vadd.f32 %v18450_v39, %v18545_v21 }
 0x303   : > { %v22245_v20 = vld [vmem:[#allocation52_spill] sm:$0xff]  ;;  %11118 = vmatpush2.bf16.msra.mxu0 %v15357_v46 }
 0x304   : > { %v18585_v10 = vadd.f32 %v22245_v20, %v22244_v45  ;;  %v22246_v3 = vld [vmem:[#allocation28_spill] sm:$0xff]  ;;  %v6167_v45 = vmax.f32 %v18509_v15, %v5695_v60  ;;  %11170 = vmatprep.subr.bf16.mxu1 %v15486_v48  ;;  %v5627_v56 = vpop.f32.mrf.mxu0  ;;  %v18675_v48 = vpack.c.bf16 %v6444_v4, %v6432_v18 }
 0x305   : > { %v22248_v53 = vmax.f32 %v22246_v3, %v22247_v1  ;;  %v18603_v40 = vld [vmem:[%s21982_s3 + $0x9c0] sm:$0xff]  ;;  %v6168_v3 = vmax.f32 %v5677_v30, %v5697_v23  ;;  %v5699_v1 = vadd.f32 %v5698_v58, %v5625_v54  ;;  %11171 = vmatpush2.bf16.msra.mxu1 %v15485_v34  ;;  %v5701_v46 = vadd.f32 %v5700_v36, %v5627_v56 }
 0x306   : > { %v18608_v43 = vld [vmem:[%s21982_s3 + $0x9e0] sm:$0xff]  ;;  %v6180_v28 = vmax.f32 %v18598_v38, %v18585_v10  ;;  %v5631_v39 = vpop.f32.mrf.mxu0  ;;  %11120 = vmatmul.mubr.bf16.vlgmr.msra.gmra.mxu0 %v18082_v59 }
 0x307   : > { %v6274_v52 = vmax.f32 %v22248_v53, %v6214_v9  ;;  %v18618_v41 = vld [vmem:[%s21982_s3 + $0xdc0] sm:$0xff]  ;;  %v15606_v6 = vcombine.high %v18603_v40, %v18608_v43  ;;  %v15605_v53 = vcombine.low %v18603_v40, %v18608_v43  ;;  %v5706_v40 = vpop.f32.mrf.mxu1  ;;  %v6191_v60 = vmax.f32 %v18539_v51, %v5699_v1  ;;  %11129 = vmatprep.mubr.bf16.mxu0 %v18675_v48 }
 0x308   : > { %v18623_v2 = vld [vmem:[%s21982_s3 + $0xde0] sm:$0xff]  ;;  %v6192_v30 = vmax.f32 %v5681_v12, %v5701_v46  ;;  %11173 = vmatmul.mubr.bf16.vlgmr.msra.gmra.mxu1 %v18326_v0  ;;  %v5633_v18 = vpop.f32.mrf.mxu0 }
 0x309   : > { %v6386_v9 = vadd.f32 %v18385_v25, %v6274_v52  ;;  %v15734_v22 = vcombine.high %v18618_v41, %v18623_v2  ;;  %v18640_v25 = vld [vmem:[%s21982_s3 + $0x980] sm:$0xff]  ;;  %11193 = vmatprep.subr.bf16.mxu0 %v15606_v6  ;;  %v15733_v58 = vcombine.low %v18618_v41, %v18623_v2 }
 0x30a   : > { %v18645_v50 = vld [vmem:[%s21982_s3 + $0x9a0] sm:$0xff]  ;;  %11194 = vmatpush1.bf16.msra.mxu0 %v15605_v53 }
 0x30b   : > { %v18650_v15 = vld [vmem:[%s21981_s2] sm:$0xff]  ;;  %v6434_v32 = vmax.f32 %v6386_v9, 0.0  ;;  %v15598_v43 = vcombine.high %v18640_v25, %v18645_v50  ;;  %11246 = vmatprep.subr.bf16.mxu1 %v15734_v22  ;;  %v15597_v51 = vcombine.low %v18640_v25, %v18645_v50  ;;  %v22258_v9 = vld [vmem:[#allocation46_spill] sm:$0xff]  ;;  %v5705_v50 = vadd.f32 %v5704_v7, %v5631_v39  ;;  %v5635_v7 = vpop.f32.mrf.mxu0 }
 0x30c   : > { %v18653_v62 = vrot.slane %v18650_v15, %v6317_v5  ;;  %v18656_v24 = vrot.slane %v18650_v15, %v6321_v16  ;;  %v22251_v20 = vld [vmem:[#allocation44_spill] sm:$0xff]  ;;  %v22256_v5 = vmax.f32 %v22254_v13, %v22255_v27  ;;  %v22260_v34 = vmax.f32 %v22258_v9, %v22259_v57  ;;  %11247 = vmatpush1.bf16.msra.mxu1 %v15733_v58  ;;  %v22267_v57 = vld [vmem:[#allocation50_spill] sm:$0xff] }
 0x30d   : > { %v22253_v29 = vmax.f32 %v22251_v20, %v22252_v55  ;;  %v18666_v52 = vld [vmem:[%s21982_s3 + $0xd80] sm:$0xff]  ;;  %v18695_v21 = vpack.c.bf16 %v6446_v61, %v6434_v32  ;;  %v5708_v61 = vpop.f32.mrf.mxu1  ;;  %v6264_v55 = vmax.f32 %v6180_v28, %v6192_v30  ;;  %11195 = vmatprep.subr.bf16.mxu0 %v15598_v43 }
 0x30e   : > { %v18671_v42 = vld [vmem:[%s21982_s3 + $0xda0] sm:$0xff]  ;;  %v6252_v16 = vmax.f32 %v22256_v5, %v6168_v3  ;;  %v6263_v6 = vmax.f32 %v22260_v34, %v6191_v60  ;;  %v6215_v3 = vmax.f32 %v18566_v37, %v5705_v50  ;;  %v5709_v10 = vadd.f32 %v5708_v61, %v5635_v7  ;;  %11196 = vmatpush1.bf16.msra.mxu0 %v15597_v51  ;;  %v22265_v60 = vld [vmem:[#allocation58_spill] sm:$0xff]  ;;  %v22268_v34 = vld [vmem:[#allocation59_spill] sm:$0xff] }
 0x30f   : > { %v6251_v11 = vmax.f32 %v22253_v29, %v6167_v45  ;;  %v18688_v41 = vld [vmem:[%s21982_s3 + $0x940] sm:$0xff]  ;;  %22257 = vst [vmem:[#allocation25_spill] sm:$0xff] %v18695_v21  ;;  %v15726_v36 = vcombine.high %v18666_v52, %v18671_v42  ;;  %v15725_v45 = vcombine.low %v18666_v52, %v18671_v42  ;;  %11182 = vmatprep.mubr.bf16.mxu1 %v18695_v21 }
 0x310   : > { %v6779_v2 = vld [vmem:[%s21982_s3 + $0x960] sm:$0xff]  ;;  %v6364_v25 = vadd.f32 %v18656_v24, %v6252_v16  ;;  %v6375_v20 = vadd.f32 %v18653_v62, %v6263_v6  ;;  %v5707_v29 = vadd.f32 %v5706_v40, %v5633_v18  ;;  %v6376_v42 = vadd.f32 %v18656_v24, %v6264_v55  ;;  %v22262_v40 = vld [vmem:[#allocation57_spill] sm:$0xff]  ;;  %11130 = vmatmul.mubr.bf16.gmra.mxu0 %v18098_v17 }
 0x311   : > { %v6363_v4 = vadd.f32 %v18653_v62, %v6251_v11  ;;  %v6903_v23 = vld [vmem:[%s21982_s3 + $0xd40] sm:$0xff]  ;;  %v15590_v54 = vcombine.high %v18688_v41, %v6779_v2  ;;  %11248 = vmatprep.subr.bf16.mxu1 %v15726_v36  ;;  %v22264_v16 = vld [vmem:[#allocation49_spill] sm:$0xff]  ;;  %v6239_v39 = vmax.f32 %v18588_v47, %v5709_v10  ;;  %v22269_v47 = vmax.f32 %v22267_v57, %v22268_v34 }
 0x312   : > { %v6907_v22 = vld [vmem:[%s21982_s3 + $0xd60] sm:$0xff]  ;;  %v6423_v52 = vmax.f32 %v6375_v20, 0.0  ;;  %v6216_v32 = vmax.f32 %v18569_v31, %v5707_v29  ;;  %v6412_v56 = vmax.f32 %v6364_v25, 0.0  ;;  %v15589_v31 = vcombine.low %v18688_v41, %v6779_v2  ;;  %11249 = vmatpush1.bf16.msra.mxu1 %v15725_v45 }
 0x313   : > { %v6411_v11 = vmax.f32 %v6363_v4, 0.0  ;;  %v15718_v1 = vcombine.high %v6903_v23, %v6907_v22  ;;  %v6767_v53 = vld [vmem:[%s21982_s3 + $0x900] sm:$0xff]  ;;  %v15717_v13 = vcombine.low %v6903_v23, %v6907_v22  ;;  %v6424_v5 = vmax.f32 %v6376_v42, 0.0  ;;  %11197 = vmatprep.subr.bf16.mxu0 %v15590_v54  ;;  %11183 = vmatmul.mubr.bf16.gmra.mxu1 %v18401_v49 }
 0x314   : > { %v6771_v38 = vld [vmem:[%s21982_s3 + $0x920] sm:$0xff]  ;;  %v22266_v46 = vmax.f32 %v22264_v16, %v22265_v60  ;;  %v6287_v6 = vmax.f32 %v22269_v47, %v6239_v39  ;;  %11198 = vmatpush1.bf16.msra.mxu0 %v15589_v31 }
 0x315   : > { %v6895_v37 = vld [vmem:[%s21982_s3 + $0xd00] sm:$0xff]  ;;  %v18740_v27 = vpack.c.bf16 %v6423_v52, %v6411_v11  ;;  %11250 = vmatprep.subr.bf16.mxu1 %v15718_v1  ;;  %v15582_v36 = vcombine.high %v6767_v53, %v6771_v38  ;;  %v18760_v30 = vpack.c.bf16 %v6424_v5, %v6412_v56  ;;  %v15581_v22 = vcombine.low %v6767_v53, %v6771_v38  ;;  %v18798_v56 = vpop.f32.mrf.mxu1 }
 0x316   : > { %v6899_v28 = vld [vmem:[%s21982_s3 + $0xd20] sm:$0xff]  ;;  %v18745_v4 = vmax.f32 %v22266_v46, %v6216_v32  ;;  %v6399_v25 = vadd.f32 %v18653_v62, %v6287_v6  ;;  %11251 = vmatpush1.bf16.msra.mxu1 %v15717_v13 }
 0x317   : > { %v22261_v58 = vld [vmem:[#allocation48_spill] sm:$0xff]  ;;  %v15710_v51 = vcombine.high %v6895_v37, %v6899_v28  ;;  %22270 = vst [vmem:[#allocation36_spill] sm:$0xff] %v18760_v30  ;;  %11225 = vmatprep.mubr.bf16.mxu0 %v18760_v30  ;;  %v15709_v50 = vcombine.low %v6895_v37, %v6899_v28  ;;  %11199 = vmatprep.subr.bf16.mxu0 %v15582_v36  ;;  %v18796_v37 = vpop.f32.mrf.mxu0 }
 0x318   : > { %v22263_v43 = vmax.f32 %v22261_v58, %v22262_v40  ;;  %v6759_v41 = vld [vmem:[%s21982_s3 + $0x8c0] sm:$0xff]  ;;  %v6447_v29 = vmax.f32 %v6399_v25, 0.0  ;;  %11200 = vmatpush1.bf16.msra.mxu0 %v15581_v22 }
 0x319   : > { %v6763_v2 = vld [vmem:[%s21982_s3 + $0x8e0] sm:$0xff]  ;;  %11252 = vmatprep.subr.bf16.mxu1 %v15710_v51 }
 0x31a   : > { %v6275_v12 = vmax.f32 %v22263_v43, %v6215_v3  ;;  %v6887_v45 = vld [vmem:[%s21982_s3 + $0xcc0] sm:$0xff]  ;;  %v15574_v18 = vcombine.high %v6759_v41, %v6763_v2  ;;  %v15573_v3 = vcombine.low %v6759_v41, %v6763_v2  ;;  %11253 = vmatpush1.bf16.msra.mxu1 %v15709_v50  ;;  %v18800_v43 = vpop.f32.mrf.mxu0 }
 0x31b   : > { %v6891_v23 = vld [vmem:[%s21982_s3 + $0xce0] sm:$0xff]  ;;  %v18808_v5 = vpop.f32.mrf.mxu1 }
 0x31c   : > { %v6387_v9 = vadd.f32 %v18653_v62, %v6275_v12  ;;  %v15702_v61 = vcombine.high %v6887_v45, %v6891_v23  ;;  %v6751_v54 = vld [vmem:[%s21982_s3 + $0x880] sm:$0xff]  ;;  %11201 = vmatprep.subr.bf16.mxu0 %v15574_v18  ;;  %v15701_v7 = vcombine.low %v6887_v45, %v6891_v23  ;;  %v18816_v46 = vpop.f32.mrf.mxu0 }
 0x31d   : > { %v6755_v20 = vld [vmem:[%s21982_s3 + $0x8a0] sm:$0xff]  ;;  %11202 = vmatpush1.bf16.msra.mxu0 %v15573_v3  ;;  %v18818_v36 = vpop.f32.mrf.mxu1 }
 0x31e   : > { %v6435_v55 = vmax.f32 %v6387_v9, 0.0  ;;  %v6879_v62 = vld [vmem:[%s21982_s3 + $0xc80] sm:$0xff]  ;;  %v15566_v1 = vcombine.high %v6751_v54, %v6755_v20  ;;  %11254 = vmatprep.subr.bf16.mxu1 %v15702_v61  ;;  %v15565_v28 = vcombine.low %v6751_v54, %v6755_v20  ;;  %v18820_v2 = vpop.f32.mrf.mxu0 }
 0x31f   : > { %v6883_v11 = vld [vmem:[%s21982_s3 + $0xca0] sm:$0xff]  ;;  %11255 = vmatpush1.bf16.msra.mxu1 %v15701_v7  ;;  %v18828_v47 = vpop.f32.mrf.mxu1 }
 0x320   : > { %v18782_v53 = vpack.c.bf16 %v6447_v29, %v6435_v55  ;;  %v15694_v52 = vcombine.high %v6879_v62, %v6883_v11  ;;  %v6743_v42 = vld [vmem:[%s21982_s3 + $0x840] sm:$0xff]  ;;  %11203 = vmatprep.subr.bf16.mxu0 %v15566_v1  ;;  %v15693_v58 = vcombine.low %v6879_v62, %v6883_v11  ;;  %v18836_v23 = vpop.f32.mrf.mxu0 }
 0x321   : > { %v6747_v32 = vld [vmem:[%s21982_s3 + $0x860] sm:$0xff]  ;;  %11204 = vmatpush1.bf16.msra.mxu0 %v15565_v28  ;;  %v18838_v25 = vpop.f32.mrf.mxu1 }
 0x322   : > { %v6871_v10 = vld [vmem:[%s21982_s3 + $0xc40] sm:$0xff]  ;;  %v15558_v40 = vcombine.high %v6743_v42, %v6747_v32  ;;  %11256 = vmatprep.subr.bf16.mxu1 %v15694_v52  ;;  %v15557_v39 = vcombine.low %v6743_v42, %v6747_v32  ;;  %v18840_v61 = vpop.f32.mrf.mxu0 }
 0x323   : > { %v6875_v38 = vld [vmem:[%s21982_s3 + $0xc60] sm:$0xff]  ;;  %11257 = vmatpush1.bf16.msra.mxu1 %v15693_v58  ;;  %v18848_v29 = vpop.f32.mrf.mxu1 }
 0x324   : > { %v15686_v12 = vcombine.high %v6871_v10, %v6875_v38  ;;  %v6735_v31 = vld [vmem:[%s21982_s3 + $0x800] sm:$0xff]  ;;  %11205 = vmatprep.subr.bf16.mxu0 %v15558_v40  ;;  %v15685_v51 = vcombine.low %v6871_v10, %v6875_v38  ;;  %v18856_v3 = vpop.f32.mrf.mxu0  ;;  %v22272_v10 = vld [vmem:[#allocation61_spill] sm:$0xff] }
 0x325   : > { %v6739_v13 = vld [vmem:[%s21982_s3 + $0x820] sm:$0xff]  ;;  %11206 = vmatpush1.bf16.msra.mxu0 %v15557_v39  ;;  %v18858_v1 = vpop.f32.mrf.mxu1 }
 0x326   : > { %v6863_v16 = vld [vmem:[%s21982_s3 + $0xc00] sm:$0xff]  ;;  %v15550_v41 = vcombine.high %v6735_v31, %v6739_v13  ;;  %11258 = vmatprep.subr.bf16.mxu1 %v15686_v12  ;;  %v15549_v22 = vcombine.low %v6735_v31, %v6739_v13  ;;  %v18864_v28 = vpop.f32.mrf.mxu0  ;;  %v22274_v13 = vld [vmem:[#allocation75_spill] sm:$0xff] }
 0x327   : > { %v6867_v60 = vld [vmem:[%s21982_s3 + $0xc20] sm:$0xff]  ;;  %11259 = vmatpush1.bf16.msra.mxu1 %v15685_v51 }
 0x328   : > { %v15678_v9 = vcombine.high %v6863_v16, %v6867_v60  ;;  %v6855_v57 = vld [vmem:[%s21982_s3 + $0xbc0] sm:$0xff]  ;;  %11207 = vmatprep.subr.bf16.mxu0 %v15550_v41  ;;  %v15677_v50 = vcombine.low %v6863_v16, %v6867_v60  ;;  %v18880_v60 = vpop.f32.mrf.mxu1  ;;  %v22275_v41 = vld [vmem:[#allocation51_spill] sm:$0xff] }
 0x329   : > { %v6859_v34 = vld [vmem:[%s21982_s3 + $0xbe0] sm:$0xff]  ;;  %11208 = vmatpush1.bf16.msra.mxu0 %v15549_v22  ;;  %v22277_v22 = vld [vmem:[#allocation66_spill] sm:$0xff] }
 0x32a   : > { %v6983_v6 = vld [vmem:[%s21982_s3 + $0xfc0] sm:$0xff]  ;;  %v15670_v18 = vcombine.high %v6855_v57, %v6859_v34  ;;  %11260 = vmatprep.subr.bf16.mxu1 %v15678_v9  ;;  %v15669_v7 = vcombine.low %v6855_v57, %v6859_v34  ;;  %v22276_v9 = vld [vmem:[#allocation43_spill] sm:$0xff]  ;;  %v18896_v34 = vpop.f32.mrf.mxu0 }
 0x32b   : > { %v6987_v45 = vld [vmem:[%s21982_s3 + $0xfe0] sm:$0xff]  ;;  %11261 = vmatpush1.bf16.msra.mxu1 %v15677_v50  ;;  %v18894_v57 = vadd.f32 %v22276_v9, %v22275_v41  ;;  %v22278_v50 = vld [vmem:[#allocation65_spill] sm:$0xff]  ;;  %v22282_v41 = vld [vmem:[#allocation82_spill] sm:$0xff] }
 0x32c   : > { %v15798_v54 = vcombine.high %v6983_v6, %v6987_v45  ;;  %v6847_v20 = vld [vmem:[%s21982_s3 + $0xb80] sm:$0xff]  ;;  %11209 = vmatprep.subr.bf16.mxu0 %v15670_v18  ;;  %v15797_v52 = vcombine.low %v6983_v6, %v6987_v45  ;;  %v6325_v6 = vsub.s32 6, %v18032_v8  ;;  %v18901_v18 = vadd.f32 %v22278_v50, %v22277_v22 }
 0x32d   : > { %v6851_v55 = vld [vmem:[%s21982_s3 + $0xba0] sm:$0xff]  ;;  %11210 = vmatpush2.bf16.msra.mxu0 %v15669_v7 }
 0x32e   : > { %v6975_v62 = vld [vmem:[%s21982_s3 + $0xf80] sm:$0xff]  ;;  %v15662_v42 = vcombine.high %v6847_v20, %v6851_v55  ;;  %11262 = vmatprep.subr.bf16.mxu1 %v15798_v54  ;;  %v15661_v45 = vcombine.low %v6847_v20, %v6851_v55  ;;  %v18903_v54 = vpop.f32.mrf.mxu1 }
 0x32f   : > { %v6979_v11 = vld [vmem:[%s21982_s3 + $0xfa0] sm:$0xff]  ;;  %11263 = vmatpush2.bf16.msra.mxu1 %v15797_v52 }
 0x330   : > { %v22271_v32 = vld [vmem:[#allocation60_spill] sm:$0xff]  ;;  %v15790_v58 = vcombine.high %v6975_v62, %v6979_v11  ;;  %11211 = vmatprep.subr.bf16.mxu0 %v15662_v42  ;;  %v5767_v22 = vpop.f32.mrf.mxu1 }
 0x331   : > { %v18862_v38 = vadd.f32 %v22272_v10, %v22271_v32  ;;  %v18869_v40 = vld [vmem:[%s21982_s3 + $0xb40] sm:$0xff]  ;;  %v15789_v32 = vcombine.low %v6975_v62, %v6979_v11  ;;  %v6329_v10 = vsub.s32 7, %v18032_v8  ;;  %v22279_v62 = vld [vmem:[#allocation71_spill] sm:$0xff]  ;;  %v22280_v11 = vld [vmem:[#allocation70_spill] sm:$0xff]  ;;  %11212 = vmatpush2.bf16.msra.mxu0 %v15661_v45  ;;  %v5823_v45 = vadd.f32 %v18816_v46, %v18818_v36 }
 0x332   : > { %v18874_v12 = vld [vmem:[%s21982_s3 + $0xb60] sm:$0xff]  ;;  %11264 = vmatprep.subr.bf16.mxu1 %v15790_v58  ;;  %v18924_v52 = vadd.f32 %v22280_v11, %v22279_v62 }
 0x333   : > { %v22273_v31 = vld [vmem:[#allocation76_spill] sm:$0xff]  ;;  %v15653_v50 = vcombine.low %v18869_v40, %v18874_v12  ;;  %11265 = vmatpush2.bf16.msra.mxu1 %v15789_v32 }
 0x334   : > { %v18878_v16 = vadd.f32 %v22274_v13, %v22273_v31  ;;  %v18885_v39 = vld [vmem:[%s21982_s3 + $0xf40] sm:$0xff]  ;;  %v15654_v31 = vcombine.high %v18869_v40, %v18874_v12  ;;  %v5840_v13 = vpop.f32.mrf.mxu0  ;;  %v18952_v40 = vrot.slane %v18650_v15, %v6325_v6  ;;  %v18972_v6 = vrot.slane %v18650_v15, %v6329_v10 }
 0x335   : > { %v18890_v51 = vld [vmem:[%s21982_s3 + $0xf60] sm:$0xff] }
 0x336   : > { %v15782_v20 = vcombine.high %v18885_v39, %v18890_v51  ;;  %v18915_v55 = vld [vmem:[%s21982_s3 + $0xb00] sm:$0xff]  ;;  %v5842_v12 = vpop.f32.mrf.mxu0  ;;  %v15781_v42 = vcombine.low %v18885_v39, %v18890_v51  ;;  %11213 = vmatprep.subr.bf16.mxu0 %v15654_v31 }
 0x337   : > { %v18920_v8 = vld [vmem:[%s21982_s3 + $0xb20] sm:$0xff]  ;;  %11214 = vmatpush2.bf16.msra.mxu0 %v15653_v50 }
 0x338   : > { %v22281_v58 = vld [vmem:[#allocation80_spill] sm:$0xff]  ;;  %v15645_v39 = vcombine.low %v18915_v55, %v18920_v8  ;;  %v15646_v51 = vcombine.high %v18915_v55, %v18920_v8  ;;  %v5844_v0 = vpop.f32.mrf.mxu0  ;;  %11266 = vmatprep.subr.bf16.mxu1 %v15782_v20  ;;  %v5825_v8 = vadd.f32 %v18820_v2, %v18828_v47  ;;  %v5711_v2 = vadd.f32 %v18798_v56, %v18796_v37  ;;  %v22286_v56 = vld [vmem:[#allocation63_spill] sm:$0xff] }
 0x339   : > { %v18930_v9 = vadd.f32 %v22282_v41, %v22281_v58  ;;  %v18937_v7 = vld [vmem:[%s21982_s3 + $0xf00] sm:$0xff]  ;;  %v5821_v58 = vadd.f32 %v18800_v43, %v18808_v5  ;;  %v5841_v41 = vadd.f32 %v5840_v13, %v5767_v22  ;;  %v5769_v5 = vpop.f32.mrf.mxu1  ;;  %11267 = vmatpush2.bf16.msra.mxu1 %v15781_v42  ;;  %v5827_v37 = vadd.f32 %v18836_v23, %v18838_v25  ;;  %v22287_v42 = vld [vmem:[#allocation73_spill] sm:$0xff] }
 0x33a   : > { %v18942_v62 = vld [vmem:[%s21982_s3 + $0xf20] sm:$0xff]  ;;  %v5843_v22 = vadd.f32 %v5842_v12, %v5769_v5  ;;  %11215 = vmatprep.subr.bf16.mxu0 %v15646_v51  ;;  %v22288_v51 = vmax.f32 %v22286_v56, %v22287_v42  ;;  %v22292_v56 = vmax.f32 %v18901_v18, %v18878_v16 }
 0x33b   : > { %v18947_v11 = vld [vmem:[%s21982_s3 + $0xac0] sm:$0xff]  ;;  %v6169_v13 = vmax.f32 %v5821_v58, %v5841_v41  ;;  %v15774_v32 = vcombine.high %v18937_v7, %v18942_v62  ;;  %v5771_v31 = vpop.f32.mrf.mxu1  ;;  %v15773_v46 = vcombine.low %v18937_v7, %v18942_v62  ;;  %v22283_v58 = vld [vmem:[#allocation62_spill] sm:$0xff]  ;;  %v5846_v7 = vpop.f32.mrf.mxu0  ;;  %11216 = vmatpush2.bf16.msra.mxu0 %v15645_v39 }
 0x33c   : > { %v18959_v49 = vld [vmem:[%s21982_s3 + $0xae0] sm:$0xff]  ;;  %v6170_v30 = vmax.f32 %v5823_v45, %v5843_v22  ;;  %v5845_v17 = vadd.f32 %v5844_v0, %v5771_v31  ;;  %v5691_v31 = vadd.f32 %v18494_v63, %v18594_v33 }
 0x33d   : > { %v18964_v21 = vld [vmem:[%s21982_s3 + $0xec0] sm:$0xff]  ;;  %v15637_v36 = vcombine.low %v18947_v11, %v18959_v49  ;;  %v15638_v20 = vcombine.high %v18947_v11, %v18959_v49  ;;  %v5773_v47 = vpop.f32.mrf.mxu1  ;;  %v5850_v22 = vpop.f32.mrf.mxu0  ;;  %11268 = vmatprep.subr.bf16.mxu1 %v15774_v32 }
 0x33e   : > { %v18969_v43 = vld [vmem:[%s21982_s3 + $0xee0] sm:$0xff]  ;;  %11269 = vmatpush2.bf16.msra.mxu1 %v15773_v46 }
 0x33f   : > { %v18985_v15 = vld [vmem:[%s21982_s3 + $0xa80] sm:$0xff]  ;;  %v15765_v55 = vcombine.low %v18964_v21, %v18969_v43  ;;  %v15766_v0 = vcombine.high %v18964_v21, %v18969_v43  ;;  %v6254_v21 = vmax.f32 %v22288_v51, %v6170_v30  ;;  %v6193_v43 = vmax.f32 %v5825_v8, %v5845_v17  ;;  %v22290_v17 = vld [vmem:[#allocation74_spill] sm:$0xff]  ;;  %11217 = vmatprep.subr.bf16.mxu0 %v15638_v20 }
 0x340   : > { %v18990_v10 = vld [vmem:[%s21982_s3 + $0xaa0] sm:$0xff]  ;;  %11218 = vmatpush2.bf16.msra.mxu0 %v15637_v36 }
 0x341   : > { %v22284_v41 = vld [vmem:[#allocation72_spill] sm:$0xff]  ;;  %v15630_v50 = vcombine.high %v18985_v15, %v18990_v10  ;;  %11270 = vmatprep.subr.bf16.mxu1 %v15766_v0  ;;  %v22293_v0 = vmax.f32 %v18894_v57, %v18862_v38  ;;  %v6230_v57 = vmax.f32 %v18924_v52, %v18930_v9 }
 0x342   : > { %v22285_v12 = vmax.f32 %v22283_v58, %v22284_v41  ;;  %v19008_v62 = vld [vmem:[%s21982_s3 + $0xe80] sm:$0xff]  ;;  %v5777_v58 = vpop.f32.mrf.mxu1  ;;  %v15629_v41 = vcombine.low %v18985_v15, %v18990_v10  ;;  %v6240_v10 = vmax.f32 %v5691_v31, %v5711_v2  ;;  %v5833_v2 = vadd.f32 %v18856_v3, %v18858_v1  ;;  %v22294_v3 = vld [vmem:[#allocation67_spill] sm:$0xff]  ;;  %v22295_v1 = vld [vmem:[#allocation77_spill] sm:$0xff]  ;;  %11271 = vmatpush2.bf16.msra.mxu1 %v15765_v55 }
 0x343   : > { %v19013_v49 = vld [vmem:[%s21982_s3 + $0xea0] sm:$0xff]  ;;  %11219 = vmatprep.subr.bf16.mxu0 %v15630_v50  ;;  %v5837_v55 = vadd.f32 %v18896_v34, %v18903_v54 }
 0x344   : > { %v6253_v5 = vmax.f32 %v22285_v12, %v6169_v13  ;;  %v19024_v11 = vld [vmem:[%s21982_s3 + $0xa40] sm:$0xff]  ;;  %v5847_v13 = vadd.f32 %v5846_v7, %v5773_v47  ;;  %v15757_v12 = vcombine.low %v19008_v62, %v19013_v49  ;;  %v15758_v23 = vcombine.high %v19008_v62, %v19013_v49  ;;  %v5852_v47 = vpop.f32.mrf.mxu0  ;;  %v5779_v39 = vpop.f32.mrf.mxu1  ;;  %11220 = vmatpush2.bf16.msra.mxu0 %v15629_v41 }
 0x345   : > { %v19029_v45 = vld [vmem:[%s21982_s3 + $0xa60] sm:$0xff]  ;;  %v5851_v62 = vadd.f32 %v5850_v22, %v5777_v58  ;;  %v6366_v49 = vadd.f32 %v18972_v6, %v6254_v21  ;;  %v5853_v51 = vadd.f32 %v5852_v47, %v5779_v39  ;;  %v6288_v31 = vmax.f32 %v22293_v0, %v6240_v10 }
 0x346   : > { %v6365_v25 = vadd.f32 %v18952_v40, %v6253_v5  ;;  %v22289_v30 = vld [vmem:[#allocation64_spill] sm:$0xff]  ;;  %v6194_v32 = vmax.f32 %v5827_v37, %v5847_v13  ;;  %v15622_v63 = vcombine.high %v19024_v11, %v19029_v45  ;;  %v5831_v5 = vadd.f32 %v18840_v61, %v18848_v29  ;;  %v5781_v46 = vpop.f32.mrf.mxu1  ;;  %11272 = vmatprep.subr.bf16.mxu1 %v15758_v23 }
 0x347   : > { %v22291_v8 = vmax.f32 %v22289_v30, %v22290_v17  ;;  %v19053_v33 = vld [vmem:[%s21982_s3 + $0xe40] sm:$0xff]  ;;  %v5835_v61 = vadd.f32 %v18864_v28, %v18880_v60  ;;  %v22296_v58 = vmax.f32 %v22294_v3, %v22295_v1  ;;  %v6218_v60 = vmax.f32 %v5833_v2, %v5853_v51  ;;  %11273 = vmatpush2.bf16.msra.mxu1 %v15757_v12 }
 0x348   : > { %v19058_v15 = vld [vmem:[%s21982_s3 + $0xe60] sm:$0xff]  ;;  %v6266_v42 = vmax.f32 %v22292_v56, %v6194_v32  ;;  %v6217_v29 = vmax.f32 %v5831_v5, %v5851_v62  ;;  %v6413_v21 = vmax.f32 %v6365_v25, 0.0  ;;  %v5783_v30 = vpop.f32.mrf.mxu1  ;;  %v6414_v17 = vmax.f32 %v6366_v49, 0.0  ;;  %v22297_v5 = vld [vmem:[#allocation69_spill] sm:$0xff]  ;;  %v22298_v62 = vld [vmem:[#allocation79_spill] sm:$0xff]  ;;  %11221 = vmatprep.subr.bf16.mxu0 %v15622_v63 }
 0x349   : > { %v6265_v7 = vmax.f32 %v22291_v8, %v6193_v43  ;;  %v5854_v43 = vpop.f32.mrf.mxu0  ;;  %v15750_v20 = vcombine.high %v19053_v33, %v19058_v15  ;;  %v6799_v36 = vld [vmem:[%s21982_s3 + $0xa00] sm:$0xff]  ;;  %v15621_v32 = vcombine.low %v19024_v11, %v19029_v45  ;;  %v22299_v52 = vmax.f32 %v22297_v5, %v22298_v62  ;;  %v22301_v45 = vld [vmem:[#allocation78_spill] sm:$0xff] }
 0x34a   : > { %v6378_v22 = vadd.f32 %v18972_v6, %v6266_v42  ;;  %v5855_v16 = vadd.f32 %v5854_v43, %v5781_v46  ;;  %v6277_v28 = vmax.f32 %v22296_v58, %v6217_v29  ;;  %v6803_v38 = vld [vmem:[%s21982_s3 + $0xa20] sm:$0xff]  ;;  %v15749_v54 = vcombine.low %v19053_v33, %v19058_v15 }
 0x34b   : > { %v6377_v37 = vadd.f32 %v18952_v40, %v6265_v7  ;;  %v5856_v18 = vpop.f32.mrf.mxu0  ;;  %v6927_v23 = vld [vmem:[%s21982_s3 + $0xe00] sm:$0xff]  ;;  %v15614_v56 = vcombine.high %v6799_v36, %v6803_v38  ;;  %v6400_v42 = vadd.f32 %v18656_v24, %v6288_v31  ;;  %11274 = vmatprep.subr.bf16.mxu1 %v15750_v20  ;;  %v15613_v12 = vcombine.low %v6799_v36, %v6803_v38 }
 0x34c   : > { %v6426_v8 = vmax.f32 %v6378_v22, 0.0  ;;  %v6241_v7 = vmax.f32 %v5835_v61, %v5855_v16  ;;  %v5857_v50 = vadd.f32 %v5856_v18, %v5783_v30  ;;  %v6931_v47 = vld [vmem:[%s21982_s3 + $0xe20] sm:$0xff]  ;;  %v6389_v10 = vadd.f32 %v18952_v40, %v6277_v28  ;;  %11222 = vmatpush2.bf16.msra.mxu0 %v15621_v32  ;;  %11275 = vmatpush2.bf16.msra.mxu1 %v15749_v54 }
 0x34d   : > { %v6425_v13 = vmax.f32 %v6377_v37, 0.0  ;;  %v22300_v11 = vld [vmem:[#allocation68_spill] sm:$0xff]  ;;  %v15742_v41 = vcombine.high %v6927_v23, %v6931_v47  ;;  %v6388_v2 = vadd.f32 %v18656_v24, %v18745_v4  ;;  %v15741_v46 = vcombine.low %v6927_v23, %v6931_v47  ;;  %11223 = vmatprep.subr.bf16.mxu0 %v15614_v56 }
 0x34e   : > { %v6289_v9 = vmax.f32 %v22299_v52, %v6241_v7  ;;  %v19104_v34 = vpack.c.bf16 %v6426_v8, %v6414_v17  ;;  %v22302_v39 = vmax.f32 %v22300_v11, %v22301_v45  ;;  %v6242_v37 = vmax.f32 %v5837_v55, %v5857_v50  ;;  %v7047_v33 = vld [vmem:[%s21982_s3 + $0x11c0] sm:$0xff]  ;;  %v19146_v17 = vpop.f32.mrf.mxu1 }
 0x34f   : > { %v19080_v25 = vpack.c.bf16 %v6425_v13, %v6413_v21  ;;  %v7051_v15 = vld [vmem:[%s21982_s3 + $0x11e0] sm:$0xff]  ;;  %v6437_v61 = vmax.f32 %v6389_v10, 0.0  ;;  %v6448_v22 = vmax.f32 %v6400_v42, 0.0  ;;  %11276 = vmatprep.subr.bf16.mxu1 %v15742_v41  ;;  %v6436_v31 = vmax.f32 %v6388_v2, 0.0 }
 0x350   : > { %v6278_v49 = vmax.f32 %v22302_v39, %v6218_v60  ;;  %v6401_v51 = vadd.f32 %v18952_v40, %v6289_v9  ;;  %11278 = vmatprep.mubr.bf16.mxu1 %v19104_v34  ;;  %v6290_v43 = vmax.f32 %v6230_v57, %v6242_v37  ;;  %v7175_v63 = vld [vmem:[%s21982_s3 + $0x15c0] sm:$0xff]  ;;  %v15862_v13 = vcombine.high %v7047_v33, %v7051_v15  ;;  %v19166_v50 = vpop.f32.mrf.mxu1 }
 0x351   : > { %v7179_v40 = vld [vmem:[%s21982_s3 + $0x15e0] sm:$0xff]  ;;  %11224 = vmatpush2.bf16.msra.mxu0 %v15613_v12  ;;  %11277 = vmatpush2.bf16.msra.mxu1 %v15741_v46  ;;  %v15861_v58 = vcombine.low %v7047_v33, %v7051_v15  ;;  %v19144_v28 = vpack.c.bf16 %v6448_v22, %v6436_v31 }
 0x352   : > { %v6449_v29 = vmax.f32 %v6401_v51, 0.0  ;;  %v6390_v20 = vadd.f32 %v18972_v6, %v6278_v49  ;;  %v6402_v21 = vadd.f32 %v18972_v6, %v6290_v43  ;;  %v15990_v18 = vcombine.high %v7175_v63, %v7179_v40  ;;  %v7039_v24 = vld [vmem:[%s21982_s3 + $0x1180] sm:$0xff]  ;;  %11299 = vmatprep.subr.bf16.mxu0 %v15862_v13  ;;  %v19168_v10 = vpop.f32.mrf.mxu1 }
 0x353   : > { %v7043_v4 = vld [vmem:[%s21982_s3 + $0x11a0] sm:$0xff]  ;;  %v15989_v30 = vcombine.low %v7175_v63, %v7179_v40 }
 0x354   : > { %v19130_v16 = vpack.c.bf16 %v6449_v29, %v6437_v61  ;;  %v6450_v0 = vmax.f32 %v6402_v21, 0.0  ;;  %v7167_v6 = vld [vmem:[%s21982_s3 + $0x1580] sm:$0xff]  ;;  %v6438_v1 = vmax.f32 %v6390_v20, 0.0  ;;  %v15854_v60 = vcombine.high %v7039_v24, %v7043_v4  ;;  %11352 = vmatprep.subr.bf16.mxu1 %v15990_v18  ;;  %11226 = vmatmul.mubr.bf16.vlgmr.msra.gmra.mxu0 %v18740_v27  ;;  %v19182_v11 = vpop.f32.mrf.mxu1 }
 0x355   : > { %v7171_v3 = vld [vmem:[%s21982_s3 + $0x15a0] sm:$0xff]  ;;  %11279 = vmatmul.mubr.bf16.vlgmr.msra.gmra.mxu1 %v19080_v25  ;;  %11235 = vmatprep.mubr.bf16.mxu0 %v19144_v28  ;;  %v15853_v32 = vcombine.low %v7039_v24, %v7043_v4 }
 0x356   : > { %v19149_v8 = vpack.c.bf16 %v6450_v0, %v6438_v1  ;;  %v7031_v7 = vld [vmem:[%s21982_s3 + $0x1140] sm:$0xff]  ;;  %v15982_v38 = vcombine.high %v7167_v6, %v7171_v3  ;;  %11300 = vmatpush1.bf16.msra.mxu0 %v15861_v58  ;;  %11353 = vmatpush1.bf16.msra.mxu1 %v15989_v30  ;;  %v15981_v47 = vcombine.low %v7167_v6, %v7171_v3  ;;  %v19191_v42 = vpop.f32.mrf.mxu1 }
 0x357   : > { %v7035_v36 = vld [vmem:[%s21982_s3 + $0x1160] sm:$0xff]  ;;  %11301 = vmatprep.subr.bf16.mxu0 %v15854_v60 }
 0x358   : > { %v7159_v57 = vld [vmem:[%s21982_s3 + $0x1540] sm:$0xff]  ;;  %11288 = vmatprep.mubr.bf16.mxu1 %v19149_v8  ;;  %v15846_v23 = vcombine.high %v7031_v7, %v7035_v36  ;;  %11354 = vmatprep.subr.bf16.mxu1 %v15982_v38  ;;  %v15845_v45 = vcombine.low %v7031_v7, %v7035_v36  ;;  %v19200_v43 = vpop.f32.mrf.mxu1 }
 0x359   : > { %v7163_v55 = vld [vmem:[%s21982_s3 + $0x1560] sm:$0xff] }
 0x35a   : > { %v7023_v5 = vld [vmem:[%s21982_s3 + $0x1100] sm:$0xff]  ;;  %v15974_v52 = vcombine.high %v7159_v57, %v7163_v55  ;;  %11302 = vmatpush1.bf16.msra.mxu0 %v15853_v32  ;;  %11355 = vmatpush1.bf16.msra.mxu1 %v15981_v47  ;;  %v15973_v49 = vcombine.low %v7159_v57, %v7163_v55  ;;  %v19208_v61 = vpop.f32.mrf.mxu1  ;;  %v19230_v1 = vpop.f32.mrf.mxu0 }
 0x35b   : > { %v7027_v62 = vld [vmem:[%s21982_s3 + $0x1120] sm:$0xff]  ;;  %11303 = vmatprep.subr.bf16.mxu0 %v15846_v23 }
 0x35c   : > { %v7151_v9 = vld [vmem:[%s21982_s3 + $0x1500] sm:$0xff]  ;;  %v15838_v39 = vcombine.high %v7023_v5, %v7027_v62  ;;  %11236 = vmatmul.mubr.bf16.gmra.mxu0 %v18782_v53  ;;  %11356 = vmatprep.subr.bf16.mxu1 %v15974_v52  ;;  %v15837_v15 = vcombine.low %v7023_v5, %v7027_v62  ;;  %v19222_v24 = vpop.f32.mrf.mxu1  ;;  %v19240_v57 = vpop.f32.mrf.mxu0 }
 0x35d   : > { %v7155_v54 = vld [vmem:[%s21982_s3 + $0x1520] sm:$0xff]  ;;  %11289 = vmatmul.mubr.bf16.gmra.mxu1 %v19130_v16 }
 0x35e   : > { %v7015_v37 = vld [vmem:[%s21982_s3 + $0x10c0] sm:$0xff]  ;;  %v15966_v51 = vcombine.high %v7151_v9, %v7155_v54  ;;  %11304 = vmatpush1.bf16.msra.mxu0 %v15845_v45  ;;  %11357 = vmatpush1.bf16.msra.mxu1 %v15973_v49  ;;  %v15965_v63 = vcombine.low %v7151_v9, %v7155_v54  ;;  %v19238_v36 = vpop.f32.mrf.mxu1  ;;  %v19248_v47 = vpop.f32.mrf.mxu0 }
 0x35f   : > { %v7019_v56 = vld [vmem:[%s21982_s3 + $0x10e0] sm:$0xff]  ;;  %11305 = vmatprep.subr.bf16.mxu0 %v15838_v39 }
 0x360   : > { %v7143_v41 = vld [vmem:[%s21982_s3 + $0x14c0] sm:$0xff]  ;;  %v15830_v12 = vcombine.high %v7015_v37, %v7019_v56  ;;  %11358 = vmatprep.subr.bf16.mxu1 %v15966_v51  ;;  %v15829_v21 = vcombine.low %v7015_v37, %v7019_v56  ;;  %v19256_v54 = vpop.f32.mrf.mxu1  ;;  %v19258_v39 = vpop.f32.mrf.mxu0 }
 0x361   : > { %v7147_v33 = vld [vmem:[%s21982_s3 + $0x14e0] sm:$0xff] }
 0x362   : > { %v7007_v40 = vld [vmem:[%s21982_s3 + $0x1080] sm:$0xff]  ;;  %v15958_v29 = vcombine.high %v7143_v41, %v7147_v33  ;;  %11306 = vmatpush1.bf16.msra.mxu0 %v15837_v15  ;;  %11359 = vmatpush1.bf16.msra.mxu1 %v15965_v63  ;;  %v15957_v22 = vcombine.low %v7143_v41, %v7147_v33  ;;  %v19266_v51 = vpop.f32.mrf.mxu0  ;;  %v5990_v63 = vpop.f32.mrf.mxu1 }
 0x363   : > { %v7011_v2 = vld [vmem:[%s21982_s3 + $0x10a0] sm:$0xff]  ;;  %11307 = vmatprep.subr.bf16.mxu0 %v15830_v12 }
 0x364   : > { %v7135_v46 = vld [vmem:[%s21982_s3 + $0x1480] sm:$0xff]  ;;  %v15822_v13 = vcombine.high %v7007_v40, %v7011_v2  ;;  %11360 = vmatprep.subr.bf16.mxu1 %v15958_v29  ;;  %v15821_v3 = vcombine.low %v7007_v40, %v7011_v2  ;;  %v19274_v2 = vpop.f32.mrf.mxu0 }
 0x365   : > { %v7139_v20 = vld [vmem:[%s21982_s3 + $0x14a0] sm:$0xff] }
 0x366   : > { %v6999_v18 = vld [vmem:[%s21982_s3 + $0x1040] sm:$0xff]  ;;  %v15950_v4 = vcombine.high %v7135_v46, %v7139_v20  ;;  %11308 = vmatpush1.bf16.msra.mxu0 %v15829_v21  ;;  %11361 = vmatpush1.bf16.msra.mxu1 %v15957_v22  ;;  %v15949_v60 = vcombine.low %v7135_v46, %v7139_v20  ;;  %v19282_v21 = vpop.f32.mrf.mxu0 }
 0x367   : > { %v7003_v0 = vld [vmem:[%s21982_s3 + $0x1060] sm:$0xff]  ;;  %11309 = vmatprep.subr.bf16.mxu0 %v15822_v13 }
 0x368   : > { %v7127_v31 = vld [vmem:[%s21982_s3 + $0x1440] sm:$0xff]  ;;  %v15814_v58 = vcombine.high %v6999_v18, %v7003_v0  ;;  %11362 = vmatprep.subr.bf16.mxu1 %v15950_v4  ;;  %v15813_v23 = vcombine.low %v6999_v18, %v7003_v0  ;;  %v5992_v4 = vpop.f32.mrf.mxu1 }
 0x369   : > { %v7131_v6 = vld [vmem:[%s21982_s3 + $0x1460] sm:$0xff] }
 0x36a   : > { %v6991_v30 = vld [vmem:[%s21982_s3 + $0x1000] sm:$0xff]  ;;  %v15942_v38 = vcombine.high %v7127_v31, %v7131_v6  ;;  %11310 = vmatpush1.bf16.msra.mxu0 %v15821_v3  ;;  %11363 = vmatpush1.bf16.msra.mxu1 %v15949_v60  ;;  %v15941_v62 = vcombine.low %v7127_v31, %v7131_v6  ;;  %v19294_v60 = vpop.f32.mrf.mxu0 }
 0x36b   : > { %v6995_v7 = vld [vmem:[%s21982_s3 + $0x1020] sm:$0xff]  ;;  %11311 = vmatprep.subr.bf16.mxu0 %v15814_v58 }
 0x36c   : > { %v7119_v55 = vld [vmem:[%s21982_s3 + $0x1400] sm:$0xff]  ;;  %v15806_v5 = vcombine.high %v6991_v30, %v6995_v7  ;;  %11364 = vmatprep.subr.bf16.mxu1 %v15942_v38  ;;  %v15805_v56 = vcombine.low %v6991_v30, %v6995_v7 }
 0x36d   : > { %v7123_v32 = vld [vmem:[%s21982_s3 + $0x1420] sm:$0xff] }
 0x36e   : > { %v7111_v52 = vld [vmem:[%s21982_s3 + $0x13c0] sm:$0xff]  ;;  %v15934_v45 = vcombine.high %v7119_v55, %v7123_v32  ;;  %11312 = vmatpush1.bf16.msra.mxu0 %v15813_v23  ;;  %11365 = vmatpush1.bf16.msra.mxu1 %v15941_v62  ;;  %v15933_v33 = vcombine.low %v7119_v55, %v7123_v32  ;;  %v22305_v55 = vld [vmem:[#allocation87_spill] sm:$0xff]  ;;  %v22306_v32 = vld [vmem:[#allocation81_spill] sm:$0xff] }
 0x36f   : > { %v7115_v9 = vld [vmem:[%s21982_s3 + $0x13e0] sm:$0xff]  ;;  %11313 = vmatprep.subr.bf16.mxu0 %v15806_v5  ;;  %v19304_v23 = vadd.f32 %v22306_v32, %v22305_v55  ;;  %v5913_v5 = vpop.f32.mrf.mxu0  ;;  %v19309_v62 = vld [vmem:[%s21981_s2 + $0x8] sm:$0xf] }
 0x370   : > { %v7239_v49 = vld [vmem:[%s21982_s3 + $0x17c0] sm:$0xff]  ;;  %v15926_v41 = vcombine.high %v7111_v52, %v7115_v9  ;;  %11366 = vmatprep.subr.bf16.mxu1 %v15934_v45  ;;  %v15925_v20 = vcombine.low %v7111_v52, %v7115_v9  ;;  %v22311_v55 = vld [vmem:[#allocation93_spill] sm:$0xff] }
 0x371   : > { %v7243_v37 = vld [vmem:[%s21982_s3 + $0x17e0] sm:$0xff] }
 0x372   : > { %v7103_v15 = vld [vmem:[%s21982_s3 + $0x1380] sm:$0xff]  ;;  %v16054_v40 = vcombine.high %v7239_v49, %v7243_v37  ;;  %11314 = vmatpush1.bf16.msra.mxu0 %v15805_v56  ;;  %11367 = vmatpush1.bf16.msra.mxu1 %v15933_v33  ;;  %v16053_v22 = vcombine.low %v7239_v49, %v7243_v37  ;;  %v5967_v49 = vadd.f32 %v19146_v17, %v19230_v1  ;;  %v5996_v56 = vpop.f32.mrf.mxu1  ;;  %v22307_v17 = vld [vmem:[#allocation91_spill] sm:$0xff] }
 0x373   : > { %v7107_v12 = vld [vmem:[%s21982_s3 + $0x13a0] sm:$0xff]  ;;  %11315 = vmatprep.subr.bf16.mxu0 %v15926_v41  ;;  %v5987_v37 = vadd.f32 %v19238_v36, %v5913_v5  ;;  %v22308_v1 = vld [vmem:[#allocation83_spill] sm:$0xff] }
 0x374   : > { %v7231_v29 = vld [vmem:[%s21982_s3 + $0x1780] sm:$0xff]  ;;  %v15918_v13 = vcombine.high %v7103_v15, %v7107_v12  ;;  %11368 = vmatprep.subr.bf16.mxu1 %v16054_v40  ;;  %v15917_v38 = vcombine.low %v7103_v15, %v7107_v12  ;;  %v19336_v36 = vadd.f32 %v22308_v1, %v22307_v17 }
 0x375   : > { %v7235_v46 = vld [vmem:[%s21982_s3 + $0x17a0] sm:$0xff] }
 0x376   : > { %v7095_v18 = vld [vmem:[%s21982_s3 + $0x1340] sm:$0xff]  ;;  %v16046_v31 = vcombine.high %v7231_v29, %v7235_v46  ;;  %11316 = vmatpush2.bf16.msra.mxu0 %v15925_v20  ;;  %11369 = vmatpush2.bf16.msra.mxu1 %v16053_v22  ;;  %v16045_v45 = vcombine.low %v7231_v29, %v7235_v46  ;;  %v5915_v29 = vpop.f32.mrf.mxu0  ;;  %v5969_v20 = vadd.f32 %v19166_v50, %v19240_v57  ;;  %v22309_v22 = vld [vmem:[#allocation126_spill] sm:$0xff] }
 0x377   : > { %v7099_v0 = vld [vmem:[%s21982_s3 + $0x1360] sm:$0xff]  ;;  %11317 = vmatprep.subr.bf16.mxu0 %v15918_v13  ;;  %v6171_v13 = vmax.f32 %v5967_v49, %v5987_v37  ;;  %v5998_v37 = vpop.f32.mrf.mxu1 }
 0x378   : > { %v22303_v6 = vld [vmem:[#allocation96_spill] sm:$0xff]  ;;  %v15910_v52 = vcombine.high %v7095_v18, %v7099_v0  ;;  %11370 = vmatprep.subr.bf16.mxu1 %v16046_v31  ;;  %v15909_v46 = vcombine.low %v7095_v18, %v7099_v0  ;;  %v19344_v31 = vrot.slane %v19309_v62, %v22309_v22  ;;  %v5917_v0 = vpop.f32.mrf.mxu0 }
 0x379   : > { %v22304_v3 = vld [vmem:[#allocation92_spill] sm:$0xff]  ;;  %v5991_v49 = vadd.f32 %v5990_v63, %v5917_v0 }
 0x37a   : > { %v19292_v58 = vadd.f32 %v22304_v3, %v22303_v6  ;;  %v7223_v30 = vld [vmem:[%s21982_s3 + $0x1740] sm:$0xff]  ;;  %11318 = vmatpush2.bf16.msra.mxu0 %v15917_v38  ;;  %v5989_v6 = vadd.f32 %v19256_v54, %v5915_v29  ;;  %11371 = vmatpush2.bf16.msra.mxu1 %v16045_v45  ;;  %v19382_v45 = vrot.slane %v19309_v62, %v18336_v35  ;;  %v5919_v63 = vpop.f32.mrf.mxu0 }
 0x37b   : > { %v7227_v7 = vld [vmem:[%s21982_s3 + $0x1760] sm:$0xff]  ;;  %11319 = vmatprep.subr.bf16.mxu0 %v15910_v52 }
 0x37c   : > { %v19314_v9 = vld [vmem:[%s21982_s3 + $0x1300] sm:$0xff]  ;;  %v16038_v33 = vcombine.high %v7223_v30, %v7227_v7  ;;  %v6184_v40 = vmax.f32 %v19304_v23, %v19292_v58  ;;  %v16037_v57 = vcombine.low %v7223_v30, %v7227_v7  ;;  %v5971_v58 = vadd.f32 %v19168_v10, %v19248_v47  ;;  %v22314_v10 = vld [vmem:[#allocation101_spill] sm:$0xff] }
 0x37d   : > { %v19322_v41 = vld [vmem:[%s21982_s3 + $0x1320] sm:$0xff]  ;;  %v6172_v5 = vmax.f32 %v5969_v20, %v5989_v6  ;;  %v5973_v20 = vadd.f32 %v19182_v11, %v19258_v39  ;;  %v22316_v6 = vld [vmem:[#allocation94_spill] sm:$0xff] }
 0x37e   : > { %v19327_v15 = vld [vmem:[%s21982_s3 + $0x1700] sm:$0xff]  ;;  %v15902_v50 = vcombine.high %v19314_v9, %v19322_v41  ;;  %11372 = vmatprep.subr.bf16.mxu1 %v16038_v33  ;;  %v15901_v17 = vcombine.low %v19314_v9, %v19322_v41  ;;  %11320 = vmatpush2.bf16.msra.mxu0 %v15909_v46  ;;  %v5993_v9 = vadd.f32 %v5992_v4, %v5919_v63  ;;  %v5923_v41 = vpop.f32.mrf.mxu0  ;;  %v22318_v46 = vld [vmem:[#allocation86_spill] sm:$0xff] }
 0x37f   : > { %v19332_v12 = vld [vmem:[%s21982_s3 + $0x1720] sm:$0xff]  ;;  %11373 = vmatpush2.bf16.msra.mxu1 %v16037_v57 }
 0x380   : > { %v19350_v3 = vld [vmem:[%s21982_s3 + $0x12c0] sm:$0xff]  ;;  %v16030_v54 = vcombine.high %v19327_v15, %v19332_v12  ;;  %11321 = vmatprep.subr.bf16.mxu0 %v15902_v50  ;;  %v6196_v57 = vmax.f32 %v5973_v20, %v5993_v9  ;;  %v5925_v63 = vpop.f32.mrf.mxu0 }
 0x381   : > { %v19355_v18 = vld [vmem:[%s21982_s3 + $0x12e0] sm:$0xff] }
 0x382   : > { %v22310_v38 = vld [vmem:[#allocation84_spill] sm:$0xff]  ;;  %v15894_v1 = vcombine.high %v19350_v3, %v19355_v18  ;;  %11374 = vmatprep.subr.bf16.mxu1 %v16030_v54  ;;  %11322 = vmatpush2.bf16.msra.mxu0 %v15901_v17 }
 0x383   : > { %v22312_v32 = vmax.f32 %v22310_v38, %v22311_v55  ;;  %v19369_v52 = vld [vmem:[%s21982_s3 + $0x1280] sm:$0xff]  ;;  %v6195_v55 = vmax.f32 %v5971_v58, %v5991_v49  ;;  %v6000_v58 = vpop.f32.mrf.mxu1  ;;  %v5997_v49 = vadd.f32 %v5996_v56, %v5923_v41  ;;  %v5981_v56 = vadd.f32 %v19208_v61, %v19282_v21 }
 0x384   : > { %v19374_v30 = vld [vmem:[%s21982_s3 + $0x12a0] sm:$0xff]  ;;  %11323 = vmatprep.subr.bf16.mxu0 %v15894_v1 }
 0x385   : > { %v6255_v23 = vmax.f32 %v22312_v32, %v6171_v13  ;;  %v22313_v7 = vld [vmem:[#allocation100_spill] sm:$0xff]  ;;  %v22315_v13 = vld [vmem:[#allocation85_spill] sm:$0xff]  ;;  %v15893_v32 = vcombine.low %v19350_v3, %v19355_v18  ;;  %v22319_v3 = vld [vmem:[#allocation95_spill] sm:$0xff]  ;;  %v15885_v61 = vcombine.low %v19369_v52, %v19374_v30 }
 0x386   : > { %v19378_v47 = vadd.f32 %v22314_v10, %v22313_v7  ;;  %v7207_v29 = vld [vmem:[%s21982_s3 + $0x16c0] sm:$0xff]  ;;  %v22317_v0 = vmax.f32 %v22315_v13, %v22316_v6  ;;  %v15886_v7 = vcombine.high %v19369_v52, %v19374_v30  ;;  %v16029_v10 = vcombine.low %v19327_v15, %v19332_v12 }
 0x387   : > { %v7211_v33 = vld [vmem:[%s21982_s3 + $0x16e0] sm:$0xff]  ;;  %v6367_v4 = vadd.f32 %v19344_v31, %v6255_v23  ;;  %v22320_v18 = vmax.f32 %v22318_v46, %v22319_v3  ;;  %v5977_v12 = vadd.f32 %v19191_v42, %v19266_v51  ;;  %v5999_v23 = vadd.f32 %v5998_v37, %v5925_v63  ;;  %v5927_v37 = vpop.f32.mrf.mxu0  ;;  %v22322_v46 = vld [vmem:[#allocation97_spill] sm:$0xff]  ;;  %11324 = vmatpush2.bf16.msra.mxu0 %v15893_v32 }
 0x388   : > { %v6256_v38 = vmax.f32 %v22317_v0, %v6172_v5  ;;  %v19408_v11 = vld [vmem:[%s21982_s3 + $0x1680] sm:$0xff]  ;;  %v16022_v15 = vcombine.high %v7207_v29, %v7211_v33  ;;  %v16021_v13 = vcombine.low %v7207_v29, %v7211_v33  ;;  %v6268_v0 = vmax.f32 %v6184_v40, %v6196_v57  ;;  %11375 = vmatpush2.bf16.msra.mxu1 %v16029_v10 }
 0x389   : > { %v19413_v39 = vld [vmem:[%s21982_s3 + $0x16a0] sm:$0xff]  ;;  %v6267_v50 = vmax.f32 %v22320_v18, %v6195_v55  ;;  %v5979_v51 = vadd.f32 %v19200_v43, %v19274_v2  ;;  %v6219_v40 = vmax.f32 %v5977_v12, %v5997_v49  ;;  %v6415_v17 = vmax.f32 %v6367_v4, 0.0  ;;  %v6002_v55 = vpop.f32.mrf.mxu1  ;;  %v5929_v43 = vpop.f32.mrf.mxu0  ;;  %11325 = vmatprep.subr.bf16.mxu0 %v15886_v7  ;;  %v22324_v12 = vld [vmem:[#allocation90_spill] sm:$0xff] }
 0x38a   : > { %v6368_v5 = vadd.f32 %v19382_v45, %v6256_v38  ;;  %v19426_v20 = vld [vmem:[%s21982_s3 + $0x1240] sm:$0xff]  ;;  %v16014_v42 = vcombine.high %v19408_v11, %v19413_v39  ;;  %v6380_v33 = vadd.f32 %v19382_v45, %v6268_v0  ;;  %v6001_v38 = vadd.f32 %v6000_v58, %v5927_v37  ;;  %11376 = vmatprep.subr.bf16.mxu1 %v16022_v15  ;;  %v22327_v0 = vld [vmem:[#allocation89_spill] sm:$0xff] }
 0x38b   : > { %v6379_v6 = vadd.f32 %v19344_v31, %v6267_v50  ;;  %v7067_v54 = vld [vmem:[%s21982_s3 + $0x1260] sm:$0xff]  ;;  %v6220_v50 = vmax.f32 %v5979_v51, %v5999_v23  ;;  %v5983_v58 = vadd.f32 %v19222_v24, %v19294_v60  ;;  %v6003_v52 = vadd.f32 %v6002_v55, %v5929_v43  ;;  %v22328_v23 = vld [vmem:[#allocation98_spill] sm:$0xff]  ;;  %11326 = vmatpush2.bf16.msra.mxu0 %v15885_v61  ;;  %v6528_v61 = vld [vmem:[%s21982_s3 + $0x188] sm:$0xff] }
 0x38c   : > { %v6416_v9 = vmax.f32 %v6368_v5, 0.0  ;;  %v22321_v41 = vld [vmem:[#allocation88_spill] sm:$0xff]  ;;  %v15878_v2 = vcombine.high %v19426_v20, %v7067_v54  ;;  %v6428_v4 = vmax.f32 %v6380_v33, 0.0  ;;  %v6243_v57 = vmax.f32 %v5981_v56, %v6001_v38  ;;  %11377 = vmatpush2.bf16.msra.mxu1 %v16021_v13  ;;  %v22325_v5 = vld [vmem:[#allocation99_spill] sm:$0xff]  ;;  %v6536_v33 = vld [vmem:[%s21982_s3 + $0x1c8] sm:$0xff] }
 0x38d   : > { %v6427_v29 = vmax.f32 %v6379_v6, 0.0  ;;  %v22323_v3 = vmax.f32 %v22321_v41, %v22322_v46  ;;  %v7191_v21 = vld [vmem:[%s21982_s3 + $0x1640] sm:$0xff]  ;;  %v16013_v30 = vcombine.low %v19408_v11, %v19413_v39  ;;  %v22326_v49 = vmax.f32 %v22324_v12, %v22325_v5  ;;  %11378 = vmatprep.subr.bf16.mxu1 %v16014_v42 }
 0x38e   : > { %v7195_v1 = vld [vmem:[%s21982_s3 + $0x1660] sm:$0xff]  ;;  %v19460_v6 = vpack.c.bf16 %v6428_v4, %v6416_v9  ;;  %v6232_v7 = vmax.f32 %v19336_v36, %v19378_v47  ;;  %v6244_v11 = vmax.f32 %v5983_v58, %v6003_v52  ;;  %v22329_v51 = vmax.f32 %v22327_v0, %v22328_v23  ;;  %11327 = vmatprep.subr.bf16.mxu0 %v15878_v2  ;;  %v6532_v2 = vld [vmem:[%s21982_s3 + $0x1a8] sm:$0xff]  ;;  %v6112_v4 = vpop.f32.mrf.mxu0 }
 0x38f   : > { %v6279_v18 = vmax.f32 %v22323_v3, %v6219_v40  ;;  %v19450_v10 = vpack.c.bf16 %v6427_v29, %v6415_v17  ;;  %v6291_v63 = vmax.f32 %v22326_v49, %v6243_v57  ;;  %v7055_v32 = vld [vmem:[%s21982_s3 + $0x1200] sm:$0xff]  ;;  %v16006_v60 = vcombine.high %v7191_v21, %v7195_v1  ;;  %v6039_v57 = vpop.f32.mrf.mxu1  ;;  %v6520_v52 = vld [vmem:[%s21982_s3 + $0x148] sm:$0xff] }
 0x390   : > { %v7059_v24 = vld [vmem:[%s21982_s3 + $0x1220] sm:$0xff]  ;;  %v6280_v56 = vmax.f32 %v22329_v51, %v6220_v50  ;;  %11331 = vmatprep.mubr.bf16.mxu0 %v19460_v6  ;;  %v15877_v36 = vcombine.low %v19426_v20, %v7067_v54  ;;  %v6292_v47 = vmax.f32 %v6232_v7, %v6244_v11  ;;  %11379 = vmatpush2.bf16.msra.mxu1 %v16013_v30  ;;  %v19492_v20 = vld [vmem:[%s21982_s3 + $0x5c8] sm:$0xff] }
 0x391   : > { %v6391_v15 = vadd.f32 %v19344_v31, %v6279_v18  ;;  %v7183_v39 = vld [vmem:[%s21982_s3 + $0x1600] sm:$0xff]  ;;  %v6403_v40 = vadd.f32 %v19344_v31, %v6291_v63  ;;  %v15870_v42 = vcombine.high %v7055_v32, %v7059_v24  ;;  %v16005_v37 = vcombine.low %v7191_v21, %v7195_v1  ;;  %v6540_v31 = vld [vmem:[%s21982_s3 + $0x1e8] sm:$0xff]  ;;  %11380 = vmatprep.subr.bf16.mxu1 %v16006_v60  ;;  %v6041_v12 = vpop.f32.mrf.mxu1 }
 0x392   : > { %v7187_v13 = vld [vmem:[%s21982_s3 + $0x1620] sm:$0xff]  ;;  %v6404_v55 = vadd.f32 %v19382_v45, %v6292_v47  ;;  %v19497_v54 = vld [vmem:[%s21982_s3 + $0x5e8] sm:$0xff]  ;;  %v6392_v9 = vadd.f32 %v19382_v45, %v6280_v56  ;;  %11328 = vmatpush2.bf16.msra.mxu0 %v15877_v36  ;;  %v15869_v41 = vcombine.low %v7055_v32, %v7059_v24  ;;  %v15352_v3 = vcombine.high %v6536_v33, %v6540_v31 }
 0x393   : > { %v6439_v17 = vmax.f32 %v6391_v15, 0.0  ;;  %v6451_v29 = vmax.f32 %v6403_v40, 0.0  ;;  %v15998_v38 = vcombine.high %v7183_v39, %v7187_v13  ;;  %11329 = vmatprep.subr.bf16.mxu0 %v15870_v42  ;;  %v15997_v18 = vcombine.low %v7183_v39, %v7187_v13  ;;  %v6524_v30 = vld [vmem:[%s21982_s3 + $0x168] sm:$0xff]  ;;  %v6114_v15 = vpop.f32.mrf.mxu0  ;;  %v6043_v32 = vpop.f32.mrf.mxu1 }
 0x394   : > { %11381 = vmatpush2.bf16.msra.mxu1 %v16005_v37  ;;  %v6452_v43 = vmax.f32 %v6404_v55, 0.0  ;;  %v15480_v45 = vcombine.high %v19492_v20, %v19497_v54  ;;  %v6440_v21 = vmax.f32 %v6392_v9, 0.0  ;;  %v15351_v1 = vcombine.low %v6536_v33, %v6540_v31  ;;  %v6512_v24 = vld [vmem:[%s21982_s3 + $0x108] sm:$0xff] }
 0x395   : > { %v19500_v46 = vpack.c.bf16 %v6451_v29, %v6439_v17  ;;  %11382 = vmatprep.subr.bf16.mxu1 %v15998_v38  ;;  %v15344_v50 = vcombine.high %v6528_v61, %v6532_v2  ;;  %v15343_v5 = vcombine.low %v6528_v61, %v6532_v2  ;;  %v6116_v49 = vpop.f32.mrf.mxu0  ;;  %v15336_v63 = vcombine.high %v6520_v52, %v6524_v30  ;;  %v6516_v60 = vld [vmem:[%s21982_s3 + $0x128] sm:$0xff]  ;;  %v6045_v11 = vpop.f32.mrf.mxu1 }
 0x396   : > { %11330 = vmatpush2.bf16.msra.mxu0 %v15869_v41  ;;  %v19510_v58 = vpack.c.bf16 %v6452_v43, %v6440_v21  ;;  %v15335_v39 = vcombine.low %v6520_v52, %v6524_v30  ;;  %v15328_v0 = vcombine.high %v6512_v24, %v6516_v60  ;;  %v6504_v51 = vld [vmem:[%s21982_s3 + $0xc8] sm:$0xff]  ;;  %v15327_v47 = vcombine.low %v6512_v24, %v6516_v60 }
 0x397   : > { %11405 = vmatprep.subr.bf16.mxu0 %v15352_v3  ;;  %v6118_v7 = vpop.f32.mrf.mxu0  ;;  %v19528_v23 = vpop.f32.mrf.mxu1  ;;  %v6508_v56 = vld [vmem:[%s21982_s3 + $0xe8] sm:$0xff]  ;;  %v6113_v61 = vadd.f32 %v6112_v4, %v6039_v57  ;;  %v22330_v4 = vld [vmem:[#allocation116_spill] sm:$0xff]  ;;  %v22331_v57 = vld [vmem:[#allocation115_spill] sm:$0xff] }
 0x398   : > { %11383 = vmatpush2.bf16.msra.mxu1 %v15997_v18  ;;  %v15320_v37 = vcombine.high %v6504_v51, %v6508_v56  ;;  %v6496_v29 = vld [vmem:[%s21982_s3 + $0x88] sm:$0xff]  ;;  %v15319_v55 = vcombine.low %v6504_v51, %v6508_v56  ;;  %v22332_v51 = vld [vmem:[#allocation102_spill] sm:$0xff]  ;;  %v22333_v56 = vld [vmem:[#allocation112_spill] sm:$0xff] }
 0x399   : > { %11458 = vmatprep.subr.bf16.mxu1 %v15480_v45  ;;  %11332 = vmatmul.mubr.bf16.vlgmr.msra.gmra.mxu0 %v19450_v10  ;;  %v19526_v13 = vpop.f32.mrf.mxu0  ;;  %v6051_v36 = vpop.f32.mrf.mxu1  ;;  %v6500_v33 = vld [vmem:[%s21982_s3 + $0xa8] sm:$0xff] }
 0x39a   : > { %11341 = vmatprep.mubr.bf16.mxu0 %v19510_v58  ;;  %11406 = vmatpush1.bf16.msra.mxu0 %v15351_v1  ;;  %v15312_v41 = vcombine.high %v6496_v29, %v6500_v33  ;;  %v6488_v18 = vld [vmem:[%s21982_s3 + $0x48] sm:$0xff]  ;;  %v15311_v1 = vcombine.low %v6496_v29, %v6500_v33 }
 0x39b   : > { %11407 = vmatprep.subr.bf16.mxu0 %v15344_v50  ;;  %v19537_v40 = vpop.f32.mrf.mxu0  ;;  %v19542_v17 = vpop.f32.mrf.mxu1  ;;  %v6492_v43 = vld [vmem:[%s21982_s3 + $0x68] sm:$0xff]  ;;  %v6115_v50 = vadd.f32 %v6114_v15, %v6041_v12  ;;  %v6117_v12 = vadd.f32 %v6116_v49, %v6043_v32  ;;  %v22337_v49 = vld [vmem:[#allocation103_spill] sm:$0xff] }
 0x39c   : > { %v6480_v24 = vld [vmem:[%s21982_s3 + $0x8] sm:$0xff] }
 0x39d   : > { %v19540_v42 = vpop.f32.mrf.mxu0  ;;  %v19552_v38 = vpop.f32.mrf.mxu1  ;;  %v6484_v60 = vld [vmem:[%s21982_s3 + $0x28] sm:$0xff] }
 0x39e   : > { %11408 = vmatpush1.bf16.msra.mxu0 %v15343_v5  ;;  %v22338_v32 = vld [vmem:[#allocation113_spill] sm:$0xff] }
 0x39f   : > { %11409 = vmatprep.subr.bf16.mxu0 %v15336_v63  ;;  %v19550_v31 = vpop.f32.mrf.mxu0  ;;  %v6059_v3 = vpop.f32.mrf.mxu1  ;;  %v15304_v63 = vcombine.high %v6488_v18, %v6492_v43 }
 0x3a1   : > { %11342 = vmatmul.mubr.bf16.gmra.mxu0 %v19500_v46  ;;  %v6132_v9 = vpop.f32.mrf.mxu0  ;;  %v6061_v21 = vpop.f32.mrf.mxu1 }
 0x3a2   : > { %11410 = vmatpush1.bf16.msra.mxu0 %v15335_v39  ;;  %11437 = vmatprep.mubr.bf16.mxu0 %v18435_v44  ;;  %v6133_v2 = vadd.f32 %v6132_v9, %v6059_v3  ;;  %v5263_v39 = vadd.f32 %v22331_v57, %v22330_v4  ;;  %v22335_v9 = vld [vmem:[#allocation106_spill] sm:$0xff]  ;;  %v6119_v4 = vadd.f32 %v6118_v7, %v6045_v11  ;;  %v22340_v11 = vld [vmem:[#allocation104_spill] sm:$0xff] }
 0x3a3   : > { %11411 = vmatprep.subr.bf16.mxu0 %v15328_v0  ;;  %v6134_v45 = vpop.f32.mrf.mxu0  ;;  %v19570_v0 = vrot.slane %v19309_v62, %v18160_v14  ;;  %v6063_v15 = vpop.f32.mrf.mxu1  ;;  %v22339_v57 = vmax.f32 %v22337_v49, %v22338_v32  ;;  %v16550_v14 = vld [vmem:[#allocation5 + $0x2b0] ss:$16 sps:$4 sm:$0xff]  }
 0x3a4   : > { %v6173_v52 = vmax.f32 %v6113_v61, %v6133_v2  ;;  %v6135_v30 = vadd.f32 %v6134_v45, %v6061_v21  ;;  %v19579_v61 = vrot.slane %v19309_v62, %v18350_v19  ;;  %v15303_v45 = vcombine.low %v6488_v18, %v6492_v43  ;;  %v6604_v62 = vld [vmem:[%s21982_s3 + $0x3e8] sm:$0xff]  ;;  %v6873_v19 = vld [vmem:[%s21982_s3 + $0xc50] sm:$0xff] }
 0x3a5   : > { %v6136_v5 = vpop.f32.mrf.mxu0  ;;  %v6065_v2 = vpop.f32.mrf.mxu1  ;;  %v15296_v21 = vcombine.high %v6480_v24, %v6484_v60 }
 0x3a6   : > { %11412 = vmatpush1.bf16.msra.mxu0 %v15327_v47  ;;  %v22334_v47 = vmax.f32 %v22332_v51, %v22333_v56  ;;  %v6174_v29 = vmax.f32 %v6115_v50, %v6135_v30  ;;  %v6137_v33 = vadd.f32 %v6136_v5, %v6063_v15  ;;  %v6600_v5 = vld [vmem:[%s21982_s3 + $0x3c8] sm:$0xff] }
 0x3a7   : > { %11413 = vmatprep.subr.bf16.mxu0 %v15320_v37  ;;  %v6069_v43 = vpop.f32.mrf.mxu1 }
 0x3a8   : > { %v6257_v37 = vmax.f32 %v22334_v47, %v6173_v52  ;;  %v6258_v51 = vmax.f32 %v22339_v57, %v6174_v29  ;;  %v6197_v52 = vmax.f32 %v6117_v12, %v6137_v33  ;;  %v15295_v29 = vcombine.low %v6480_v24, %v6484_v60  ;;  %v6592_v24 = vld [vmem:[%s21982_s3 + $0x388] sm:$0xff] }
 0x3a9   : > { %v6125_v33 = vadd.f32 %v19537_v40, %v6051_v36 }
 0x3aa   : > { %11414 = vmatpush1.bf16.msra.mxu0 %v15319_v55  ;;  %v6138_v55 = vpop.f32.mrf.mxu0  ;;  %v6369_v18 = vadd.f32 %v19570_v0, %v6257_v37  ;;  %v6370_v37 = vadd.f32 %v19579_v61, %v6258_v51  ;;  %v22343_v51 = vld [vmem:[#allocation120_spill] sm:$0xff] }
 0x3ab   : > { %11415 = vmatprep.subr.bf16.mxu0 %v15312_v41  ;;  %v22336_v41 = vld [vmem:[#allocation105_spill] sm:$0xff]  ;;  %v6139_v50 = vadd.f32 %v6138_v55, %v6065_v2 }
 0x3ac   : > { %v5243_v3 = vadd.f32 %v22336_v41, %v22335_v9  ;;  %v6142_v30 = vpop.f32.mrf.mxu0  ;;  %v6071_v9 = vpop.f32.mrf.mxu1  ;;  %v15416_v41 = vcombine.high %v6600_v5, %v6604_v62  ;;  %v6417_v40 = vmax.f32 %v6369_v18, 0.0 }
 0x3ad   : > { %v6198_v12 = vmax.f32 %v6119_v4, %v6139_v50  ;;  %v6143_v55 = vadd.f32 %v6142_v30, %v6069_v43  ;;  %v22345_v30 = vld [vmem:[#allocation107_spill] sm:$0xff]  ;;  %v22346_v43 = vld [vmem:[#allocation117_spill] sm:$0xff] }
 0x3ae   : > { %11416 = vmatpush1.bf16.msra.mxu0 %v15311_v1  ;;  %v6186_v7 = vmax.f32 %v5243_v3, %v5263_v39  ;;  %v22341_v1 = vld [vmem:[#allocation114_spill] sm:$0xff]  ;;  %v6144_v47 = vpop.f32.mrf.mxu0  ;;  %v6073_v60 = vpop.f32.mrf.mxu1 }
 0x3af   : > { %11417 = vmatprep.subr.bf16.mxu0 %v15304_v63  ;;  %v22342_v15 = vmax.f32 %v22340_v11, %v22341_v1  ;;  %v6123_v63 = vadd.f32 %v19526_v13, %v19528_v23  ;;  %v6145_v2 = vadd.f32 %v6144_v47, %v6071_v9  ;;  %v6596_v13 = vld [vmem:[%s21982_s3 + $0x3a8] sm:$0xff]  ;;  %v6127_v23 = vadd.f32 %v19540_v42, %v19542_v17  ;;  %v22351_v9 = vld [vmem:[#allocation118_spill] sm:$0xff] }
 0x3b0   : > { %v6270_v3 = vmax.f32 %v6186_v7, %v6198_v12  ;;  %v6146_v49 = vpop.f32.mrf.mxu0  ;;  %v22347_v7 = vmax.f32 %v22345_v30, %v22346_v43  ;;  %v6075_v1 = vpop.f32.mrf.mxu1  ;;  %v15408_v42 = vcombine.high %v6592_v24, %v6596_v13  ;;  %v6418_v17 = vmax.f32 %v6370_v37, 0.0  ;;  %v6656_v47 = vld [vmem:[%s21982_s3 + $0x588] sm:$0xff] }
 0x3b1   : > { %v6269_v56 = vmax.f32 %v22342_v15, %v6197_v52  ;;  %v6221_v36 = vmax.f32 %v6123_v63, %v6143_v55  ;;  %v6222_v32 = vmax.f32 %v6125_v33, %v6145_v2  ;;  %v6147_v57 = vadd.f32 %v6146_v49, %v6073_v60  ;;  %v22344_v52 = vld [vmem:[#allocation122_spill] sm:$0xff]  ;;  %v6660_v63 = vld [vmem:[%s21982_s3 + $0x5a8] sm:$0xff]  ;;  %v22348_v33 = vld [vmem:[#allocation111_spill] sm:$0xff] }
 0x3b2   : > { %11418 = vmatpush1.bf16.msra.mxu0 %v15303_v45  ;;  %v6382_v4 = vadd.f32 %v19579_v61, %v6270_v3  ;;  %v5273_v50 = vadd.f32 %v22344_v52, %v22343_v51  ;;  %v15415_v15 = vcombine.low %v6600_v5, %v6604_v62  ;;  %v22349_v55 = vld [vmem:[#allocation110_spill] sm:$0xff]  ;;  %v6129_v5 = vadd.f32 %v19550_v31, %v19552_v38  ;;  %v22350_v62 = vld [vmem:[#allocation108_spill] sm:$0xff]  ;;  %v6588_v2 = vld [vmem:[%s21982_s3 + $0x368] sm:$0xff] }
 0x3b3   : > { %v6381_v39 = vadd.f32 %v19570_v0, %v6269_v56  ;;  %11419 = vmatprep.subr.bf16.mxu0 %v15296_v21  ;;  %v6148_v21 = vpop.f32.mrf.mxu0  ;;  %v6281_v11 = vmax.f32 %v22347_v7, %v6221_v36  ;;  %v6245_v12 = vmax.f32 %v6127_v23, %v6147_v57  ;;  %v22352_v37 = vmax.f32 %v22350_v62, %v22351_v9  ;;  %v22353_v23 = vld [vmem:[#allocation109_spill] sm:$0xff] }
 0x3b4   : > { %v6430_v56 = vmax.f32 %v6382_v4, 0.0  ;;  %v6149_v3 = vadd.f32 %v6148_v21, %v6075_v1  ;;  %v15479_v38 = vcombine.low %v19492_v20, %v19497_v54  ;;  %v15472_v57 = vcombine.high %v6656_v47, %v6660_v63  ;;  %v6648_v52 = vld [vmem:[%s21982_s3 + $0x548] sm:$0xff] }
 0x3b5   : > { %v6429_v45 = vmax.f32 %v6381_v39, 0.0  ;;  %v6282_v39 = vmax.f32 %v22352_v37, %v6222_v32  ;;  %v6393_v49 = vadd.f32 %v19570_v0, %v6281_v11  ;;  %v15407_v32 = vcombine.low %v6592_v24, %v6596_v13  ;;  %v6652_v30 = vld [vmem:[%s21982_s3 + $0x568] sm:$0xff] }
 0x3b6   : > { %11420 = vmatpush1.bf16.msra.mxu0 %v15295_v29  ;;  %v5253_v29 = vadd.f32 %v22349_v55, %v22348_v33  ;;  %v19638_v31 = vpack.c.bf16 %v6430_v56, %v6418_v17  ;;  %v6246_v4 = vmax.f32 %v6129_v5, %v6149_v3  ;;  %v6580_v24 = vld [vmem:[%s21982_s3 + $0x328] sm:$0xff]  ;;  %v15471_v43 = vcombine.low %v6656_v47, %v6660_v63 }
 0x3b7   : > { %v19613_v18 = vpack.c.bf16 %v6429_v45, %v6417_v40  ;;  %11421 = vmatprep.subr.bf16.mxu0 %v15416_v41  ;;  %v6584_v41 = vld [vmem:[%s21982_s3 + $0x348] sm:$0xff]  ;;  %v22354_v40 = vld [vmem:[#allocation119_spill] sm:$0xff]  ;;  %v6394_v20 = vadd.f32 %v19579_v61, %v6282_v39  ;;  %v6441_v13 = vmax.f32 %v6393_v49, 0.0  ;;  %v15464_v1 = vcombine.high %v6648_v52, %v6652_v30 }
 0x3b8   : > { %v22355_v36 = vmax.f32 %v22353_v23, %v22354_v40  ;;  %v6234_v45 = vmax.f32 %v5253_v29, %v5273_v50  ;;  %11384 = vmatprep.mubr.bf16.mxu1 %v19638_v31  ;;  %v15400_v51 = vcombine.high %v6584_v41, %v6588_v2  ;;  %v15399_v11 = vcombine.low %v6584_v41, %v6588_v2  ;;  %v6644_v47 = vld [vmem:[%s21982_s3 + $0x528] sm:$0xff] }
 0x3b9   : > { %11385 = vmatmul.mubr.bf16.vlgmr.msra.gmra.mxu1 %v19613_v18  ;;  %v6442_v17 = vmax.f32 %v6394_v20, 0.0  ;;  %v6572_v63 = vld [vmem:[%s21982_s3 + $0x2e8] sm:$0xff]  ;;  %v15463_v55 = vcombine.low %v6648_v52, %v6652_v30 }
 0x3ba   : > { %v6293_v60 = vmax.f32 %v22355_v36, %v6245_v12  ;;  %11422 = vmatpush2.bf16.msra.mxu0 %v15415_v15  ;;  %v6294_v54 = vmax.f32 %v6234_v45, %v6246_v4  ;;  %11459 = vmatpush1.bf16.msra.mxu1 %v15479_v38  ;;  %v6640_v12 = vld [vmem:[%s21982_s3 + $0x508] sm:$0xff] }
 0x3bb   : > { %11423 = vmatprep.subr.bf16.mxu0 %v15408_v42  ;;  %11460 = vmatprep.subr.bf16.mxu1 %v15472_v57  ;;  %v15456_v5 = vcombine.high %v6640_v12, %v6644_v47  ;;  %v6632_v62 = vld [vmem:[%s21982_s3 + $0x4c8] sm:$0xff]  ;;  %v15455_v41 = vcombine.low %v6640_v12, %v6644_v47 }
 0x3bc   : > { %v6405_v21 = vadd.f32 %v19570_v0, %v6293_v60  ;;  %v6576_v0 = vld [vmem:[%s21982_s3 + $0x308] sm:$0xff]  ;;  %v6406_v7 = vadd.f32 %v19579_v61, %v6294_v54 }
 0x3bd   : > { %v15392_v42 = vcombine.high %v6576_v0, %v6580_v24  ;;  %v6568_v61 = vld [vmem:[%s21982_s3 + $0x2c8] sm:$0xff]  ;;  %v15391_v29 = vcombine.low %v6576_v0, %v6580_v24 }
 0x3be   : > { %v6453_v50 = vmax.f32 %v6405_v21, 0.0  ;;  %11424 = vmatpush2.bf16.msra.mxu0 %v15407_v32  ;;  %v6454_v56 = vmax.f32 %v6406_v7, 0.0  ;;  %11461 = vmatpush1.bf16.msra.mxu1 %v15471_v43  ;;  %v15384_v9 = vcombine.high %v6568_v61, %v6572_v63  ;;  %v6636_v37 = vld [vmem:[%s21982_s3 + $0x4e8] sm:$0xff]  ;;  %v15383_v2 = vcombine.low %v6568_v61, %v6572_v63 }
 0x3bf   : > { %11425 = vmatprep.subr.bf16.mxu0 %v15400_v51  ;;  %11462 = vmatprep.subr.bf16.mxu1 %v15464_v1  ;;  %v6560_v39 = vld [vmem:[%s21982_s3 + $0x288] sm:$0xff]  ;;  %v15448_v49 = vcombine.high %v6632_v62, %v6636_v37  ;;  %v15447_v45 = vcombine.low %v6632_v62, %v6636_v37 }
 0x3c0   : > { %v19659_v15 = vpack.c.bf16 %v6453_v50, %v6441_v13  ;;  %v19673_v33 = vpack.c.bf16 %v6454_v56, %v6442_v17  ;;  %v6564_v3 = vld [vmem:[%s21982_s3 + $0x2a8] sm:$0xff] }
 0x3c1   : > { %v15376_v23 = vcombine.high %v6560_v39, %v6564_v3  ;;  %v6624_v40 = vld [vmem:[%s21982_s3 + $0x488] sm:$0xff]  ;;  %v15375_v4 = vcombine.low %v6560_v39, %v6564_v3 }
 0x3c2   : > { %11426 = vmatpush2.bf16.msra.mxu0 %v15399_v11  ;;  %11394 = vmatprep.mubr.bf16.mxu1 %v19673_v33  ;;  %v6628_v36 = vld [vmem:[%s21982_s3 + $0x4a8] sm:$0xff] }
 0x3c3   : > { %11427 = vmatprep.subr.bf16.mxu0 %v15392_v42  ;;  %11395 = vmatmul.mubr.bf16.gmra.mxu1 %v19659_v15  ;;  %v6552_v60 = vld [vmem:[%s21982_s3 + $0x248] sm:$0xff]  ;;  %v15440_v32 = vcombine.high %v6624_v40, %v6628_v36  ;;  %v15439_v20 = vcombine.low %v6624_v40, %v6628_v36 }
 0x3c4   : > { %11463 = vmatpush1.bf16.msra.mxu1 %v15463_v55  ;;  %11490 = vmatprep.mubr.bf16.mxu1 %v18446_v26  ;;  %v6556_v38 = vld [vmem:[%s21982_s3 + $0x268] sm:$0xff] }
 0x3c5   : > { %11464 = vmatprep.subr.bf16.mxu1 %v15456_v5  ;;  %v15368_v57 = vcombine.high %v6552_v60, %v6556_v38  ;;  %v6616_v21 = vld [vmem:[%s21982_s3 + $0x448] sm:$0xff]  ;;  %v15367_v54 = vcombine.low %v6552_v60, %v6556_v38 }
 0x3c6   : > { %11428 = vmatpush2.bf16.msra.mxu0 %v15391_v29  ;;  %v6620_v51 = vld [vmem:[%s21982_s3 + $0x468] sm:$0xff]  ;;  %v11121_v55 = vpop.f32.mrf.mxu0 }
 0x3c7   : > { %11429 = vmatprep.subr.bf16.mxu0 %v15384_v9  ;;  %v6544_v52 = vld [vmem:[%s21982_s3 + $0x208] sm:$0xff]  ;;  %v15432_v0 = vcombine.high %v6616_v21, %v6620_v51  ;;  %v15431_v11 = vcombine.low %v6616_v21, %v6620_v51 }
 0x3c8   : > { %11465 = vmatpush1.bf16.msra.mxu1 %v15455_v41  ;;  %v6548_v30 = vld [vmem:[%s21982_s3 + $0x228] sm:$0xff]  ;;  %v11174_v62 = vpop.f32.mrf.mxu1  ;;  %v11123_v41 = vpop.f32.mrf.mxu0 }
 0x3c9   : > { %11466 = vmatprep.subr.bf16.mxu1 %v15448_v49  ;;  %v15360_v24 = vcombine.high %v6544_v52, %v6548_v30  ;;  %v6608_v13 = vld [vmem:[%s21982_s3 + $0x408] sm:$0xff]  ;;  %v15359_v1 = vcombine.low %v6544_v52, %v6548_v30  ;;  %v19744_v3 = vadd.f32 %v11174_v62, %v11121_v55 }
 0x3ca   : > { %11430 = vmatpush2.bf16.msra.mxu0 %v15383_v2  ;;  %v6612_v50 = vld [vmem:[%s21982_s3 + $0x428] sm:$0xff]  ;;  %v11125_v60 = vpop.f32.mrf.mxu0 }
 0x3cb   : > { %11431 = vmatprep.subr.bf16.mxu0 %v15376_v23  ;;  %v6792_v43 = vld [vmem:[%s21982_s3 + $0x9c8] sm:$0xff]  ;;  %v15424_v42 = vcombine.high %v6608_v13, %v6612_v50  ;;  %v15423_v63 = vcombine.low %v6608_v13, %v6612_v50  ;;  %v11176_v23 = vpop.f32.mrf.mxu1 }
 0x3cc   : > { %11467 = vmatpush1.bf16.msra.mxu1 %v15447_v45  ;;  %v6796_v7 = vld [vmem:[%s21982_s3 + $0x9e8] sm:$0xff]  ;;  %v19754_v36 = vadd.f32 %v11176_v23, %v11123_v41  ;;  %v19764_v52 = vpop.f32.mrf.mxu0 }
 0x3cd   : > { %11468 = vmatprep.subr.bf16.mxu1 %v15440_v32  ;;  %v15608_v17 = vcombine.high %v6792_v43, %v6796_v7  ;;  %v6728_v56 = vld [vmem:[%s21982_s3 + $0x7c8] sm:$0xff]  ;;  %v15607_v29 = vcombine.low %v6792_v43, %v6796_v7 }
 0x3ce   : > { %11432 = vmatpush2.bf16.msra.mxu0 %v15375_v4  ;;  %v6732_v12 = vld [vmem:[%s21982_s3 + $0x7e8] sm:$0xff]  ;;  %v11178_v4 = vpop.f32.mrf.mxu1 }
 0x3cf   : > { %11433 = vmatprep.subr.bf16.mxu0 %v15368_v57  ;;  %v6784_v47 = vld [vmem:[%s21982_s3 + $0x988] sm:$0xff]  ;;  %v15544_v5 = vcombine.high %v6728_v56, %v6732_v12  ;;  %v15543_v40 = vcombine.low %v6728_v56, %v6732_v12  ;;  %v19762_v51 = vadd.f32 %v11178_v4, %v11125_v60 }
 0x3d0   : > { %11469 = vmatpush1.bf16.msra.mxu1 %v15439_v20  ;;  %v6788_v61 = vld [vmem:[%s21982_s3 + $0x9a8] sm:$0xff] }
 0x3d1   : > { %11470 = vmatprep.subr.bf16.mxu1 %v15432_v0  ;;  %v15600_v9 = vcombine.high %v6784_v47, %v6788_v61  ;;  %v6720_v37 = vld [vmem:[%s21982_s3 + $0x788] sm:$0xff]  ;;  %v15599_v38 = vcombine.low %v6784_v47, %v6788_v61  ;;  %v22357_v61 = vld [vmem:[#allocation36_spill] sm:$0xff] }
 0x3d2   : > { %11434 = vmatpush2.bf16.msra.mxu0 %v15367_v54  ;;  %v6724_v39 = vld [vmem:[%s21982_s3 + $0x7a8] sm:$0xff]  ;;  %v19772_v54 = vpop.f32.mrf.mxu1 }
 0x3d3   : > { %11435 = vmatprep.subr.bf16.mxu0 %v15360_v24  ;;  %v6776_v2 = vld [vmem:[%s21982_s3 + $0x948] sm:$0xff]  ;;  %v15536_v45 = vcombine.high %v6720_v37, %v6724_v39  ;;  %v15535_v0 = vcombine.low %v6720_v37, %v6724_v39  ;;  %v11131_v24 = vpop.f32.mrf.mxu0 }
 0x3d4   : > { %11471 = vmatpush1.bf16.msra.mxu1 %v15431_v11  ;;  %v6780_v49 = vld [vmem:[%s21982_s3 + $0x968] sm:$0xff]  ;;  %v11184_v43 = vpop.f32.mrf.mxu1 }
 0x3d5   : > { %11472 = vmatprep.subr.bf16.mxu1 %v15424_v42  ;;  %v15592_v32 = vcombine.high %v6776_v2, %v6780_v49  ;;  %v6712_v57 = vld [vmem:[%s21982_s3 + $0x748] sm:$0xff]  ;;  %v15591_v13 = vcombine.low %v6776_v2, %v6780_v49  ;;  %v19780_v42 = vadd.f32 %v11184_v43, %v11131_v24  ;;  %v11133_v56 = vpop.f32.mrf.mxu0 }
 0x3d6   : > { %11436 = vmatpush2.bf16.msra.mxu0 %v15359_v1  ;;  %v6716_v21 = vld [vmem:[%s21982_s3 + $0x768] sm:$0xff] }
 0x3d7   : > { %11511 = vmatprep.subr.bf16.mxu0 %v15608_v17  ;;  %v6768_v30 = vld [vmem:[%s21982_s3 + $0x908] sm:$0xff]  ;;  %v15528_v50 = vcombine.high %v6712_v57, %v6716_v21  ;;  %v22356_v17 = vld [vmem:[#allocation127_spill] sm:$0xff]  ;;  %v15527_v55 = vcombine.low %v6712_v57, %v6716_v21 }
 0x3d8   : > { %11473 = vmatpush1.bf16.msra.mxu1 %v15423_v63  ;;  %v6772_v20 = vld [vmem:[%s21982_s3 + $0x928] sm:$0xff]  ;;  %v11186_v63 = vpop.f32.mrf.mxu1 }
 0x3d9   : > { %11438 = vmatmul.mubr.bf16.vlgmr.msra.gmra.mxu0 %v18082_v59  ;;  %11474 = vmatprep.subr.bf16.mxu1 %v15544_v5  ;;  %v15584_v7 = vcombine.high %v6768_v30, %v6772_v20  ;;  %v6704_v11 = vld [vmem:[%s21982_s3 + $0x708] sm:$0xff]  ;;  %v11135_v5 = vpop.f32.mrf.mxu0  ;;  %v15583_v62 = vcombine.low %v6768_v30, %v6772_v20 }
 0x3da   : > { %11447 = vmatprep.mubr.bf16.mxu0 %v18675_v48  ;;  %11512 = vmatpush1.bf16.msra.mxu0 %v15607_v29  ;;  %v6708_v1 = vld [vmem:[%s21982_s3 + $0x728] sm:$0xff]  ;;  %v19790_v29 = vadd.f32 %v11186_v63, %v11133_v56  ;;  %v11188_v37 = vpop.f32.mrf.mxu1 }
 0x3db   : > { %11513 = vmatprep.subr.bf16.mxu0 %v15600_v9  ;;  %v6760_v12 = vld [vmem:[%s21982_s3 + $0x8c8] sm:$0xff]  ;;  %v15520_v9 = vcombine.high %v6704_v11, %v6708_v1  ;;  %v19798_v49 = vadd.f32 %v11188_v37, %v11135_v5  ;;  %v11137_v23 = vpop.f32.mrf.mxu0 }
 0x3dc   : > { %11475 = vmatpush2.bf16.msra.mxu1 %v15543_v40  ;;  %v6764_v47 = vld [vmem:[%s21982_s3 + $0x8e8] sm:$0xff] }
 0x3dd   : > { %11476 = vmatprep.subr.bf16.mxu1 %v15536_v45  ;;  %v15576_v39 = vcombine.high %v6760_v12, %v6764_v47  ;;  %v6696_v41 = vld [vmem:[%s21982_s3 + $0x6c8] sm:$0xff]  ;;  %v15519_v45 = vcombine.low %v6704_v11, %v6708_v1 }
 0x3de   : > { %11514 = vmatpush1.bf16.msra.mxu0 %v15599_v38  ;;  %v6700_v2 = vld [vmem:[%s21982_s3 + $0x6e8] sm:$0xff]  ;;  %v11190_v38 = vpop.f32.mrf.mxu1 }
 0x3df   : > { %11515 = vmatprep.subr.bf16.mxu0 %v15592_v32  ;;  %v6752_v40 = vld [vmem:[%s21982_s3 + $0x888] sm:$0xff]  ;;  %v19806_v4 = vadd.f32 %v11190_v38, %v11137_v23  ;;  %v15575_v32 = vcombine.low %v6760_v12, %v6764_v47  ;;  %v15512_v57 = vcombine.high %v6696_v41, %v6700_v2 }
 0x3e0   : > { %11477 = vmatpush2.bf16.msra.mxu1 %v15535_v0  ;;  %v6756_v60 = vld [vmem:[%s21982_s3 + $0x8a8] sm:$0xff] }
 0x3e1   : > { %11448 = vmatmul.mubr.bf16.gmra.mxu0 %v22356_v17  ;;  %11478 = vmatprep.subr.bf16.mxu1 %v15528_v50  ;;  %v15568_v21 = vcombine.high %v6752_v40, %v6756_v60  ;;  %v6688_v30 = vld [vmem:[%s21982_s3 + $0x688] sm:$0xff]  ;;  %v15567_v50 = vcombine.low %v6752_v40, %v6756_v60 }
 0x3e2   : > { %11543 = vmatprep.mubr.bf16.mxu0 %v22357_v61  ;;  %11516 = vmatpush1.bf16.msra.mxu0 %v15591_v13  ;;  %v6692_v20 = vld [vmem:[%s21982_s3 + $0x6a8] sm:$0xff]  ;;  %v15511_v13 = vcombine.low %v6696_v41, %v6700_v2 }
 0x3e3   : > { %11517 = vmatprep.subr.bf16.mxu0 %v15584_v7  ;;  %v6744_v0 = vld [vmem:[%s21982_s3 + $0x848] sm:$0xff]  ;;  %v15504_v43 = vcombine.high %v6688_v30, %v6692_v20  ;;  %v15503_v47 = vcombine.low %v6688_v30, %v6692_v20 }
 0x3e4   : > { %11479 = vmatpush2.bf16.msra.mxu1 %v15527_v55  ;;  %v6748_v24 = vld [vmem:[%s21982_s3 + $0x868] sm:$0xff] }
 0x3e5   : > { %11480 = vmatprep.subr.bf16.mxu1 %v15520_v9  ;;  %v15560_v7 = vcombine.high %v6744_v0, %v6748_v24  ;;  %v6680_v11 = vld [vmem:[%s21982_s3 + $0x648] sm:$0xff]  ;;  %v15559_v63 = vcombine.low %v6744_v0, %v6748_v24 }
 0x3e6   : > { %11518 = vmatpush1.bf16.msra.mxu0 %v15583_v62  ;;  %v6684_v1 = vld [vmem:[%s21982_s3 + $0x668] sm:$0xff] }
 0x3e7   : > { %11519 = vmatprep.subr.bf16.mxu0 %v15576_v39  ;;  %v6736_v56 = vld [vmem:[%s21982_s3 + $0x808] sm:$0xff]  ;;  %v15496_v55 = vcombine.high %v6680_v11, %v6684_v1  ;;  %v15495_v41 = vcombine.low %v6680_v11, %v6684_v1 }
 0x3e8   : > { %11481 = vmatpush2.bf16.msra.mxu1 %v15519_v45  ;;  %v6740_v12 = vld [vmem:[%s21982_s3 + $0x828] sm:$0xff] }
 0x3e9   : > { %11482 = vmatprep.subr.bf16.mxu1 %v15512_v57  ;;  %v15552_v5 = vcombine.high %v6736_v56, %v6740_v12  ;;  %v6672_v62 = vld [vmem:[%s21982_s3 + $0x608] sm:$0xff]  ;;  %v15551_v2 = vcombine.low %v6736_v56, %v6740_v12 }
 0x3ea   : > { %11520 = vmatpush1.bf16.msra.mxu0 %v15575_v32  ;;  %v6676_v9 = vld [vmem:[%s21982_s3 + $0x628] sm:$0xff] }
 0x3eb   : > { %11521 = vmatprep.subr.bf16.mxu0 %v15568_v21  ;;  %v6856_v37 = vld [vmem:[%s21982_s3 + $0xbc8] sm:$0xff]  ;;  %v15488_v23 = vcombine.high %v6672_v62, %v6676_v9  ;;  %v15487_v57 = vcombine.low %v6672_v62, %v6676_v9 }
 0x3ec   : > { %11483 = vmatpush2.bf16.msra.mxu1 %v15511_v13  ;;  %v6860_v39 = vld [vmem:[%s21982_s3 + $0xbe8] sm:$0xff] }
 0x3ed   : > { %11484 = vmatprep.subr.bf16.mxu1 %v15504_v43  ;;  %v15672_v40 = vcombine.high %v6856_v37, %v6860_v39  ;;  %v6920_v60 = vld [vmem:[%s21982_s3 + $0xdc8] sm:$0xff]  ;;  %v15671_v21 = vcombine.low %v6856_v37, %v6860_v39 }
 0x3ee   : > { %11522 = vmatpush1.bf16.msra.mxu0 %v15567_v50  ;;  %v6924_v38 = vld [vmem:[%s21982_s3 + $0xde8] sm:$0xff] }
 0x3ef   : > { %11523 = vmatprep.subr.bf16.mxu0 %v15560_v7  ;;  %v6848_v45 = vld [vmem:[%s21982_s3 + $0xb88] sm:$0xff]  ;;  %v15736_v30 = vcombine.high %v6920_v60, %v6924_v38  ;;  %v15735_v43 = vcombine.low %v6920_v60, %v6924_v38 }
 0x3f0   : > { %11485 = vmatpush2.bf16.msra.mxu1 %v15503_v47  ;;  %v6852_v32 = vld [vmem:[%s21982_s3 + $0xba8] sm:$0xff]  ;;  %v22358_v47 = vld [vmem:[#allocation22_spill] sm:$0xff] }
 0x3f1   : > { %11486 = vmatprep.subr.bf16.mxu1 %v15496_v55  ;;  %v15664_v20 = vcombine.high %v6848_v45, %v6852_v32  ;;  %v6912_v0 = vld [vmem:[%s21982_s3 + $0xd88] sm:$0xff]  ;;  %v15663_v7 = vcombine.low %v6848_v45, %v6852_v32 }
 0x3f2   : > { %11524 = vmatpush1.bf16.msra.mxu0 %v15559_v63  ;;  %v6916_v24 = vld [vmem:[%s21982_s3 + $0xda8] sm:$0xff] }
 0x3f3   : > { %11525 = vmatprep.subr.bf16.mxu0 %v15552_v5  ;;  %v6840_v13 = vld [vmem:[%s21982_s3 + $0xb48] sm:$0xff]  ;;  %v15728_v11 = vcombine.high %v6912_v0, %v6916_v24  ;;  %v15727_v62 = vcombine.low %v6912_v0, %v6916_v24 }
 0x3f4   : > { %11487 = vmatpush2.bf16.msra.mxu1 %v15495_v41  ;;  %v6844_v50 = vld [vmem:[%s21982_s3 + $0xb68] sm:$0xff] }
 0x3f5   : > { %11488 = vmatprep.subr.bf16.mxu1 %v15488_v23  ;;  %v15656_v1 = vcombine.high %v6840_v13, %v6844_v50  ;;  %v6904_v56 = vld [vmem:[%s21982_s3 + $0xd48] sm:$0xff]  ;;  %v15655_v9 = vcombine.low %v6840_v13, %v6844_v50 }
 0x3f6   : > { %11526 = vmatpush1.bf16.msra.mxu0 %v15551_v2  ;;  %v6908_v12 = vld [vmem:[%s21982_s3 + $0xd68] sm:$0xff] }
 0x3f7   : > { %11527 = vmatprep.subr.bf16.mxu0 %v15672_v40  ;;  %v6832_v63 = vld [vmem:[%s21982_s3 + $0xb08] sm:$0xff]  ;;  %v15720_v37 = vcombine.high %v6904_v56, %v6908_v12  ;;  %v15719_v60 = vcombine.low %v6904_v56, %v6908_v12 }
 0x3f8   : > { %11489 = vmatpush2.bf16.msra.mxu1 %v15487_v57  ;;  %v6836_v55 = vld [vmem:[%s21982_s3 + $0xb28] sm:$0xff] }
 0x3f9   : > { %11564 = vmatprep.subr.bf16.mxu1 %v15736_v30  ;;  %v22359_v5 = vld [vmem:[#allocation25_spill] sm:$0xff]  ;;  %v15648_v39 = vcombine.high %v6832_v63, %v6836_v55  ;;  %v15647_v38 = vcombine.low %v6832_v63, %v6836_v55  ;;  %v22360_v30 = vld [vmem:[#allocation26_spill] sm:$0xff] }
 0x3fa   : > { %11528 = vmatpush2.bf16.msra.mxu0 %v15671_v21  ;;  %v6896_v41 = vld [vmem:[%s21982_s3 + $0xd08] sm:$0xff] }
 0x3fb   : > { %11529 = vmatprep.subr.bf16.mxu0 %v15664_v20  ;;  %11491 = vmatmul.mubr.bf16.vlgmr.msra.gmra.mxu1 %v22358_v47  ;;  %v6900_v2 = vld [vmem:[%s21982_s3 + $0xd28] sm:$0xff] }
 0x3fc   : > { %11500 = vmatprep.mubr.bf16.mxu1 %v22359_v5  ;;  %11565 = vmatpush1.bf16.msra.mxu1 %v15735_v43  ;;  %v6824_v23 = vld [vmem:[%s21982_s3 + $0xac8] sm:$0xff]  ;;  %v15712_v45 = vcombine.high %v6896_v41, %v6900_v2  ;;  %v15711_v24 = vcombine.low %v6896_v41, %v6900_v2 }
 0x3fd   : > { %11566 = vmatprep.subr.bf16.mxu1 %v15728_v11  ;;  %v6828_v40 = vld [vmem:[%s21982_s3 + $0xae8] sm:$0xff] }
 0x3fe   : > { %11530 = vmatpush2.bf16.msra.mxu0 %v15663_v7  ;;  %v15640_v32 = vcombine.high %v6824_v23, %v6828_v40  ;;  %v6888_v57 = vld [vmem:[%s21982_s3 + $0xcc8] sm:$0xff]  ;;  %v15639_v13 = vcombine.low %v6824_v23, %v6828_v40 }
 0x3ff   : > { %11531 = vmatprep.subr.bf16.mxu0 %v15656_v1  ;;  %v6892_v21 = vld [vmem:[%s21982_s3 + $0xce8] sm:$0xff] }
 0x400   : > { %11567 = vmatpush1.bf16.msra.mxu1 %v15727_v62  ;;  %v6816_v20 = vld [vmem:[%s21982_s3 + $0xa88] sm:$0xff]  ;;  %v15704_v50 = vcombine.high %v6888_v57, %v6892_v21  ;;  %v15703_v12 = vcombine.low %v6888_v57, %v6892_v21 }
 0x401   : > { %11568 = vmatprep.subr.bf16.mxu1 %v15720_v37  ;;  %v6820_v0 = vld [vmem:[%s21982_s3 + $0xaa8] sm:$0xff] }
 0x402   : > { %11532 = vmatpush2.bf16.msra.mxu0 %v15655_v9  ;;  %v15632_v43 = vcombine.high %v6816_v20, %v6820_v0  ;;  %v6880_v7 = vld [vmem:[%s21982_s3 + $0xc88] sm:$0xff]  ;;  %v15631_v63 = vcombine.low %v6816_v20, %v6820_v0 }
 0x403   : > { %11533 = vmatprep.subr.bf16.mxu0 %v15648_v39  ;;  %11501 = vmatmul.mubr.bf16.gmra.mxu1 %v22360_v30  ;;  %v6884_v11 = vld [vmem:[%s21982_s3 + $0xca8] sm:$0xff] }
 0x404   : > { %11569 = vmatpush1.bf16.msra.mxu1 %v15719_v60  ;;  %11596 = vmatprep.mubr.bf16.mxu1 %v19104_v34  ;;  %v6808_v1 = vld [vmem:[%s21982_s3 + $0xa48] sm:$0xff]  ;;  %v15696_v55 = vcombine.high %v6880_v7, %v6884_v11  ;;  %v15695_v2 = vcombine.low %v6880_v7, %v6884_v11 }
 0x405   : > { %11570 = vmatprep.subr.bf16.mxu1 %v15712_v45  ;;  %v6812_v56 = vld [vmem:[%s21982_s3 + $0xa68] sm:$0xff] }
 0x406   : > { %11534 = vmatpush2.bf16.msra.mxu0 %v15647_v38  ;;  %v15624_v62 = vcombine.high %v6808_v1, %v6812_v56  ;;  %v6872_v9 = vld [vmem:[%s21982_s3 + $0xc48] sm:$0xff]  ;;  %v15623_v23 = vcombine.low %v6808_v1, %v6812_v56 }
 0x407   : > { %11535 = vmatprep.subr.bf16.mxu0 %v15640_v32  ;;  %v6876_v37 = vld [vmem:[%s21982_s3 + $0xc68] sm:$0xff] }
 0x408   : > { %11571 = vmatpush1.bf16.msra.mxu1 %v15711_v24  ;;  %v6800_v39 = vld [vmem:[%s21982_s3 + $0xa08] sm:$0xff]  ;;  %v15688_v40 = vcombine.high %v6872_v9, %v6876_v37  ;;  %v15687_v21 = vcombine.low %v6872_v9, %v6876_v37 }
 0x409   : > { %11572 = vmatprep.subr.bf16.mxu1 %v15704_v50  ;;  %v6804_v41 = vld [vmem:[%s21982_s3 + $0xa28] sm:$0xff] }
 0x40a   : > { %11536 = vmatpush2.bf16.msra.mxu0 %v15639_v13  ;;  %v15616_v60 = vcombine.high %v6800_v39, %v6804_v41  ;;  %v6864_v38 = vld [vmem:[%s21982_s3 + $0xc08] sm:$0xff]  ;;  %v15615_v20 = vcombine.low %v6800_v39, %v6804_v41 }
 0x40b   : > { %11537 = vmatprep.subr.bf16.mxu0 %v15632_v43  ;;  %v6868_v45 = vld [vmem:[%s21982_s3 + $0xc28] sm:$0xff] }
 0x40c   : > { %11573 = vmatpush1.bf16.msra.mxu1 %v15703_v12  ;;  %v7048_v32 = vld [vmem:[%s21982_s3 + $0x11c8] sm:$0xff]  ;;  %v15680_v0 = vcombine.high %v6864_v38, %v6868_v45  ;;  %v15679_v11 = vcombine.low %v6864_v38, %v6868_v45 }
 0x40d   : > { %11574 = vmatprep.subr.bf16.mxu1 %v15696_v55  ;;  %v7052_v57 = vld [vmem:[%s21982_s3 + $0x11e8] sm:$0xff] }
 0x40e   : > { %11538 = vmatpush2.bf16.msra.mxu0 %v15631_v63  ;;  %v15864_v24 = vcombine.high %v7048_v32, %v7052_v57  ;;  %v6984_v13 = vld [vmem:[%s21982_s3 + $0xfc8] sm:$0xff]  ;;  %v15863_v1 = vcombine.low %v7048_v32, %v7052_v57 }
 0x40f   : > { %11539 = vmatprep.subr.bf16.mxu0 %v15624_v62  ;;  %v6988_v50 = vld [vmem:[%s21982_s3 + $0xfe8] sm:$0xff] }
 0x410   : > { %11575 = vmatpush1.bf16.msra.mxu1 %v15695_v2  ;;  %v7040_v43 = vld [vmem:[%s21982_s3 + $0x1188] sm:$0xff]  ;;  %v15800_v12 = vcombine.high %v6984_v13, %v6988_v50 }
 0x411   : > { %11576 = vmatprep.subr.bf16.mxu1 %v15688_v40  ;;  %v7044_v7 = vld [vmem:[%s21982_s3 + $0x11a8] sm:$0xff] }
 0x412   : > { %11540 = vmatpush2.bf16.msra.mxu0 %v15623_v23  ;;  %v15856_v63 = vcombine.high %v7040_v43, %v7044_v7  ;;  %v6976_v55 = vld [vmem:[%s21982_s3 + $0xf88] sm:$0xff]  ;;  %v15799_v23 = vcombine.low %v6984_v13, %v6988_v50  ;;  %v15855_v40 = vcombine.low %v7040_v43, %v7044_v7 }
 0x413   : > { %11541 = vmatprep.subr.bf16.mxu0 %v15616_v60  ;;  %v6980_v62 = vld [vmem:[%s21982_s3 + $0xfa8] sm:$0xff] }
 0x414   : > { %11577 = vmatpush1.bf16.msra.mxu1 %v15687_v21  ;;  %v11227_v56 = vpop.f32.mrf.mxu0  ;;  %v7032_v39 = vld [vmem:[%s21982_s3 + $0x1148] sm:$0xff]  ;;  %v15792_v45 = vcombine.high %v6976_v55, %v6980_v62 }
 0x415   : > { %11578 = vmatprep.subr.bf16.mxu1 %v15680_v0  ;;  %v11228_v9 = vadd.f32 %v11227_v56, %v19744_v3  ;;  %v11280_v37 = vpop.f32.mrf.mxu1  ;;  %v7036_v41 = vld [vmem:[%s21982_s3 + $0x1168] sm:$0xff] }
 0x416   : > { %11542 = vmatpush2.bf16.msra.mxu0 %v15615_v20  ;;  %v11229_v2 = vpop.f32.mrf.mxu0  ;;  %v15848_v57 = vcombine.high %v7032_v39, %v7036_v41  ;;  %v6968_v21 = vld [vmem:[%s21982_s3 + $0xf48] sm:$0xff]  ;;  %v11181_v20 = vadd.f32 %v19772_v54, %v19764_v52  ;;  %v15791_v52 = vcombine.low %v6976_v55, %v6980_v62 }
 0x417   : > { %11617 = vmatprep.subr.bf16.mxu0 %v15864_v24  ;;  %v19970_v60 = vadd.f32 %v11280_v37, %v11228_v9  ;;  %v11230_v3 = vadd.f32 %v11229_v2, %v19754_v36  ;;  %v11282_v38 = vpop.f32.mrf.mxu1  ;;  %v6972_v36 = vld [vmem:[%s21982_s3 + $0xf68] sm:$0xff] }
 0x418   : > { %11579 = vmatpush1.bf16.msra.mxu1 %v15679_v11  ;;  %v11231_v32 = vpop.f32.mrf.mxu0  ;;  %v7024_v50 = vld [vmem:[%s21982_s3 + $0x1108] sm:$0xff] }
 0x419   : > { %11544 = vmatmul.mubr.bf16.vlgmr.msra.gmra.mxu0 %v18740_v27  ;;  %11580 = vmatprep.subr.bf16.mxu1 %v15800_v12  ;;  %v19979_v0 = vadd.f32 %v11282_v38, %v11230_v3  ;;  %v11232_v24 = vadd.f32 %v11231_v32, %v19762_v51  ;;  %v11284_v13 = vpop.f32.mrf.mxu1  ;;  %v7028_v43 = vld [vmem:[%s21982_s3 + $0x1128] sm:$0xff]  ;;  %v15784_v12 = vcombine.high %v6968_v21, %v6972_v36 }
 0x41a   : > { %11553 = vmatprep.mubr.bf16.mxu0 %v19144_v28  ;;  %11618 = vmatpush1.bf16.msra.mxu0 %v15863_v1  ;;  %v11233_v7 = vpop.f32.mrf.mxu0  ;;  %v15847_v1 = vcombine.low %v7032_v39, %v7036_v41  ;;  %v6960_v9 = vld [vmem:[%s21982_s3 + $0xf08] sm:$0xff]  ;;  %v15839_v3 = vcombine.low %v7024_v50, %v7028_v43 }
 0x41b   : > { %11619 = vmatprep.subr.bf16.mxu0 %v15856_v63  ;;  %v19991_v54 = vadd.f32 %v11284_v13, %v11232_v24  ;;  %v11234_v51 = vadd.f32 %v11233_v7, %v11181_v20  ;;  %v11286_v11 = vpop.f32.mrf.mxu1  ;;  %v15840_v63 = vcombine.high %v7024_v50, %v7028_v43  ;;  %v6964_v37 = vld [vmem:[%s21982_s3 + $0xf28] sm:$0xff] }
 0x41c   : > { %11581 = vmatpush2.bf16.msra.mxu1 %v15799_v23  ;;  %v11237_v56 = vpop.f32.mrf.mxu0  ;;  %v7016_v39 = vld [vmem:[%s21982_s3 + $0x10c8] sm:$0xff]  ;;  %v15776_v32 = vcombine.high %v6960_v9, %v6964_v37 }
 0x41d   : > { %11582 = vmatprep.subr.bf16.mxu1 %v15792_v45  ;;  %v19999_v55 = vadd.f32 %v11286_v11, %v11234_v51  ;;  %v11238_v62 = vadd.f32 %v11237_v56, %v19780_v42  ;;  %v11290_v2 = vpop.f32.mrf.mxu1  ;;  %v7020_v41 = vld [vmem:[%s21982_s3 + $0x10e8] sm:$0xff] }
 0x41e   : > { %11620 = vmatpush1.bf16.msra.mxu0 %v15855_v40  ;;  %v11239_v23 = vpop.f32.mrf.mxu0  ;;  %v15783_v40 = vcombine.low %v6968_v21, %v6972_v36  ;;  %v15832_v20 = vcombine.high %v7016_v39, %v7020_v41  ;;  %v6952_v24 = vld [vmem:[%s21982_s3 + $0xec8] sm:$0xff]  ;;  %v15831_v51 = vcombine.low %v7016_v39, %v7020_v41 }
 0x41f   : > { %11621 = vmatprep.subr.bf16.mxu0 %v15848_v57  ;;  %v20009_v38 = vadd.f32 %v11290_v2, %v11238_v62  ;;  %v11240_v42 = vadd.f32 %v11239_v23, %v19790_v29  ;;  %v11292_v45 = vpop.f32.mrf.mxu1  ;;  %v6956_v21 = vld [vmem:[%s21982_s3 + $0xee8] sm:$0xff] }
 0x420   : > { %11583 = vmatpush2.bf16.msra.mxu1 %v15791_v52  ;;  %v11241_v57 = vpop.f32.mrf.mxu0  ;;  %v7008_v29 = vld [vmem:[%s21982_s3 + $0x1088] sm:$0xff]  ;;  %v15775_v52 = vcombine.low %v6960_v9, %v6964_v37  ;;  %v15767_v37 = vcombine.low %v6952_v24, %v6956_v21 }
 0x421   : > { %11554 = vmatmul.mubr.bf16.gmra.mxu0 %v18782_v53  ;;  %11584 = vmatprep.subr.bf16.mxu1 %v15784_v12  ;;  %v20019_v13 = vadd.f32 %v11292_v45, %v11240_v42  ;;  %v11242_v36 = vadd.f32 %v11241_v57, %v19798_v49  ;;  %v7012_v50 = vld [vmem:[%s21982_s3 + $0x10a8] sm:$0xff]  ;;  %v11294_v43 = vpop.f32.mrf.mxu1  ;;  %v15768_v49 = vcombine.high %v6952_v24, %v6956_v21 }
 0x422   : > { %11622 = vmatpush1.bf16.msra.mxu0 %v15847_v1  ;;  %11649 = vmatprep.mubr.bf16.mxu0 %v19460_v6  ;;  %v11243_v7 = vpop.f32.mrf.mxu0  ;;  %v15824_v56 = vcombine.high %v7008_v29, %v7012_v50  ;;  %v6944_v12 = vld [vmem:[%s21982_s3 + $0xe88] sm:$0xff]  ;;  %v15823_v62 = vcombine.low %v7008_v29, %v7012_v50 }
 0x423   : > { %11623 = vmatprep.subr.bf16.mxu0 %v15840_v63  ;;  %v20028_v11 = vadd.f32 %v11294_v43, %v11242_v36  ;;  %v20031_v1 = vadd.f32 %v11243_v7, %v19806_v4  ;;  %v6948_v63 = vld [vmem:[%s21982_s3 + $0xea8] sm:$0xff] }
 0x424   : > { %11585 = vmatpush2.bf16.msra.mxu1 %v15783_v40  ;;  %v7000_v9 = vld [vmem:[%s21982_s3 + $0x1048] sm:$0xff]  ;;  %v15760_v2 = vcombine.high %v6944_v12, %v6948_v63  ;;  %v15759_v42 = vcombine.low %v6944_v12, %v6948_v63 }
 0x425   : > { %11586 = vmatprep.subr.bf16.mxu1 %v15776_v32  ;;  %v7004_v4 = vld [vmem:[%s21982_s3 + $0x1068] sm:$0xff] }
 0x426   : > { %11624 = vmatpush1.bf16.msra.mxu0 %v15839_v3  ;;  %v15816_v39 = vcombine.high %v7000_v9, %v7004_v4  ;;  %v6936_v41 = vld [vmem:[%s21982_s3 + $0xe48] sm:$0xff]  ;;  %v15815_v45 = vcombine.low %v7000_v9, %v7004_v4 }
 0x427   : > { %11625 = vmatprep.subr.bf16.mxu0 %v15832_v20  ;;  %v6940_v23 = vld [vmem:[%s21982_s3 + $0xe68] sm:$0xff] }
 0x428   : > { %11587 = vmatpush2.bf16.msra.mxu1 %v15775_v52  ;;  %v6992_v40 = vld [vmem:[%s21982_s3 + $0x1008] sm:$0xff]  ;;  %v15752_v32 = vcombine.high %v6936_v41, %v6940_v23  ;;  %v15751_v29 = vcombine.low %v6936_v41, %v6940_v23 }
 0x429   : > { %11588 = vmatprep.subr.bf16.mxu1 %v15768_v49  ;;  %v6996_v3 = vld [vmem:[%s21982_s3 + $0x1028] sm:$0xff] }
 0x42a   : > { %11626 = vmatpush1.bf16.msra.mxu0 %v15831_v51  ;;  %v15808_v57 = vcombine.high %v6992_v40, %v6996_v3  ;;  %v6928_v20 = vld [vmem:[%s21982_s3 + $0xe08] sm:$0xff]  ;;  %v15807_v50 = vcombine.low %v6992_v40, %v6996_v3 }
 0x42b   : > { %11627 = vmatprep.subr.bf16.mxu0 %v15824_v56  ;;  %v6932_v24 = vld [vmem:[%s21982_s3 + $0xe28] sm:$0xff] }
 0x42c   : > { %11589 = vmatpush2.bf16.msra.mxu1 %v15767_v37  ;;  %v7112_v21 = vld [vmem:[%s21982_s3 + $0x13c8] sm:$0xff]  ;;  %v15744_v43 = vcombine.high %v6928_v20, %v6932_v24  ;;  %v15743_v12 = vcombine.low %v6928_v20, %v6932_v24 }
 0x42d   : > { %11590 = vmatprep.subr.bf16.mxu1 %v15760_v2  ;;  %v7116_v36 = vld [vmem:[%s21982_s3 + $0x13e8] sm:$0xff] }
 0x42e   : > { %11628 = vmatpush1.bf16.msra.mxu0 %v15823_v62  ;;  %v15928_v7 = vcombine.high %v7112_v21, %v7116_v36  ;;  %v7176_v52 = vld [vmem:[%s21982_s3 + $0x15c8] sm:$0xff]  ;;  %v15927_v63 = vcombine.low %v7112_v21, %v7116_v36 }
 0x42f   : > { %11629 = vmatprep.subr.bf16.mxu0 %v15816_v39  ;;  %v7180_v51 = vld [vmem:[%s21982_s3 + $0x15e8] sm:$0xff] }
 0x430   : > { %11591 = vmatpush2.bf16.msra.mxu1 %v15759_v42  ;;  %v7104_v49 = vld [vmem:[%s21982_s3 + $0x1388] sm:$0xff]  ;;  %v15992_v9 = vcombine.high %v7176_v52, %v7180_v51  ;;  %v15991_v41 = vcombine.low %v7176_v52, %v7180_v51 }
 0x431   : > { %11592 = vmatprep.subr.bf16.mxu1 %v15752_v32  ;;  %v7108_v56 = vld [vmem:[%s21982_s3 + $0x13a8] sm:$0xff] }
 0x432   : > { %11630 = vmatpush1.bf16.msra.mxu0 %v15815_v45  ;;  %v15920_v4 = vcombine.high %v7104_v49, %v7108_v56  ;;  %v7168_v37 = vld [vmem:[%s21982_s3 + $0x1588] sm:$0xff]  ;;  %v15919_v23 = vcombine.low %v7104_v49, %v7108_v56 }
 0x433   : > { %11631 = vmatprep.subr.bf16.mxu0 %v15808_v57  ;;  %v7172_v62 = vld [vmem:[%s21982_s3 + $0x15a8] sm:$0xff] }
 0x434   : > { %11593 = vmatpush2.bf16.msra.mxu1 %v15751_v29  ;;  %v7096_v2 = vld [vmem:[%s21982_s3 + $0x1348] sm:$0xff]  ;;  %v15984_v40 = vcombine.high %v7168_v37, %v7172_v62  ;;  %v15983_v20 = vcombine.low %v7168_v37, %v7172_v62 }
 0x435   : > { %11594 = vmatprep.subr.bf16.mxu1 %v15744_v43  ;;  %v7100_v39 = vld [vmem:[%s21982_s3 + $0x1368] sm:$0xff] }
 0x436   : > { %11632 = vmatpush1.bf16.msra.mxu0 %v15807_v50  ;;  %v15912_v3 = vcombine.high %v7096_v2, %v7100_v39  ;;  %v7160_v42 = vld [vmem:[%s21982_s3 + $0x1548] sm:$0xff]  ;;  %v15911_v24 = vcombine.low %v7096_v2, %v7100_v39 }
 0x437   : > { %11633 = vmatprep.subr.bf16.mxu0 %v15928_v7  ;;  %v7164_v45 = vld [vmem:[%s21982_s3 + $0x1568] sm:$0xff] }
 0x438   : > { %11595 = vmatpush2.bf16.msra.mxu1 %v15743_v12  ;;  %v7088_v32 = vld [vmem:[%s21982_s3 + $0x1308] sm:$0xff]  ;;  %v15976_v21 = vcombine.high %v7160_v42, %v7164_v45  ;;  %v15975_v52 = vcombine.low %v7160_v42, %v7164_v45 }
 0x439   : > { %11670 = vmatprep.subr.bf16.mxu1 %v15992_v9  ;;  %v7092_v57 = vld [vmem:[%s21982_s3 + $0x1328] sm:$0xff] }
 0x43a   : > { %11634 = vmatpush2.bf16.msra.mxu0 %v15927_v63  ;;  %v15904_v36 = vcombine.high %v7088_v32, %v7092_v57  ;;  %v7152_v29 = vld [vmem:[%s21982_s3 + $0x1508] sm:$0xff]  ;;  %v15903_v51 = vcombine.low %v7088_v32, %v7092_v57 }
 0x43b   : > { %11635 = vmatprep.subr.bf16.mxu0 %v15920_v4  ;;  %11597 = vmatmul.mubr.bf16.vlgmr.msra.gmra.mxu1 %v19080_v25  ;;  %v7156_v50 = vld [vmem:[%s21982_s3 + $0x1528] sm:$0xff] }
 0x43c   : > { %11606 = vmatprep.mubr.bf16.mxu1 %v19149_v8  ;;  %11671 = vmatpush1.bf16.msra.mxu1 %v15991_v41  ;;  %v7080_v43 = vld [vmem:[%s21982_s3 + $0x12c8] sm:$0xff]  ;;  %v15968_v49 = vcombine.high %v7152_v29, %v7156_v50  ;;  %v15967_v37 = vcombine.low %v7152_v29, %v7156_v50 }
 0x43d   : > { %11672 = vmatprep.subr.bf16.mxu1 %v15984_v40  ;;  %v7084_v7 = vld [vmem:[%s21982_s3 + $0x12e8] sm:$0xff] }
 0x43e   : > { %11636 = vmatpush2.bf16.msra.mxu0 %v15919_v23  ;;  %v15896_v56 = vcombine.high %v7080_v43, %v7084_v7  ;;  %v7144_v12 = vld [vmem:[%s21982_s3 + $0x14c8] sm:$0xff]  ;;  %v15895_v62 = vcombine.low %v7080_v43, %v7084_v7 }
 0x43f   : > { %11637 = vmatprep.subr.bf16.mxu0 %v15912_v3  ;;  %v7148_v63 = vld [vmem:[%s21982_s3 + $0x14e8] sm:$0xff] }
 0x440   : > { %11673 = vmatpush1.bf16.msra.mxu1 %v15983_v20  ;;  %v7072_v9 = vld [vmem:[%s21982_s3 + $0x1288] sm:$0xff]  ;;  %v15960_v2 = vcombine.high %v7144_v12, %v7148_v63  ;;  %v15959_v42 = vcombine.low %v7144_v12, %v7148_v63 }
 0x441   : > { %11674 = vmatprep.subr.bf16.mxu1 %v15976_v21  ;;  %v7076_v4 = vld [vmem:[%s21982_s3 + $0x12a8] sm:$0xff] }
 0x442   : > { %11638 = vmatpush2.bf16.msra.mxu0 %v15911_v24  ;;  %v15888_v39 = vcombine.high %v7072_v9, %v7076_v4  ;;  %v7136_v41 = vld [vmem:[%s21982_s3 + $0x1488] sm:$0xff]  ;;  %v15887_v45 = vcombine.low %v7072_v9, %v7076_v4 }
 0x443   : > { %11639 = vmatprep.subr.bf16.mxu0 %v15904_v36  ;;  %11607 = vmatmul.mubr.bf16.gmra.mxu1 %v19130_v16  ;;  %v7140_v23 = vld [vmem:[%s21982_s3 + $0x14a8] sm:$0xff] }
 0x444   : > { %11675 = vmatpush1.bf16.msra.mxu1 %v15975_v52  ;;  %11702 = vmatprep.mubr.bf16.mxu1 %v19638_v31  ;;  %v7064_v40 = vld [vmem:[%s21982_s3 + $0x1248] sm:$0xff]  ;;  %v15952_v32 = vcombine.high %v7136_v41, %v7140_v23  ;;  %v15951_v29 = vcombine.low %v7136_v41, %v7140_v23 }
 0x445   : > { %11676 = vmatprep.subr.bf16.mxu1 %v15968_v49  ;;  %v7068_v3 = vld [vmem:[%s21982_s3 + $0x1268] sm:$0xff]  ;;  %v6537_v49 = vld [vmem:[%s21982_s3 + $0x1d0] sm:$0xff] }
 0x446   : > { %11640 = vmatpush2.bf16.msra.mxu0 %v15903_v51  ;;  %v15880_v57 = vcombine.high %v7064_v40, %v7068_v3  ;;  %v7128_v20 = vld [vmem:[%s21982_s3 + $0x1448] sm:$0xff]  ;;  %v15879_v50 = vcombine.low %v7064_v40, %v7068_v3 }
 0x447   : > { %11641 = vmatprep.subr.bf16.mxu0 %v15896_v56  ;;  %v7132_v24 = vld [vmem:[%s21982_s3 + $0x1468] sm:$0xff]  ;;  %v6541_v56 = vld [vmem:[%s21982_s3 + $0x1f0] sm:$0xff] }
 0x448   : > { %11677 = vmatpush1.bf16.msra.mxu1 %v15967_v37  ;;  %v7056_v21 = vld [vmem:[%s21982_s3 + $0x1208] sm:$0xff]  ;;  %v15944_v43 = vcombine.high %v7128_v20, %v7132_v24  ;;  %v15943_v12 = vcombine.low %v7128_v20, %v7132_v24  ;;  %v15354_v4 = vcombine.high %v6537_v49, %v6541_v56  ;;  %v15353_v23 = vcombine.low %v6537_v49, %v6541_v56  ;;  %v6525_v20 = vld [vmem:[%s21982_s3 + $0x170] sm:$0xff] }
 0x449   : > { %11678 = vmatprep.subr.bf16.mxu1 %v15960_v2  ;;  %v7060_v36 = vld [vmem:[%s21982_s3 + $0x1228] sm:$0xff]  ;;  %v6529_v2 = vld [vmem:[%s21982_s3 + $0x190] sm:$0xff] }
 0x44a   : > { %11642 = vmatpush2.bf16.msra.mxu0 %v15895_v62  ;;  %v15872_v7 = vcombine.high %v7056_v21, %v7060_v36  ;;  %v7120_v52 = vld [vmem:[%s21982_s3 + $0x1408] sm:$0xff]  ;;  %v15871_v63 = vcombine.low %v7056_v21, %v7060_v36  ;;  %v6513_v49 = vld [vmem:[%s21982_s3 + $0x110] sm:$0xff] }
 0x44b   : > { %11643 = vmatprep.subr.bf16.mxu0 %v15888_v39  ;;  %v7124_v51 = vld [vmem:[%s21982_s3 + $0x1428] sm:$0xff]  ;;  %v6533_v39 = vld [vmem:[%s21982_s3 + $0x1b0] sm:$0xff] }
 0x44c   : > { %11679 = vmatpush1.bf16.msra.mxu1 %v15959_v42  ;;  %v15936_v9 = vcombine.high %v7120_v52, %v7124_v51  ;;  %v7240_v37 = vld [vmem:[%s21982_s3 + $0x17c8] sm:$0xff]  ;;  %v15935_v41 = vcombine.low %v7120_v52, %v7124_v51  ;;  %v15346_v3 = vcombine.high %v6529_v2, %v6533_v39 }
 0x44d   : > { %11680 = vmatprep.subr.bf16.mxu1 %v15952_v32  ;;  %v7244_v62 = vld [vmem:[%s21982_s3 + $0x17e8] sm:$0xff] }
 0x44e   : > { %11644 = vmatpush2.bf16.msra.mxu0 %v15887_v45  ;;  %v16056_v40 = vcombine.high %v7240_v37, %v7244_v62  ;;  %v7232_v42 = vld [vmem:[%s21982_s3 + $0x1788] sm:$0xff]  ;;  %v16055_v21 = vcombine.low %v7240_v37, %v7244_v62 }
 0x44f   : > { %11645 = vmatprep.subr.bf16.mxu0 %v15880_v57  ;;  %v7236_v45 = vld [vmem:[%s21982_s3 + $0x17a8] sm:$0xff]  ;;  %v6521_v57 = vld [vmem:[%s21982_s3 + $0x150] sm:$0xff] }
 0x450   : > { %11681 = vmatpush1.bf16.msra.mxu1 %v15951_v29  ;;  %v15345_v29 = vcombine.low %v6529_v2, %v6533_v39  ;;  %v7228_v51 = vld [vmem:[%s21982_s3 + $0x1768] sm:$0xff] }
 0x451   : > { %11682 = vmatprep.subr.bf16.mxu1 %v15944_v43  ;;  %v7216_v2 = vld [vmem:[%s21982_s3 + $0x1708] sm:$0xff] }
 0x452   : > { %11646 = vmatpush2.bf16.msra.mxu0 %v15879_v50  ;;  %v16048_v50 = vcombine.high %v7232_v42, %v7236_v45 }
 0x453   : > { %11647 = vmatprep.subr.bf16.mxu0 %v15872_v7  ;;  %v15338_v7 = vcombine.high %v6521_v57, %v6525_v20 }
 0x454   : > { %11683 = vmatpush1.bf16.msra.mxu1 %v15943_v12  ;;  %v16047_v12 = vcombine.low %v7232_v42, %v7236_v45 }
 0x455   : > { %11684 = vmatprep.subr.bf16.mxu1 %v15936_v9  ;;  %v15337_v9 = vcombine.low %v6521_v57, %v6525_v20  ;;  %v7212_v20 = vld [vmem:[%s21982_s3 + $0x16e8] sm:$0xff] }
 0x456   : > { %11648 = vmatpush2.bf16.msra.mxu0 %v15871_v63 }
 0x457   : > { %11723 = vmatprep.subr.bf16.mxu0 %v15354_v4 }
 0x458   : > { %11685 = vmatpush1.bf16.msra.mxu1 %v15935_v41  ;;  %v6505_v41 = vld [vmem:[%s21982_s3 + $0xd0] sm:$0xff] }
 0x459   : > { %v11333_v32 = vpop.f32.mrf.mxu0  ;;  %11650 = vmatmul.mubr.bf16.vlgmr.msra.gmra.mxu0 %v19450_v10  ;;  %11686 = vmatprep.subr.bf16.mxu1 %v16056_v40 }
 0x45a   : > { %v20194_v24 = vadd.f32 %v11333_v32, %v19970_v60  ;;  %11659 = vmatprep.mubr.bf16.mxu0 %v19510_v58  ;;  %11724 = vmatpush1.bf16.msra.mxu0 %v15353_v23  ;;  %v7224_v60 = vld [vmem:[%s21982_s3 + $0x1748] sm:$0xff] }
 0x45b   : > { %v11335_v36 = vpop.f32.mrf.mxu0  ;;  %11725 = vmatprep.subr.bf16.mxu0 %v15346_v3  ;;  %v16040_v37 = vcombine.high %v7224_v60, %v7228_v51  ;;  %v16039_v40 = vcombine.low %v7224_v60, %v7228_v51 }
 0x45c   : > { %v20199_v43 = vadd.f32 %v11335_v36, %v19979_v0  ;;  %v6517_v0 = vld [vmem:[%s21982_s3 + $0x130] sm:$0xff]  ;;  %11687 = vmatpush2.bf16.msra.mxu1 %v16055_v21  ;;  %v11296_v21 = vpop.f32.mrf.mxu1 }
 0x45d   : > { %v11337_v52 = vpop.f32.mrf.mxu0  ;;  %11688 = vmatprep.subr.bf16.mxu1 %v16048_v50  ;;  %v15330_v62 = vcombine.high %v6513_v49, %v6517_v0  ;;  %v15329_v42 = vcombine.low %v6513_v49, %v6517_v0  ;;  %v11297_v50 = vadd.f32 %v11296_v21, %v20031_v1  ;;  %v6489_v1 = vld [vmem:[%s21982_s3 + $0x50] sm:$0xff] }
 0x45e   : > { %v20214_v56 = vadd.f32 %v11337_v52, %v19991_v54  ;;  %11726 = vmatpush1.bf16.msra.mxu0 %v15345_v29  ;;  %v7220_v54 = vld [vmem:[%s21982_s3 + $0x1728] sm:$0xff]  ;;  %v6497_v29 = vld [vmem:[%s21982_s3 + $0x90] sm:$0xff] }
 0x45f   : > { %v11339_v63 = vpop.f32.mrf.mxu0  ;;  %11727 = vmatprep.subr.bf16.mxu0 %v15338_v7  ;;  %v16032_v45 = vcombine.high %v7216_v2, %v7220_v54  ;;  %v16031_v60 = vcombine.low %v7216_v2, %v7220_v54  ;;  %v6601_v21 = vld [vmem:[%s21982_s3 + $0x3d0] sm:$0xff] }
 0x460   : > { %v20217_v4 = vadd.f32 %v11339_v63, %v19999_v55  ;;  %v6509_v55 = vld [vmem:[%s21982_s3 + $0xf0] sm:$0xff]  ;;  %11689 = vmatpush2.bf16.msra.mxu1 %v16047_v12  ;;  %v7200_v63 = vld [vmem:[%s21982_s3 + $0x1688] sm:$0xff] }
 0x461   : > { %v11343_v39 = vpop.f32.mrf.mxu0  ;;  %11660 = vmatmul.mubr.bf16.gmra.mxu0 %v19500_v46  ;;  %11690 = vmatprep.subr.bf16.mxu1 %v16040_v37  ;;  %v15322_v57 = vcombine.high %v6505_v41, %v6509_v55  ;;  %v15321_v51 = vcombine.low %v6505_v41, %v6509_v55  ;;  %v7196_v41 = vld [vmem:[%s21982_s3 + $0x1668] sm:$0xff]  ;;  %v6481_v55 = vld [vmem:[%s21982_s3 + $0x10] sm:$0xff] }
 0x462   : > { %v20232_v23 = vadd.f32 %v11343_v39, %v20009_v38  ;;  %11728 = vmatpush1.bf16.msra.mxu0 %v15337_v9  ;;  %11755 = vmatprep.mubr.bf16.mxu0 %v18435_v44  ;;  %v7208_v38 = vld [vmem:[%s21982_s3 + $0x16c8] sm:$0xff]  ;;  %v6493_v9 = vld [vmem:[%s21982_s3 + $0x70] sm:$0xff] }
 0x463   : > { %v11345_v3 = vpop.f32.mrf.mxu0  ;;  %11729 = vmatprep.subr.bf16.mxu0 %v15330_v62  ;;  %v16024_v49 = vcombine.high %v7208_v38, %v7212_v20  ;;  %v16023_v37 = vcombine.low %v7208_v38, %v7212_v20  ;;  %v15306_v54 = vcombine.high %v6489_v1, %v6493_v9  ;;  %v7192_v39 = vld [vmem:[%s21982_s3 + $0x1648] sm:$0xff] }
 0x464   : > { %v20237_v32 = vadd.f32 %v11345_v3, %v20019_v13  ;;  %v6501_v13 = vld [vmem:[%s21982_s3 + $0xb0] sm:$0xff]  ;;  %11691 = vmatpush2.bf16.msra.mxu1 %v16039_v40  ;;  %v7184_v38 = vld [vmem:[%s21982_s3 + $0x1608] sm:$0xff] }
 0x465   : > { %v11347_v36 = vpop.f32.mrf.mxu0  ;;  %11692 = vmatprep.subr.bf16.mxu1 %v16032_v45  ;;  %v15314_v12 = vcombine.high %v6497_v29, %v6501_v13  ;;  %v15313_v62 = vcombine.low %v6497_v29, %v6501_v13  ;;  %v6485_v40 = vld [vmem:[%s21982_s3 + $0x30] sm:$0xff]  ;;  %v16008_v45 = vcombine.high %v7192_v39, %v7196_v41  ;;  %v7188_v20 = vld [vmem:[%s21982_s3 + $0x1628] sm:$0xff]  ;;  %v16007_v29 = vcombine.low %v7192_v39, %v7196_v41 }
 0x466   : > { %v20253_v7 = vadd.f32 %v11347_v36, %v20028_v11  ;;  %11730 = vmatpush1.bf16.msra.mxu0 %v15329_v42  ;;  %v7204_v11 = vld [vmem:[%s21982_s3 + $0x16a8] sm:$0xff]  ;;  %v15305_v42 = vcombine.low %v6489_v1, %v6493_v9  ;;  %v6605_v36 = vld [vmem:[%s21982_s3 + $0x3f0] sm:$0xff]  ;;  %v15297_v13 = vcombine.low %v6481_v55, %v6485_v40 }
 0x467   : > { %v11349_v52 = vpop.f32.mrf.mxu0  ;;  %11731 = vmatprep.subr.bf16.mxu0 %v15322_v57  ;;  %v16016_v2 = vcombine.high %v7200_v63, %v7204_v11  ;;  %v16015_v3 = vcombine.low %v7200_v63, %v7204_v11  ;;  %v15298_v57 = vcombine.high %v6481_v55, %v6485_v40  ;;  %v15999_v63 = vcombine.low %v7184_v38, %v7188_v20 }
 0x468   : > { %v20255_v0 = vadd.f32 %v11349_v52, %v11297_v50  ;;  %11693 = vmatpush2.bf16.msra.mxu1 %v16031_v60  ;;  %v16000_v50 = vcombine.high %v7184_v38, %v7188_v20  ;;  %v15418_v60 = vcombine.high %v6601_v21, %v6605_v36  ;;  %v6665_v52 = vld [vmem:[%s21982_s3 + $0x5d0] sm:$0xff]  ;;  %v15417_v11 = vcombine.low %v6601_v21, %v6605_v36 }
 0x469   : > { %11694 = vmatprep.subr.bf16.mxu1 %v16024_v49  ;;  %v6593_v49 = vld [vmem:[%s21982_s3 + $0x390] sm:$0xff] }
 0x46a   : > { %11732 = vmatpush1.bf16.msra.mxu0 %v15321_v51  ;;  %v6669_v51 = vld [vmem:[%s21982_s3 + $0x5f0] sm:$0xff] }
 0x46b   : > { %11733 = vmatprep.subr.bf16.mxu0 %v15314_v12  ;;  %v6597_v12 = vld [vmem:[%s21982_s3 + $0x3b0] sm:$0xff]  ;;  %v15482_v1 = vcombine.high %v6665_v52, %v6669_v51  ;;  %v15481_v39 = vcombine.low %v6665_v52, %v6669_v51 }
 0x46c   : > { %11695 = vmatpush2.bf16.msra.mxu1 %v16023_v37  ;;  %v15410_v9 = vcombine.high %v6593_v49, %v6597_v12  ;;  %v6657_v37 = vld [vmem:[%s21982_s3 + $0x590] sm:$0xff]  ;;  %v15409_v41 = vcombine.low %v6593_v49, %v6597_v12 }
 0x46d   : > { %11696 = vmatprep.subr.bf16.mxu1 %v16016_v2  ;;  %v6585_v2 = vld [vmem:[%s21982_s3 + $0x350] sm:$0xff] }
 0x46e   : > { %11734 = vmatpush1.bf16.msra.mxu0 %v15313_v62  ;;  %v6661_v62 = vld [vmem:[%s21982_s3 + $0x5b0] sm:$0xff] }
 0x46f   : > { %11735 = vmatprep.subr.bf16.mxu0 %v15306_v54  ;;  %v6589_v54 = vld [vmem:[%s21982_s3 + $0x370] sm:$0xff]  ;;  %v15474_v55 = vcombine.high %v6657_v37, %v6661_v62  ;;  %v15473_v36 = vcombine.low %v6657_v37, %v6661_v62 }
 0x470   : > { %11697 = vmatpush2.bf16.msra.mxu1 %v16015_v3  ;;  %v15402_v3 = vcombine.high %v6585_v2, %v6589_v54  ;;  %v6577_v38 = vld [vmem:[%s21982_s3 + $0x310] sm:$0xff] }
 0x471   : > { %11698 = vmatprep.subr.bf16.mxu1 %v16008_v45  ;;  %v6653_v45 = vld [vmem:[%s21982_s3 + $0x570] sm:$0xff] }
 0x472   : > { %11736 = vmatpush1.bf16.msra.mxu0 %v15305_v42  ;;  %v6649_v42 = vld [vmem:[%s21982_s3 + $0x550] sm:$0xff] }
 0x473   : > { %11737 = vmatprep.subr.bf16.mxu0 %v15298_v57  ;;  %v6581_v20 = vld [vmem:[%s21982_s3 + $0x330] sm:$0xff] }
 0x474   : > { %11699 = vmatpush2.bf16.msra.mxu1 %v16007_v29  ;;  %v6641_v52 = vld [vmem:[%s21982_s3 + $0x510] sm:$0xff] }
 0x475   : > { %11700 = vmatprep.subr.bf16.mxu1 %v16000_v50  ;;  %v6645_v51 = vld [vmem:[%s21982_s3 + $0x530] sm:$0xff] }
 0x476   : > { %11738 = vmatpush1.bf16.msra.mxu0 %v15297_v13  ;;  %v15466_v13 = vcombine.high %v6649_v42, %v6653_v45  ;;  %v6573_v12 = vld [vmem:[%s21982_s3 + $0x2f0] sm:$0xff]  ;;  %v15458_v37 = vcombine.high %v6641_v52, %v6645_v51 }
 0x477   : > { %11739 = vmatprep.subr.bf16.mxu0 %v15418_v60  ;;  %v15394_v60 = vcombine.high %v6577_v38, %v6581_v20  ;;  %v6633_v62 = vld [vmem:[%s21982_s3 + $0x4d0] sm:$0xff] }
 0x478   : > { %11701 = vmatpush2.bf16.msra.mxu1 %v15999_v63 }
 0x479   : > { %11776 = vmatprep.subr.bf16.mxu1 %v15482_v1  ;;  %v11386_v40 = vpop.f32.mrf.mxu1 }
 0x47a   : > { %11740 = vmatpush2.bf16.msra.mxu0 %v15417_v11  ;;  %v20325_v57 = vadd.f32 %v11386_v40, %v20194_v24  ;;  %v15401_v24 = vcombine.low %v6585_v2, %v6589_v54  ;;  %v15465_v11 = vcombine.low %v6649_v42, %v6653_v45  ;;  %v6637_v2 = vld [vmem:[%s21982_s3 + $0x4f0] sm:$0xff] }
 0x47b   : > { %11741 = vmatprep.subr.bf16.mxu0 %v15410_v9  ;;  %11703 = vmatmul.mubr.bf16.vlgmr.msra.gmra.mxu1 %v19613_v18  ;;  %v11388_v21 = vpop.f32.mrf.mxu1  ;;  %v15393_v9 = vcombine.low %v6577_v38, %v6581_v20  ;;  %v15450_v42 = vcombine.high %v6633_v62, %v6637_v2  ;;  %v6625_v20 = vld [vmem:[%s21982_s3 + $0x490] sm:$0xff] }
 0x47c   : > { %11712 = vmatprep.mubr.bf16.mxu1 %v19673_v33  ;;  %11777 = vmatpush1.bf16.msra.mxu1 %v15481_v39  ;;  %v20335_v29 = vadd.f32 %v11388_v21, %v20199_v43  ;;  %v6569_v43 = vld [vmem:[%s21982_s3 + $0x2d0] sm:$0xff] }
 0x47d   : > { %11778 = vmatprep.subr.bf16.mxu1 %v15474_v55  ;;  %v11390_v50 = vpop.f32.mrf.mxu1  ;;  %v6565_v39 = vld [vmem:[%s21982_s3 + $0x2b0] sm:$0xff]  ;;  %v15457_v55 = vcombine.low %v6641_v52, %v6645_v51 }
 0x47e   : > { %11742 = vmatpush2.bf16.msra.mxu0 %v15409_v41  ;;  %v20344_v49 = vadd.f32 %v11390_v50, %v20214_v56  ;;  %v15386_v56 = vcombine.high %v6569_v43, %v6573_v12 }
 0x47f   : > { %11743 = vmatprep.subr.bf16.mxu0 %v15402_v3  ;;  %v11392_v63 = vpop.f32.mrf.mxu1  ;;  %v15385_v3 = vcombine.low %v6569_v43, %v6573_v12  ;;  %v6617_v12 = vld [vmem:[%s21982_s3 + $0x450] sm:$0xff] }
 0x480   : > { %11779 = vmatpush1.bf16.msra.mxu1 %v15473_v36  ;;  %v20353_v1 = vadd.f32 %v11392_v63, %v20217_v4  ;;  %v6561_v4 = vld [vmem:[%s21982_s3 + $0x290] sm:$0xff] }
 0x481   : > { %11780 = vmatprep.subr.bf16.mxu1 %v15466_v13  ;;  %v15378_v38 = vcombine.high %v6561_v4, %v6565_v39  ;;  %v6553_v36 = vld [vmem:[%s21982_s3 + $0x250] sm:$0xff]  ;;  %v15449_v13 = vcombine.low %v6633_v62, %v6637_v2 }
 0x482   : > { %11744 = vmatpush2.bf16.msra.mxu0 %v15401_v24  ;;  %v6545_v63 = vld [vmem:[%s21982_s3 + $0x210] sm:$0xff] }
 0x483   : > { %11745 = vmatprep.subr.bf16.mxu0 %v15394_v60  ;;  %11713 = vmatmul.mubr.bf16.gmra.mxu1 %v19659_v15  ;;  %v11396_v54 = vpop.f32.mrf.mxu1  ;;  %v15377_v60 = vcombine.low %v6561_v4, %v6565_v39  ;;  %v6609_v62 = vld [vmem:[%s21982_s3 + $0x410] sm:$0xff] }
 0x484   : > { %v20369_v41 = vadd.f32 %v11396_v54, %v20232_v23  ;;  %11781 = vmatpush1.bf16.msra.mxu1 %v15465_v11  ;;  %11808 = vmatprep.mubr.bf16.mxu1 %v18446_v26  ;;  %v6629_v23 = vld [vmem:[%s21982_s3 + $0x4b0] sm:$0xff] }
 0x485   : > { %v11398_v40 = vpop.f32.mrf.mxu1  ;;  %11782 = vmatprep.subr.bf16.mxu1 %v15458_v37  ;;  %v15442_v52 = vcombine.high %v6625_v20, %v6629_v23  ;;  %v6549_v11 = vld [vmem:[%s21982_s3 + $0x230] sm:$0xff] }
 0x486   : > { %22361 = vst [vmem:[#allocation35_spill] sm:$0xff] %v20369_v41  ;;  %11746 = vmatpush2.bf16.msra.mxu0 %v15393_v9  ;;  %v20373_v45 = vadd.f32 %v11398_v40, %v20237_v32  ;;  %v6557_v32 = vld [vmem:[%s21982_s3 + $0x270] sm:$0xff] }
 0x487   : > { %11747 = vmatprep.subr.bf16.mxu0 %v15386_v56  ;;  %v11400_v21 = vpop.f32.mrf.mxu1  ;;  %v15370_v43 = vcombine.high %v6553_v36, %v6557_v32  ;;  %v15369_v9 = vcombine.low %v6553_v36, %v6557_v32  ;;  %v15362_v56 = vcombine.high %v6545_v63, %v6549_v11  ;;  %v6613_v2 = vld [vmem:[%s21982_s3 + $0x430] sm:$0xff] }
 0x488   : > { %22362 = vst [vmem:[#allocation24_spill] sm:$0xff] %v20373_v45  ;;  %v20388_v24 = vadd.f32 %v11400_v21, %v20253_v7  ;;  %11783 = vmatpush1.bf16.msra.mxu1 %v15457_v55  ;;  %v6621_v7 = vld [vmem:[%s21982_s3 + $0x470] sm:$0xff]  ;;  %v15361_v55 = vcombine.low %v6545_v63, %v6549_v11  ;;  %v15426_v40 = vcombine.high %v6609_v62, %v6613_v2 }
 0x489   : > { %v11402_v50 = vpop.f32.mrf.mxu1  ;;  %11784 = vmatprep.subr.bf16.mxu1 %v15450_v42  ;;  %v15434_v37 = vcombine.high %v6617_v12, %v6621_v7  ;;  %v6793_v54 = vld [vmem:[%s21982_s3 + $0x9d0] sm:$0xff]  ;;  %v15433_v39 = vcombine.low %v6617_v12, %v6621_v7  ;;  %v15425_v21 = vcombine.low %v6609_v62, %v6613_v2 }
 0x48a   : > { %22363 = vst [vmem:[#allocation34_spill] sm:$0xff] %v20388_v24  ;;  %11748 = vmatpush2.bf16.msra.mxu0 %v15385_v3  ;;  %v20391_v51 = vadd.f32 %v11402_v50, %v20255_v0  ;;  %v15441_v0 = vcombine.low %v6625_v20, %v6629_v23  ;;  %v6797_v4 = vld [vmem:[%s21982_s3 + $0x9f0] sm:$0xff] }
 0x48b   : > { %11749 = vmatprep.subr.bf16.mxu0 %v15378_v38  ;;  %v15610_v3 = vcombine.high %v6793_v54, %v6797_v4  ;;  %v6729_v42 = vld [vmem:[%s21982_s3 + $0x7d0] sm:$0xff]  ;;  %v15609_v36 = vcombine.low %v6793_v54, %v6797_v4 }
 0x48c   : > { %22364 = vst [vmem:[#allocation27_spill] sm:$0xff] %v20391_v51  ;;  %11785 = vmatpush1.bf16.msra.mxu1 %v15449_v13  ;;  %v6733_v38 = vld [vmem:[%s21982_s3 + $0x7f0] sm:$0xff] }
 0x48d   : > { %11786 = vmatprep.subr.bf16.mxu1 %v15442_v52  ;;  %v6785_v20 = vld [vmem:[%s21982_s3 + $0x990] sm:$0xff]  ;;  %v15546_v32 = vcombine.high %v6729_v42, %v6733_v38  ;;  %v15545_v12 = vcombine.low %v6729_v42, %v6733_v38 }
 0x48e   : > { %11750 = vmatpush2.bf16.msra.mxu0 %v15377_v60  ;;  %v6789_v23 = vld [vmem:[%s21982_s3 + $0x9b0] sm:$0xff] }
 0x48f   : > { %11751 = vmatprep.subr.bf16.mxu0 %v15370_v43  ;;  %v15602_v13 = vcombine.high %v6785_v20, %v6789_v23  ;;  %v6721_v50 = vld [vmem:[%s21982_s3 + $0x790] sm:$0xff]  ;;  %v15601_v7 = vcombine.low %v6785_v20, %v6789_v23 }
 0x490   : > { %11787 = vmatpush1.bf16.msra.mxu1 %v15441_v0  ;;  %v6725_v60 = vld [vmem:[%s21982_s3 + $0x7b0] sm:$0xff] }
 0x491   : > { %11788 = vmatprep.subr.bf16.mxu1 %v15434_v37  ;;  %v6777_v52 = vld [vmem:[%s21982_s3 + $0x950] sm:$0xff]  ;;  %v15538_v63 = vcombine.high %v6721_v50, %v6725_v60  ;;  %v15537_v62 = vcombine.low %v6721_v50, %v6725_v60 }
 0x492   : > { %11752 = vmatpush2.bf16.msra.mxu0 %v15369_v9  ;;  %v6781_v43 = vld [vmem:[%s21982_s3 + $0x970] sm:$0xff] }
 0x493   : > { %11753 = vmatprep.subr.bf16.mxu0 %v15362_v56  ;;  %v15594_v11 = vcombine.high %v6777_v52, %v6781_v43  ;;  %v6713_v0 = vld [vmem:[%s21982_s3 + $0x750] sm:$0xff]  ;;  %v15593_v2 = vcombine.low %v6777_v52, %v6781_v43 }
 0x494   : > { %11789 = vmatpush1.bf16.msra.mxu1 %v15433_v39  ;;  %v6717_v9 = vld [vmem:[%s21982_s3 + $0x770] sm:$0xff] }
 0x495   : > { %11790 = vmatprep.subr.bf16.mxu1 %v15426_v40  ;;  %v6769_v37 = vld [vmem:[%s21982_s3 + $0x910] sm:$0xff]  ;;  %v15530_v54 = vcombine.high %v6713_v0, %v6717_v9  ;;  %v15529_v42 = vcombine.low %v6713_v0, %v6717_v9 }
 0x496   : > { %11754 = vmatpush2.bf16.msra.mxu0 %v15361_v55  ;;  %v6773_v56 = vld [vmem:[%s21982_s3 + $0x930] sm:$0xff] }
 0x497   : > { %11829 = vmatprep.subr.bf16.mxu0 %v15610_v3  ;;  %v15586_v4 = vcombine.high %v6769_v37, %v6773_v56  ;;  %v6705_v39 = vld [vmem:[%s21982_s3 + $0x710] sm:$0xff]  ;;  %v15585_v38 = vcombine.low %v6769_v37, %v6773_v56 }
 0x498   : > { %11791 = vmatpush1.bf16.msra.mxu1 %v15425_v21  ;;  %v6709_v55 = vld [vmem:[%s21982_s3 + $0x730] sm:$0xff] }
 0x499   : > { %11756 = vmatmul.mubr.bf16.vlgmr.msra.gmra.mxu0 %v18082_v59  ;;  %11792 = vmatprep.subr.bf16.mxu1 %v15546_v32  ;;  %v6761_v40 = vld [vmem:[%s21982_s3 + $0x8d0] sm:$0xff]  ;;  %v15522_v20 = vcombine.high %v6705_v39, %v6709_v55  ;;  %v15521_v50 = vcombine.low %v6705_v39, %v6709_v55  ;;  %v11439_v55 = vpop.f32.mrf.mxu0 }
 0x49a   : > { %11765 = vmatprep.mubr.bf16.mxu0 %v18675_v48  ;;  %11830 = vmatpush1.bf16.msra.mxu0 %v15609_v36  ;;  %v6765_v3 = vld [vmem:[%s21982_s3 + $0x8f0] sm:$0xff] }
 0x49b   : > { %11831 = vmatprep.subr.bf16.mxu0 %v15602_v13  ;;  %v15578_v23 = vcombine.high %v6761_v40, %v6765_v3  ;;  %v6697_v21 = vld [vmem:[%s21982_s3 + $0x6d0] sm:$0xff]  ;;  %v15577_v60 = vcombine.low %v6761_v40, %v6765_v3 }
 0x49c   : > { %11793 = vmatpush2.bf16.msra.mxu1 %v15545_v12  ;;  %v6701_v36 = vld [vmem:[%s21982_s3 + $0x6f0] sm:$0xff] }
 0x49d   : > { %11794 = vmatprep.subr.bf16.mxu1 %v15538_v63  ;;  %v6753_v32 = vld [vmem:[%s21982_s3 + $0x890] sm:$0xff]  ;;  %v15514_v52 = vcombine.high %v6697_v21, %v6701_v36  ;;  %v15513_v0 = vcombine.low %v6697_v21, %v6701_v36 }
 0x49e   : > { %11832 = vmatpush1.bf16.msra.mxu0 %v15601_v7  ;;  %v6757_v13 = vld [vmem:[%s21982_s3 + $0x8b0] sm:$0xff] }
 0x49f   : > { %11833 = vmatprep.subr.bf16.mxu0 %v15594_v11  ;;  %v15570_v43 = vcombine.high %v6753_v32, %v6757_v13  ;;  %v6689_v12 = vld [vmem:[%s21982_s3 + $0x690] sm:$0xff]  ;;  %v15569_v9 = vcombine.low %v6753_v32, %v6757_v13  ;;  %v11441_v32 = vpop.f32.mrf.mxu0 }
 0x4a0   : > { %11795 = vmatpush2.bf16.msra.mxu1 %v15537_v62  ;;  %v6693_v7 = vld [vmem:[%s21982_s3 + $0x6b0] sm:$0xff] }
 0x4a1   : > { %11766 = vmatmul.mubr.bf16.gmra.mxu0 %v22356_v17  ;;  %11796 = vmatprep.subr.bf16.mxu1 %v15530_v54  ;;  %v6745_v63 = vld [vmem:[%s21982_s3 + $0x850] sm:$0xff]  ;;  %v15506_v37 = vcombine.high %v6689_v12, %v6693_v7  ;;  %v15505_v39 = vcombine.low %v6689_v12, %v6693_v7 }
 0x4a2   : > { %11834 = vmatpush1.bf16.msra.mxu0 %v15593_v2  ;;  %11861 = vmatprep.mubr.bf16.mxu0 %v22357_v61  ;;  %v6749_v11 = vld [vmem:[%s21982_s3 + $0x870] sm:$0xff] }
 0x4a3   : > { %11835 = vmatprep.subr.bf16.mxu0 %v15586_v4  ;;  %v15562_v56 = vcombine.high %v6745_v63, %v6749_v11  ;;  %v6681_v62 = vld [vmem:[%s21982_s3 + $0x650] sm:$0xff]  ;;  %v15561_v40 = vcombine.low %v6745_v63, %v6749_v11  ;;  %v11443_v11 = vpop.f32.mrf.mxu0 }
 0x4a4   : > { %11797 = vmatpush2.bf16.msra.mxu1 %v15529_v42  ;;  %v6685_v2 = vld [vmem:[%s21982_s3 + $0x670] sm:$0xff] }
 0x4a5   : > { %11798 = vmatprep.subr.bf16.mxu1 %v15522_v20  ;;  %v6737_v54 = vld [vmem:[%s21982_s3 + $0x810] sm:$0xff]  ;;  %v15498_v3 = vcombine.high %v6681_v62, %v6685_v2  ;;  %v15497_v36 = vcombine.low %v6681_v62, %v6685_v2 }
 0x4a6   : > { %11836 = vmatpush1.bf16.msra.mxu0 %v15585_v38  ;;  %v6741_v4 = vld [vmem:[%s21982_s3 + $0x830] sm:$0xff] }
 0x4a7   : > { %11837 = vmatprep.subr.bf16.mxu0 %v15578_v23  ;;  %v15554_v42 = vcombine.high %v6737_v54, %v6741_v4  ;;  %v6673_v38 = vld [vmem:[%s21982_s3 + $0x610] sm:$0xff]  ;;  %v15553_v13 = vcombine.low %v6737_v54, %v6741_v4 }
 0x4a8   : > { %11799 = vmatpush2.bf16.msra.mxu1 %v15521_v50  ;;  %v6677_v20 = vld [vmem:[%s21982_s3 + $0x630] sm:$0xff] }
 0x4a9   : > { %11800 = vmatprep.subr.bf16.mxu1 %v15514_v52  ;;  %v6857_v23 = vld [vmem:[%s21982_s3 + $0xbd0] sm:$0xff]  ;;  %v15490_v50 = vcombine.high %v6673_v38, %v6677_v20  ;;  %v15489_v63 = vcombine.low %v6673_v38, %v6677_v20 }
 0x4aa   : > { %11838 = vmatpush1.bf16.msra.mxu0 %v15577_v60  ;;  %v6861_v21 = vld [vmem:[%s21982_s3 + $0xbf0] sm:$0xff] }
 0x4ab   : > { %11839 = vmatprep.subr.bf16.mxu0 %v15570_v43  ;;  %v15674_v60 = vcombine.high %v6857_v23, %v6861_v21  ;;  %v6921_v52 = vld [vmem:[%s21982_s3 + $0xdd0] sm:$0xff] }
 0x4ac   : > { %11801 = vmatpush2.bf16.msra.mxu1 %v15513_v0  ;;  %v6925_v43 = vld [vmem:[%s21982_s3 + $0xdf0] sm:$0xff]  ;;  %v15673_v0 = vcombine.low %v6857_v23, %v6861_v21 }
 0x4ad   : > { %11802 = vmatprep.subr.bf16.mxu1 %v15506_v37  ;;  %v6849_v12 = vld [vmem:[%s21982_s3 + $0xb90] sm:$0xff]  ;;  %v15737_v4 = vcombine.low %v6921_v52, %v6925_v43 }
 0x4ae   : > { %11840 = vmatpush1.bf16.msra.mxu0 %v15569_v9  ;;  %v6853_v7 = vld [vmem:[%s21982_s3 + $0xbb0] sm:$0xff]  ;;  %v15738_v9 = vcombine.high %v6921_v52, %v6925_v43 }
 0x4af   : > { %11841 = vmatprep.subr.bf16.mxu0 %v15562_v56  ;;  %v15666_v37 = vcombine.high %v6849_v12, %v6853_v7  ;;  %v6913_v56 = vld [vmem:[%s21982_s3 + $0xd90] sm:$0xff] }
 0x4b0   : > { %11803 = vmatpush2.bf16.msra.mxu1 %v15505_v39  ;;  %v6917_v62 = vld [vmem:[%s21982_s3 + $0xdb0] sm:$0xff]  ;;  %v11445_v39 = vpop.f32.mrf.mxu0 }
 0x4b1   : > { %11804 = vmatprep.subr.bf16.mxu1 %v15498_v3  ;;  %v6841_v2 = vld [vmem:[%s21982_s3 + $0xb50] sm:$0xff]  ;;  %v15730_v3 = vcombine.high %v6913_v56, %v6917_v62 }
 0x4b2   : > { %11842 = vmatpush1.bf16.msra.mxu0 %v15561_v40  ;;  %v6845_v54 = vld [vmem:[%s21982_s3 + $0xb70] sm:$0xff]  ;;  %v15665_v40 = vcombine.low %v6849_v12, %v6853_v7 }
 0x4b3   : > { %11843 = vmatprep.subr.bf16.mxu0 %v15554_v42  ;;  %v15658_v42 = vcombine.high %v6841_v2, %v6845_v54  ;;  %v6905_v38 = vld [vmem:[%s21982_s3 + $0xd50] sm:$0xff]  ;;  %v15657_v43 = vcombine.low %v6841_v2, %v6845_v54 }
 0x4b4   : > { %11805 = vmatpush2.bf16.msra.mxu1 %v15497_v36  ;;  %v6909_v20 = vld [vmem:[%s21982_s3 + $0xd70] sm:$0xff] }
 0x4b5   : > { %11806 = vmatprep.subr.bf16.mxu1 %v15490_v50  ;;  %v6833_v21 = vld [vmem:[%s21982_s3 + $0xb10] sm:$0xff]  ;;  %v15729_v50 = vcombine.low %v6913_v56, %v6917_v62  ;;  %v15722_v12 = vcombine.high %v6905_v38, %v6909_v20  ;;  %v15721_v62 = vcombine.low %v6905_v38, %v6909_v20 }
 0x4b6   : > { %11844 = vmatpush1.bf16.msra.mxu0 %v15553_v13  ;;  %v6837_v36 = vld [vmem:[%s21982_s3 + $0xb30] sm:$0xff] }
 0x4b7   : > { %11845 = vmatprep.subr.bf16.mxu0 %v15674_v60  ;;  %v11449_v60 = vpop.f32.mrf.mxu0  ;;  %v6817_v38 = vld [vmem:[%s21982_s3 + $0xa90] sm:$0xff] }
 0x4b8   : > { %11807 = vmatpush2.bf16.msra.mxu1 %v15489_v63  ;;  %v15650_v63 = vcombine.high %v6833_v21, %v6837_v36 }
 0x4b9   : > { %11882 = vmatprep.subr.bf16.mxu1 %v15738_v9  ;;  %v11451_v2 = vpop.f32.mrf.mxu0 }
 0x4ba   : > { %11846 = vmatpush2.bf16.msra.mxu0 %v15673_v0  ;;  %v6897_v0 = vld [vmem:[%s21982_s3 + $0xd10] sm:$0xff] }
 0x4bb   : > { %11847 = vmatprep.subr.bf16.mxu0 %v15666_v37  ;;  %v11492_v23 = vpop.f32.mrf.mxu1  ;;  %11809 = vmatmul.mubr.bf16.vlgmr.msra.gmra.mxu1 %v22358_v47  ;;  %v6825_v37 = vld [vmem:[%s21982_s3 + $0xad0] sm:$0xff] }
 0x4bc   : > { %v20554_v13 = vadd.f32 %v11492_v23, %v11439_v55  ;;  %11818 = vmatprep.mubr.bf16.mxu1 %v22359_v5  ;;  %11883 = vmatpush1.bf16.msra.mxu1 %v15737_v4  ;;  %v6901_v55 = vld [vmem:[%s21982_s3 + $0xd30] sm:$0xff]  ;;  %v15649_v4 = vcombine.low %v6833_v21, %v6837_v36  ;;  %v11453_v36 = vpop.f32.mrf.mxu0 }
 0x4bd   : > { %v11494_v52 = vpop.f32.mrf.mxu1  ;;  %11884 = vmatprep.subr.bf16.mxu1 %v15730_v3  ;;  %v6889_v23 = vld [vmem:[%s21982_s3 + $0xcd0] sm:$0xff]  ;;  %v15713_v21 = vcombine.low %v6897_v0, %v6901_v55 }
 0x4be   : > { %11848 = vmatpush2.bf16.msra.mxu0 %v15665_v40  ;;  %v20557_v7 = vadd.f32 %v11494_v52, %v11441_v32  ;;  %v6829_v32 = vld [vmem:[%s21982_s3 + $0xaf0] sm:$0xff]  ;;  %v15714_v40 = vcombine.high %v6897_v0, %v6901_v55 }
 0x4bf   : > { %11849 = vmatprep.subr.bf16.mxu0 %v15658_v42  ;;  %v11496_v9 = vpop.f32.mrf.mxu1  ;;  %v15642_v42 = vcombine.high %v6825_v37, %v6829_v32  ;;  %v6809_v0 = vld [vmem:[%s21982_s3 + $0xa50] sm:$0xff] }
 0x4c0   : > { %v20571_v56 = vadd.f32 %v11496_v9, %v11443_v11  ;;  %11885 = vmatpush1.bf16.msra.mxu1 %v15729_v50  ;;  %v6893_v11 = vld [vmem:[%s21982_s3 + $0xcf0] sm:$0xff] }
 0x4c1   : > { %v11498_v54 = vpop.f32.mrf.mxu1  ;;  %11886 = vmatprep.subr.bf16.mxu1 %v15722_v12  ;;  %v15706_v12 = vcombine.high %v6889_v23, %v6893_v11  ;;  %v6813_v55 = vld [vmem:[%s21982_s3 + $0xa70] sm:$0xff] }
 0x4c2   : > { %11850 = vmatpush2.bf16.msra.mxu0 %v15657_v43  ;;  %v20573_v3 = vadd.f32 %v11498_v54, %v11445_v39  ;;  %v6821_v39 = vld [vmem:[%s21982_s3 + $0xab0] sm:$0xff]  ;;  %v15641_v43 = vcombine.low %v6825_v37, %v6829_v32  ;;  %v15705_v32 = vcombine.low %v6889_v23, %v6893_v11 }
 0x4c3   : > { %11851 = vmatprep.subr.bf16.mxu0 %v15650_v63  ;;  %v11502_v50 = vpop.f32.mrf.mxu1  ;;  %11819 = vmatmul.mubr.bf16.gmra.mxu1 %v22360_v30  ;;  %v15634_v9 = vcombine.high %v6817_v38, %v6821_v39  ;;  %v6881_v54 = vld [vmem:[%s21982_s3 + $0xc90] sm:$0xff] }
 0x4c4   : > { %v20588_v20 = vadd.f32 %v11502_v50, %v11449_v60  ;;  %11887 = vmatpush1.bf16.msra.mxu1 %v15721_v62  ;;  %11914 = vmatprep.mubr.bf16.mxu1 %v19104_v34  ;;  %v6885_v60 = vld [vmem:[%s21982_s3 + $0xcb0] sm:$0xff] }
 0x4c5   : > { %v11504_v52 = vpop.f32.mrf.mxu1  ;;  %11888 = vmatprep.subr.bf16.mxu1 %v15714_v40  ;;  %v15633_v40 = vcombine.low %v6817_v38, %v6821_v39  ;;  %v6801_v23 = vld [vmem:[%s21982_s3 + $0xa10] sm:$0xff]  ;;  %v15697_v38 = vcombine.low %v6881_v54, %v6885_v60  ;;  %v15625_v39 = vcombine.low %v6809_v0, %v6813_v55 }
 0x4c6   : > { %11852 = vmatpush2.bf16.msra.mxu0 %v15649_v4  ;;  %v20591_v63 = vadd.f32 %v11504_v52, %v11451_v2  ;;  %v11455_v2 = vpop.f32.mrf.mxu0  ;;  %v15626_v52 = vcombine.high %v6809_v0, %v6813_v55  ;;  %v6805_v11 = vld [vmem:[%s21982_s3 + $0xa30] sm:$0xff] }
 0x4c7   : > { %11853 = vmatprep.subr.bf16.mxu0 %v15642_v42  ;;  %v11506_v62 = vpop.f32.mrf.mxu1  ;;  %v15698_v42 = vcombine.high %v6881_v54, %v6885_v60  ;;  %v7053_v54 = vld [vmem:[%s21982_s3 + $0x11f0] sm:$0xff]  ;;  %v15617_v0 = vcombine.low %v6801_v23, %v6805_v11 }
 0x4c8   : > { %v20605_v37 = vadd.f32 %v11506_v62, %v11453_v36  ;;  %11889 = vmatpush1.bf16.msra.mxu1 %v15713_v21  ;;  %v6877_v36 = vld [vmem:[%s21982_s3 + $0xc70] sm:$0xff] }
 0x4c9   : > { %v11508_v4 = vpop.f32.mrf.mxu1  ;;  %11890 = vmatprep.subr.bf16.mxu1 %v15706_v12  ;;  %v15690_v21 = vcombine.high %v6873_v19, %v6877_v36  ;;  %v6865_v12 = vld [vmem:[%s21982_s3 + $0xc10] sm:$0xff]  ;;  %v15689_v60 = vcombine.low %v6873_v19, %v6877_v36 }
 0x4ca   : > { %11854 = vmatpush2.bf16.msra.mxu0 %v15641_v43  ;;  %v20607_v50 = vadd.f32 %v11508_v4, %v11455_v2  ;;  %v15618_v43 = vcombine.high %v6801_v23, %v6805_v11  ;;  %v7049_v62 = vld [vmem:[%s21982_s3 + $0x11d0] sm:$0xff] }
 0x4cb   : > { %11855 = vmatprep.subr.bf16.mxu0 %v15634_v9  ;;  %v6869_v9 = vld [vmem:[%s21982_s3 + $0xc30] sm:$0xff] }
 0x4cc   : > { %11891 = vmatpush1.bf16.msra.mxu1 %v15705_v32  ;;  %v15682_v55 = vcombine.high %v6865_v12, %v6869_v9  ;;  %v15866_v32 = vcombine.high %v7049_v62, %v7053_v54  ;;  %v6985_v2 = vld [vmem:[%s21982_s3 + $0xfd0] sm:$0xff] }
 0x4cd   : > { %11892 = vmatprep.subr.bf16.mxu1 %v15698_v42  ;;  %v6989_v4 = vld [vmem:[%s21982_s3 + $0xff0] sm:$0xff]  ;;  %v15681_v42 = vcombine.low %v6865_v12, %v6869_v9 }
 0x4ce   : > { %11856 = vmatpush2.bf16.msra.mxu0 %v15633_v40  ;;  %v7041_v40 = vld [vmem:[%s21982_s3 + $0x1190] sm:$0xff]  ;;  %v15802_v36 = vcombine.high %v6985_v2, %v6989_v4  ;;  %v15801_v12 = vcombine.low %v6985_v2, %v6989_v4 }
 0x4cf   : > { %11857 = vmatprep.subr.bf16.mxu0 %v15626_v52  ;;  %v7045_v19 = vld [vmem:[%s21982_s3 + $0x11b0] sm:$0xff]  ;;  %v15865_v52 = vcombine.low %v7049_v62, %v7053_v54 }
 0x4d0   : > { %11893 = vmatpush1.bf16.msra.mxu1 %v15697_v38  ;;  %v15858_v23 = vcombine.high %v7041_v40, %v7045_v19  ;;  %v6977_v11 = vld [vmem:[%s21982_s3 + $0xf90] sm:$0xff]  ;;  %v15857_v62 = vcombine.low %v7041_v40, %v7045_v19 }
 0x4d1   : > { %11894 = vmatprep.subr.bf16.mxu1 %v15690_v21  ;;  %v6981_v38 = vld [vmem:[%s21982_s3 + $0xfb0] sm:$0xff] }
 0x4d2   : > { %11858 = vmatpush2.bf16.msra.mxu0 %v15625_v39  ;;  %v7033_v39 = vld [vmem:[%s21982_s3 + $0x1150] sm:$0xff]  ;;  %v15794_v54 = vcombine.high %v6977_v11, %v6981_v38  ;;  %v15793_v19 = vcombine.low %v6977_v11, %v6981_v38 }
 0x4d3   : > { %11859 = vmatprep.subr.bf16.mxu0 %v15618_v43  ;;  %v7037_v21 = vld [vmem:[%s21982_s3 + $0x1170] sm:$0xff] }
 0x4d4   : > { %11895 = vmatpush1.bf16.msra.mxu1 %v15689_v60  ;;  %v7025_v2 = vld [vmem:[%s21982_s3 + $0x1110] sm:$0xff] }
 0x4d5   : > { %11896 = vmatprep.subr.bf16.mxu1 %v15682_v55  ;;  %v6969_v55 = vld [vmem:[%s21982_s3 + $0xf50] sm:$0xff] }
 0x4d6   : > { %11860 = vmatpush2.bf16.msra.mxu0 %v15617_v0  ;;  %v15850_v0 = vcombine.high %v7033_v39, %v7037_v21  ;;  %v7029_v4 = vld [vmem:[%s21982_s3 + $0x1130] sm:$0xff] }
 0x4d7   : > { %11935 = vmatprep.subr.bf16.mxu0 %v15866_v32  ;;  %v7021_v38 = vld [vmem:[%s21982_s3 + $0x10f0] sm:$0xff] }
 0x4d8   : > { %11897 = vmatpush1.bf16.msra.mxu1 %v15681_v42 }
 0x4d9   : > { %v11545_v43 = vpop.f32.mrf.mxu0  ;;  %11862 = vmatmul.mubr.bf16.vlgmr.msra.gmra.mxu0 %v18740_v27  ;;  %11898 = vmatprep.subr.bf16.mxu1 %v15802_v36 }
 0x4da   : > { %v20659_v9 = vadd.f32 %v11545_v43, %v20554_v13  ;;  %11871 = vmatprep.mubr.bf16.mxu0 %v19144_v28  ;;  %11936 = vmatpush1.bf16.msra.mxu0 %v15865_v52  ;;  %v6973_v13 = vld [vmem:[%s21982_s3 + $0xf70] sm:$0xff] }
 0x4db   : > { %v11547_v60 = vpop.f32.mrf.mxu0  ;;  %11937 = vmatprep.subr.bf16.mxu0 %v15858_v23  ;;  %v15786_v36 = vcombine.high %v6969_v55, %v6973_v13  ;;  %v15842_v23 = vcombine.high %v7025_v2, %v7029_v4  ;;  %v6961_v43 = vld [vmem:[%s21982_s3 + $0xf10] sm:$0xff] }
 0x4dc   : > { %v20666_v32 = vadd.f32 %v11547_v60, %v20557_v7  ;;  %11899 = vmatpush2.bf16.msra.mxu1 %v15801_v12  ;;  %v15849_v7 = vcombine.low %v7033_v39, %v7037_v21  ;;  %v6965_v60 = vld [vmem:[%s21982_s3 + $0xf30] sm:$0xff]  ;;  %v15785_v21 = vcombine.low %v6969_v55, %v6973_v13 }
 0x4dd   : > { %v11549_v40 = vpop.f32.mrf.mxu0  ;;  %11900 = vmatprep.subr.bf16.mxu1 %v15794_v54  ;;  %v6957_v55 = vld [vmem:[%s21982_s3 + $0xef0] sm:$0xff] }
 0x4de   : > { %v20678_v42 = vadd.f32 %v11549_v40, %v20571_v56  ;;  %11938 = vmatpush1.bf16.msra.mxu0 %v15857_v62  ;;  %v7017_v56 = vld [vmem:[%s21982_s3 + $0x10d0] sm:$0xff]  ;;  %v15778_v62 = vcombine.high %v6961_v43, %v6965_v60 }
 0x4df   : > { %v11551_v52 = vpop.f32.mrf.mxu0  ;;  %11939 = vmatprep.subr.bf16.mxu0 %v15850_v0  ;;  %v15834_v0 = vcombine.high %v7017_v56, %v7021_v38  ;;  %v6953_v40 = vld [vmem:[%s21982_s3 + $0xed0] sm:$0xff] }
 0x4e0   : > { %v20687_v11 = vadd.f32 %v11551_v52, %v20573_v3  ;;  %11901 = vmatpush2.bf16.msra.mxu1 %v15793_v19  ;;  %v15841_v3 = vcombine.low %v7025_v2, %v7029_v4  ;;  %v7009_v13 = vld [vmem:[%s21982_s3 + $0x1090] sm:$0xff]  ;;  %v15777_v19 = vcombine.low %v6961_v43, %v6965_v60  ;;  %v15833_v52 = vcombine.low %v7017_v56, %v7021_v38 }
 0x4e1   : > { %v11555_v39 = vpop.f32.mrf.mxu0  ;;  %11872 = vmatmul.mubr.bf16.gmra.mxu0 %v18782_v53  ;;  %11902 = vmatprep.subr.bf16.mxu1 %v15786_v36  ;;  %v7013_v2 = vld [vmem:[%s21982_s3 + $0x10b0] sm:$0xff]  ;;  %v15770_v36 = vcombine.high %v6953_v40, %v6957_v55  ;;  %v15769_v56 = vcombine.low %v6953_v40, %v6957_v55 }
 0x4e2   : > { %v20697_v12 = vadd.f32 %v11555_v39, %v20588_v20  ;;  %11940 = vmatpush1.bf16.msra.mxu0 %v15849_v7  ;;  %11967 = vmatprep.mubr.bf16.mxu0 %v19460_v6  ;;  %v6945_v39 = vld [vmem:[%s21982_s3 + $0xe90] sm:$0xff]  ;;  %v15825_v38 = vcombine.low %v7009_v13, %v7013_v2 }
 0x4e3   : > { %v11557_v54 = vpop.f32.mrf.mxu0  ;;  %11941 = vmatprep.subr.bf16.mxu0 %v15842_v23  ;;  %v15826_v23 = vcombine.high %v7009_v13, %v7013_v2  ;;  %v7005_v60 = vld [vmem:[%s21982_s3 + $0x1070] sm:$0xff] }
 0x4e4   : > { %v20707_v20 = vadd.f32 %v11557_v54, %v20591_v63  ;;  %11903 = vmatpush2.bf16.msra.mxu1 %v15785_v21  ;;  %v6949_v54 = vld [vmem:[%s21982_s3 + $0xeb0] sm:$0xff] }
 0x4e5   : > { %v11559_v4 = vpop.f32.mrf.mxu0  ;;  %11904 = vmatprep.subr.bf16.mxu1 %v15778_v62  ;;  %v15762_v21 = vcombine.high %v6945_v39, %v6949_v54  ;;  %v6941_v62 = vld [vmem:[%s21982_s3 + $0xe70] sm:$0xff]  ;;  %v15761_v55 = vcombine.low %v6945_v39, %v6949_v54 }
 0x4e6   : > { %v20716_v7 = vadd.f32 %v11559_v4, %v20605_v37  ;;  %11942 = vmatpush1.bf16.msra.mxu0 %v15841_v3  ;;  %v7001_v37 = vld [vmem:[%s21982_s3 + $0x1050] sm:$0xff] }
 0x4e7   : > { %v11561_v63 = vpop.f32.mrf.mxu0  ;;  %11943 = vmatprep.subr.bf16.mxu0 %v15834_v0  ;;  %v15818_v3 = vcombine.high %v7001_v37, %v7005_v60  ;;  %v6993_v0 = vld [vmem:[%s21982_s3 + $0x1010] sm:$0xff]  ;;  %v15817_v13 = vcombine.low %v7001_v37, %v7005_v60 }
 0x4e8   : > { %v20725_v43 = vadd.f32 %v11561_v63, %v20607_v50  ;;  %11905 = vmatpush2.bf16.msra.mxu1 %v15777_v19  ;;  %v6937_v50 = vld [vmem:[%s21982_s3 + $0xe50] sm:$0xff] }
 0x4e9   : > { %11906 = vmatprep.subr.bf16.mxu1 %v15770_v36  ;;  %v6997_v40 = vld [vmem:[%s21982_s3 + $0x1030] sm:$0xff]  ;;  %v15754_v2 = vcombine.high %v6937_v50, %v6941_v62 }
 0x4ea   : > { %11944 = vmatpush1.bf16.msra.mxu0 %v15833_v52  ;;  %v15810_v4 = vcombine.high %v6993_v0, %v6997_v40  ;;  %v6929_v19 = vld [vmem:[%s21982_s3 + $0xe10] sm:$0xff]  ;;  %v15809_v39 = vcombine.low %v6993_v0, %v6997_v40 }
 0x4eb   : > { %11945 = vmatprep.subr.bf16.mxu0 %v15826_v23  ;;  %v6933_v52 = vld [vmem:[%s21982_s3 + $0xe30] sm:$0xff]  ;;  %v15753_v23 = vcombine.low %v6937_v50, %v6941_v62 }
 0x4ec   : > { %11907 = vmatpush2.bf16.msra.mxu1 %v15769_v56  ;;  %v7113_v36 = vld [vmem:[%s21982_s3 + $0x13d0] sm:$0xff]  ;;  %v15746_v54 = vcombine.high %v6929_v19, %v6933_v52 }
 0x4ed   : > { %11908 = vmatprep.subr.bf16.mxu1 %v15762_v21  ;;  %v7117_v63 = vld [vmem:[%s21982_s3 + $0x13f0] sm:$0xff] }
 0x4ee   : > { %11946 = vmatpush1.bf16.msra.mxu0 %v15825_v38  ;;  %v15930_v37 = vcombine.high %v7113_v36, %v7117_v63  ;;  %v7177_v60 = vld [vmem:[%s21982_s3 + $0x15d0] sm:$0xff]  ;;  %v15929_v50 = vcombine.low %v7113_v36, %v7117_v63 }
 0x4ef   : > { %11947 = vmatprep.subr.bf16.mxu0 %v15818_v3  ;;  %v7181_v56 = vld [vmem:[%s21982_s3 + $0x15f0] sm:$0xff]  ;;  %v15745_v3 = vcombine.low %v6929_v19, %v6933_v52 }
 0x4f0   : > { %11909 = vmatpush2.bf16.msra.mxu1 %v15761_v55  ;;  %v7105_v38 = vld [vmem:[%s21982_s3 + $0x1390] sm:$0xff]  ;;  %v15994_v62 = vcombine.high %v7177_v60, %v7181_v56 }
 0x4f1   : > { %11910 = vmatprep.subr.bf16.mxu1 %v15754_v2  ;;  %v7109_v21 = vld [vmem:[%s21982_s3 + $0x13b0] sm:$0xff] }
 0x4f2   : > { %11948 = vmatpush1.bf16.msra.mxu0 %v15817_v13  ;;  %v15922_v0 = vcombine.high %v7105_v38, %v7109_v21  ;;  %v7169_v40 = vld [vmem:[%s21982_s3 + $0x1590] sm:$0xff]  ;;  %v15921_v19 = vcombine.low %v7105_v38, %v7109_v21 }
 0x4f3   : > { %11949 = vmatprep.subr.bf16.mxu0 %v15810_v4  ;;  %v7173_v55 = vld [vmem:[%s21982_s3 + $0x15b0] sm:$0xff]  ;;  %v15993_v4 = vcombine.low %v7177_v60, %v7181_v56 }
 0x4f4   : > { %11911 = vmatpush2.bf16.msra.mxu1 %v15753_v23  ;;  %v7097_v13 = vld [vmem:[%s21982_s3 + $0x1350] sm:$0xff]  ;;  %v15986_v52 = vcombine.high %v7169_v40, %v7173_v55  ;;  %v15985_v56 = vcombine.low %v7169_v40, %v7173_v55 }
 0x4f5   : > { %11912 = vmatprep.subr.bf16.mxu1 %v15746_v54  ;;  %v7101_v2 = vld [vmem:[%s21982_s3 + $0x1370] sm:$0xff] }
 0x4f6   : > { %11950 = vmatpush1.bf16.msra.mxu0 %v15809_v39  ;;  %v15914_v36 = vcombine.high %v7097_v13, %v7101_v2  ;;  %v7161_v63 = vld [vmem:[%s21982_s3 + $0x1550] sm:$0xff]  ;;  %v15913_v21 = vcombine.low %v7097_v13, %v7101_v2 }
 0x4f7   : > { %11951 = vmatprep.subr.bf16.mxu0 %v15930_v37  ;;  %v7165_v23 = vld [vmem:[%s21982_s3 + $0x1570] sm:$0xff] }
 0x4f8   : > { %11913 = vmatpush2.bf16.msra.mxu1 %v15745_v3  ;;  %v7089_v54 = vld [vmem:[%s21982_s3 + $0x1310] sm:$0xff]  ;;  %v15978_v3 = vcombine.high %v7161_v63, %v7165_v23  ;;  %v15977_v13 = vcombine.low %v7161_v63, %v7165_v23 }
 0x4f9   : > { %11988 = vmatprep.subr.bf16.mxu1 %v15994_v62  ;;  %v7093_v37 = vld [vmem:[%s21982_s3 + $0x1330] sm:$0xff] }
 0x4fa   : > { %11952 = vmatpush2.bf16.msra.mxu0 %v15929_v50  ;;  %v15906_v62 = vcombine.high %v7089_v54, %v7093_v37  ;;  %v7081_v40 = vld [vmem:[%s21982_s3 + $0x12d0] sm:$0xff] }
 0x4fb   : > { %11953 = vmatprep.subr.bf16.mxu0 %v15922_v0  ;;  %v11598_v39 = vpop.f32.mrf.mxu1  ;;  %11915 = vmatmul.mubr.bf16.vlgmr.msra.gmra.mxu1 %v19080_v25  ;;  %v7153_v0 = vld [vmem:[%s21982_s3 + $0x1510] sm:$0xff] }
 0x4fc   : > { %v20795_v60 = vadd.f32 %v11598_v39, %v20659_v9  ;;  %11924 = vmatprep.mubr.bf16.mxu1 %v19149_v8  ;;  %11989 = vmatpush1.bf16.msra.mxu1 %v15993_v4  ;;  %v7157_v9 = vld [vmem:[%s21982_s3 + $0x1530] sm:$0xff] }
 0x4fd   : > { %v11600_v38 = vpop.f32.mrf.mxu1  ;;  %11990 = vmatprep.subr.bf16.mxu1 %v15986_v52  ;;  %v15970_v52 = vcombine.high %v7153_v0, %v7157_v9  ;;  %v7073_v63 = vld [vmem:[%s21982_s3 + $0x1290] sm:$0xff] }
 0x4fe   : > { %11954 = vmatpush2.bf16.msra.mxu0 %v15921_v19  ;;  %v20799_v50 = vadd.f32 %v11600_v38, %v20666_v32  ;;  %v7085_v32 = vld [vmem:[%s21982_s3 + $0x12f0] sm:$0xff]  ;;  %v15905_v19 = vcombine.low %v7089_v54, %v7093_v37  ;;  %v15969_v54 = vcombine.low %v7153_v0, %v7157_v9 }
 0x4ff   : > { %11955 = vmatprep.subr.bf16.mxu0 %v15914_v36  ;;  %v11602_v4 = vpop.f32.mrf.mxu1  ;;  %v15898_v39 = vcombine.high %v7081_v40, %v7085_v32  ;;  %v7145_v38 = vld [vmem:[%s21982_s3 + $0x14d0] sm:$0xff] }
 0x500   : > { %v20814_v55 = vadd.f32 %v11602_v4, %v20678_v42  ;;  %11991 = vmatpush1.bf16.msra.mxu1 %v15985_v56  ;;  %v7149_v42 = vld [vmem:[%s21982_s3 + $0x14f0] sm:$0xff] }
 0x501   : > { %v11604_v2 = vpop.f32.mrf.mxu1  ;;  %11992 = vmatprep.subr.bf16.mxu1 %v15978_v3  ;;  %v15962_v3 = vcombine.high %v7145_v38, %v7149_v42  ;;  %v7065_v0 = vld [vmem:[%s21982_s3 + $0x1250] sm:$0xff] }
 0x502   : > { %11956 = vmatpush2.bf16.msra.mxu0 %v15913_v21  ;;  %v20817_v36 = vadd.f32 %v11604_v2, %v20687_v11  ;;  %v7077_v11 = vld [vmem:[%s21982_s3 + $0x12b0] sm:$0xff]  ;;  %v15897_v21 = vcombine.low %v7081_v40, %v7085_v32  ;;  %v15961_v40 = vcombine.low %v7145_v38, %v7149_v42 }
 0x503   : > { %11957 = vmatprep.subr.bf16.mxu0 %v15906_v62  ;;  %v11608_v56 = vpop.f32.mrf.mxu1  ;;  %11925 = vmatmul.mubr.bf16.gmra.mxu1 %v19130_v16  ;;  %v15890_v4 = vcombine.high %v7073_v63, %v7077_v11  ;;  %v7137_v2 = vld [vmem:[%s21982_s3 + $0x1490] sm:$0xff] }
 0x504   : > { %v20833_v23 = vadd.f32 %v11608_v56, %v20697_v12  ;;  %11993 = vmatpush1.bf16.msra.mxu1 %v15977_v13  ;;  %12020 = vmatprep.mubr.bf16.mxu1 %v19638_v31  ;;  %v7141_v12 = vld [vmem:[%s21982_s3 + $0x14b0] sm:$0xff] }
 0x505   : > { %v11610_v37 = vpop.f32.mrf.mxu1  ;;  %11994 = vmatprep.subr.bf16.mxu1 %v15970_v52  ;;  %v15954_v52 = vcombine.high %v7137_v2, %v7141_v12  ;;  %v7057_v38 = vld [vmem:[%s21982_s3 + $0x1210] sm:$0xff] }
 0x506   : > { %11958 = vmatpush2.bf16.msra.mxu0 %v15905_v19  ;;  %v20837_v62 = vadd.f32 %v11610_v37, %v20707_v20  ;;  %v7069_v20 = vld [vmem:[%s21982_s3 + $0x1270] sm:$0xff]  ;;  %v15889_v19 = vcombine.low %v7073_v63, %v7077_v11 }
 0x507   : > { %11959 = vmatprep.subr.bf16.mxu0 %v15898_v39  ;;  %v11612_v13 = vpop.f32.mrf.mxu1  ;;  %v15882_v56 = vcombine.high %v7065_v0, %v7069_v20  ;;  %v7129_v37 = vld [vmem:[%s21982_s3 + $0x1450] sm:$0xff]  ;;  %v15881_v63 = vcombine.low %v7065_v0, %v7069_v20 }
 0x508   : > { %v20852_v9 = vadd.f32 %v11612_v13, %v20716_v7  ;;  %11995 = vmatpush1.bf16.msra.mxu1 %v15969_v54  ;;  %v7133_v7 = vld [vmem:[%s21982_s3 + $0x1470] sm:$0xff] }
 0x509   : > { %v11614_v32 = vpop.f32.mrf.mxu1  ;;  %11996 = vmatprep.subr.bf16.mxu1 %v15962_v3  ;;  %v7061_v42 = vld [vmem:[%s21982_s3 + $0x1230] sm:$0xff]  ;;  %v15946_v11 = vcombine.high %v7129_v37, %v7133_v7 }
 0x50a   : > { %11960 = vmatpush2.bf16.msra.mxu0 %v15897_v21  ;;  %v20855_v39 = vadd.f32 %v11614_v32, %v20725_v43  ;;  %v15953_v43 = vcombine.low %v7137_v2, %v7141_v12  ;;  %v15874_v54 = vcombine.high %v7057_v38, %v7061_v42  ;;  %v7121_v21 = vld [vmem:[%s21982_s3 + $0x1410] sm:$0xff]  ;;  %v6542_v2 = vld [vmem:[%s21982_s3 + $0x1f8] sm:$0xff]  ;;  %v15945_v12 = vcombine.low %v7129_v37, %v7133_v7 }
 0x50b   : > { %11961 = vmatprep.subr.bf16.mxu0 %v15890_v4  ;;  %v7125_v3 = vld [vmem:[%s21982_s3 + $0x1430] sm:$0xff]  ;;  %v6538_v4 = vld [vmem:[%s21982_s3 + $0x1d8] sm:$0xff]  ;;  %v15873_v13 = vcombine.low %v7057_v38, %v7061_v42 }
 0x50c   : > { %11997 = vmatpush1.bf16.msra.mxu1 %v15961_v40  ;;  %v15938_v0 = vcombine.high %v7121_v21, %v7125_v3  ;;  %v15356_v20 = vcombine.high %v6538_v4, %v6542_v2  ;;  %v7241_v40 = vld [vmem:[%s21982_s3 + $0x17d0] sm:$0xff]  ;;  %v15355_v37 = vcombine.low %v6538_v4, %v6542_v2 }
 0x50d   : > { %11998 = vmatprep.subr.bf16.mxu1 %v15954_v52  ;;  %v7245_v32 = vld [vmem:[%s21982_s3 + $0x17f0] sm:$0xff]  ;;  %v6534_v52 = vld [vmem:[%s21982_s3 + $0x1b8] sm:$0xff] }
 0x50e   : > { %11962 = vmatpush2.bf16.msra.mxu0 %v15889_v19  ;;  %v6530_v19 = vld [vmem:[%s21982_s3 + $0x198] sm:$0xff]  ;;  %v16058_v7 = vcombine.high %v7241_v40, %v7245_v32  ;;  %v7233_v42 = vld [vmem:[%s21982_s3 + $0x1790] sm:$0xff] }
 0x50f   : > { %11963 = vmatprep.subr.bf16.mxu0 %v15882_v56  ;;  %v15937_v56 = vcombine.low %v7121_v21, %v7125_v3  ;;  %v15348_v38 = vcombine.high %v6530_v19, %v6534_v52  ;;  %v16057_v21 = vcombine.low %v7241_v40, %v7245_v32  ;;  %v15347_v4 = vcombine.low %v6530_v19, %v6534_v52  ;;  %v6514_v40 = vld [vmem:[%s21982_s3 + $0x118] sm:$0xff] }
 0x510   : > { %11999 = vmatpush1.bf16.msra.mxu1 %v15953_v43  ;;  %v7237_v43 = vld [vmem:[%s21982_s3 + $0x17b0] sm:$0xff]  ;;  %v6518_v32 = vld [vmem:[%s21982_s3 + $0x138] sm:$0xff] }
 0x511   : > { %12000 = vmatprep.subr.bf16.mxu1 %v15946_v11  ;;  %v6526_v11 = vld [vmem:[%s21982_s3 + $0x178] sm:$0xff]  ;;  %v16050_v2 = vcombine.high %v7233_v42, %v7237_v43  ;;  %v16049_v52 = vcombine.low %v7233_v42, %v7237_v43 }
 0x512   : > { %11964 = vmatpush2.bf16.msra.mxu0 %v15881_v63  ;;  %v6522_v63 = vld [vmem:[%s21982_s3 + $0x158] sm:$0xff] }
 0x513   : > { %11965 = vmatprep.subr.bf16.mxu0 %v15874_v54  ;;  %v6510_v43 = vld [vmem:[%s21982_s3 + $0xf8] sm:$0xff] }
 0x514   : > { %12001 = vmatpush1.bf16.msra.mxu1 %v15945_v12 }
 0x515   : > { %12002 = vmatprep.subr.bf16.mxu1 %v15938_v0  ;;  %v7225_v0 = vld [vmem:[%s21982_s3 + $0x1750] sm:$0xff] }
 0x516   : > { %11966 = vmatpush2.bf16.msra.mxu0 %v15873_v13  ;;  %v15340_v13 = vcombine.high %v6522_v63, %v6526_v11 }
 0x517   : > { %12041 = vmatprep.subr.bf16.mxu0 %v15356_v20 }
 0x518   : > { %12003 = vmatpush1.bf16.msra.mxu1 %v15937_v56 }
 0x519   : > { %v11651_v54 = vpop.f32.mrf.mxu0  ;;  %11968 = vmatmul.mubr.bf16.vlgmr.msra.gmra.mxu0 %v19450_v10  ;;  %12004 = vmatprep.subr.bf16.mxu1 %v16058_v7 }
 0x51a   : > { %v20907_v3 = vadd.f32 %v11651_v54, %v20795_v60  ;;  %11977 = vmatprep.mubr.bf16.mxu0 %v19510_v58  ;;  %12042 = vmatpush1.bf16.msra.mxu0 %v15355_v37  ;;  %v7229_v60 = vld [vmem:[%s21982_s3 + $0x1770] sm:$0xff] }
 0x51b   : > { %v11653_v12 = vpop.f32.mrf.mxu0  ;;  %12043 = vmatprep.subr.bf16.mxu0 %v15348_v38  ;;  %v16042_v7 = vcombine.high %v7225_v0, %v7229_v60  ;;  %v15332_v38 = vcombine.high %v6514_v40, %v6518_v32  ;;  %v7217_v54 = vld [vmem:[%s21982_s3 + $0x1710] sm:$0xff] }
 0x51c   : > { %v20914_v20 = vadd.f32 %v11653_v12, %v20799_v50  ;;  %12005 = vmatpush2.bf16.msra.mxu1 %v16057_v21  ;;  %v15339_v50 = vcombine.low %v6522_v63, %v6526_v11  ;;  %v7221_v12 = vld [vmem:[%s21982_s3 + $0x1730] sm:$0xff]  ;;  %v16041_v11 = vcombine.low %v7225_v0, %v7229_v60  ;;  %v6502_v60 = vld [vmem:[%s21982_s3 + $0xb8] sm:$0xff] }
 0x51d   : > { %v11655_v19 = vpop.f32.mrf.mxu0  ;;  %12006 = vmatprep.subr.bf16.mxu1 %v16050_v2  ;;  %v7213_v0 = vld [vmem:[%s21982_s3 + $0x16f0] sm:$0xff] }
 0x51e   : > { %v20926_v56 = vadd.f32 %v11655_v19, %v20814_v55  ;;  %12044 = vmatpush1.bf16.msra.mxu0 %v15347_v4  ;;  %v6506_v55 = vld [vmem:[%s21982_s3 + $0xd8] sm:$0xff]  ;;  %v16034_v4 = vcombine.high %v7217_v54, %v7221_v12  ;;  %v7209_v19 = vld [vmem:[%s21982_s3 + $0x16d0] sm:$0xff] }
 0x51f   : > { %v11657_v37 = vpop.f32.mrf.mxu0  ;;  %12045 = vmatprep.subr.bf16.mxu0 %v15340_v13  ;;  %v15324_v13 = vcombine.high %v6506_v55, %v6510_v43 }
 0x520   : > { %v20935_v42 = vadd.f32 %v11657_v37, %v20817_v36  ;;  %12007 = vmatpush2.bf16.msra.mxu1 %v16049_v52  ;;  %v15331_v36 = vcombine.low %v6514_v40, %v6518_v32  ;;  %v16033_v32 = vcombine.low %v7217_v54, %v7221_v12  ;;  %v16026_v37 = vcombine.high %v7209_v19, %v7213_v0  ;;  %v6494_v12 = vld [vmem:[%s21982_s3 + $0x78] sm:$0xff] }
 0x521   : > { %v11661_v63 = vpop.f32.mrf.mxu0  ;;  %11978 = vmatmul.mubr.bf16.gmra.mxu0 %v19500_v46  ;;  %12008 = vmatprep.subr.bf16.mxu1 %v16042_v7 }
 0x522   : > { %v20945_v21 = vadd.f32 %v11661_v63, %v20833_v23  ;;  %12046 = vmatpush1.bf16.msra.mxu0 %v15339_v50  ;;  %12073 = vmatprep.mubr.bf16.mxu0 %v18435_v44  ;;  %v6498_v44 = vld [vmem:[%s21982_s3 + $0x98] sm:$0xff]  ;;  %v15323_v50 = vcombine.low %v6506_v55, %v6510_v43  ;;  %v7205_v63 = vld [vmem:[%s21982_s3 + $0x16b0] sm:$0xff]  ;;  %v16025_v55 = vcombine.low %v7209_v19, %v7213_v0 }
 0x523   : > { %v11663_v2 = vpop.f32.mrf.mxu0  ;;  %12047 = vmatprep.subr.bf16.mxu0 %v15332_v38  ;;  %v15316_v7 = vcombine.high %v6498_v44, %v6502_v60  ;;  %v7201_v38 = vld [vmem:[%s21982_s3 + $0x1690] sm:$0xff]  ;;  %v15315_v43 = vcombine.low %v6498_v44, %v6502_v60 }
 0x524   : > { %v20955_v23 = vadd.f32 %v11663_v2, %v20837_v62  ;;  %12009 = vmatpush2.bf16.msra.mxu1 %v16041_v11  ;;  %v16018_v11 = vcombine.high %v7201_v38, %v7205_v63  ;;  %v6482_v2 = vld [vmem:[%s21982_s3 + $0x18] sm:$0xff]  ;;  %v16017_v19 = vcombine.low %v7201_v38, %v7205_v63 }
 0x525   : > { %v11665_v40 = vpop.f32.mrf.mxu0  ;;  %12010 = vmatprep.subr.bf16.mxu1 %v16034_v4  ;;  %v7197_v4 = vld [vmem:[%s21982_s3 + $0x1670] sm:$0xff] }
 0x526   : > { %v20964_v52 = vadd.f32 %v11665_v40, %v20852_v9  ;;  %12048 = vmatpush1.bf16.msra.mxu0 %v15331_v36  ;;  %v6490_v9 = vld [vmem:[%s21982_s3 + $0x58] sm:$0xff]  ;;  %v7185_v40 = vld [vmem:[%s21982_s3 + $0x1610] sm:$0xff] }
 0x527   : > { %v11667_v62 = vpop.f32.mrf.mxu0  ;;  %12049 = vmatprep.subr.bf16.mxu0 %v15324_v13  ;;  %v15308_v36 = vcombine.high %v6490_v9, %v6494_v12  ;;  %v6486_v13 = vld [vmem:[%s21982_s3 + $0x38] sm:$0xff]  ;;  %v15307_v0 = vcombine.low %v6490_v9, %v6494_v12 }
 0x528   : > { %v20973_v54 = vadd.f32 %v11667_v62, %v20855_v39  ;;  %12011 = vmatpush2.bf16.msra.mxu1 %v16033_v32  ;;  %v7193_v39 = vld [vmem:[%s21982_s3 + $0x1650] sm:$0xff]  ;;  %v15300_v60 = vcombine.high %v6482_v2, %v6486_v13  ;;  %v6666_v9 = vld [vmem:[%s21982_s3 + $0x5d8] sm:$0xff] }
 0x529   : > { %12012 = vmatprep.subr.bf16.mxu1 %v16026_v37  ;;  %v16010_v44 = vcombine.high %v7193_v39, %v7197_v4  ;;  %v7189_v32 = vld [vmem:[%s21982_s3 + $0x1630] sm:$0xff]  ;;  %v6606_v37 = vld [vmem:[%s21982_s3 + $0x3f8] sm:$0xff]  ;;  %v16009_v62 = vcombine.low %v7193_v39, %v7197_v4 }
 0x52a   : > { %12050 = vmatpush1.bf16.msra.mxu0 %v15323_v50  ;;  %v6602_v50 = vld [vmem:[%s21982_s3 + $0x3d8] sm:$0xff]  ;;  %v16002_v38 = vcombine.high %v7185_v40, %v7189_v32 }
 0x52b   : > { %12051 = vmatprep.subr.bf16.mxu0 %v15316_v7  ;;  %v15299_v7 = vcombine.low %v6482_v2, %v6486_v13  ;;  %v15420_v63 = vcombine.high %v6602_v50, %v6606_v37  ;;  %v6670_v12 = vld [vmem:[%s21982_s3 + $0x5f8] sm:$0xff] }
 0x52c   : > { %12013 = vmatpush2.bf16.msra.mxu1 %v16025_v55  ;;  %v6594_v55 = vld [vmem:[%s21982_s3 + $0x398] sm:$0xff]  ;;  %v15484_v39 = vcombine.high %v6666_v9, %v6670_v12 }
 0x52d   : > { %12014 = vmatprep.subr.bf16.mxu1 %v16018_v11  ;;  %v16001_v11 = vcombine.low %v7185_v40, %v7189_v32  ;;  %v6658_v2 = vld [vmem:[%s21982_s3 + $0x598] sm:$0xff] }
 0x52e   : > { %12052 = vmatpush1.bf16.msra.mxu0 %v15315_v43  ;;  %v6598_v43 = vld [vmem:[%s21982_s3 + $0x3b8] sm:$0xff] }
 0x52f   : > { %12053 = vmatprep.subr.bf16.mxu0 %v15308_v36  ;;  %v15419_v36 = vcombine.low %v6602_v50, %v6606_v37  ;;  %v15412_v4 = vcombine.high %v6594_v55, %v6598_v43  ;;  %v6662_v13 = vld [vmem:[%s21982_s3 + $0x5b8] sm:$0xff] }
 0x530   : > { %12015 = vmatpush2.bf16.msra.mxu1 %v16017_v19  ;;  %v6586_v19 = vld [vmem:[%s21982_s3 + $0x358] sm:$0xff]  ;;  %v15476_v40 = vcombine.high %v6658_v2, %v6662_v13 }
 0x531   : > { %12016 = vmatprep.subr.bf16.mxu1 %v16010_v44  ;;  %v15483_v44 = vcombine.low %v6666_v9, %v6670_v12  ;;  %v6650_v50 = vld [vmem:[%s21982_s3 + $0x558] sm:$0xff]  ;;  %v15475_v9 = vcombine.low %v6658_v2, %v6662_v13 }
 0x532   : > { %12054 = vmatpush1.bf16.msra.mxu0 %v15307_v0  ;;  %v6590_v0 = vld [vmem:[%s21982_s3 + $0x378] sm:$0xff] }
 0x533   : > { %12055 = vmatprep.subr.bf16.mxu0 %v15300_v60  ;;  %v15411_v60 = vcombine.low %v6594_v55, %v6598_v43  ;;  %v15404_v32 = vcombine.high %v6586_v19, %v6590_v0  ;;  %v6654_v37 = vld [vmem:[%s21982_s3 + $0x578] sm:$0xff]  ;;  %v15403_v55 = vcombine.low %v6586_v19, %v6590_v0 }
 0x534   : > { %12017 = vmatpush2.bf16.msra.mxu1 %v16009_v62  ;;  %v15468_v43 = vcombine.high %v6650_v50, %v6654_v37  ;;  %v6570_v13 = vld [vmem:[%s21982_s3 + $0x2d8] sm:$0xff] }
 0x535   : > { %12018 = vmatprep.subr.bf16.mxu1 %v16002_v38  ;;  %v6582_v38 = vld [vmem:[%s21982_s3 + $0x338] sm:$0xff] }
 0x536   : > { %12056 = vmatpush1.bf16.msra.mxu0 %v15299_v7  ;;  %v6578_v7 = vld [vmem:[%s21982_s3 + $0x318] sm:$0xff] }
 0x537   : > { %12057 = vmatprep.subr.bf16.mxu0 %v15420_v63 }
 0x538   : > { %12019 = vmatpush2.bf16.msra.mxu1 %v16001_v11 }
 0x539   : > { %12094 = vmatprep.subr.bf16.mxu1 %v15484_v39  ;;  %v15396_v39 = vcombine.high %v6578_v7, %v6582_v38 }
 0x53a   : > { %12058 = vmatpush2.bf16.msra.mxu0 %v15419_v36 }
 0x53b   : > { %12059 = vmatprep.subr.bf16.mxu0 %v15412_v4  ;;  %v11704_v62 = vpop.f32.mrf.mxu1  ;;  %12021 = vmatmul.mubr.bf16.vlgmr.msra.gmra.mxu1 %v19613_v18  ;;  %v6646_v4 = vld [vmem:[%s21982_s3 + $0x538] sm:$0xff] }
 0x53c   : > { %v21043_v63 = vadd.f32 %v11704_v62, %v20907_v3  ;;  %12030 = vmatprep.mubr.bf16.mxu1 %v19673_v33  ;;  %12095 = vmatpush1.bf16.msra.mxu1 %v15483_v44  ;;  %v6642_v3 = vld [vmem:[%s21982_s3 + $0x518] sm:$0xff]  ;;  %v15467_v44 = vcombine.low %v6650_v50, %v6654_v37 }
 0x53d   : > { %v11706_v12 = vpop.f32.mrf.mxu1  ;;  %12096 = vmatprep.subr.bf16.mxu1 %v15476_v40  ;;  %v15395_v40 = vcombine.low %v6578_v7, %v6582_v38  ;;  %v6638_v50 = vld [vmem:[%s21982_s3 + $0x4f8] sm:$0xff] }
 0x53e   : > { %12060 = vmatpush2.bf16.msra.mxu0 %v15411_v60  ;;  %v21049_v36 = vadd.f32 %v11706_v12, %v20914_v20  ;;  %v6574_v20 = vld [vmem:[%s21982_s3 + $0x2f8] sm:$0xff] }
 0x53f   : > { %12061 = vmatprep.subr.bf16.mxu0 %v15404_v32  ;;  %v11708_v2 = vpop.f32.mrf.mxu1  ;;  %v15460_v32 = vcombine.high %v6642_v3, %v6646_v4  ;;  %v15388_v11 = vcombine.high %v6570_v13, %v6574_v20  ;;  %v6562_v7 = vld [vmem:[%s21982_s3 + $0x298] sm:$0xff] }
 0x540   : > { %v21066_v0 = vadd.f32 %v11708_v2, %v20926_v56  ;;  %12097 = vmatpush1.bf16.msra.mxu1 %v15475_v9  ;;  %v6634_v56 = vld [vmem:[%s21982_s3 + $0x4d8] sm:$0xff] }
 0x541   : > { %v11710_v60 = vpop.f32.mrf.mxu1  ;;  %12098 = vmatprep.subr.bf16.mxu1 %v15468_v43  ;;  %v15452_v2 = vcombine.high %v6634_v56, %v6638_v50 }
 0x542   : > { %12062 = vmatpush2.bf16.msra.mxu0 %v15403_v55  ;;  %v21071_v12 = vadd.f32 %v11710_v60, %v20935_v42  ;;  %v6566_v42 = vld [vmem:[%s21982_s3 + $0x2b8] sm:$0xff]  ;;  %v15459_v55 = vcombine.low %v6642_v3, %v6646_v4 }
 0x543   : > { %12063 = vmatprep.subr.bf16.mxu0 %v15396_v39  ;;  %v11714_v37 = vpop.f32.mrf.mxu1  ;;  %12031 = vmatmul.mubr.bf16.gmra.mxu1 %v19659_v15  ;;  %v15387_v39 = vcombine.low %v6570_v13, %v6574_v20  ;;  %v15380_v38 = vcombine.high %v6562_v7, %v6566_v42  ;;  %v6554_v4 = vld [vmem:[%s21982_s3 + $0x258] sm:$0xff]  ;;  %v15451_v20 = vcombine.low %v6634_v56, %v6638_v50 }
 0x544   : > { %v21089_v9 = vadd.f32 %v11714_v37, %v20945_v21  ;;  %12099 = vmatpush1.bf16.msra.mxu1 %v15467_v44  ;;  %12126 = vmatprep.mubr.bf16.mxu1 %v18446_v26  ;;  %v6626_v21 = vld [vmem:[%s21982_s3 + $0x498] sm:$0xff] }
 0x545   : > { %v11716_v43 = vpop.f32.mrf.mxu1  ;;  %12100 = vmatprep.subr.bf16.mxu1 %v15460_v32  ;;  %v6630_v26 = vld [vmem:[%s21982_s3 + $0x4b8] sm:$0xff] }
 0x546   : > { %22365 = vst [vmem:[#allocation37_spill] sm:$0xff] %v21089_v9  ;;  %12064 = vmatpush2.bf16.msra.mxu0 %v15395_v40  ;;  %v21095_v62 = vadd.f32 %v11716_v43, %v20955_v23  ;;  %v6558_v23 = vld [vmem:[%s21982_s3 + $0x278] sm:$0xff]  ;;  %v15379_v40 = vcombine.low %v6562_v7, %v6566_v42  ;;  %v15444_v32 = vcombine.high %v6626_v21, %v6630_v26 }
 0x547   : > { %12065 = vmatprep.subr.bf16.mxu0 %v15388_v11  ;;  %v11718_v3 = vpop.f32.mrf.mxu1  ;;  %v15372_v60 = vcombine.high %v6554_v4, %v6558_v23  ;;  %v6622_v56 = vld [vmem:[%s21982_s3 + $0x478] sm:$0xff]  ;;  %v15443_v42 = vcombine.low %v6626_v21, %v6630_v26 }
 0x548   : > { %22366 = vst [vmem:[#allocation124_spill] sm:$0xff] %v21095_v62  ;;  %v21112_v13 = vadd.f32 %v11718_v3, %v20964_v52  ;;  %12101 = vmatpush1.bf16.msra.mxu1 %v15459_v55  ;;  %v6618_v52 = vld [vmem:[%s21982_s3 + $0x458] sm:$0xff] }
 0x549   : > { %v11720_v44 = vpop.f32.mrf.mxu1  ;;  %12102 = vmatprep.subr.bf16.mxu1 %v15452_v2  ;;  %v6546_v50 = vld [vmem:[%s21982_s3 + $0x218] sm:$0xff]  ;;  %v15436_v55 = vcombine.high %v6618_v52, %v6622_v56  ;;  %v15435_v26 = vcombine.low %v6618_v52, %v6622_v56 }
 0x54a   : > { %22367 = vst [vmem:[#allocation121_spill] sm:$0xff] %v21112_v13  ;;  %12066 = vmatpush2.bf16.msra.mxu0 %v15387_v39  ;;  %v21117_v43 = vadd.f32 %v11720_v44, %v20973_v54  ;;  %v6550_v7 = vld [vmem:[%s21982_s3 + $0x238] sm:$0xff] }
 0x54b   : > { %12067 = vmatprep.subr.bf16.mxu0 %v15380_v38  ;;  %v15371_v38 = vcombine.low %v6554_v4, %v6558_v23  ;;  %v15364_v39 = vcombine.high %v6546_v50, %v6550_v7  ;;  %v6610_v2 = vld [vmem:[%s21982_s3 + $0x418] sm:$0xff] }
 0x54c   : > { %22368 = vst [vmem:[#allocation29_spill] sm:$0xff] %v21117_v43  ;;  %12103 = vmatpush1.bf16.msra.mxu1 %v15451_v20  ;;  %v6614_v3 = vld [vmem:[%s21982_s3 + $0x438] sm:$0xff] }
 0x54d   : > { %12104 = vmatprep.subr.bf16.mxu1 %v15444_v32  ;;  %v6794_v44 = vld [vmem:[%s21982_s3 + $0x9d8] sm:$0xff]  ;;  %v15428_v4 = vcombine.high %v6610_v2, %v6614_v3  ;;  %v15427_v56 = vcombine.low %v6610_v2, %v6614_v3 }
 0x54e   : > { %12068 = vmatpush2.bf16.msra.mxu0 %v15379_v40  ;;  %v6798_v21 = vld [vmem:[%s21982_s3 + $0x9f8] sm:$0xff] }
 0x54f   : > { %12069 = vmatprep.subr.bf16.mxu0 %v15372_v60  ;;  %v15363_v60 = vcombine.low %v6546_v50, %v6550_v7  ;;  %v15612_v23 = vcombine.high %v6794_v44, %v6798_v21  ;;  %v6730_v20 = vld [vmem:[%s21982_s3 + $0x7d8] sm:$0xff]  ;;  %v15611_v50 = vcombine.low %v6794_v44, %v6798_v21 }
 0x550   : > { %12105 = vmatpush1.bf16.msra.mxu1 %v15443_v42  ;;  %v6734_v40 = vld [vmem:[%s21982_s3 + $0x7f8] sm:$0xff] }
 0x551   : > { %12106 = vmatprep.subr.bf16.mxu1 %v15436_v55  ;;  %v6786_v32 = vld [vmem:[%s21982_s3 + $0x998] sm:$0xff]  ;;  %v15548_v7 = vcombine.high %v6730_v20, %v6734_v40  ;;  %v15547_v3 = vcombine.low %v6730_v20, %v6734_v40 }
 0x552   : > { %12070 = vmatpush2.bf16.msra.mxu0 %v15371_v38  ;;  %v6790_v52 = vld [vmem:[%s21982_s3 + $0x9b8] sm:$0xff] }
 0x553   : > { %12071 = vmatprep.subr.bf16.mxu0 %v15364_v39  ;;  %v15604_v42 = vcombine.high %v6786_v32, %v6790_v52  ;;  %v6722_v38 = vld [vmem:[%s21982_s3 + $0x798] sm:$0xff]  ;;  %v15603_v44 = vcombine.low %v6786_v32, %v6790_v52 }
 0x554   : > { %12107 = vmatpush1.bf16.msra.mxu1 %v15435_v26  ;;  %v6726_v55 = vld [vmem:[%s21982_s3 + $0x7b8] sm:$0xff] }
 0x555   : > { %12108 = vmatprep.subr.bf16.mxu1 %v15428_v4  ;;  %v6778_v39 = vld [vmem:[%s21982_s3 + $0x958] sm:$0xff]  ;;  %v15540_v21 = vcombine.high %v6722_v38, %v6726_v55 }
 0x556   : > { %12072 = vmatpush2.bf16.msra.mxu0 %v15363_v60  ;;  %v6782_v2 = vld [vmem:[%s21982_s3 + $0x978] sm:$0xff] }
 0x557   : > { %12147 = vmatprep.subr.bf16.mxu0 %v15612_v23  ;;  %v15596_v26 = vcombine.high %v6778_v39, %v6782_v2  ;;  %v6714_v60 = vld [vmem:[%s21982_s3 + $0x758] sm:$0xff]  ;;  %v15539_v23 = vcombine.low %v6722_v38, %v6726_v55  ;;  %v15595_v20 = vcombine.low %v6778_v39, %v6782_v2 }
 0x558   : > { %12109 = vmatpush1.bf16.msra.mxu1 %v15427_v56  ;;  %v6718_v4 = vld [vmem:[%s21982_s3 + $0x778] sm:$0xff] }
 0x559   : > { %12074 = vmatmul.mubr.bf16.vlgmr.msra.gmra.mxu0 %v18082_v59  ;;  %12110 = vmatprep.subr.bf16.mxu1 %v15548_v7  ;;  %v6770_v59 = vld [vmem:[%s21982_s3 + $0x918] sm:$0xff]  ;;  %v15532_v40 = vcombine.high %v6714_v60, %v6718_v4 }
 0x55a   : > { %12083 = vmatprep.mubr.bf16.mxu0 %v18675_v48  ;;  %12148 = vmatpush1.bf16.msra.mxu0 %v15611_v50  ;;  %v6774_v48 = vld [vmem:[%s21982_s3 + $0x938] sm:$0xff] }
 0x55b   : > { %12149 = vmatprep.subr.bf16.mxu0 %v15604_v42  ;;  %v15588_v32 = vcombine.high %v6770_v59, %v6774_v48  ;;  %v6706_v52 = vld [vmem:[%s21982_s3 + $0x718] sm:$0xff]  ;;  %v15531_v42 = vcombine.low %v6714_v60, %v6718_v4  ;;  %v15587_v38 = vcombine.low %v6770_v59, %v6774_v48 }
 0x55c   : > { %12111 = vmatpush2.bf16.msra.mxu1 %v15547_v3  ;;  %v6710_v56 = vld [vmem:[%s21982_s3 + $0x738] sm:$0xff] }
 0x55d   : > { %12112 = vmatprep.subr.bf16.mxu1 %v15540_v21  ;;  %v6762_v50 = vld [vmem:[%s21982_s3 + $0x8d8] sm:$0xff]  ;;  %v15524_v55 = vcombine.high %v6706_v52, %v6710_v56 }
 0x55e   : > { %12150 = vmatpush1.bf16.msra.mxu0 %v15603_v44  ;;  %v6766_v7 = vld [vmem:[%s21982_s3 + $0x8f8] sm:$0xff]  ;;  %v15523_v44 = vcombine.low %v6706_v52, %v6710_v56 }
 0x55f   : > { %12151 = vmatprep.subr.bf16.mxu0 %v15596_v26  ;;  %v15580_v39 = vcombine.high %v6762_v50, %v6766_v7  ;;  %v6698_v2 = vld [vmem:[%s21982_s3 + $0x6d8] sm:$0xff]  ;;  %v15579_v21 = vcombine.low %v6762_v50, %v6766_v7 }
 0x560   : > { %12113 = vmatpush2.bf16.msra.mxu1 %v15539_v23  ;;  %v6702_v3 = vld [vmem:[%s21982_s3 + $0x6f8] sm:$0xff] }
 0x561   : > { %12084 = vmatmul.mubr.bf16.gmra.mxu0 %v22356_v17  ;;  %12114 = vmatprep.subr.bf16.mxu1 %v15532_v40  ;;  %v6754_v17 = vld [vmem:[%s21982_s3 + $0x898] sm:$0xff]  ;;  %v15516_v26 = vcombine.high %v6698_v2, %v6702_v3 }
 0x562   : > { %12152 = vmatpush1.bf16.msra.mxu0 %v15595_v20  ;;  %12179 = vmatprep.mubr.bf16.mxu0 %v22357_v61  ;;  %v6758_v61 = vld [vmem:[%s21982_s3 + $0x8b8] sm:$0xff]  ;;  %v15515_v20 = vcombine.low %v6698_v2, %v6702_v3 }
 0x563   : > { %12153 = vmatprep.subr.bf16.mxu0 %v15588_v32  ;;  %v15572_v60 = vcombine.high %v6754_v17, %v6758_v61  ;;  %v6690_v4 = vld [vmem:[%s21982_s3 + $0x698] sm:$0xff]  ;;  %v15571_v40 = vcombine.low %v6754_v17, %v6758_v61 }
 0x564   : > { %12115 = vmatpush2.bf16.msra.mxu1 %v15531_v42  ;;  %v6694_v59 = vld [vmem:[%s21982_s3 + $0x6b8] sm:$0xff] }
 0x565   : > { %12116 = vmatprep.subr.bf16.mxu1 %v15524_v55  ;;  %v6746_v48 = vld [vmem:[%s21982_s3 + $0x858] sm:$0xff]  ;;  %v15508_v32 = vcombine.high %v6690_v4, %v6694_v59  ;;  %v11757_v55 = vpop.f32.mrf.mxu0 }
 0x566   : > { %12154 = vmatpush1.bf16.msra.mxu0 %v15587_v38  ;;  %v6750_v23 = vld [vmem:[%s21982_s3 + $0x878] sm:$0xff]  ;;  %v15507_v38 = vcombine.low %v6690_v4, %v6694_v59 }
 0x567   : > { %12155 = vmatprep.subr.bf16.mxu0 %v15580_v39  ;;  %v15564_v52 = vcombine.high %v6746_v48, %v6750_v23  ;;  %v6682_v56 = vld [vmem:[%s21982_s3 + $0x658] sm:$0xff]  ;;  %v15563_v39 = vcombine.low %v6746_v48, %v6750_v23 }
 0x568   : > { %12117 = vmatpush2.bf16.msra.mxu1 %v15523_v44  ;;  %v6686_v50 = vld [vmem:[%s21982_s3 + $0x678] sm:$0xff] }
 0x569   : > { %12118 = vmatprep.subr.bf16.mxu1 %v15516_v26  ;;  %v6738_v7 = vld [vmem:[%s21982_s3 + $0x818] sm:$0xff]  ;;  %v15500_v2 = vcombine.high %v6682_v56, %v6686_v50  ;;  %v15499_v26 = vcombine.low %v6682_v56, %v6686_v50 }
 0x56a   : > { %12156 = vmatpush1.bf16.msra.mxu0 %v15579_v21  ;;  %v6742_v42 = vld [vmem:[%s21982_s3 + $0x838] sm:$0xff] }
 0x56b   : > { %12157 = vmatprep.subr.bf16.mxu0 %v15572_v60  ;;  %v15556_v3 = vcombine.high %v6738_v7, %v6742_v42  ;;  %v6674_v17 = vld [vmem:[%s21982_s3 + $0x618] sm:$0xff]  ;;  %v11759_v60 = vpop.f32.mrf.mxu0  ;;  %v15555_v4 = vcombine.low %v6738_v7, %v6742_v42 }
 0x56c   : > { %12119 = vmatpush2.bf16.msra.mxu1 %v15515_v20  ;;  %v6678_v61 = vld [vmem:[%s21982_s3 + $0x638] sm:$0xff] }
 0x56d   : > { %12120 = vmatprep.subr.bf16.mxu1 %v15508_v32  ;;  %v6858_v44 = vld [vmem:[%s21982_s3 + $0xbd8] sm:$0xff]  ;;  %v15492_v59 = vcombine.high %v6674_v17, %v6678_v61  ;;  %v11761_v56 = vpop.f32.mrf.mxu0 }
 0x56e   : > { %12158 = vmatpush1.bf16.msra.mxu0 %v15571_v40  ;;  %v6862_v21 = vld [vmem:[%s21982_s3 + $0xbf8] sm:$0xff] }
 0x56f   : > { %12159 = vmatprep.subr.bf16.mxu0 %v15564_v52  ;;  %v15676_v48 = vcombine.high %v6858_v44, %v6862_v21  ;;  %v6922_v23 = vld [vmem:[%s21982_s3 + $0xdd8] sm:$0xff]  ;;  %v15491_v52 = vcombine.low %v6674_v17, %v6678_v61  ;;  %v15675_v50 = vcombine.low %v6858_v44, %v6862_v21  ;;  %v11763_v61 = vpop.f32.mrf.mxu0 }
 0x570   : > { %12121 = vmatpush2.bf16.msra.mxu1 %v15507_v38  ;;  %v6926_v20 = vld [vmem:[%s21982_s3 + $0xdf8] sm:$0xff] }
 0x571   : > { %12122 = vmatprep.subr.bf16.mxu1 %v15500_v2  ;;  %v6850_v40 = vld [vmem:[%s21982_s3 + $0xb98] sm:$0xff]  ;;  %v15740_v7 = vcombine.high %v6922_v23, %v6926_v20  ;;  %v15739_v17 = vcombine.low %v6922_v23, %v6926_v20 }
 0x572   : > { %12160 = vmatpush1.bf16.msra.mxu0 %v15563_v39  ;;  %v6854_v32 = vld [vmem:[%s21982_s3 + $0xbb8] sm:$0xff] }
 0x573   : > { %12161 = vmatprep.subr.bf16.mxu0 %v15556_v3  ;;  %v15668_v42 = vcombine.high %v6850_v40, %v6854_v32  ;;  %v6914_v38 = vld [vmem:[%s21982_s3 + $0xd98] sm:$0xff]  ;;  %v15667_v44 = vcombine.low %v6850_v40, %v6854_v32 }
 0x574   : > { %12123 = vmatpush2.bf16.msra.mxu1 %v15499_v26  ;;  %v6918_v39 = vld [vmem:[%s21982_s3 + $0xdb8] sm:$0xff] }
 0x575   : > { %12124 = vmatprep.subr.bf16.mxu1 %v15492_v59  ;;  %v6842_v2 = vld [vmem:[%s21982_s3 + $0xb58] sm:$0xff]  ;;  %v15732_v21 = vcombine.high %v6914_v38, %v6918_v39  ;;  %v15731_v32 = vcombine.low %v6914_v38, %v6918_v39 }
 0x576   : > { %12162 = vmatpush1.bf16.msra.mxu0 %v15555_v4  ;;  %v6846_v3 = vld [vmem:[%s21982_s3 + $0xb78] sm:$0xff] }
 0x577   : > { %12163 = vmatprep.subr.bf16.mxu0 %v15676_v48  ;;  %v15660_v26 = vcombine.high %v6842_v2, %v6846_v3  ;;  %v6906_v4 = vld [vmem:[%s21982_s3 + $0xd58] sm:$0xff] }
 0x578   : > { %12125 = vmatpush2.bf16.msra.mxu1 %v15491_v52  ;;  %v6910_v59 = vld [vmem:[%s21982_s3 + $0xd78] sm:$0xff]  ;;  %v11767_v52 = vpop.f32.mrf.mxu0 }
 0x579   : > { %12200 = vmatprep.subr.bf16.mxu1 %v15740_v7  ;;  %v6834_v23 = vld [vmem:[%s21982_s3 + $0xb18] sm:$0xff]  ;;  %v15659_v7 = vcombine.low %v6842_v2, %v6846_v3  ;;  %v15723_v2 = vcombine.low %v6906_v4, %v6910_v59 }
 0x57a   : > { %12164 = vmatpush2.bf16.msra.mxu0 %v15675_v50  ;;  %v6838_v20 = vld [vmem:[%s21982_s3 + $0xb38] sm:$0xff]  ;;  %v11769_v3 = vpop.f32.mrf.mxu0 }
 0x57b   : > { %12165 = vmatprep.subr.bf16.mxu0 %v15668_v42  ;;  %v11810_v48 = vpop.f32.mrf.mxu1  ;;  %12127 = vmatmul.mubr.bf16.vlgmr.msra.gmra.mxu1 %v22358_v47  ;;  %v15724_v47 = vcombine.high %v6906_v4, %v6910_v59  ;;  %v15652_v54 = vcombine.high %v6834_v23, %v6838_v20  ;;  %v6898_v37 = vld [vmem:[%s21982_s3 + $0xd18] sm:$0xff] }
 0x57c   : > { %v21282_v40 = vadd.f32 %v11810_v48, %v11757_v55  ;;  %12136 = vmatprep.mubr.bf16.mxu1 %v22359_v5  ;;  %12201 = vmatpush1.bf16.msra.mxu1 %v15739_v17  ;;  %v6902_v5 = vld [vmem:[%s21982_s3 + $0xd38] sm:$0xff] }
 0x57d   : > { %v11812_v50 = vpop.f32.mrf.mxu1  ;;  %12202 = vmatprep.subr.bf16.mxu1 %v15732_v21  ;;  %v6826_v38 = vld [vmem:[%s21982_s3 + $0xad8] sm:$0xff]  ;;  %v15716_v21 = vcombine.high %v6898_v37, %v6902_v5  ;;  %v15715_v59 = vcombine.low %v6898_v37, %v6902_v5 }
 0x57e   : > { %12166 = vmatpush2.bf16.msra.mxu0 %v15667_v44  ;;  %v21285_v42 = vadd.f32 %v11812_v50, %v11759_v60  ;;  %v6830_v60 = vld [vmem:[%s21982_s3 + $0xaf8] sm:$0xff]  ;;  %v15651_v44 = vcombine.low %v6834_v23, %v6838_v20  ;;  %v11771_v23 = vpop.f32.mrf.mxu0 }
 0x57f   : > { %12167 = vmatprep.subr.bf16.mxu0 %v15660_v26  ;;  %v11814_v55 = vpop.f32.mrf.mxu1  ;;  %v15644_v48 = vcombine.high %v6826_v38, %v6830_v60  ;;  %v6890_v50 = vld [vmem:[%s21982_s3 + $0xcd8] sm:$0xff] }
 0x580   : > { %v21299_v39 = vadd.f32 %v11814_v55, %v11761_v56  ;;  %12203 = vmatpush1.bf16.msra.mxu1 %v15731_v32  ;;  %v6894_v56 = vld [vmem:[%s21982_s3 + $0xcf8] sm:$0xff] }
 0x581   : > { %v11816_v17 = vpop.f32.mrf.mxu1  ;;  %12204 = vmatprep.subr.bf16.mxu1 %v15724_v47  ;;  %v6818_v4 = vld [vmem:[%s21982_s3 + $0xa98] sm:$0xff] }
 0x582   : > { %12168 = vmatpush2.bf16.msra.mxu0 %v15659_v7  ;;  %v21301_v26 = vadd.f32 %v11816_v17, %v11763_v61  ;;  %v15643_v7 = vcombine.low %v6826_v38, %v6830_v60  ;;  %v6882_v17 = vld [vmem:[%s21982_s3 + $0xc98] sm:$0xff]  ;;  %v15707_v60 = vcombine.low %v6890_v50, %v6894_v56 }
 0x583   : > { %12169 = vmatprep.subr.bf16.mxu0 %v15652_v54  ;;  %v11820_v32 = vpop.f32.mrf.mxu1  ;;  %12137 = vmatmul.mubr.bf16.gmra.mxu1 %v22360_v30  ;;  %v6822_v54 = vld [vmem:[%s21982_s3 + $0xab8] sm:$0xff]  ;;  %v15708_v30 = vcombine.high %v6890_v50, %v6894_v56 }
 0x584   : > { %v21316_v61 = vadd.f32 %v11820_v32, %v11767_v52  ;;  %12205 = vmatpush1.bf16.msra.mxu1 %v15723_v2  ;;  %12232 = vmatprep.mubr.bf16.mxu1 %v19104_v34  ;;  %v15636_v55 = vcombine.high %v6818_v4, %v6822_v54  ;;  %v6886_v52 = vld [vmem:[%s21982_s3 + $0xcb8] sm:$0xff]  ;;  %v11773_v2 = vpop.f32.mrf.mxu0 }
 0x585   : > { %v11822_v20 = vpop.f32.mrf.mxu1  ;;  %12206 = vmatprep.subr.bf16.mxu1 %v15716_v21  ;;  %v6810_v37 = vld [vmem:[%s21982_s3 + $0xa58] sm:$0xff]  ;;  %v15700_v21 = vcombine.high %v6882_v17, %v6886_v52 }
 0x586   : > { %12170 = vmatpush2.bf16.msra.mxu0 %v15651_v44  ;;  %v21319_v47 = vadd.f32 %v11822_v20, %v11769_v3  ;;  %v6814_v5 = vld [vmem:[%s21982_s3 + $0xa78] sm:$0xff]  ;;  %v15635_v44 = vcombine.low %v6818_v4, %v6822_v54  ;;  %v15699_v4 = vcombine.low %v6882_v17, %v6886_v52 }
 0x587   : > { %12171 = vmatprep.subr.bf16.mxu0 %v15644_v48  ;;  %v11824_v34 = vpop.f32.mrf.mxu1  ;;  %v15628_v32 = vcombine.high %v6810_v37, %v6814_v5  ;;  %v6874_v20 = vld [vmem:[%s21982_s3 + $0xc58] sm:$0xff]  ;;  %v15627_v54 = vcombine.low %v6810_v37, %v6814_v5 }
 0x588   : > { %v21333_v38 = vadd.f32 %v11824_v34, %v11771_v23  ;;  %12207 = vmatpush1.bf16.msra.mxu1 %v15715_v59  ;;  %v6878_v23 = vld [vmem:[%s21982_s3 + $0xc78] sm:$0xff] }
 0x589   : > { %v11826_v3 = vpop.f32.mrf.mxu1  ;;  %12208 = vmatprep.subr.bf16.mxu1 %v15708_v30  ;;  %v6802_v50 = vld [vmem:[%s21982_s3 + $0xa18] sm:$0xff]  ;;  %v15692_v59 = vcombine.high %v6874_v20, %v6878_v23  ;;  %v15691_v52 = vcombine.low %v6874_v20, %v6878_v23 }
 0x58a   : > { %12172 = vmatpush2.bf16.msra.mxu0 %v15643_v7  ;;  %v21335_v48 = vadd.f32 %v11826_v3, %v11773_v2  ;;  %v6806_v56 = vld [vmem:[%s21982_s3 + $0xa38] sm:$0xff] }
 0x58b   : > { %12173 = vmatprep.subr.bf16.mxu0 %v15636_v55  ;;  %v15620_v7 = vcombine.high %v6802_v50, %v6806_v56  ;;  %v6866_v30 = vld [vmem:[%s21982_s3 + $0xc18] sm:$0xff]  ;;  %v15619_v37 = vcombine.low %v6802_v50, %v6806_v56 }
 0x58c   : > { %12209 = vmatpush1.bf16.msra.mxu1 %v15707_v60  ;;  %v6870_v55 = vld [vmem:[%s21982_s3 + $0xc38] sm:$0xff] }
 0x58d   : > { %12210 = vmatprep.subr.bf16.mxu1 %v15700_v21  ;;  %v7050_v34 = vld [vmem:[%s21982_s3 + $0x11d8] sm:$0xff]  ;;  %v15684_v5 = vcombine.high %v6866_v30, %v6870_v55 }
 0x58e   : > { %12174 = vmatpush2.bf16.msra.mxu0 %v15635_v44  ;;  %v7054_v17 = vld [vmem:[%s21982_s3 + $0x11f8] sm:$0xff] }
 0x58f   : > { %12175 = vmatprep.subr.bf16.mxu0 %v15628_v32  ;;  %v15868_v60 = vcombine.high %v7050_v34, %v7054_v17  ;;  %v6986_v2 = vld [vmem:[%s21982_s3 + $0xfd8] sm:$0xff]  ;;  %v15683_v32 = vcombine.low %v6866_v30, %v6870_v55  ;;  %v15867_v20 = vcombine.low %v7050_v34, %v7054_v17 }
 0x590   : > { %12211 = vmatpush1.bf16.msra.mxu1 %v15699_v4  ;;  %v6990_v3 = vld [vmem:[%s21982_s3 + $0xff8] sm:$0xff] }
 0x591   : > { %12212 = vmatprep.subr.bf16.mxu1 %v15692_v59  ;;  %v7042_v44 = vld [vmem:[%s21982_s3 + $0x1198] sm:$0xff]  ;;  %v15804_v23 = vcombine.high %v6986_v2, %v6990_v3  ;;  %v15803_v30 = vcombine.low %v6986_v2, %v6990_v3 }
 0x592   : > { %12176 = vmatpush2.bf16.msra.mxu0 %v15627_v54  ;;  %v7046_v21 = vld [vmem:[%s21982_s3 + $0x11b8] sm:$0xff] }
 0x593   : > { %12177 = vmatprep.subr.bf16.mxu0 %v15620_v7  ;;  %v15860_v50 = vcombine.high %v7042_v44, %v7046_v21  ;;  %v6978_v56 = vld [vmem:[%s21982_s3 + $0xf98] sm:$0xff]  ;;  %v15859_v34 = vcombine.low %v7042_v44, %v7046_v21 }
 0x594   : > { %12213 = vmatpush1.bf16.msra.mxu1 %v15691_v52  ;;  %v6982_v4 = vld [vmem:[%s21982_s3 + $0xfb8] sm:$0xff] }
 0x595   : > { %12214 = vmatprep.subr.bf16.mxu1 %v15684_v5  ;;  %v7034_v54 = vld [vmem:[%s21982_s3 + $0x1158] sm:$0xff]  ;;  %v15796_v17 = vcombine.high %v6978_v56, %v6982_v4  ;;  %v15795_v3 = vcombine.low %v6978_v56, %v6982_v4 }
 0x596   : > { %12178 = vmatpush2.bf16.msra.mxu0 %v15619_v37  ;;  %v7038_v59 = vld [vmem:[%s21982_s3 + $0x1178] sm:$0xff] }
 0x597   : > { %12253 = vmatprep.subr.bf16.mxu0 %v15868_v60  ;;  %v15852_v37 = vcombine.high %v7034_v54, %v7038_v59  ;;  %v6970_v5 = vld [vmem:[%s21982_s3 + $0xf58] sm:$0xff] }
 0x598   : > { %12215 = vmatpush1.bf16.msra.mxu1 %v15683_v32  ;;  %v7030_v60 = vld [vmem:[%s21982_s3 + $0x1138] sm:$0xff] }
 0x599   : > { %v11863_v7 = vpop.f32.mrf.mxu0  ;;  %12180 = vmatmul.mubr.bf16.vlgmr.msra.gmra.mxu0 %v18740_v27  ;;  %12216 = vmatprep.subr.bf16.mxu1 %v15804_v23  ;;  %v6966_v23 = vld [vmem:[%s21982_s3 + $0xf38] sm:$0xff] }
 0x59a   : > { %v21387_v55 = vadd.f32 %v11863_v7, %v21282_v40  ;;  %12189 = vmatprep.mubr.bf16.mxu0 %v19144_v28  ;;  %12254 = vmatpush1.bf16.msra.mxu0 %v15867_v20  ;;  %v6974_v40 = vld [vmem:[%s21982_s3 + $0xf78] sm:$0xff] }
 0x59b   : > { %v11865_v52 = vpop.f32.mrf.mxu0  ;;  %12255 = vmatprep.subr.bf16.mxu0 %v15860_v50  ;;  %v7026_v28 = vld [vmem:[%s21982_s3 + $0x1118] sm:$0xff]  ;;  %v15788_v21 = vcombine.high %v6970_v5, %v6974_v40 }
 0x59c   : > { %v21394_v27 = vadd.f32 %v11865_v52, %v21285_v42  ;;  %12217 = vmatpush2.bf16.msra.mxu1 %v15803_v30  ;;  %v15851_v42 = vcombine.low %v7034_v54, %v7038_v59  ;;  %v15844_v32 = vcombine.high %v7026_v28, %v7030_v60  ;;  %v6962_v20 = vld [vmem:[%s21982_s3 + $0xf18] sm:$0xff]  ;;  %v15787_v54 = vcombine.low %v6970_v5, %v6974_v40 }
 0x59d   : > { %v21405_v2 = vpop.f32.mrf.mxu0  ;;  %12218 = vmatprep.subr.bf16.mxu1 %v15796_v17  ;;  %v7018_v50 = vld [vmem:[%s21982_s3 + $0x10d8] sm:$0xff]  ;;  %v15843_v7 = vcombine.low %v7026_v28, %v7030_v60  ;;  %v15780_v30 = vcombine.high %v6962_v20, %v6966_v23  ;;  %v15779_v40 = vcombine.low %v6962_v20, %v6966_v23 }
 0x59e   : > { %12256 = vmatpush1.bf16.msra.mxu0 %v15859_v34  ;;  %v7022_v56 = vld [vmem:[%s21982_s3 + $0x10f8] sm:$0xff] }
 0x59f   : > { %v21407_v44 = vpop.f32.mrf.mxu0  ;;  %12257 = vmatprep.subr.bf16.mxu0 %v15852_v37  ;;  %v15836_v17 = vcombine.high %v7018_v50, %v7022_v56  ;;  %v6954_v52 = vld [vmem:[%s21982_s3 + $0xed8] sm:$0xff]  ;;  %v15835_v60 = vcombine.low %v7018_v50, %v7022_v56 }
 0x5a0   : > { %12219 = vmatpush2.bf16.msra.mxu1 %v15795_v3  ;;  %v7014_v37 = vld [vmem:[%s21982_s3 + $0x10b8] sm:$0xff] }
 0x5a1   : > { %v11873_v4 = vpop.f32.mrf.mxu0  ;;  %12190 = vmatmul.mubr.bf16.gmra.mxu0 %v18782_v53  ;;  %12220 = vmatprep.subr.bf16.mxu1 %v15788_v21  ;;  %v6958_v53 = vld [vmem:[%s21982_s3 + $0xef8] sm:$0xff] }
 0x5a2   : > { %v21423_v59 = vadd.f32 %v11873_v4, %v21316_v61  ;;  %12258 = vmatpush1.bf16.msra.mxu0 %v15851_v42  ;;  %12285 = vmatprep.mubr.bf16.mxu0 %v19460_v6  ;;  %v7010_v6 = vld [vmem:[%s21982_s3 + $0x1098] sm:$0xff]  ;;  %v15772_v3 = vcombine.high %v6954_v52, %v6958_v53  ;;  %v15771_v50 = vcombine.low %v6954_v52, %v6958_v53 }
 0x5a3   : > { %v11875_v34 = vpop.f32.mrf.mxu0  ;;  %12259 = vmatprep.subr.bf16.mxu0 %v15844_v32  ;;  %v15828_v42 = vcombine.high %v7010_v6, %v7014_v37  ;;  %v6946_v21 = vld [vmem:[%s21982_s3 + $0xe98] sm:$0xff]  ;;  %v15827_v56 = vcombine.low %v7010_v6, %v7014_v37 }
 0x5a4   : > { %v21433_v61 = vadd.f32 %v11875_v34, %v21319_v47  ;;  %12221 = vmatpush2.bf16.msra.mxu1 %v15787_v54  ;;  %v6950_v32 = vld [vmem:[%s21982_s3 + $0xeb8] sm:$0xff] }
 0x5a5   : > { %v11877_v5 = vpop.f32.mrf.mxu0  ;;  %12222 = vmatprep.subr.bf16.mxu1 %v15780_v30  ;;  %v7006_v23 = vld [vmem:[%s21982_s3 + $0x1078] sm:$0xff]  ;;  %v15764_v4 = vcombine.high %v6946_v21, %v6950_v32 }
 0x5a6   : > { %v21442_v28 = vadd.f32 %v11877_v5, %v21333_v38  ;;  %12260 = vmatpush1.bf16.msra.mxu0 %v15843_v7  ;;  %v7002_v38 = vld [vmem:[%s21982_s3 + $0x1058] sm:$0xff] }
 0x5a7   : > { %v11879_v47 = vpop.f32.mrf.mxu0  ;;  %12261 = vmatprep.subr.bf16.mxu0 %v15836_v17  ;;  %v15820_v54 = vcombine.high %v7002_v38, %v7006_v23  ;;  %v6942_v7 = vld [vmem:[%s21982_s3 + $0xe78] sm:$0xff]  ;;  %v15763_v17 = vcombine.low %v6946_v21, %v6950_v32  ;;  %v15819_v52 = vcombine.low %v7002_v38, %v7006_v23 }
 0x5a8   : > { %v21451_v20 = vadd.f32 %v11879_v47, %v21335_v48  ;;  %12223 = vmatpush2.bf16.msra.mxu1 %v15779_v40  ;;  %v6938_v48 = vld [vmem:[%s21982_s3 + $0xe58] sm:$0xff] }
 0x5a9   : > { %12224 = vmatprep.subr.bf16.mxu1 %v15772_v3  ;;  %v6994_v30 = vld [vmem:[%s21982_s3 + $0x1018] sm:$0xff]  ;;  %v15756_v53 = vcombine.high %v6938_v48, %v6942_v7  ;;  %v15755_v3 = vcombine.low %v6938_v48, %v6942_v7 }
 0x5aa   : > { %12262 = vmatpush1.bf16.msra.mxu0 %v15835_v60  ;;  %v6998_v34 = vld [vmem:[%s21982_s3 + $0x1038] sm:$0xff] }
 0x5ab   : > { %12263 = vmatprep.subr.bf16.mxu0 %v15828_v42  ;;  %v15812_v6 = vcombine.high %v6994_v30, %v6998_v34  ;;  %v6930_v37 = vld [vmem:[%s21982_s3 + $0xe18] sm:$0xff]  ;;  %v15811_v47 = vcombine.low %v6994_v30, %v6998_v34 }
 0x5ac   : > { %12225 = vmatpush2.bf16.msra.mxu1 %v15771_v50  ;;  %v6934_v5 = vld [vmem:[%s21982_s3 + $0xe38] sm:$0xff] }
 0x5ad   : > { %12226 = vmatprep.subr.bf16.mxu1 %v15764_v4  ;;  %v7114_v40 = vld [vmem:[%s21982_s3 + $0x13d8] sm:$0xff]  ;;  %v15748_v42 = vcombine.high %v6930_v37, %v6934_v5 }
 0x5ae   : > { %12264 = vmatpush1.bf16.msra.mxu0 %v15827_v56  ;;  %v7118_v60 = vld [vmem:[%s21982_s3 + $0x13f8] sm:$0xff]  ;;  %v15747_v56 = vcombine.low %v6930_v37, %v6934_v5 }
 0x5af   : > { %12265 = vmatprep.subr.bf16.mxu0 %v15820_v54  ;;  %v15932_v21 = vcombine.high %v7114_v40, %v7118_v60  ;;  %v7178_v32 = vld [vmem:[%s21982_s3 + $0x15d8] sm:$0xff]  ;;  %v15931_v4 = vcombine.low %v7114_v40, %v7118_v60 }
 0x5b0   : > { %12227 = vmatpush2.bf16.msra.mxu1 %v15763_v17  ;;  %v7182_v38 = vld [vmem:[%s21982_s3 + $0x15f8] sm:$0xff] }
 0x5b1   : > { %12228 = vmatprep.subr.bf16.mxu1 %v15756_v53  ;;  %v7106_v23 = vld [vmem:[%s21982_s3 + $0x1398] sm:$0xff]  ;;  %v15996_v54 = vcombine.high %v7178_v32, %v7182_v38 }
 0x5b2   : > { %12266 = vmatpush1.bf16.msra.mxu0 %v15819_v52  ;;  %v7110_v50 = vld [vmem:[%s21982_s3 + $0x13b8] sm:$0xff]  ;;  %v15995_v52 = vcombine.low %v7178_v32, %v7182_v38 }
 0x5b3   : > { %12267 = vmatprep.subr.bf16.mxu0 %v15812_v6  ;;  %v15924_v48 = vcombine.high %v7106_v23, %v7110_v50  ;;  %v7170_v7 = vld [vmem:[%s21982_s3 + $0x1598] sm:$0xff]  ;;  %v15923_v53 = vcombine.low %v7106_v23, %v7110_v50 }
 0x5b4   : > { %12229 = vmatpush2.bf16.msra.mxu1 %v15755_v3  ;;  %v7174_v30 = vld [vmem:[%s21982_s3 + $0x15b8] sm:$0xff] }
 0x5b5   : > { %12230 = vmatprep.subr.bf16.mxu1 %v15748_v42  ;;  %v7098_v34 = vld [vmem:[%s21982_s3 + $0x1358] sm:$0xff]  ;;  %v15988_v6 = vcombine.high %v7170_v7, %v7174_v30 }
 0x5b6   : > { %12268 = vmatpush1.bf16.msra.mxu0 %v15811_v47  ;;  %v7102_v17 = vld [vmem:[%s21982_s3 + $0x1378] sm:$0xff] }
 0x5b7   : > { %12269 = vmatprep.subr.bf16.mxu0 %v15932_v21  ;;  %v15916_v37 = vcombine.high %v7098_v34, %v7102_v17  ;;  %v7162_v5 = vld [vmem:[%s21982_s3 + $0x1558] sm:$0xff]  ;;  %v15987_v21 = vcombine.low %v7170_v7, %v7174_v30  ;;  %v15915_v38 = vcombine.low %v7098_v34, %v7102_v17 }
 0x5b8   : > { %12231 = vmatpush2.bf16.msra.mxu1 %v15747_v56  ;;  %v7166_v40 = vld [vmem:[%s21982_s3 + $0x1578] sm:$0xff] }
 0x5b9   : > { %12306 = vmatprep.subr.bf16.mxu1 %v15996_v54  ;;  %v7090_v3 = vld [vmem:[%s21982_s3 + $0x1318] sm:$0xff]  ;;  %v15979_v54 = vcombine.low %v7162_v5, %v7166_v40 }
 0x5ba   : > { %12270 = vmatpush2.bf16.msra.mxu0 %v15931_v4  ;;  %v7094_v47 = vld [vmem:[%s21982_s3 + $0x1338] sm:$0xff] }
 0x5bb   : > { %12271 = vmatprep.subr.bf16.mxu0 %v15924_v48  ;;  %v11916_v60 = vpop.f32.mrf.mxu1  ;;  %12233 = vmatmul.mubr.bf16.vlgmr.msra.gmra.mxu1 %v19080_v25  ;;  %v15980_v25 = vcombine.high %v7162_v5, %v7166_v40  ;;  %v15908_v50 = vcombine.high %v7090_v3, %v7094_v47  ;;  %v7154_v56 = vld [vmem:[%s21982_s3 + $0x1518] sm:$0xff]  ;;  %v15907_v7 = vcombine.low %v7090_v3, %v7094_v47 }
 0x5bc   : > { %v21521_v42 = vadd.f32 %v11916_v60, %v21387_v55  ;;  %12242 = vmatprep.mubr.bf16.mxu1 %v19149_v8  ;;  %12307 = vmatpush1.bf16.msra.mxu1 %v15995_v52  ;;  %v7158_v8 = vld [vmem:[%s21982_s3 + $0x1538] sm:$0xff] }
 0x5bd   : > { %v11918_v32 = vpop.f32.mrf.mxu1  ;;  %12308 = vmatprep.subr.bf16.mxu1 %v15988_v6  ;;  %v7082_v4 = vld [vmem:[%s21982_s3 + $0x12d8] sm:$0xff]  ;;  %v15972_v30 = vcombine.high %v7154_v56, %v7158_v8  ;;  %v15971_v40 = vcombine.low %v7154_v56, %v7158_v8 }
 0x5be   : > { %12272 = vmatpush2.bf16.msra.mxu0 %v15923_v53  ;;  %v21525_v23 = vadd.f32 %v11918_v32, %v21394_v27  ;;  %v7086_v27 = vld [vmem:[%s21982_s3 + $0x12f8] sm:$0xff] }
 0x5bf   : > { %12273 = vmatprep.subr.bf16.mxu0 %v15916_v37  ;;  %v21533_v55 = vpop.f32.mrf.mxu1  ;;  %v15900_v34 = vcombine.high %v7082_v4, %v7086_v27  ;;  %v7146_v17 = vld [vmem:[%s21982_s3 + $0x14d8] sm:$0xff]  ;;  %v15899_v3 = vcombine.low %v7082_v4, %v7086_v27 }
 0x5c0   : > { %12309 = vmatpush1.bf16.msra.mxu1 %v15987_v21  ;;  %v7150_v52 = vld [vmem:[%s21982_s3 + $0x14f8] sm:$0xff] }
 0x5c1   : > { %v21541_v48 = vpop.f32.mrf.mxu1  ;;  %12310 = vmatprep.subr.bf16.mxu1 %v15980_v25  ;;  %v7074_v6 = vld [vmem:[%s21982_s3 + $0x1298] sm:$0xff] }
 0x5c2   : > { %12274 = vmatpush2.bf16.msra.mxu0 %v15915_v38  ;;  %v7078_v37 = vld [vmem:[%s21982_s3 + $0x12b8] sm:$0xff] }
 0x5c3   : > { %12275 = vmatprep.subr.bf16.mxu0 %v15908_v50  ;;  %v11926_v53 = vpop.f32.mrf.mxu1  ;;  %12243 = vmatmul.mubr.bf16.gmra.mxu1 %v19130_v16  ;;  %v15964_v16 = vcombine.high %v7146_v17, %v7150_v52  ;;  %v15892_v21 = vcombine.high %v7074_v6, %v7078_v37  ;;  %v7138_v32 = vld [vmem:[%s21982_s3 + $0x1498] sm:$0xff]  ;;  %v15963_v50 = vcombine.low %v7146_v17, %v7150_v52 }
 0x5c4   : > { %v21557_v5 = vadd.f32 %v11926_v53, %v21423_v59  ;;  %12311 = vmatpush1.bf16.msra.mxu1 %v15979_v54  ;;  %12338 = vmatprep.mubr.bf16.mxu1 %v19638_v31  ;;  %v7142_v59 = vld [vmem:[%s21982_s3 + $0x14b8] sm:$0xff]  ;;  %v15891_v8 = vcombine.low %v7074_v6, %v7078_v37 }
 0x5c5   : > { %v11928_v60 = vpop.f32.mrf.mxu1  ;;  %12312 = vmatprep.subr.bf16.mxu1 %v15972_v30  ;;  %v7066_v38 = vld [vmem:[%s21982_s3 + $0x1258] sm:$0xff]  ;;  %v15956_v4 = vcombine.high %v7138_v32, %v7142_v59 }
 0x5c6   : > { %12276 = vmatpush2.bf16.msra.mxu0 %v15907_v7  ;;  %v21561_v47 = vadd.f32 %v11928_v60, %v21433_v61  ;;  %v7070_v61 = vld [vmem:[%s21982_s3 + $0x1278] sm:$0xff] }
 0x5c7   : > { %12277 = vmatprep.subr.bf16.mxu0 %v15900_v34  ;;  %v11930_v31 = vpop.f32.mrf.mxu1  ;;  %v15884_v54 = vcombine.high %v7066_v38, %v7070_v61  ;;  %v7130_v7 = vld [vmem:[%s21982_s3 + $0x1458] sm:$0xff]  ;;  %v15883_v17 = vcombine.low %v7066_v38, %v7070_v61 }
 0x5c8   : > { %v21576_v25 = vadd.f32 %v11930_v31, %v21442_v28  ;;  %12313 = vmatpush1.bf16.msra.mxu1 %v15971_v40  ;;  %v7134_v28 = vld [vmem:[%s21982_s3 + $0x1478] sm:$0xff] }
 0x5c9   : > { %v11932_v56 = vpop.f32.mrf.mxu1  ;;  %12314 = vmatprep.subr.bf16.mxu1 %v15964_v16  ;;  %v7058_v30 = vld [vmem:[%s21982_s3 + $0x1218] sm:$0xff]  ;;  %v15948_v52 = vcombine.high %v7130_v7, %v7134_v28  ;;  %v15947_v40 = vcombine.low %v7130_v7, %v7134_v28 }
 0x5ca   : > { %12278 = vmatpush2.bf16.msra.mxu0 %v15899_v3  ;;  %v21579_v27 = vadd.f32 %v11932_v56, %v21451_v20  ;;  %v7062_v34 = vld [vmem:[%s21982_s3 + $0x1238] sm:$0xff]  ;;  %v15955_v20 = vcombine.low %v7138_v32, %v7142_v59 }
 0x5cb   : > { %12279 = vmatprep.subr.bf16.mxu0 %v15892_v21  ;;  %v15876_v53 = vcombine.high %v7058_v30, %v7062_v34  ;;  %v7122_v6 = vld [vmem:[%s21982_s3 + $0x1418] sm:$0xff]  ;;  %v15875_v60 = vcombine.low %v7058_v30, %v7062_v34 }
 0x5cc   : > { %12315 = vmatpush1.bf16.msra.mxu1 %v15963_v50  ;;  %v7126_v37 = vld [vmem:[%s21982_s3 + $0x1438] sm:$0xff] }
 0x5cd   : > { %12316 = vmatprep.subr.bf16.mxu1 %v15956_v4  ;;  %v15940_v3 = vcombine.high %v7122_v6, %v7126_v37  ;;  %v7242_v16 = vld [vmem:[%s21982_s3 + $0x17d8] sm:$0xff]  ;;  %v15939_v32 = vcombine.low %v7122_v6, %v7126_v37 }
 0x5ce   : > { %12280 = vmatpush2.bf16.msra.mxu0 %v15891_v8  ;;  %v7246_v21 = vld [vmem:[%s21982_s3 + $0x17f8] sm:$0xff] }
 0x5cf   : > { %12281 = vmatprep.subr.bf16.mxu0 %v15884_v54  ;;  %v16060_v59 = vcombine.high %v7242_v16, %v7246_v21  ;;  %v7234_v31 = vld [vmem:[%s21982_s3 + $0x1798] sm:$0xff]  ;;  %v16059_v50 = vcombine.low %v7242_v16, %v7246_v21 }
 0x5d0   : > { %12317 = vmatpush1.bf16.msra.mxu1 %v15955_v20  ;;  %v7238_v38 = vld [vmem:[%s21982_s3 + $0x17b8] sm:$0xff] }
 0x5d1   : > { %12318 = vmatprep.subr.bf16.mxu1 %v15948_v52  ;;  %v16052_v56 = vcombine.high %v7234_v31, %v7238_v38  ;;  %v7226_v4 = vld [vmem:[%s21982_s3 + $0x1758] sm:$0xff] }
 0x5d2   : > { %12282 = vmatpush2.bf16.msra.mxu0 %v15883_v17  ;;  %v7230_v54 = vld [vmem:[%s21982_s3 + $0x1778] sm:$0xff] }
 0x5d3   : > { %12283 = vmatprep.subr.bf16.mxu0 %v15876_v53  ;;  %v16044_v28 = vcombine.high %v7226_v4, %v7230_v54  ;;  %v7222_v34 = vld [vmem:[%s21982_s3 + $0x1738] sm:$0xff]  ;;  %v16043_v17 = vcombine.low %v7226_v4, %v7230_v54 }
 0x5d4   : > { %12319 = vmatpush1.bf16.msra.mxu1 %v15947_v40  ;;  %v7210_v37 = vld [vmem:[%s21982_s3 + $0x16d8] sm:$0xff] }
 0x5d5   : > { %12320 = vmatprep.subr.bf16.mxu1 %v15940_v3  ;;  %v7214_v40 = vld [vmem:[%s21982_s3 + $0x16f8] sm:$0xff] }
 0x5d6   : > { %12284 = vmatpush2.bf16.msra.mxu0 %v15875_v60  ;;  %v7190_v54 = vld [vmem:[%s21982_s3 + $0x1638] sm:$0xff] }
 0x5d7   : > { %v16555_v11 = vld [vmem:[#allocation5 + $0x2bc] ss:$16 sps:$4 sm:$0xff]  }
 0x5d8   : > { %12321 = vmatpush1.bf16.msra.mxu1 %v15939_v32  ;;  %v7202_v32 = vld [vmem:[%s21982_s3 + $0x1698] sm:$0xff] }
 0x5d9   : > { %v21611_v61 = vpop.f32.mrf.mxu0  ;;  %12286 = vmatmul.mubr.bf16.vlgmr.msra.gmra.mxu0 %v19450_v10  ;;  %12322 = vmatprep.subr.bf16.mxu1 %v16060_v59  ;;  %v16051_v10 = vcombine.low %v7234_v31, %v7238_v38  ;;  %v7206_v59 = vld [vmem:[%s21982_s3 + $0x16b8] sm:$0xff] }
 0x5da   : > { %12295 = vmatprep.mubr.bf16.mxu0 %v19510_v58  ;;  %v7218_v58 = vld [vmem:[%s21982_s3 + $0x1718] sm:$0xff]  ;;  %v16020_v38 = vcombine.high %v7202_v32, %v7206_v59 }
 0x5db   : > { %v21615_v8 = vpop.f32.mrf.mxu0  ;;  %v16036_v53 = vcombine.high %v7218_v58, %v7222_v34 }
 0x5dc   : > { %12323 = vmatpush2.bf16.msra.mxu1 %v16059_v50  ;;  %v7198_v50 = vld [vmem:[%s21982_s3 + $0x1678] sm:$0xff] }
 0x5dd   : > { %v21623_v7 = vpop.f32.mrf.mxu0  ;;  %12324 = vmatprep.subr.bf16.mxu1 %v16052_v56  ;;  %v16019_v56 = vcombine.low %v7202_v32, %v7206_v59  ;;  %v16491_v32 = vld [vmem:[#allocation5 + $0x27c] ss:$16 sps:$4 sm:$0xff]   ;;  %v16486_v59 = vld [vmem:[#allocation5 + $0x270] ss:$16 sps:$4 sm:$0xff]  }
 0x5df   : > { %v21625_v30 = vpop.f32.mrf.mxu0 }
 0x5e0   : > { %12325 = vmatpush2.bf16.msra.mxu1 %v16051_v10 }
 0x5e1   : > { %v11979_v20 = vpop.f32.mrf.mxu0  ;;  %12296 = vmatmul.mubr.bf16.gmra.mxu0 %v19500_v46  ;;  %12326 = vmatprep.subr.bf16.mxu1 %v16044_v28  ;;  %v16035_v46 = vcombine.low %v7218_v58, %v7222_v34 }
 0x5e2   : > { %v11980_v52 = vadd.f32 %v11979_v20, %v21557_v5  ;;  %v16028_v5 = vcombine.high %v7210_v37, %v7214_v40 }
 0x5e3   : > { %v11981_v6 = vpop.f32.mrf.mxu0 }
 0x5e4   : > { %v11982_v60 = vadd.f32 %v11981_v6, %v21561_v47  ;;  %12327 = vmatpush2.bf16.msra.mxu1 %v16043_v17  ;;  %v16027_v47 = vcombine.low %v7210_v37, %v7214_v40 }
 0x5e5   : > { %v11983_v3 = vpop.f32.mrf.mxu0  ;;  %12328 = vmatprep.subr.bf16.mxu1 %v16036_v53 }
 0x5e6   : > { %v11984_v16 = vadd.f32 %v11983_v3, %v21576_v25  ;;  %v7194_v25 = vld [vmem:[%s21982_s3 + $0x1658] sm:$0xff] }
 0x5e7   : > { %v11985_v21 = vpop.f32.mrf.mxu0  ;;  %v16012_v4 = vcombine.high %v7194_v25, %v7198_v50  ;;  %v16011_v10 = vcombine.low %v7194_v25, %v7198_v50  ;;  %v16495_v25 = vld [vmem:[#allocation5 + $0x258] ss:$16 sps:$4 sm:$0xff]  }
 0x5e8   : > { %v11986_v31 = vadd.f32 %v11985_v21, %v21579_v27  ;;  %12329 = vmatpush2.bf16.msra.mxu1 %v16035_v46  ;;  %v7186_v27 = vld [vmem:[%s21982_s3 + $0x1618] sm:$0xff] }
 0x5e9   : > { %12330 = vmatprep.subr.bf16.mxu1 %v16028_v5  ;;  %v16004_v28 = vcombine.high %v7186_v27, %v7190_v54  ;;  %v16003_v58 = vcombine.low %v7186_v27, %v7190_v54  ;;  %v16501_v50 = vld [vmem:[#allocation5 + $0x238] ss:$16 sps:$4 sm:$0xff]   ;;  %v16504_v27 = vld [vmem:[#allocation5 + $0x210] ss:$16 sps:$4 sm:$0xff]  }
 0x5ea   : > { %v16507_v54 = vld [vmem:[#allocation5 + $0x218] ss:$16 sps:$4 sm:$0xff]  }
 0x5ec   : > { %12331 = vmatpush2.bf16.msra.mxu1 %v16027_v47  ;;  %v16489_v47 = vld [vmem:[#allocation5 + $0x278] ss:$16 sps:$4 sm:$0xff]  }
 0x5ed   : > { %12332 = vmatprep.subr.bf16.mxu1 %v16020_v38  ;;  %v16492_v38 = vld [vmem:[#allocation5 + $0x250] ss:$16 sps:$4 sm:$0xff]  }
 0x5f0   : > { %12333 = vmatpush2.bf16.msra.mxu1 %v16019_v56  ;;  %v16506_v56 = vld [vmem:[#allocation5 + $0x214] ss:$16 sps:$4 sm:$0xff]  }
 0x5f1   : > { %12334 = vmatprep.subr.bf16.mxu1 %v16012_v4  ;;  %v16509_v4 = vld [vmem:[#allocation5 + $0x21c] ss:$16 sps:$4 sm:$0xff]  }
 0x5f4   : > { %12335 = vmatpush2.bf16.msra.mxu1 %v16011_v10  ;;  %v16512_v10 = vld [vmem:[#allocation5 + $0x1f4] ss:$16 sps:$4 sm:$0xff]  }
 0x5f5   : > { %12336 = vmatprep.subr.bf16.mxu1 %v16004_v28  ;;  %v16515_v28 = vld [vmem:[#allocation5 + $0x1fc] ss:$16 sps:$4 sm:$0xff]  }
 0x5f8   : > { %12337 = vmatpush2.bf16.msra.mxu1 %v16003_v58  ;;  %v16510_v58 = vld [vmem:[#allocation5 + $0x1f0] ss:$16 sps:$4 sm:$0xff]  }
 0x5f9   : > { %12829 = vmatprep.subr.bf16.mxu1 %v16491_v32  ;;  %v16519_v32 = vld [vmem:[#allocation5 + $0x1d8] ss:$16 sps:$4 sm:$0xff]  }
 0x5fb   : > { %v21662_v34 = vpop.f32.mrf.mxu1  ;;  %12339 = vmatmul.mubr.bf16.vlgmr.msra.gmra.mxu1 %v19613_v18 }
 0x5fc   : > { %12348 = vmatprep.mubr.bf16.mxu1 %v19673_v33  ;;  %v16488_v33 = vld [vmem:[#allocation5 + $0x274] ss:$16 sps:$4 sm:$0xff]   ;;  %12830 = vmatpush1.bf16.msra.mxu1 %v16489_v47  ;;  %v16527_v47 = vld [vmem:[#allocation5 + $0x1bc] ss:$16 sps:$4 sm:$0xff]  }
 0x5fd   : > { %v21666_v20 = vpop.f32.mrf.mxu1  ;;  %12788 = vmatprep.subr.bf16.mxu0 %v16488_v33  ;;  %v16516_v33 = vld [vmem:[#allocation5 + $0x1d0] ss:$16 sps:$4 sm:$0xff]  }
 0x5fe   : > { %12789 = vmatpush1.bf16.msra.mxu0 %v16486_v59  ;;  %v16524_v59 = vld [vmem:[#allocation5 + $0x1b4] ss:$16 sps:$4 sm:$0xff]  }
 0x5ff   : > { %v21668_v17 = vpop.f32.mrf.mxu1 }
 0x601   : > { %v21670_v53 = vpop.f32.mrf.mxu1 }
 0x603   : > { %v12032_v6 = vpop.f32.mrf.mxu1  ;;  %12349 = vmatmul.mubr.bf16.gmra.mxu1 %v19659_v15  ;;  %v16494_v15 = vld [vmem:[#allocation5 + $0x254] ss:$16 sps:$4 sm:$0xff]  }
 0x604   : > { %v21673_v37 = vadd.f32 %v12032_v6, %v11980_v52  ;;  %v16497_v52 = vld [vmem:[#allocation5 + $0x25c] ss:$16 sps:$4 sm:$0xff]   ;;  %12790 = vmatprep.subr.bf16.mxu0 %v16494_v15  ;;  %v16513_v6 = vld [vmem:[#allocation5 + $0x1f8] ss:$16 sps:$4 sm:$0xff]  }
 0x605   : > { %v12034_v40 = vpop.f32.mrf.mxu1  ;;  %12831 = vmatprep.subr.bf16.mxu1 %v16497_v52  ;;  %12791 = vmatpush1.bf16.msra.mxu0 %v16492_v38  ;;  %v16522_v52 = vld [vmem:[#allocation5 + $0x1b0] ss:$16 sps:$4 sm:$0xff]   ;;  %v16525_v38 = vld [vmem:[#allocation5 + $0x1b8] ss:$16 sps:$4 sm:$0xff]  }
 0x606   : > { %v21675_v3 = vadd.f32 %v12034_v40, %v11982_v60  ;;  %12832 = vmatpush1.bf16.msra.mxu1 %v16495_v25  ;;  %v16500_v60 = vld [vmem:[#allocation5 + $0x234] ss:$16 sps:$4 sm:$0xff]  }
 0x607   : > { %v12036_v46 = vpop.f32.mrf.mxu1  ;;  %12792 = vmatprep.subr.bf16.mxu0 %v16500_v60  ;;  %v16518_v40 = vld [vmem:[#allocation5 + $0x1d4] ss:$16 sps:$4 sm:$0xff]   ;;  %v16533_v60 = vld [vmem:[#allocation5 + $0x19c] ss:$16 sps:$4 sm:$0xff]  }
 0x608   : > { %v21677_v5 = vadd.f32 %v12036_v46, %v11984_v16  ;;  %v16503_v16 = vld [vmem:[#allocation5 + $0x23c] ss:$16 sps:$4 sm:$0xff]   ;;  %v16530_v25 = vld [vmem:[#allocation5 + $0x194] ss:$16 sps:$4 sm:$0xff]  }
 0x609   : > { %v12038_v18 = vpop.f32.mrf.mxu1  ;;  %12833 = vmatprep.subr.bf16.mxu1 %v16503_v16  ;;  %v16521_v46 = vld [vmem:[#allocation5 + $0x1dc] ss:$16 sps:$4 sm:$0xff]  }
 0x60a   : > { %22369 = vst [vmem:[#allocation39_spill] sm:$0xff] %v21677_v5  ;;  %v21679_v21 = vadd.f32 %v12038_v18, %v11986_v31  ;;  %v16498_v31 = vld [vmem:[#allocation5 + $0x230] ss:$16 sps:$4 sm:$0xff]   ;;  %12834 = vmatpush1.bf16.msra.mxu1 %v16501_v50  ;;  %v16531_v50 = vld [vmem:[#allocation5 + $0x198] ss:$16 sps:$4 sm:$0xff]  }
 0x60b   : > { %12793 = vmatpush1.bf16.msra.mxu0 %v16498_v31  ;;  %12835 = vmatprep.subr.bf16.mxu1 %v16509_v4  ;;  %v16528_v31 = vld [vmem:[#allocation5 + $0x190] ss:$16 sps:$4 sm:$0xff]  }
 0x60c   : > { %22370 = vst [vmem:[#allocation17_spill] sm:$0xff] %v21679_v21  ;;  %12794 = vmatprep.subr.bf16.mxu0 %v16506_v56  ;;  %v12514_v4 = vld [vmem:[#allocation5 + $0x310] sm:$0xff] }
 0x60e   : > { %12836 = vmatpush1.bf16.msra.mxu1 %v16507_v54  ;;  %v16110_v54 = vcombine.high %v12514_v4, %v12514_v4 }
 0x60f   : > { %12795 = vmatpush1.bf16.msra.mxu0 %v16504_v27  ;;  %12837 = vmatprep.subr.bf16.mxu1 %v16515_v28  ;;  %v12515_v27 = vld [vmem:[#allocation5 + $0x318] sm:$0xff]  ;;  %v16109_v28 = vcombine.low %v12514_v4, %v12514_v4  ;;  %v16546_v4 = vld [vmem:[#allocation5 + $0x2d4] ss:$16 sps:$4 sm:$0xff]  }
 0x610   : > { %12796 = vmatprep.subr.bf16.mxu0 %v16512_v10  ;;  %v16112_v10 = vcombine.high %v12515_v27, %v12515_v27 }
 0x612   : > { %12838 = vmatpush1.bf16.msra.mxu1 %v16513_v6 }
 0x613   : > { %12797 = vmatpush1.bf16.msra.mxu0 %v16510_v58  ;;  %12839 = vmatprep.subr.bf16.mxu1 %v16521_v46  ;;  %v16111_v58 = vcombine.low %v12515_v27, %v12515_v27  ;;  %v16549_v27 = vld [vmem:[#allocation5 + $0x2dc] ss:$16 sps:$4 sm:$0xff]  }
 0x614   : > { %12798 = vmatprep.subr.bf16.mxu0 %v16518_v40  ;;  %v12777_v40 = vsel %vm12775_vm2, %v16109_v28, 0  ;;  %v16547_v28 = vld [vmem:[#allocation5 + $0x2d8] ss:$16 sps:$4 sm:$0xff]  }
 0x615   : > { %v12783_v46 = vsel %vm12775_vm2, %v16111_v58, 0 }
 0x616   : > { %12840 = vmatpush1.bf16.msra.mxu1 %v16519_v32 }
 0x617   : > { %12799 = vmatpush1.bf16.msra.mxu0 %v16516_v33  ;;  %12841 = vmatprep.subr.bf16.mxu1 %v16527_v47  ;;  %v16543_v47 = vld [vmem:[#allocation5 + $0x2fc] ss:$16 sps:$4 sm:$0xff]  }
 0x618   : > { %12800 = vmatprep.subr.bf16.mxu0 %v16524_v59  ;;  %v16540_v59 = vld [vmem:[#allocation5 + $0x2f4] ss:$16 sps:$4 sm:$0xff]  }
 0x619   : > { %v21681_v18 = vpop.f32.mrf.mxu0 }
 0x61a   : > { %12842 = vmatpush1.bf16.msra.mxu1 %v16525_v38  ;;  %v16538_v38 = vld [vmem:[#allocation5 + $0x2f0] ss:$16 sps:$4 sm:$0xff]  }
 0x61b   : > { %v21683_v15 = vpop.f32.mrf.mxu0  ;;  %12801 = vmatpush1.bf16.msra.mxu0 %v16522_v52  ;;  %12843 = vmatprep.subr.bf16.mxu1 %v16533_v60 }
 0x61c   : > { %12802 = vmatprep.subr.bf16.mxu0 %v16530_v25  ;;  %v16541_v25 = vld [vmem:[#allocation5 + $0x2f8] ss:$16 sps:$4 sm:$0xff]  }
 0x61d   : > { %v21685_v16 = vpop.f32.mrf.mxu0 }
 0x61e   : > { %12844 = vmatpush1.bf16.msra.mxu1 %v16531_v50 }
 0x61f   : > { %v21687_v56 = vpop.f32.mrf.mxu0  ;;  %12803 = vmatpush1.bf16.msra.mxu0 %v16528_v31  ;;  %16115 = vmatprep.subr.msk.bf16.mxu1 %vm12775_vm2, %v16112_v10  ;;  %v16544_v10 = vld [vmem:[#allocation5 + $0x2d0] ss:$16 sps:$4 sm:$0xff]  }
 0x620   : > { %16113 = vmatprep.subr.msk.bf16.mxu0 %vm12775_vm2, %v16110_v54 }
 0x621   : > { %v12085_v33 = vpop.f32.mrf.mxu0 }
 0x622   : > { %12852 = vmatpush2.bf16.msra.mxu1 %v12783_v46 }
 0x623   : > { %12811 = vmatpush2.bf16.msra.mxu0 %v12777_v40  ;;  %12853 = vmatprep.subr.bf16.mxu1 %v16543_v47  ;;  %v12087_v60 = vpop.f32.mrf.mxu0  ;;  %v16552_v47 = vld [vmem:[#allocation5 + $0x2b4] ss:$16 sps:$4 sm:$0xff]  }
 0x624   : > { %12812 = vmatprep.subr.bf16.mxu0 %v16540_v59 }
 0x625   : > { %v12089_v58 = vpop.f32.mrf.mxu0 }
 0x626   : > { %12854 = vmatpush2.bf16.msra.mxu1 %v16541_v25 }
 0x627   : > { %12813 = vmatpush2.bf16.msra.mxu0 %v16538_v38  ;;  %12855 = vmatprep.subr.bf16.mxu1 %v16549_v27  ;;  %v16553_v38 = vld [vmem:[#allocation5 + $0x2b8] ss:$16 sps:$4 sm:$0xff]   ;;  %v12091_v25 = vpop.f32.mrf.mxu0  ;;  %v16556_v27 = vld [vmem:[#allocation5 + $0x290] ss:$16 sps:$4 sm:$0xff]  }
 0x628   : > { %12814 = vmatprep.subr.bf16.mxu0 %v16546_v4  ;;  %v16561_v4 = vld [vmem:[#allocation5 + $0x29c] ss:$16 sps:$4 sm:$0xff]  }
 0x62a   : > { %12856 = vmatpush2.bf16.msra.mxu1 %v16547_v28  ;;  %v16567_v28 = vld [vmem:[#allocation5 + $0xec] ss:$16 sps:$4 sm:$0xff]  }
 0x62b   : > { %12815 = vmatpush2.bf16.msra.mxu0 %v16544_v10  ;;  %12857 = vmatprep.subr.bf16.mxu1 %v16555_v11  ;;  %v16564_v10 = vld [vmem:[#allocation5 + $0xe4] ss:$16 sps:$4 sm:$0xff]  }
 0x62c   : > { %12816 = vmatprep.subr.bf16.mxu0 %v16552_v47 }
 0x62e   : > { %12858 = vmatpush2.bf16.msra.mxu1 %v16553_v38 }
 0x62f   : > { %12817 = vmatpush2.bf16.msra.mxu0 %v16550_v14  ;;  %12859 = vmatprep.subr.bf16.mxu1 %v16561_v4 }
 0x63b   : > { %v21689_v6 = vpop.f32.mrf.mxu1 }
 0x63d   : > { %v21695_v32 = vpop.f32.mrf.mxu1 }
 0x63f   : > { %v21697_v52 = vpop.f32.mrf.mxu1 }
 0x641   : > { %v21699_v31 = vpop.f32.mrf.mxu1 }
 0x643   : > { %v12138_v50 = vpop.f32.mrf.mxu1 }
 0x644   : > { %v12139_v54 = vadd.f32 %v12138_v50, %v12085_v33  ;;  %v16558_v50 = vld [vmem:[#allocation5 + $0x294] ss:$16 sps:$4 sm:$0xff]  }
 0x645   : > { %v12140_v40 = vpop.f32.mrf.mxu1  ;;  %12818 = vmatprep.subr.bf16.mxu0 %v16558_v50 }
 0x646   : > { %v12141_v46 = vadd.f32 %v12140_v40, %v12087_v60  ;;  %v16559_v60 = vld [vmem:[#allocation5 + $0x298] ss:$16 sps:$4 sm:$0xff]   ;;  %12819 = vmatpush2.bf16.msra.mxu0 %v16556_v27 }
 0x647   : > { %v12142_v59 = vpop.f32.mrf.mxu1  ;;  %12860 = vmatpush2.bf16.msra.mxu1 %v16559_v60  ;;  %13135 = vmatprep.subr.bf16.mxu0 %v16564_v10 }
 0x648   : > { %v12143_v19 = vadd.f32 %v12142_v59, %v12089_v58  ;;  %13176 = vmatprep.subr.bf16.mxu1 %v16567_v28 }
 0x649   : > { %v12144_v43 = vpop.f32.mrf.mxu1 }
 0x64a   : > { %v21701_v33 = vadd.f32 %v12144_v43, %v12091_v25 }
 0x659   : > { %v12181_v58 = vpop.f32.mrf.mxu0 }
 0x65b   : > { %v12183_v40 = vpop.f32.mrf.mxu0 }
 0x65d   : > { %v12185_v59 = vpop.f32.mrf.mxu0 }
 0x65f   : > { %v12187_v11 = vpop.f32.mrf.mxu0 }
 0x661   : > { %v12191_v43 = vpop.f32.mrf.mxu0 }
 0x662   : > { %v12192_v47 = vadd.f32 %v12191_v43, %v12139_v54  ;;  %v12129_v54 = vadd.f32 %v21689_v6, %v21681_v18  ;;  %v12135_v18 = vadd.f32 %v21699_v31, %v21687_v56 }
 0x663   : > { %v12193_v14 = vpop.f32.mrf.mxu0 }
 0x664   : > { %v12194_v38 = vadd.f32 %v12193_v14, %v12141_v46  ;;  %v12182_v46 = vadd.f32 %v12181_v58, %v12129_v54  ;;  %v11870_v58 = vadd.f32 %v21407_v44, %v21301_v26 }
 0x665   : > { %v12195_v25 = vpop.f32.mrf.mxu0 }
 0x666   : > { %v12196_v51 = vadd.f32 %v12195_v25, %v12143_v19  ;;  %v12131_v19 = vadd.f32 %v21695_v32, %v21683_v15 }
 0x667   : > { %v12197_v62 = vpop.f32.mrf.mxu0 }
 0x668   : > { %v12184_v14 = vadd.f32 %v12183_v40, %v12131_v19 }
 0x67b   : > { %v12234_v21 = vpop.f32.mrf.mxu1 }
 0x67d   : > { %v12236_v13 = vpop.f32.mrf.mxu1 }
 0x67f   : > { %v12238_v50 = vpop.f32.mrf.mxu1 }
 0x681   : > { %v12240_v4 = vpop.f32.mrf.mxu1 }
 0x683   : > { %v12244_v27 = vpop.f32.mrf.mxu1 }
 0x684   : > { %v12245_v60 = vadd.f32 %v12244_v27, %v12192_v47  ;;  %v12133_v47 = vadd.f32 %v21697_v52, %v21685_v16  ;;  %v12237_v27 = vadd.f32 %v12236_v13, %v12184_v14  ;;  %v11923_v13 = vadd.f32 %v21541_v48, %v11870_v58 }
 0x685   : > { %v12246_v24 = vpop.f32.mrf.mxu1  ;;  %v22371_v48 = vmax.f32 %v20325_v57, %v21043_v63  ;;  %v22373_v57 = vmax.f32 %v20344_v49, %v21066_v0 }
 0x686   : > { %v12247_v5 = vadd.f32 %v12246_v24, %v12194_v38  ;;  %v12235_v24 = vadd.f32 %v12234_v21, %v12182_v46  ;;  %v11970_v38 = vadd.f32 %v21611_v61, %v21521_v42  ;;  %v12186_v6 = vadd.f32 %v12185_v59, %v12133_v47 }
 0x687   : > { %v12248_v10 = vpop.f32.mrf.mxu1  ;;  %v11972_v21 = vadd.f32 %v21615_v8, %v21525_v23  ;;  %v12188_v42 = vadd.f32 %v12187_v11, %v12135_v18  ;;  %v11976_v59 = vadd.f32 %v21625_v30, %v11923_v13  ;;  %v22372_v30 = vmax.f32 %v20335_v29, %v21049_v36 }
 0x688   : > { %v21703_v28 = vadd.f32 %v12248_v10, %v12196_v51  ;;  %v11868_v51 = vadd.f32 %v21405_v2, %v21299_v39  ;;  %v12023_v39 = vadd.f32 %v21662_v34, %v11970_v38  ;;  %v12239_v61 = vadd.f32 %v12238_v50, %v12186_v6 }
 0x689   : > { %v12250_v25 = vpop.f32.mrf.mxu1  ;;  %v12025_v44 = vadd.f32 %v21666_v20, %v11972_v21  ;;  %v12241_v56 = vadd.f32 %v12240_v4, %v12188_v42  ;;  %v12029_v19 = vadd.f32 %v21670_v53, %v11976_v59  ;;  %v12198_v6 = vadd.f32 %v12197_v62, %v21701_v33 }
 0x68a   : > { %v11921_v16 = vadd.f32 %v21533_v55, %v11868_v51 }
 0x68c   : > { %v11974_v26 = vadd.f32 %v21623_v7, %v11921_v16 }
 0x699   : > { %v12287_v45 = vpop.f32.mrf.mxu0 }
 0x69a   : > { %v12288_v15 = vadd.f32 %v12287_v45, %v12235_v24  ;;  %v12383_v45 = vld [vmem:[%s21983_s4] sm:$0x3] }
 0x69b   : > { %v12289_v9 = vpop.f32.mrf.mxu0  ;;  %v12388_v11 = vrot.slane %v12383_v45, %v22309_v22  ;;  %v12392_v4 = vrot.slane %v12383_v45, %v18336_v35 }
 0x69c   : > { %v12290_v52 = vadd.f32 %v12289_v9, %v12237_v27  ;;  %v12027_v9 = vadd.f32 %v21668_v17, %v11974_v26  ;;  %v22379_v26 = vld [vmem:[#allocation124_spill] sm:$0xff] }
 0x69d   : > { %v12291_v41 = vpop.f32.mrf.mxu0 }
 0x69e   : > { %v12292_v23 = vadd.f32 %v12291_v41, %v12239_v61 }
 0x69f   : > { %v12293_v43 = vpop.f32.mrf.mxu0 }
 0x6a0   : > { %v12294_v10 = vadd.f32 %v12293_v43, %v12241_v56 }
 0x6a1   : > { %v12297_v32 = vpop.f32.mrf.mxu0 }
 0x6a2   : > { %v12298_v24 = vadd.f32 %v12297_v32, %v12245_v60  ;;  %v22374_v60 = vmax.f32 %v20353_v1, %v21071_v12 }
 0x6a3   : > { %v12299_v8 = vpop.f32.mrf.mxu0 }
 0x6a4   : > { %v12300_v38 = vadd.f32 %v12299_v8, %v12247_v5  ;;  %v12251_v5 = vadd.f32 %v12250_v25, %v12198_v6  ;;  %v22378_v25 = vld [vmem:[#allocation24_spill] sm:$0xff] }
 0x6a5   : > { %v12301_v46 = vpop.f32.mrf.mxu0 }
 0x6a6   : > { %v12302_v58 = vadd.f32 %v12301_v46, %v21703_v28  ;;  %v22375_v28 = vld [vmem:[#allocation35_spill] sm:$0xff] }
 0x6a7   : > { %v12303_v29 = vpop.f32.mrf.mxu0  ;;  %v22386_v46 = vld [vmem:[#allocation27_spill] sm:$0xff] }
 0x6a8   : > { %v12304_v42 = vadd.f32 %v12303_v29, %v12251_v5  ;;  %v16582_v29 = vld [vmem:[#allocation5 + $0x84] ss:$16 sps:$4 sm:$0xff]   ;;  %v16591_v5 = vld [vmem:[#allocation5 + $0x6c] ss:$16 sps:$4 sm:$0xff]  }
 0x6bb   : > { %v12340_v2 = vpop.f32.mrf.mxu1 }
 0x6bc   : > { %v12341_v40 = vadd.f32 %v12340_v2, %v12288_v15 }
 0x6bd   : > { %v12342_v55 = vpop.f32.mrf.mxu1 }
 0x6be   : > { %v12367_v34 = vmax.f32 %v12023_v39, %v12341_v40  ;;  %v12343_v31 = vadd.f32 %v12342_v55, %v12290_v52  ;;  %v22376_v52 = vld [vmem:[#allocation37_spill] sm:$0xff]  ;;  %v22381_v55 = vld [vmem:[#allocation39_spill] sm:$0xff] }
 0x6bf   : > { %v12344_v50 = vpop.f32.mrf.mxu1  ;;  %v22377_v40 = vmax.f32 %v22375_v28, %v22376_v52  ;;  %v16601_v28 = vld [vmem:[#allocation5 + $0x28] ss:$16 sps:$4 sm:$0xff]   ;;  %v16606_v52 = vld [vmem:[#allocation5 + $0x4] ss:$16 sps:$4 sm:$0xff]  }
 0x6c0   : > { %v12375_v7 = vmax.f32 %v22371_v48, %v12367_v34  ;;  %v12368_v54 = vmax.f32 %v12025_v44, %v12343_v31  ;;  %v12345_v20 = vadd.f32 %v12344_v50, %v12292_v23  ;;  %v22380_v44 = vmax.f32 %v22378_v25, %v22379_v26  ;;  %v22382_v34 = vld [vmem:[#allocation34_spill] sm:$0xff]  ;;  %v22383_v31 = vld [vmem:[#allocation121_spill] sm:$0xff] }
 0x6c1   : > { %v12346_v41 = vpop.f32.mrf.mxu1  ;;  %v22384_v59 = vmax.f32 %v22382_v34, %v22383_v31  ;;  %v22385_v50 = vld [vmem:[#allocation17_spill] sm:$0xff]  ;;  %v16614_v34 = vld [vmem:[#allocation5 + $0x160] ss:$16 sps:$4 sm:$0xff]  }
 0x6c2   : > { %v12376_v17 = vmax.f32 %v22372_v30, %v12368_v54  ;;  %v12369_v47 = vmax.f32 %v12027_v9, %v12345_v20  ;;  %v12347_v14 = vadd.f32 %v12346_v41, %v12294_v10  ;;  %v12395_v43 = vadd.f32 %v12388_v11, %v12375_v7  ;;  %v16562_v54 = vld [vmem:[#allocation5 + $0xe0] ss:$16 sps:$4 sm:$0xff]   ;;  %v16565_v20 = vld [vmem:[#allocation5 + $0xe8] ss:$16 sps:$4 sm:$0xff]  }
 0x6c3   : > { %v12350_v51 = vpop.f32.mrf.mxu1  ;;  %v22387_v30 = vld [vmem:[#allocation29_spill] sm:$0xff] }
 0x6c4   : > { %v12377_v63 = vmax.f32 %v22373_v57, %v12369_v47  ;;  %v12370_v18 = vmax.f32 %v12029_v19, %v12347_v14  ;;  %v12396_v27 = vadd.f32 %v12392_v4, %v12376_v17  ;;  %v12351_v53 = vadd.f32 %v12350_v51, %v12298_v24  ;;  %v16573_v51 = vld [vmem:[#allocation5 + $0xcc] ss:$16 sps:$4 sm:$0xff]   ;;  %v16568_v57 = vld [vmem:[#allocation5 + $0xc0] ss:$16 sps:$4 sm:$0xff]   ;;  %v16607_v25 = vld [vmem:[#allocation5 + $0x8] ss:$16 sps:$4 sm:$0xff]  }
 0x6c5   : > { %v12352_v15 = vpop.f32.mrf.mxu1  ;;  %v12403_v21 = vmax.f32 %v12395_v43, 0.0  ;;  %v22388_v17 = vmax.f32 %v22386_v46, %v22387_v30  ;;  %v16570_v43 = vld [vmem:[#allocation5 + $0xc4] ss:$16 sps:$4 sm:$0xff]   ;;  %v16617_v31 = vld [vmem:[#allocation5 + $0x168] ss:$16 sps:$4 sm:$0xff]  }
 0x6c6   : > { %v12397_v36 = vadd.f32 %v12388_v11, %v12377_v63  ;;  %v12378_v32 = vmax.f32 %v22374_v60, %v12370_v18  ;;  %v12353_v16 = vadd.f32 %v12352_v15, %v12300_v38  ;;  %v12371_v49 = vmax.f32 %v21673_v37, %v12351_v53  ;;  %v16571_v63 = vld [vmem:[#allocation5 + $0xc8] ss:$16 sps:$4 sm:$0xff]   ;;  %v16579_v53 = vld [vmem:[#allocation5 + $0xac] ss:$16 sps:$4 sm:$0xff]   ;;  %v16580_v60 = vld [vmem:[#allocation5 + $0x80] ss:$16 sps:$4 sm:$0xff]  }
 0x6c7   : > { %v12354_v0 = vpop.f32.mrf.mxu1  ;;  %v12404_v61 = vmax.f32 %v12396_v27, 0.0  ;;  %v16576_v27 = vld [vmem:[#allocation5 + $0xa4] ss:$16 sps:$4 sm:$0xff]   ;;  %v16632_v46 = vld [vmem:[#allocation5 + $0x100] ss:$16 sps:$4 sm:$0xff]  }
 0x6c8   : > { %v12405_v39 = vmax.f32 %v12397_v36, 0.0  ;;  %v12398_v2 = vadd.f32 %v12392_v4, %v12378_v32  ;;  %v12372_v62 = vmax.f32 %v21675_v3, %v12353_v16  ;;  %v12355_v33 = vadd.f32 %v12354_v0, %v12302_v58  ;;  %v16577_v58 = vld [vmem:[#allocation5 + $0xa8] ss:$16 sps:$4 sm:$0xff]   ;;  %v16585_v36 = vld [vmem:[#allocation5 + $0x8c] ss:$16 sps:$4 sm:$0xff]  }
 0x6c9   : > { %v12379_v45 = vmax.f32 %v22377_v40, %v12371_v49  ;;  %v12356_v13 = vpop.f32.mrf.mxu1  ;;  %v16583_v32 = vld [vmem:[#allocation5 + $0x88] ss:$16 sps:$4 sm:$0xff]   ;;  %v16588_v16 = vld [vmem:[#allocation5 + $0x64] ss:$16 sps:$4 sm:$0xff]   ;;  %v16609_v40 = vld [vmem:[#allocation5 + $0xc] ss:$16 sps:$4 sm:$0xff]  }
 0x6ca   : > { %v21753_v1 = vpack.c.bf16 %v12405_v39, %v12403_v21  ;;  %v12406_v12 = vmax.f32 %v12398_v2, 0.0  ;;  %v12380_v37 = vmax.f32 %v22380_v44, %v12372_v62  ;;  %v12373_v56 = vmax.f32 %v22381_v55, %v12355_v33  ;;  %v16586_v21 = vld [vmem:[#allocation5 + $0x60] ss:$16 sps:$4 sm:$0xff]   ;;  %v16589_v49 = vld [vmem:[#allocation5 + $0x68] ss:$16 sps:$4 sm:$0xff]  }
 0x6cb   : > { %v12399_v23 = vadd.f32 %v12388_v11, %v12379_v45  ;;  %v12357_v8 = vadd.f32 %v12356_v13, %v12304_v42  ;;  %v16594_v0 = vld [vmem:[#allocation5 + $0x44] ss:$16 sps:$4 sm:$0xff]   ;;  %v16597_v39 = vld [vmem:[#allocation5 + $0x4c] ss:$16 sps:$4 sm:$0xff]   ;;  %v16592_v2 = vld [vmem:[#allocation5 + $0x40] ss:$16 sps:$4 sm:$0xff]  }
 0x6cc   : > { %v12412_v3 = vpack.c.bf16 %v12406_v12, %v12404_v61  ;;  %v12381_v9 = vmax.f32 %v22384_v59, %v12373_v56  ;;  %v12518_v41 = vrot.slane %v21753_v1, 4  ;;  %v12400_v19 = vadd.f32 %v12392_v4, %v12380_v37  ;;  %v16595_v62 = vld [vmem:[#allocation5 + $0x48] ss:$16 sps:$4 sm:$0xff]   ;;  %v16600_v33 = vld [vmem:[#allocation5 + $0x24] ss:$16 sps:$4 sm:$0xff]  }
 0x6cd   : > { %v12374_v10 = vmax.f32 %v22385_v50, %v12357_v8  ;;  %v12407_v14 = vmax.f32 %v12399_v23, 0.0  ;;  %v16603_v42 = vld [vmem:[#allocation5 + $0x2c] ss:$16 sps:$4 sm:$0xff]   ;;  %v16598_v61 = vld [vmem:[#allocation5 + $0x20] ss:$16 sps:$4 sm:$0xff]  }
 0x6ce   : > { %v12401_v48 = vadd.f32 %v12388_v11, %v12381_v9  ;;  %v12519_v7 = vrot.slane %v12412_v3, 4  ;;  %v12408_v18 = vmax.f32 %v12400_v19, 0.0  ;;  %v12463_v45 = vld [vmem:[#allocation5 + $0x180] sm:$0xff]  ;;  %v12464_v13 = vld [vmem:[#allocation5 + $0x188] sm:$0xff] }
 0x6cf   : > { %v12382_v47 = vmax.f32 %v22388_v17, %v12374_v10  ;;  %v16604_v12 = vld [vmem:[#allocation5] ss:$16 sps:$4 sm:$0xff]   ;;  %v16166_v26 = vcombine.high %v12463_v45, %v12463_v45  ;;  %v16168_v44 = vcombine.high %v12464_v13, %v12464_v13  ;;  %v16165_v37 = vcombine.low %v12463_v45, %v12463_v45  ;;  %v16616_v8 = vld [vmem:[#allocation5 + $0x164] ss:$16 sps:$4 sm:$0xff]   ;;  %v16625_v9 = vld [vmem:[#allocation5 + $0x14c] ss:$16 sps:$4 sm:$0xff]  }
 0x6d0   : > { %v12409_v24 = vmax.f32 %v12401_v48, 0.0  ;;  %16114 = vmatprep.mubr.msk.bf16.mxu0 %vm12771_vm3, %v12519_v7  ;;  %16116 = vmatprep.mubr.msk.bf16.mxu1 %vm12771_vm3, %v12519_v7  ;;  %v16167_v55 = vcombine.low %v12464_v13, %v12464_v13  ;;  %v16622_v59 = vld [vmem:[#allocation5 + $0x144] ss:$16 sps:$4 sm:$0xff]   ;;  %v16620_v50 = vld [vmem:[#allocation5 + $0x140] ss:$16 sps:$4 sm:$0xff]  }
 0x6d1   : > { %v12402_v38 = vadd.f32 %v12392_v4, %v12382_v47  ;;  %12821 = vmatmul.mubr.bf16.vlgmr.msra.gmra.mxu0 %v12518_v41  ;;  %12862 = vmatmul.mubr.bf16.vlgmr.msra.gmra.mxu1 %v12518_v41  ;;  %v16574_v4 = vld [vmem:[#allocation5 + $0xa0] ss:$16 sps:$4 sm:$0xff]   ;;  %v13124_v56 = vsel %vm12775_vm2, %v16165_v37, 0  ;;  %v16623_v10 = vld [vmem:[#allocation5 + $0x148] ss:$16 sps:$4 sm:$0xff]  }
 0x6d2   : > { %v21769_v11 = vpack.c.bf16 %v12409_v24, %v12407_v14  ;;  %13136 = vmatpush1.bf16.msra.mxu0 %v16562_v54  ;;  %13177 = vmatpush1.bf16.msra.mxu1 %v16565_v20  ;;  %v13130_v23 = vsel %vm12775_vm2, %v16167_v55, 0  ;;  %v16628_v48 = vld [vmem:[#allocation5 + $0x124] ss:$16 sps:$4 sm:$0xff]   ;;  %v16631_v7 = vld [vmem:[#allocation5 + $0x12c] ss:$16 sps:$4 sm:$0xff]  }
 0x6d3   : > { %v12410_v6 = vmax.f32 %v12402_v38, 0.0  ;;  %16170 = vmatprep.mubr.msk.bf16.mxu0 %vm12771_vm3, %v12412_v3  ;;  %16172 = vmatprep.mubr.msk.bf16.mxu1 %vm12771_vm3, %v12412_v3  ;;  %v16619_v3 = vld [vmem:[#allocation5 + $0x16c] ss:$16 sps:$4 sm:$0xff]   ;;  %v16626_v54 = vld [vmem:[#allocation5 + $0x120] ss:$16 sps:$4 sm:$0xff]  }
 0x6d4   : > { %13137 = vmatprep.subr.bf16.mxu0 %v16570_v43  ;;  %13178 = vmatprep.subr.bf16.mxu1 %v16573_v51  ;;  %v16629_v20 = vld [vmem:[#allocation5 + $0x128] ss:$16 sps:$4 sm:$0xff]   ;;  %v16634_v41 = vld [vmem:[#allocation5 + $0x104] ss:$16 sps:$4 sm:$0xff]   ;;  %v16637_v19 = vld [vmem:[#allocation5 + $0x10c] ss:$16 sps:$4 sm:$0xff]  }
 0x6d5   : > { %v21773_v15 = vpack.c.bf16 %v12410_v6, %v12408_v18  ;;  %v16635_v30 = vld [vmem:[#allocation5 + $0x108] ss:$16 sps:$4 sm:$0xff]   ;;  %v16640_v17 = vld [vmem:[#allocation5 + $0x404] ss:$16 sps:$4 sm:$0xff]   ;;  %v16643_v47 = vld [vmem:[#allocation5 + $0x40c] ss:$16 sps:$4 sm:$0xff]  }
 0x6d6   : > { %13138 = vmatpush1.bf16.msra.mxu0 %v16568_v57  ;;  %13179 = vmatpush1.bf16.msra.mxu1 %v16571_v63  ;;  %v16638_v14 = vld [vmem:[#allocation5 + $0x400] ss:$16 sps:$4 sm:$0xff]   ;;  %v16641_v24 = vld [vmem:[#allocation5 + $0x408] ss:$16 sps:$4 sm:$0xff]   ;;  %v16646_v43 = vld [vmem:[#allocation5 + $0x3e4] ss:$16 sps:$4 sm:$0xff]  }
 0x6d7   : > { %13139 = vmatprep.subr.bf16.mxu0 %v16576_v27  ;;  %13180 = vmatprep.subr.bf16.mxu1 %v16579_v53  ;;  %v16649_v51 = vld [vmem:[#allocation5 + $0x3ec] ss:$16 sps:$4 sm:$0xff]   ;;  %v16644_v38 = vld [vmem:[#allocation5 + $0x3e0] ss:$16 sps:$4 sm:$0xff]   ;;  %v16647_v57 = vld [vmem:[#allocation5 + $0x3e8] ss:$16 sps:$4 sm:$0xff]  }
 0x6d8   : > { %v16652_v63 = vld [vmem:[#allocation5 + $0x3c4] ss:$16 sps:$4 sm:$0xff]   ;;  %v16655_v18 = vld [vmem:[#allocation5 + $0x3cc] ss:$16 sps:$4 sm:$0xff]   ;;  %v16650_v6 = vld [vmem:[#allocation5 + $0x3c0] ss:$16 sps:$4 sm:$0xff]  }
 0x6d9   : > { %v16653_v27 = vld [vmem:[#allocation5 + $0x3c8] ss:$16 sps:$4 sm:$0xff]   ;;  %v16661_v53 = vld [vmem:[#allocation5 + $0x3ac] ss:$16 sps:$4 sm:$0xff]  }
 0x6da   : > { %13140 = vmatpush1.bf16.msra.mxu0 %v16574_v4  ;;  %13181 = vmatpush1.bf16.msra.mxu1 %v16577_v58  ;;  %v16656_v4 = vld [vmem:[#allocation5 + $0x3a0] ss:$16 sps:$4 sm:$0xff]   ;;  %v16659_v58 = vld [vmem:[#allocation5 + $0x3a8] ss:$16 sps:$4 sm:$0xff]   ;;  %v16695_v55 = vld [vmem:[#allocation5 + $0x48c] ss:$16 sps:$4 sm:$0xff]  }
 0x6db   : > { %13141 = vmatprep.subr.bf16.mxu0 %v16582_v29  ;;  %13182 = vmatprep.subr.bf16.mxu1 %v16585_v36  ;;  %v16664_v29 = vld [vmem:[#allocation5 + $0x384] ss:$16 sps:$4 sm:$0xff]   ;;  %v16667_v36 = vld [vmem:[#allocation5 + $0x38c] ss:$16 sps:$4 sm:$0xff]  }
 0x6de   : > { %13142 = vmatpush1.bf16.msra.mxu0 %v16580_v60  ;;  %13183 = vmatpush1.bf16.msra.mxu1 %v16583_v32  ;;  %v16662_v60 = vld [vmem:[#allocation5 + $0x380] ss:$16 sps:$4 sm:$0xff]   ;;  %v16665_v32 = vld [vmem:[#allocation5 + $0x388] ss:$16 sps:$4 sm:$0xff]  }
 0x6df   : > { %13143 = vmatprep.subr.bf16.mxu0 %v16588_v16  ;;  %13184 = vmatprep.subr.bf16.mxu1 %v16591_v5  ;;  %v16670_v16 = vld [vmem:[#allocation5 + $0x364] ss:$16 sps:$4 sm:$0xff]   ;;  %v16673_v5 = vld [vmem:[#allocation5 + $0x36c] ss:$16 sps:$4 sm:$0xff]  }
 0x6e2   : > { %13144 = vmatpush1.bf16.msra.mxu0 %v16586_v21  ;;  %13185 = vmatpush1.bf16.msra.mxu1 %v16589_v49  ;;  %v16668_v21 = vld [vmem:[#allocation5 + $0x360] ss:$16 sps:$4 sm:$0xff]   ;;  %v16671_v49 = vld [vmem:[#allocation5 + $0x368] ss:$16 sps:$4 sm:$0xff]  }
 0x6e3   : > { %13145 = vmatprep.subr.bf16.mxu0 %v16594_v0  ;;  %13186 = vmatprep.subr.bf16.mxu1 %v16597_v39  ;;  %v16676_v0 = vld [vmem:[#allocation5 + $0x344] ss:$16 sps:$4 sm:$0xff]   ;;  %v16679_v39 = vld [vmem:[#allocation5 + $0x34c] ss:$16 sps:$4 sm:$0xff]  }
 0x6e6   : > { %13146 = vmatpush1.bf16.msra.mxu0 %v16592_v2  ;;  %13187 = vmatpush1.bf16.msra.mxu1 %v16595_v62  ;;  %v16674_v2 = vld [vmem:[#allocation5 + $0x340] ss:$16 sps:$4 sm:$0xff]   ;;  %v16677_v62 = vld [vmem:[#allocation5 + $0x348] ss:$16 sps:$4 sm:$0xff]  }
 0x6e7   : > { %13147 = vmatprep.subr.bf16.mxu0 %v16600_v33  ;;  %13188 = vmatprep.subr.bf16.mxu1 %v16603_v42  ;;  %v16682_v33 = vld [vmem:[#allocation5 + $0x324] ss:$16 sps:$4 sm:$0xff]   ;;  %v16685_v42 = vld [vmem:[#allocation5 + $0x32c] ss:$16 sps:$4 sm:$0xff]  }
 0x6ea   : > { %13148 = vmatpush1.bf16.msra.mxu0 %v16598_v61  ;;  %13189 = vmatpush1.bf16.msra.mxu1 %v16601_v28  ;;  %v13266_v61 = vld [vmem:[#allocation5 + $0x4a0] sm:$0xff]  ;;  %v13267_v28 = vld [vmem:[#allocation5 + $0x4a8] sm:$0xff] }
 0x6eb   : > { %13149 = vmatprep.subr.bf16.mxu0 %v16606_v52  ;;  %13190 = vmatprep.subr.bf16.mxu1 %v16609_v40  ;;  %v16680_v52 = vld [vmem:[#allocation5 + $0x320] ss:$16 sps:$4 sm:$0xff]   ;;  %v16683_v40 = vld [vmem:[#allocation5 + $0x328] ss:$16 sps:$4 sm:$0xff]   ;;  %v16222_v45 = vcombine.high %v13266_v61, %v13266_v61  ;;  %v16221_v13 = vcombine.low %v13266_v61, %v13266_v61 }
 0x6ee   : > { %13150 = vmatpush1.bf16.msra.mxu0 %v16604_v12  ;;  %13191 = vmatpush1.bf16.msra.mxu1 %v16607_v25  ;;  %v16224_v12 = vcombine.high %v13267_v28, %v13267_v28  ;;  %v16223_v25 = vcombine.low %v13267_v28, %v13267_v28 }
 0x6ef   : > { %16169 = vmatprep.subr.msk.bf16.mxu0 %vm12775_vm2, %v16166_v26  ;;  %16171 = vmatprep.subr.msk.bf16.mxu1 %vm12775_vm2, %v16168_v44  ;;  %v13522_v26 = vsel %vm12775_vm2, %v16221_v13, 0  ;;  %v16692_v44 = vld [vmem:[#allocation5 + $0x484] ss:$16 sps:$4 sm:$0xff]  }
 0x6f0   : > { %v13528_v37 = vsel %vm12775_vm2, %v16223_v25, 0  ;;  %v16768_v13 = vld [vmem:[#allocation5 + $0x614] ss:$16 sps:$4 sm:$0xff]   ;;  %v16771_v25 = vld [vmem:[#allocation5 + $0x61c] ss:$16 sps:$4 sm:$0xff]  }
 0x6f2   : > { %13158 = vmatpush2.bf16.msra.mxu0 %v13124_v56  ;;  %13199 = vmatpush2.bf16.msra.mxu1 %v13130_v23  ;;  %v16690_v56 = vld [vmem:[#allocation5 + $0x480] ss:$16 sps:$4 sm:$0xff]   ;;  %v16693_v23 = vld [vmem:[#allocation5 + $0x488] ss:$16 sps:$4 sm:$0xff]  }
 0x6f3   : > { %13159 = vmatprep.subr.bf16.mxu0 %v16616_v8  ;;  %13200 = vmatprep.subr.bf16.mxu1 %v16619_v3  ;;  %v16698_v8 = vld [vmem:[#allocation5 + $0x464] ss:$16 sps:$4 sm:$0xff]   ;;  %v16701_v3 = vld [vmem:[#allocation5 + $0x46c] ss:$16 sps:$4 sm:$0xff]  }
 0x6f6   : > { %13160 = vmatpush2.bf16.msra.mxu0 %v16614_v34  ;;  %13201 = vmatpush2.bf16.msra.mxu1 %v16617_v31  ;;  %v16696_v34 = vld [vmem:[#allocation5 + $0x460] ss:$16 sps:$4 sm:$0xff]   ;;  %v16699_v31 = vld [vmem:[#allocation5 + $0x468] ss:$16 sps:$4 sm:$0xff]  }
 0x6f7   : > { %13161 = vmatprep.subr.bf16.mxu0 %v16622_v59  ;;  %13202 = vmatprep.subr.bf16.mxu1 %v16625_v9  ;;  %v16704_v59 = vld [vmem:[#allocation5 + $0x444] ss:$16 sps:$4 sm:$0xff]   ;;  %v16707_v9 = vld [vmem:[#allocation5 + $0x44c] ss:$16 sps:$4 sm:$0xff]  }
 0x6fa   : > { %13162 = vmatpush2.bf16.msra.mxu0 %v16620_v50  ;;  %13203 = vmatpush2.bf16.msra.mxu1 %v16623_v10  ;;  %v16702_v50 = vld [vmem:[#allocation5 + $0x440] ss:$16 sps:$4 sm:$0xff]   ;;  %v16705_v10 = vld [vmem:[#allocation5 + $0x448] ss:$16 sps:$4 sm:$0xff]  }
 0x6fb   : > { %13163 = vmatprep.subr.bf16.mxu0 %v16628_v48  ;;  %13204 = vmatprep.subr.bf16.mxu1 %v16631_v7  ;;  %v16710_v48 = vld [vmem:[#allocation5 + $0x424] ss:$16 sps:$4 sm:$0xff]   ;;  %v16713_v7 = vld [vmem:[#allocation5 + $0x42c] ss:$16 sps:$4 sm:$0xff]  }
 0x6fe   : > { %13164 = vmatpush2.bf16.msra.mxu0 %v16626_v54  ;;  %13205 = vmatpush2.bf16.msra.mxu1 %v16629_v20  ;;  %v16708_v54 = vld [vmem:[#allocation5 + $0x420] ss:$16 sps:$4 sm:$0xff]   ;;  %v16711_v20 = vld [vmem:[#allocation5 + $0x428] ss:$16 sps:$4 sm:$0xff]  }
 0x6ff   : > { %13165 = vmatprep.subr.bf16.mxu0 %v16634_v41  ;;  %13206 = vmatprep.subr.bf16.mxu1 %v16637_v19  ;;  %v16716_v41 = vld [vmem:[#allocation5 + $0x594] ss:$16 sps:$4 sm:$0xff]   ;;  %v16719_v19 = vld [vmem:[#allocation5 + $0x59c] ss:$16 sps:$4 sm:$0xff]  }
 0x702   : > { %13166 = vmatpush2.bf16.msra.mxu0 %v16632_v46  ;;  %13207 = vmatpush2.bf16.msra.mxu1 %v16635_v30  ;;  %v16714_v46 = vld [vmem:[#allocation5 + $0x590] ss:$16 sps:$4 sm:$0xff]   ;;  %v16717_v30 = vld [vmem:[#allocation5 + $0x598] ss:$16 sps:$4 sm:$0xff]  }
 0x703   : > { %13533 = vmatprep.subr.bf16.mxu0 %v16640_v17  ;;  %13574 = vmatprep.subr.bf16.mxu1 %v16643_v47  ;;  %v16722_v17 = vld [vmem:[#allocation5 + $0x574] ss:$16 sps:$4 sm:$0xff]   ;;  %v13673_v47 = vrot.slane %v21773_v15, 4 }
 0x705   : > { %13168 = vmatmul.mubr.bf16.vlgmr.msra.gmra.mxu0 %v21753_v1  ;;  %13209 = vmatmul.mubr.bf16.vlgmr.msra.gmra.mxu1 %v21753_v1  ;;  %v16658_v1 = vld [vmem:[#allocation5 + $0x3a4] ss:$16 sps:$4 sm:$0xff]  }
 0x706   : > { %13534 = vmatpush1.bf16.msra.mxu0 %v16638_v14  ;;  %16226 = vmatprep.mubr.msk.bf16.mxu0 %vm12771_vm3, %v21773_v15  ;;  %v16725_v14 = vld [vmem:[#allocation5 + $0x57c] ss:$16 sps:$4 sm:$0xff]  }
 0x707   : > { %13575 = vmatpush1.bf16.msra.mxu1 %v16641_v24  ;;  %16228 = vmatprep.mubr.msk.bf16.mxu1 %vm12771_vm3, %v21773_v15  ;;  %v16720_v24 = vld [vmem:[#allocation5 + $0x570] ss:$16 sps:$4 sm:$0xff]   ;;  %v16729_v15 = vld [vmem:[#allocation5 + $0x558] ss:$16 sps:$4 sm:$0xff]  }
 0x708   : > { %13535 = vmatprep.subr.bf16.mxu0 %v16646_v43  ;;  %13576 = vmatprep.subr.bf16.mxu1 %v16649_v51  ;;  %v16723_v43 = vld [vmem:[#allocation5 + $0x578] ss:$16 sps:$4 sm:$0xff]   ;;  %v16728_v51 = vld [vmem:[#allocation5 + $0x554] ss:$16 sps:$4 sm:$0xff]  }
 0x70a   : > { %13536 = vmatpush1.bf16.msra.mxu0 %v16644_v38  ;;  %v16731_v38 = vld [vmem:[#allocation5 + $0x55c] ss:$16 sps:$4 sm:$0xff]  }
 0x70b   : > { %13577 = vmatpush1.bf16.msra.mxu1 %v16647_v57  ;;  %13537 = vmatprep.subr.bf16.mxu0 %v16652_v63  ;;  %v16726_v57 = vld [vmem:[#allocation5 + $0x550] ss:$16 sps:$4 sm:$0xff]   ;;  %v16734_v63 = vld [vmem:[#allocation5 + $0x534] ss:$16 sps:$4 sm:$0xff]  }
 0x70c   : > { %13578 = vmatprep.subr.bf16.mxu1 %v16655_v18  ;;  %v16737_v18 = vld [vmem:[#allocation5 + $0x53c] ss:$16 sps:$4 sm:$0xff]  }
 0x70e   : > { %13538 = vmatpush1.bf16.msra.mxu0 %v16650_v6  ;;  %v16732_v6 = vld [vmem:[#allocation5 + $0x530] ss:$16 sps:$4 sm:$0xff]  }
 0x70f   : > { %13579 = vmatpush1.bf16.msra.mxu1 %v16653_v27  ;;  %13539 = vmatprep.subr.bf16.mxu0 %v16658_v1  ;;  %v16735_v27 = vld [vmem:[#allocation5 + $0x538] ss:$16 sps:$4 sm:$0xff]   ;;  %v16740_v1 = vld [vmem:[#allocation5 + $0x514] ss:$16 sps:$4 sm:$0xff]  }
 0x710   : > { %13580 = vmatprep.subr.bf16.mxu1 %v16661_v53  ;;  %v16743_v53 = vld [vmem:[#allocation5 + $0x51c] ss:$16 sps:$4 sm:$0xff]  }
 0x712   : > { %13540 = vmatpush1.bf16.msra.mxu0 %v16656_v4  ;;  %v16738_v4 = vld [vmem:[#allocation5 + $0x510] ss:$16 sps:$4 sm:$0xff]  }
 0x713   : > { %13581 = vmatpush1.bf16.msra.mxu1 %v16659_v58  ;;  %13541 = vmatprep.subr.bf16.mxu0 %v16664_v29  ;;  %v16741_v58 = vld [vmem:[#allocation5 + $0x518] ss:$16 sps:$4 sm:$0xff]   ;;  %v16746_v29 = vld [vmem:[#allocation5 + $0x4f4] ss:$16 sps:$4 sm:$0xff]  }
 0x714   : > { %13582 = vmatprep.subr.bf16.mxu1 %v16667_v36  ;;  %v16749_v36 = vld [vmem:[#allocation5 + $0x4fc] ss:$16 sps:$4 sm:$0xff]  }
 0x716   : > { %13542 = vmatpush1.bf16.msra.mxu0 %v16662_v60  ;;  %v16744_v60 = vld [vmem:[#allocation5 + $0x4f0] ss:$16 sps:$4 sm:$0xff]  }
 0x717   : > { %13583 = vmatpush1.bf16.msra.mxu1 %v16665_v32  ;;  %13543 = vmatprep.subr.bf16.mxu0 %v16670_v16  ;;  %v16747_v32 = vld [vmem:[#allocation5 + $0x4f8] ss:$16 sps:$4 sm:$0xff]   ;;  %v16752_v16 = vld [vmem:[#allocation5 + $0x4d4] ss:$16 sps:$4 sm:$0xff]  }
 0x718   : > { %13584 = vmatprep.subr.bf16.mxu1 %v16673_v5  ;;  %v16755_v5 = vld [vmem:[#allocation5 + $0x4dc] ss:$16 sps:$4 sm:$0xff]  }
 0x71a   : > { %13544 = vmatpush1.bf16.msra.mxu0 %v16668_v21  ;;  %v16750_v21 = vld [vmem:[#allocation5 + $0x4d0] ss:$16 sps:$4 sm:$0xff]  }
 0x71b   : > { %13585 = vmatpush1.bf16.msra.mxu1 %v16671_v49  ;;  %13545 = vmatprep.subr.bf16.mxu0 %v16676_v0  ;;  %v16753_v49 = vld [vmem:[#allocation5 + $0x4d8] ss:$16 sps:$4 sm:$0xff]   ;;  %v16758_v0 = vld [vmem:[#allocation5 + $0x4b4] ss:$16 sps:$4 sm:$0xff]  }
 0x71c   : > { %13586 = vmatprep.subr.bf16.mxu1 %v16679_v39  ;;  %v16761_v39 = vld [vmem:[#allocation5 + $0x4bc] ss:$16 sps:$4 sm:$0xff]  }
 0x71e   : > { %13546 = vmatpush1.bf16.msra.mxu0 %v16674_v2  ;;  %v13668_v2 = vld [vmem:[#allocation5 + $0x630] sm:$0xff] }
 0x71f   : > { %13587 = vmatpush1.bf16.msra.mxu1 %v16677_v62  ;;  %13547 = vmatprep.subr.bf16.mxu0 %v16682_v33  ;;  %v13669_v62 = vld [vmem:[#allocation5 + $0x638] sm:$0xff]  ;;  %v16756_v33 = vld [vmem:[#allocation5 + $0x4b0] ss:$16 sps:$4 sm:$0xff]   ;;  %v16278_v61 = vcombine.high %v13668_v2, %v13668_v2  ;;  %v16277_v28 = vcombine.low %v13668_v2, %v13668_v2  ;;  %v16817_v2 = vld [vmem:[%s21986_s7 + $0x88] sm:$0xff]  }
 0x720   : > { %13588 = vmatprep.subr.bf16.mxu1 %v16685_v42  ;;  %v16759_v42 = vld [vmem:[#allocation5 + $0x4b8] ss:$16 sps:$4 sm:$0xff]  }
 0x722   : > { %13548 = vmatpush1.bf16.msra.mxu0 %v16680_v52  ;;  %v16280_v52 = vcombine.high %v13669_v62, %v13669_v62 }
 0x723   : > { %13589 = vmatpush1.bf16.msra.mxu1 %v16683_v40  ;;  %16225 = vmatprep.subr.msk.bf16.mxu0 %vm12775_vm2, %v16222_v45  ;;  %v16279_v40 = vcombine.low %v13669_v62, %v13669_v62  ;;  %v13929_v45 = vsel %vm12775_vm2, %v16277_v28, 0  ;;  %v16818_v62 = vld [vmem:[%s21986_s7 + $0x40] sm:$0xff]  }
 0x724   : > { %16227 = vmatprep.subr.msk.bf16.mxu1 %vm12775_vm2, %v16224_v12 }
 0x725   : > { %v13935_v12 = vsel %vm12775_vm2, %v16279_v40, 0 }
 0x726   : > { %13556 = vmatpush2.bf16.msra.mxu0 %v13522_v26  ;;  %v16766_v26 = vld [vmem:[#allocation5 + $0x610] ss:$16 sps:$4 sm:$0xff]  }
 0x727   : > { %13597 = vmatpush2.bf16.msra.mxu1 %v13528_v37  ;;  %13557 = vmatprep.subr.bf16.mxu0 %v16692_v44  ;;  %v16769_v44 = vld [vmem:[#allocation5 + $0x618] ss:$16 sps:$4 sm:$0xff]   ;;  %v16774_v37 = vld [vmem:[#allocation5 + $0x5f4] ss:$16 sps:$4 sm:$0xff]  }
 0x728   : > { %13598 = vmatprep.subr.bf16.mxu1 %v16695_v55  ;;  %v16777_v55 = vld [vmem:[#allocation5 + $0x5fc] ss:$16 sps:$4 sm:$0xff]  }
 0x72a   : > { %13558 = vmatpush2.bf16.msra.mxu0 %v16690_v56  ;;  %v16772_v56 = vld [vmem:[#allocation5 + $0x5f0] ss:$16 sps:$4 sm:$0xff]  }
 0x72b   : > { %13599 = vmatpush2.bf16.msra.mxu1 %v16693_v23  ;;  %13559 = vmatprep.subr.bf16.mxu0 %v16698_v8  ;;  %v16775_v23 = vld [vmem:[#allocation5 + $0x5f8] ss:$16 sps:$4 sm:$0xff]   ;;  %v16780_v8 = vld [vmem:[#allocation5 + $0x5d4] ss:$16 sps:$4 sm:$0xff]  }
 0x72c   : > { %13600 = vmatprep.subr.bf16.mxu1 %v16701_v3  ;;  %v16783_v3 = vld [vmem:[#allocation5 + $0x5dc] ss:$16 sps:$4 sm:$0xff]  }
 0x72e   : > { %13560 = vmatpush2.bf16.msra.mxu0 %v16696_v34  ;;  %v16778_v34 = vld [vmem:[#allocation5 + $0x5d0] ss:$16 sps:$4 sm:$0xff]  }
 0x72f   : > { %13601 = vmatpush2.bf16.msra.mxu1 %v16699_v31  ;;  %13561 = vmatprep.subr.bf16.mxu0 %v16704_v59  ;;  %v16781_v31 = vld [vmem:[#allocation5 + $0x5d8] ss:$16 sps:$4 sm:$0xff]   ;;  %v16786_v59 = vld [vmem:[#allocation5 + $0x5b4] ss:$16 sps:$4 sm:$0xff]  }
 0x730   : > { %13602 = vmatprep.subr.bf16.mxu1 %v16707_v9  ;;  %v16789_v9 = vld [vmem:[#allocation5 + $0x5bc] ss:$16 sps:$4 sm:$0xff]  }
 0x732   : > { %13562 = vmatpush2.bf16.msra.mxu0 %v16702_v50  ;;  %v16784_v50 = vld [vmem:[#allocation5 + $0x5b0] ss:$16 sps:$4 sm:$0xff]  }
 0x733   : > { %13603 = vmatpush2.bf16.msra.mxu1 %v16705_v10  ;;  %13563 = vmatprep.subr.bf16.mxu0 %v16710_v48  ;;  %v16787_v10 = vld [vmem:[#allocation5 + $0x5b8] ss:$16 sps:$4 sm:$0xff]   ;;  %v13672_v48 = vrot.slane %v21769_v11, 4 }
 0x734   : > { %13604 = vmatprep.subr.bf16.mxu1 %v16713_v7  ;;  %v16790_v7 = vld [vmem:[%s21986_s7 + $0x78] sm:$0xff]  }
 0x736   : > { %13564 = vmatpush2.bf16.msra.mxu0 %v16708_v54  ;;  %v16791_v54 = vld [vmem:[%s21986_s7 + $0xf8] sm:$0xff]  }
 0x737   : > { %13605 = vmatpush2.bf16.msra.mxu1 %v16711_v20  ;;  %13940 = vmatprep.subr.bf16.mxu0 %v16716_v41  ;;  %v16792_v20 = vld [vmem:[%s21986_s7 + $0x38] sm:$0xff]  }
 0x738   : > { %13981 = vmatprep.subr.bf16.mxu1 %v16719_v19  ;;  %v16793_v41 = vld [vmem:[%s21986_s7 + $0xb8] sm:$0xff]   ;;  %v16795_v19 = vld [vmem:[%s21986_s7 + $0xf0] sm:$0xff]  }
 0x739   : > { %13566 = vmatmul.mubr.bf16.vlgmr.msra.gmra.mxu0 %v21769_v11 }
 0x73a   : > { %13607 = vmatmul.mubr.bf16.vlgmr.msra.gmra.mxu1 %v21769_v11  ;;  %13941 = vmatpush1.bf16.msra.mxu0 %v16714_v46  ;;  %v16794_v11 = vld [vmem:[%s21986_s7 + $0x70] sm:$0xff]  }
 0x73b   : > { %16282 = vmatprep.mubr.msk.bf16.mxu0 %vm12771_vm3, %v13673_v47  ;;  %13982 = vmatpush1.bf16.msra.mxu1 %v16717_v30  ;;  %v16796_v46 = vld [vmem:[%s21986_s7 + $0x30] sm:$0xff]  }
 0x73c   : > { %16284 = vmatprep.mubr.msk.bf16.mxu1 %vm12771_vm3, %v13673_v47  ;;  %13942 = vmatprep.subr.bf16.mxu0 %v16722_v17  ;;  %v16797_v30 = vld [vmem:[%s21986_s7 + $0xb0] sm:$0xff]   ;;  %v16798_v17 = vld [vmem:[%s21986_s7 + $0x68] sm:$0xff]  }
 0x73d   : > { %13983 = vmatprep.subr.bf16.mxu1 %v16725_v14  ;;  %v16799_v47 = vld [vmem:[%s21986_s7 + $0xe8] sm:$0xff]  }
 0x73e   : > { %13943 = vmatpush1.bf16.msra.mxu0 %v16720_v24  ;;  %v16800_v14 = vld [vmem:[%s21986_s7 + $0x28] sm:$0xff]  }
 0x73f   : > { %13984 = vmatpush1.bf16.msra.mxu1 %v16723_v43  ;;  %13944 = vmatprep.subr.bf16.mxu0 %v16728_v51  ;;  %v16801_v24 = vld [vmem:[%s21986_s7 + $0xa8] sm:$0xff]   ;;  %v16802_v43 = vld [vmem:[%s21986_s7 + $0x60] sm:$0xff]  }
 0x740   : > { %13985 = vmatprep.subr.bf16.mxu1 %v16731_v38  ;;  %v16803_v51 = vld [vmem:[%s21986_s7 + $0xe0] sm:$0xff]  }
 0x741   : > { %v16804_v38 = vld [vmem:[%s21986_s7 + $0x20] sm:$0xff]  }
 0x742   : > { %13945 = vmatpush1.bf16.msra.mxu0 %v16726_v57  ;;  %v16805_v57 = vld [vmem:[%s21986_s7 + $0xa0] sm:$0xff]  }
 0x743   : > { %13986 = vmatpush1.bf16.msra.mxu1 %v16729_v15  ;;  %13946 = vmatprep.subr.bf16.mxu0 %v16734_v63  ;;  %v16806_v15 = vld [vmem:[%s21986_s7 + $0x58] sm:$0xff]  }
 0x744   : > { %13987 = vmatprep.subr.bf16.mxu1 %v16737_v18  ;;  %v16807_v63 = vld [vmem:[%s21986_s7 + $0xd8] sm:$0xff]  }
 0x745   : > { %v16808_v18 = vld [vmem:[%s21986_s7 + $0x18] sm:$0xff]  }
 0x746   : > { %13947 = vmatpush1.bf16.msra.mxu0 %v16732_v6  ;;  %v16809_v6 = vld [vmem:[%s21986_s7 + $0x98] sm:$0xff]  }
 0x747   : > { %13988 = vmatpush1.bf16.msra.mxu1 %v16735_v27  ;;  %13948 = vmatprep.subr.bf16.mxu0 %v16740_v1 }
 0x748   : > { %13989 = vmatprep.subr.bf16.mxu1 %v16743_v53 }
 0x74a   : > { %13949 = vmatpush1.bf16.msra.mxu0 %v16738_v4 }
 0x74b   : > { %13990 = vmatpush1.bf16.msra.mxu1 %v16741_v58  ;;  %13950 = vmatprep.subr.bf16.mxu0 %v16746_v29 }
 0x74c   : > { %13991 = vmatprep.subr.bf16.mxu1 %v16749_v36 }
 0x74e   : > { %13951 = vmatpush1.bf16.msra.mxu0 %v16744_v60 }
 0x74f   : > { %13992 = vmatpush1.bf16.msra.mxu1 %v16747_v32  ;;  %13952 = vmatprep.subr.bf16.mxu0 %v16752_v16  ;;  %v16810_v32 = vld [vmem:[%s21986_s7 + $0x50] sm:$0xff]  }
 0x750   : > { %13993 = vmatprep.subr.bf16.mxu1 %v16755_v5  ;;  %v16811_v16 = vld [vmem:[%s21986_s7 + $0xd0] sm:$0xff]  }
 0x751   : > { %v16812_v5 = vld [vmem:[%s21986_s7 + $0x10] sm:$0xff]  }
 0x752   : > { %13953 = vmatpush1.bf16.msra.mxu0 %v16750_v21  ;;  %v16813_v21 = vld [vmem:[%s21986_s7 + $0x90] sm:$0xff]  }
 0x753   : > { %13994 = vmatpush1.bf16.msra.mxu1 %v16753_v49  ;;  %13954 = vmatprep.subr.bf16.mxu0 %v16758_v0  ;;  %v16814_v49 = vld [vmem:[%s21986_s7 + $0x48] sm:$0xff]  }
 0x754   : > { %13995 = vmatprep.subr.bf16.mxu1 %v16761_v39  ;;  %v16815_v0 = vld [vmem:[%s21986_s7 + $0xc8] sm:$0xff]  }
 0x755   : > { %v16816_v39 = vld [vmem:[%s21986_s7 + $0x8] sm:$0xff]  }
 0x756   : > { %13955 = vmatpush1.bf16.msra.mxu0 %v16756_v33  ;;  %v16819_v33 = vld [vmem:[%s21986_s7 + $0xc0] sm:$0xff]  }
 0x757   : > { %13996 = vmatpush1.bf16.msra.mxu1 %v16759_v42  ;;  %16281 = vmatprep.subr.msk.bf16.mxu0 %vm12775_vm2, %v16278_v61  ;;  %v16820_v42 = vld [vmem:[%s21986_s7] sm:$0xff]  }
 0x758   : > { %16283 = vmatprep.subr.msk.bf16.mxu1 %vm12775_vm2, %v16280_v52  ;;  %v16821_v61 = vld [vmem:[%s21986_s7 + $0x80] sm:$0xff]  }
 0x75a   : > { %13963 = vmatpush2.bf16.msra.mxu0 %v13929_v45 }
 0x75b   : > { %14004 = vmatpush2.bf16.msra.mxu1 %v13935_v12  ;;  %13964 = vmatprep.subr.bf16.mxu0 %v16768_v13 }
 0x75c   : > { %14005 = vmatprep.subr.bf16.mxu1 %v16771_v25 }
 0x75e   : > { %13965 = vmatpush2.bf16.msra.mxu0 %v16766_v26 }
 0x75f   : > { %14006 = vmatpush2.bf16.msra.mxu1 %v16769_v44  ;;  %13966 = vmatprep.subr.bf16.mxu0 %v16774_v37 }
 0x760   : > { %14007 = vmatprep.subr.bf16.mxu1 %v16777_v55 }
 0x762   : > { %13967 = vmatpush2.bf16.msra.mxu0 %v16772_v56 }
 0x763   : > { %14008 = vmatpush2.bf16.msra.mxu1 %v16775_v23  ;;  %13968 = vmatprep.subr.bf16.mxu0 %v16780_v8 }
 0x764   : > { %14009 = vmatprep.subr.bf16.mxu1 %v16783_v3 }
 0x766   : > { %13969 = vmatpush2.bf16.msra.mxu0 %v16778_v34 }
 0x767   : > { %14010 = vmatpush2.bf16.msra.mxu1 %v16781_v31  ;;  %13970 = vmatprep.subr.bf16.mxu0 %v16786_v59 }
 0x768   : > { %14011 = vmatprep.subr.bf16.mxu1 %v16789_v9 }
 0x76a   : > { %13971 = vmatpush2.bf16.msra.mxu0 %v16784_v50 }
 0x76b   : > { %14012 = vmatpush2.bf16.msra.mxu1 %v16787_v10  ;;  %16325 = vmatprep.subr.bf16.mxu0 %v16790_v7  ;;  %v14026_v10 = vld [vmem:[%s21985_s6] sm:$0xf] }
 0x76c   : > { %16347 = vmatprep.subr.bf16.mxu1 %v16791_v54  ;;  %v14031_v7 = vrot.slane %v14026_v10, %v22309_v22 }
 0x76d   : > { %13973 = vmatmul.mubr.bf16.vlgmr.msra.gmra.mxu0 %v13672_v48 }
 0x76e   : > { %14014 = vmatmul.mubr.bf16.vlgmr.msra.gmra.mxu1 %v13672_v48  ;;  %16326 = vmatpush3.bf16.msra.mxu0 %v16792_v20 }
 0x76f   : > { %16348 = vmatpush3.bf16.msra.mxu1 %v16793_v41  ;;  %16327 = vmatprep.subr.bf16.mxu0 %v16794_v11  ;;  %v22389_v41 = vld [vmem:[#allocation128_spill] sm:$0xff] }
 0x770   : > { %16349 = vmatprep.subr.bf16.mxu1 %v16795_v19  ;;  %v14039_v11 = vrot.slane %v14026_v10, %v22389_v41 }
 0x772   : > { %16328 = vmatpush3.bf16.msra.mxu0 %v16796_v46 }
 0x773   : > { %16350 = vmatpush3.bf16.msra.mxu1 %v16797_v30  ;;  %16329 = vmatprep.subr.bf16.mxu0 %v16798_v17  ;;  %v14035_v17 = vrot.slane %v14026_v10, %v18336_v35 }
 0x774   : > { %16351 = vmatprep.subr.bf16.mxu1 %v16799_v47 }
 0x776   : > { %16330 = vmatpush3.bf16.msra.mxu0 %v16800_v14 }
 0x777   : > { %16352 = vmatpush3.bf16.msra.mxu1 %v16801_v24  ;;  %16331 = vmatprep.subr.bf16.mxu0 %v16802_v43  ;;  %v22390_v43 = vld [vmem:[#allocation32_spill] sm:$0xff] }
 0x778   : > { %16353 = vmatprep.subr.bf16.mxu1 %v16803_v51  ;;  %v14043_v51 = vrot.slane %v14026_v10, %v22390_v43 }
 0x77a   : > { %16332 = vmatpush3.bf16.msra.mxu0 %v16804_v38 }
 0x77b   : > { %16354 = vmatpush3.bf16.msra.mxu1 %v16805_v57  ;;  %16333 = vmatprep.subr.bf16.mxu0 %v16806_v15 }
 0x77c   : > { %16355 = vmatprep.subr.bf16.mxu1 %v16807_v63 }
 0x77e   : > { %16334 = vmatpush3.bf16.msra.mxu0 %v16808_v18 }
 0x77f   : > { %16356 = vmatpush3.bf16.msra.mxu1 %v16809_v6  ;;  %16335 = vmatprep.subr.bf16.mxu0 %v16810_v32 }
 0x780   : > { %16357 = vmatprep.subr.bf16.mxu1 %v16811_v16 }
 0x782   : > { %16336 = vmatpush3.bf16.msra.mxu0 %v16812_v5 }
 0x783   : > { %16358 = vmatpush3.bf16.msra.mxu1 %v16813_v21  ;;  %16337 = vmatprep.subr.bf16.mxu0 %v16814_v49 }
 0x784   : > { %16359 = vmatprep.subr.bf16.mxu1 %v16815_v0  ;;  %v16285_v0 = vld [vmem:[%s21987_s8] ss:$0 sm:$0xff] }
 0x786   : > { %16338 = vmatpush3.bf16.msra.mxu0 %v16816_v39 }
 0x787   : > { %16360 = vmatpush3.bf16.msra.mxu1 %v16817_v2  ;;  %16339 = vmatprep.subr.bf16.mxu0 %v16818_v62 }
 0x788   : > { %16361 = vmatprep.subr.bf16.mxu1 %v16819_v33 }
 0x78a   : > { %16340 = vmatpush3.bf16.msra.mxu0 %v16820_v42 }
 0x78b   : > { %16362 = vmatpush3.bf16.msra.mxu1 %v16821_v61 }
 0x791   : > { %v12822_v27 = vpop.f32.mrf.mxu0  ;;  %v12863_v1 = vpop.f32.mrf.mxu1 }
 0x793   : > { %v12824_v53 = vpop.f32.mrf.mxu0  ;;  %v12865_v4 = vpop.f32.mrf.mxu1 }
 0x795   : > { %v12826_v58 = vpop.f32.mrf.mxu0  ;;  %v12867_v29 = vpop.f32.mrf.mxu1 }
 0x797   : > { %v12827_v36 = vpop.f32.mrf.mxu0  ;;  %v12868_v60 = vpop.f32.mrf.mxu1 }
 0x7c5   : > { %v13169_v28 = vpop.f32.mrf.mxu0  ;;  %v13210_v52 = vpop.f32.mrf.mxu1 }
 0x7c6   : > { %v13170_v40 = vadd.f32 %v13169_v28, %v12822_v27  ;;  %v13211_v45 = vadd.f32 %v13210_v52, %v12863_v1 }
 0x7c7   : > { %v13171_v13 = vpop.f32.mrf.mxu0  ;;  %v13212_v12 = vpop.f32.mrf.mxu1 }
 0x7c8   : > { %v13172_v25 = vadd.f32 %v13171_v13, %v12824_v53  ;;  %v13213_v26 = vadd.f32 %v13212_v12, %v12865_v4 }
 0x7c9   : > { %v13173_v44 = vpop.f32.mrf.mxu0  ;;  %v13214_v37 = vpop.f32.mrf.mxu1 }
 0x7cb   : > { %v13174_v55 = vpop.f32.mrf.mxu0  ;;  %v13215_v56 = vpop.f32.mrf.mxu1 }
 0x7f9   : > { %v13567_v23 = vpop.f32.mrf.mxu0 }
 0x7fa   : > { %v13608_v8 = vpop.f32.mrf.mxu1  ;;  %v13615_v48 = vadd.f32 %v13567_v23, %v13170_v40 }
 0x7fb   : > { %v13569_v3 = vpop.f32.mrf.mxu0  ;;  %v13617_v54 = vadd.f32 %v13608_v8, %v13211_v45 }
 0x7fc   : > { %v13610_v34 = vpop.f32.mrf.mxu1  ;;  %v13616_v19 = vadd.f32 %v13569_v3, %v13172_v25 }
 0x7fd   : > { %v13571_v31 = vpop.f32.mrf.mxu0  ;;  %v13618_v47 = vadd.f32 %v13610_v34, %v13213_v26 }
 0x7fe   : > { %v13612_v59 = vpop.f32.mrf.mxu1 }
 0x7ff   : > { %v13572_v9 = vpop.f32.mrf.mxu0 }
 0x800   : > { %v13613_v50 = vpop.f32.mrf.mxu1 }
 0x82d   : > { %v13974_v20 = vpop.f32.mrf.mxu0 }
 0x82e   : > { %v14022_v46 = vadd.f32 %v13974_v20, %v13615_v48  ;;  %v14015_v30 = vpop.f32.mrf.mxu1 }
 0x82f   : > { %v14024_v14 = vadd.f32 %v14015_v30, %v13617_v54  ;;  %v13976_v24 = vpop.f32.mrf.mxu0 }
 0x830   : > { %v14048_v38 = vadd.f32 %v14031_v7, %v14022_v46  ;;  %v14023_v57 = vadd.f32 %v13976_v24, %v13616_v19  ;;  %v14017_v15 = vpop.f32.mrf.mxu1 }
 0x831   : > { %v14050_v63 = vadd.f32 %v14039_v11, %v14024_v14  ;;  %v14025_v18 = vadd.f32 %v14017_v15, %v13618_v47  ;;  %v13978_v22 = vpop.f32.mrf.mxu0 }
 0x832   : > { %v14049_v6 = vadd.f32 %v14035_v17, %v14023_v57  ;;  %v14019_v27 = vpop.f32.mrf.mxu1  ;;  %v14052_v1 = vmax.f32 %v14048_v38, 0.0 }
 0x833   : > { %v14051_v53 = vadd.f32 %v14043_v51, %v14025_v18  ;;  %v13979_v4 = vpop.f32.mrf.mxu0  ;;  %v14054_v58 = vmax.f32 %v14050_v63, 0.0 }
 0x834   : > { %v14053_v29 = vmax.f32 %v14049_v6, 0.0  ;;  %v14020_v35 = vpop.f32.mrf.mxu1  ;;  %v14056_v32 = vpack.c.bf16 %v14052_v1, %v14052_v1 }
 0x835   : > { %v14055_v36 = vmax.f32 %v14051_v53, 0.0  ;;  %v14058_v5 = vpack.c.bf16 %v14054_v58, %v14054_v58 }
 0x836   : > { %v14057_v60 = vpack.c.bf16 %v14053_v29, %v14053_v29 }
 0x837   : > { %v14059_v16 = vpack.c.bf16 %v14055_v36, %v14055_v36 }
 0x838   : > { %14355 = vmatprep.mubr.bf16.mxu0 %v14057_v60 }
 0x839   : > { %14395 = vmatprep.mubr.bf16.mxu1 %v14059_v16  ;;  %14356 = vmatmul.mubr.bf16.vlgmr.msra.gmra.mxu0 %v14056_v32 }
 0x83a   : > { %14396 = vmatmul.mubr.bf16.vlgmr.msra.gmra.mxu1 %v14058_v5 }
 0x8f9   : > { %v16341_v21 = vpop.f32.mrf.mxu0 }
 0x8fa   : > { %v16363_v49 = vpop.f32.mrf.mxu1 }
 0x8fb   : > { %v16342_v39 = vpop.f32.mrf.mxu0 }
 0x8fc   : > { %v16343_v2 = vadd.f32 %v16342_v39, %v16341_v21  ;;  %v16364_v62 = vpop.f32.mrf.mxu1 }
 0x8fd   : > { %v16344_v33 = vpop.f32.mrf.mxu0  ;;  %v16365_v61 = vadd.f32 %v16364_v62, %v16363_v49 }
 0x8fe   : > { %v14358_v42 = vadd.f32 %v16343_v2, %v16285_v0  ;;  %v16366_v28 = vpop.f32.mrf.mxu1 }
 0x8ff   : > { %v16345_v52 = vpop.f32.mrf.mxu0 }
 0x900   : > { %v14398_v40 = vadd.f32 %v16365_v61, %v14358_v42  ;;  %v16367_v45 = vpop.f32.mrf.mxu1 }
 0x902   : > { %v14404_v13 = vsub.f32 0.0, %v14398_v40  ;;  %14403 = vst [vmem:[%s396_s15] sm:$0xff] %v14398_v40 }
 0x903   : > { %16956 = shalt.err (!%p16953_p3)
}
 0x904   : > { %s16957_s15 = scalar_lea.hbm %s21917_s12, 128  ;;  %s16961_s21 = scalar_lea.hbm %s21989_s10, 256 }
 0x905   : > { %p16958_p2 = scmp.ne.s32.totalorder %s21917_s12, %s16957_s15  ;;  %p16962_p6 = scmp.lt.s32.totalorder %s21917_s12, %s21989_s10 }
 0x906   : > { %p16963_p9 = scmp.lt.s32.totalorder %s16961_s21, %s16957_s15 }
 0x907   : > { %p16959_p4 = pnand %p16958_p2, %p17144_p5 }
 0x908   : > { %p16964_p10 = por %p16963_p9, %p16962_p6 }
 0x909   : > { %p16960_p13 = pneg %p16959_p4 }
 0x90b   : > { %p16965_p12 = pnand %p16964_p10, %p16960_p13 }
 0x90d   : > { %16968 = shalt.err (!%p16965_p12)
}
 0x90e   : > { %16378 = dma.vmem_to_hbm [thread:$0]  (%p17144_p5), %s14444_s22, 128, %s21917_s12, %s14417_s18   ;;  %v14405_v12 = vmul.f32 1.442695, %v14404_v13 }
 0x90f   : > { %s22391_s20 = sshll.u32 %s21903_s30, 3  ;;  %s22392_s29 = sshll.u32 %s17127_s17, 7 }
 0x910   : > { %16822 = vpow2.f32 %v14405_v12  ;;  %s389_s26 = scalar_lea.vmem [#allocation7], %s22391_s20  ;;  %s21943_s25 = scalar_lea.hbm %s21988_s9, %s22392_s29 }
 0x911   : > { %s14430_s27 = sshll.u32 %s389_s26, 4  ;;  %s14412_s28 = scalar_lea.sflag [#allocation4], %s21903_s30  ;;  %s14431_s27 = int_to_ptr.vmem [resolvable:$true] %s14430_s27 }
 0x912   : > { %s16969_s21 = scalar_lea.vmem %s14431_s27, 128  ;;  %s17050_s22 = smov [#allocation7]  }
 0x913   : > { %p16970_p7 = scmp.ne.s32.totalorder %s14431_s27, %s16969_s21  ;;  %s16973_s12 = sshll.u32 %s17050_s22, 4  ;;  %s16974_s12 = int_to_ptr.vmem [resolvable:$false] %s16973_s12 }
 0x914   : > { %s16975_s18 = scalar_lea.vmem %s16974_s12, 256  ;;  %p16976_p0 = scmp.lt.s32.totalorder %s14431_s27, %s16974_s12 }
 0x915   : > { %p16971_p8 = pnand %p16970_p7, %p17144_p5  ;;  %p16977_p1 = scmp.lt.s32.totalorder %s16975_s18, %s16969_s21 }
 0x917   : > { %p16972_p11 = pneg %p16971_p8  ;;  %p16978_p3 = por %p16977_p1, %p16976_p0 }
 0x919   : > { %p16979_p2 = pnand %p16978_p3, %p16972_p11 }
 0x91d   : > { %v16823_v25 = vpop.eup %16822 }
 0x91e   : > { %v14407_v26 = vadd.f32 1.0, %v16823_v25 }
 0x920   : > { %16824 = vrcp.f32 %v14407_v26 }
 0x92d   : > { %v16825_v44 = vpop.eup %16824 }
 0x92e   : > { %14410 = vst [vmem:[%s389_s26] sm:$0xff] %v16825_v44 }
 0x92f   : > { %16982 = shalt.err (!%p16979_p2)
}
 0x930   : > { %s16983_s17 = scalar_lea.hbm %s21943_s25, 128  ;;  %s16987_s26 = scalar_lea.hbm %s21988_s9, 256 }
 0x931   : > { %p16984_p4 = scmp.ne.s32.totalorder %s21943_s25, %s16983_s17  ;;  %p16988_p9 = scmp.lt.s32.totalorder %s21943_s25, %s21988_s9 }
 0x932   : > { %p16989_p10 = scmp.lt.s32.totalorder %s16987_s26, %s16983_s17 }
 0x933   : > { %p16985_p13 = pnand %p16984_p4, %p17144_p5 }
 0x934   : > { %p16990_p12 = por %p16989_p10, %p16988_p9 }
 0x935   : > { %p16986_p6 = pneg %p16985_p13 }
 0x937   : > { %p16991_p7 = pnand %p16990_p12, %p16986_p6 }
 0x939   : > { %16994 = shalt.err (!%p16991_p7)
}
 0x93a   : > { %16377 = dma.vmem_to_hbm [thread:$0]  (%p17144_p5), %s14431_s27, 128, %s21943_s25, %s14412_s28  }
 0x93b PF: > { %p16399_p8 = scmp.ge.s32.totalorder %s17041_s16, 2  ;;  %s14455_s15 = sand.u32 1, %s17029_s13  }
 0x93c   : > { %p22393_p11 = scmp.ne.s32.totalorder %s22081_s24, 0  ;;  %s14456_s21 = scalar_lea.sflag [#allocation4], %s14455_s15 }
 0x93e   : > { %p16389_p0 = pnand %p16399_p8, %p22393_p11 }
 0x940   : > { %p16390_p1 = pneg %p16389_p0 }
 0x942   : > { %17020 = dma.done.wait (%p16390_p1), %s14456_s21, 128  }
 0x943   : > { %17022 = vsyncadd (%p16390_p1), %s14456_s21, 4294967168  ;;  %s14465_s22 = scalar_lea.sflag [#allocation9], %s14455_s15 }
 0x944   : > { %17024 = dma.done.wait (%p16390_p1), %s14465_s22, 128  }
 0x945   : > { %17026 = vsyncadd (%p16390_p1), %s14465_s22, 4294967168  ;;  %s22394_s23 = sld [smem:[#allocation14_spill]]  ;;  %p26_p5 = scmp.ge.s32.totalorder %s17131_s19, 4  }
 0x946   : > { %s22395_s15 = sld [smem:[#allocation15_spill]]  ;;  %s22396_s13 = smov %s17033_s14 }
 0x947   : > { %s22398_s16 = smov %s17131_s19  ;;  %28 = sbr.rel (!%p26_p5) target bundleno = 7 (0x7), region = 120 }
 0x94b   : > { %s22397_s14 = smov %s22394_s23 }
 0x94c   :  { %14470 = vsyncpa [#allocation3], 1 }
 0x94d   :  { %14472 = vsyncpa [#allocation3 + $0x1], 1 }
 0x94e   :  { %14473 = vsyncpa [#allocation6], 1 }
 0x94f   :  { %14474 = vsyncpa [#allocation4], 1 }
 0x950   :  { %14476 = vsyncpa [#allocation4 + $0x1], 1 }
 0x951   :  { %14477 = vsyncpa [#allocation9], 1 }
 0x952   :  { %14479 = vsyncpa [#allocation9 + $0x1], 1 }

</bundles_post_ra>
